<compile_context>
chip_gen: v7x
topology: tpu7x:2x2x1
jax: 0.10.0
libtpu: 0.0.40
codegen_flags: <defaults>
</compile_context>

<pallas_src>
import numpy as np
import jax
import jax.numpy as jnp
from jax.experimental import pallas as pl
from jax.experimental.pallas import tpu as pltpu


TR3 = 32  # conv3 output rows per grid step (2 steps per image)


# ----------------------------------------------------------------------------
# Pallas kernel 1: full-K matmul + bias + ReLU (conv1 / conv2 im2col rows).
# ----------------------------------------------------------------------------
def _matmul_bias_relu_kernel(a_ref, w_ref, b_ref, o_ref):
    y = jnp.dot(a_ref[...], w_ref[...], preferred_element_type=jnp.float32)
    o_ref[...] = jnp.maximum(y + b_ref[...], 0.0).astype(o_ref.dtype)


def matmul_bias_act(a, w, b, *, tm=None, out_dtype=jnp.bfloat16):
    """relu(a @ w + b); w/b pre-padded so the output is lane-dense (N % 128 == 0)."""
    m, k = a.shape
    k2, n = w.shape
    assert k == k2 and n % 128 == 0 and b.shape == (1, n)
    if tm is None or tm >= m:
        tm = m
    assert m % tm == 0
    return pl.pallas_call(
        _matmul_bias_relu_kernel,
        out_shape=jax.ShapeDtypeStruct((m, n), out_dtype),
        grid_spec=pltpu.PrefetchScalarGridSpec(
            num_scalar_prefetch=0,
            grid=(m // tm,),
            in_specs=[
                pl.BlockSpec((tm, k), lambda i: (i, 0)),
                pl.BlockSpec((k, n), lambda i: (0, 0)),   # weight stays resident
                pl.BlockSpec((1, n), lambda i: (0, 0)),
            ],
            out_specs=pl.BlockSpec((tm, n), lambda i: (i, 0)),
        ),
        compiler_params=pltpu.CompilerParams(dimension_semantics=("parallel",)),
    )(a, w, b)


# ----------------------------------------------------------------------------
# Pallas kernel 2: conv3 (3x3, stride 2, pad 1) as a direct convolution.
# Input x3[n, iy, l, kx*32+ci] = PooledPadded[n, iy, 2*l+kx, ci]   (iy in [0,130))
# i.e. the adaptive-pool output, zero-padded by 1, with the three conv3 column
# taps pre-gathered into channel groups.  Each grid step computes TR3 output
# rows via 3 shift-matmuls (one per row tap); the whole per-image x3 block stays
# resident in VMEM (~1.6 MB) while only the output tile changes.
# ----------------------------------------------------------------------------
def _conv3_kernel(x_ref, w_ref, b_ref, o_ref):
    # x_ref: (1, 130, 64, 96)  w_ref: (3, 96, 128)  b_ref: (1, 128)
    # o_ref: (1, TR3, 64, 128)
    r0 = pl.multiple_of(pl.program_id(1) * (2 * TR3), 2 * TR3)
    v = x_ref[0, pl.ds(r0, 2 * TR3 + 2), :, :]          # (2*TR3+2, 64, 96)
    v = v.reshape(TR3 + 1, 2, 64, 96)                   # split rows by parity
    acc = jnp.dot(v[:TR3, 0].reshape(TR3 * 64, 96), w_ref[0],   # ky = 0
                  preferred_element_type=jnp.float32)
    acc = acc + jnp.dot(v[:TR3, 1].reshape(TR3 * 64, 96), w_ref[1],   # ky = 1
                        preferred_element_type=jnp.float32)
    acc = acc + jnp.dot(v[1:, 0].reshape(TR3 * 64, 96), w_ref[2],     # ky = 2
                        preferred_element_type=jnp.float32)
    y = jnp.maximum(acc + b_ref[...], 0.0)
    o_ref[...] = y.reshape(1, TR3, 64, 128).astype(o_ref.dtype)


def conv3_direct(x3, w3, b3):
    n = x3.shape[0]
    return pl.pallas_call(
        _conv3_kernel,
        out_shape=jax.ShapeDtypeStruct((n, 64, 64, 128), jnp.bfloat16),
        grid_spec=pltpu.PrefetchScalarGridSpec(
            num_scalar_prefetch=0,
            grid=(n, 64 // TR3),
            in_specs=[
                pl.BlockSpec((1, 130, 64, 96), lambda i, t: (i, 0, 0, 0)),
                pl.BlockSpec((3, 96, 128), lambda i, t: (0, 0, 0)),
                pl.BlockSpec((1, 128), lambda i, t: (0, 0)),
            ],
            out_specs=pl.BlockSpec((1, TR3, 64, 128), lambda i, t: (i, t, 0, 0)),
        ),
        compiler_params=pltpu.CompilerParams(
            dimension_semantics=("parallel", "parallel")),
    )(x3, w3, b3)


# ----------------------------------------------------------------------------
# Pallas kernel 3: conv4 (2x2, stride 2) + folded mlp1/mlp2 head, fused.
# The conv3 output is viewed (free, row-major reshape in the wrapper) as
# (N, 64, 32, 256): adjacent column pairs folded into the lane dim.  Row pairs
# are split in-kernel via a leading-dim reshape, giving two (1024, 256) matmuls.
# The head contribution  sum((relu(conv4), head_w))  is computed in the epilogue,
# so the conv4 feature map is never written to HBM.
# ----------------------------------------------------------------------------
def _conv4_head_kernel(x_ref, w_ref, b_ref, hw_ref, o_ref):
    # x_ref: (1, 64, 32, 256)  w_ref: (2, 256, 128)  b_ref: (1, 128)
    # hw_ref: (1024, 128) f32 head weight (NHWC order, zero for pad channels)
    # o_ref: (1, 8, 128) f32 (per-image head partial, bias added outside)
    v = x_ref[0].reshape(32, 2, 32, 256)                 # split rows by parity
    acc = jnp.dot(v[:, 0].reshape(32 * 32, 256), w_ref[0],      # ky = 0
                  preferred_element_type=jnp.float32)
    acc = acc + jnp.dot(v[:, 1].reshape(32 * 32, 256), w_ref[1],  # ky = 1
                        preferred_element_type=jnp.float32)
    y = jnp.maximum(acc + b_ref[...], 0.0)               # conv4 output tile (f32)
    o_ref[...] = jnp.broadcast_to(jnp.sum(y * hw_ref[...]), (1, 8, 128))


def conv4_head(x4, w4, b4, hw):
    n = x4.shape[0]
    return pl.pallas_call(
        _conv4_head_kernel,
        out_shape=jax.ShapeDtypeStruct((n, 8, 128), jnp.float32),
        grid_spec=pltpu.PrefetchScalarGridSpec(
            num_scalar_prefetch=0,
            grid=(n,),
            in_specs=[
                pl.BlockSpec((1, 64, 32, 256), lambda i: (i, 0, 0, 0)),
                pl.BlockSpec((2, 256, 128), lambda i: (0, 0, 0)),
                pl.BlockSpec((1, 128), lambda i: (0, 0)),
                pl.BlockSpec((1024, 128), lambda i: (0, 0)),
            ],
            out_specs=pl.BlockSpec((1, 8, 128), lambda i: (i, 0, 0)),
        ),
        compiler_params=pltpu.CompilerParams(dimension_semantics=("parallel",)),
    )(x4, w4, b4, hw)


# ----------------------------------------------------------------------------
# JAX glue: im2col (conv1/conv2), adaptive-pool tap gather (conv3 input), params.
# ----------------------------------------------------------------------------
def im2col(x, ksz, stride, pad):
    """x: (N,H,W,C) -> rows (N*Ho*Wo, k*k*C), tap order (ky, kx, ci)."""
    n, h, w, c = x.shape
    xp = jnp.pad(x, ((0, 0), (pad, pad), (pad, pad), (0, 0)))
    ho = (h + 2 * pad - ksz) // stride + 1
    wo = (w + 2 * pad - ksz) // stride + 1
    taps = []
    for ky in range(ksz):
        for kx in range(ksz):
            taps.append(jax.lax.slice(
                xp,
                (0, ky, kx, 0),
                (n, ky + stride * (ho - 1) + 1, kx + stride * (wo - 1) + 1, c),
                (1, stride, stride, 1)))
    col = jnp.stack(taps, axis=3)                        # (N, Ho, Wo, k*k, C)
    return col.reshape(n * ho * wo, ksz * ksz * c), (n, ho, wo)


def _pool_pad_indices(in_size, out_size, pad):
    """AdaptiveMaxPool window index pair per *zero-padded* output coordinate.
    Windows are <=2 wide (out > in); border coordinates map to the zero row."""
    o = np.arange(out_size)
    starts = (o * in_size) // out_size                   # floor(i*in/out)
    ends = -((-(o + 1) * in_size) // out_size)           # ceil((i+1)*in/out)
    a = starts
    b = np.minimum(starts + 1, ends - 1)
    zero = in_size                                       # index of appended zero row
    a = np.concatenate([[zero] * pad, a, [zero] * pad]).astype(np.int32)
    b = np.concatenate([[zero] * pad, b, [zero] * pad]).astype(np.int32)
    return a, b                                          # length out_size + 2*pad


def build_conv3_input(x):
    """x: (N, 9, 9, 32) conv2 output (real channels).
    Returns (N, 130, 64, 96) bf16: the AdaptiveMaxPool2d((128,128)) output,
    zero-padded by 1 (conv3 padding), with the three conv3 column taps gathered
    into channel groups: out[n, iy, l, kx*32:(kx+1)*32] = PooledPad[n, iy, 2l+kx]."""
    n, hi, wi, c = x.shape
    z = jnp.pad(x, ((0, 0), (0, 1), (0, 1), (0, 0)))     # zero row/col at index hi
    ra, rb = _pool_pad_indices(hi, 128, 1)               # padded rows, len 130
    ca, cb = _pool_pad_indices(wi, 128, 1)               # padded cols, len 130
    ri_a, ri_b = jnp.asarray(ra), jnp.asarray(rb)
    l = np.arange(64)
    groups = []
    for kx in range(3):
        ci_a = jnp.asarray(ca[2 * l + kx])
        ci_b = jnp.asarray(cb[2 * l + kx])

        def g(ri, ci):
            return jnp.take(jnp.take(z, ri, axis=1), ci, axis=2)

        grp = jnp.maximum(jnp.maximum(g(ri_a, ci_a), g(ri_a, ci_b)),
                          jnp.maximum(g(ri_b, ci_a), g(ri_b, ci_b)))
        groups.append(grp)                               # (N, 130, 64, 32)
    return jnp.concatenate(groups, axis=-1)              # (N, 130, 64, 96)


def fold_conv_bn(w, b, gamma, beta, mean, var, eps=1e-5):
    scale = gamma / jnp.sqrt(var + eps)
    return w * scale[:, None, None, None], beta + (b - mean) * scale


def pack_conv_matrix(w_f, b_f, *, cout_pad):
    """Flat im2col matmul weight, rows in (ky, kx, ci) order; lane-dense output."""
    cout, cin, k, _ = w_f.shape
    w_mat = jnp.transpose(w_f, (2, 3, 1, 0)).reshape(k * k * cin, cout)
    w_mat = jnp.pad(w_mat, ((0, 0), (0, cout_pad - cout)))
    b_mat = jnp.pad(b_f, ((0, cout_pad - cout),)).reshape(1, cout_pad)
    return w_mat.astype(jnp.bfloat16), b_mat.astype(jnp.float32)


def pack_conv3(w_f, b_f):
    """(64,32,3,3) -> (3, 96, 128): per-row-tap weight, rows = (kx, ci)."""
    cout, cin, k, _ = w_f.shape
    wt = jnp.transpose(w_f, (2, 3, 1, 0)).reshape(k, k * cin, cout)   # (3, 96, 64)
    w3 = jnp.pad(wt, ((0, 0), (0, 0), (0, 128 - cout)))
    b3 = jnp.pad(b_f, ((0, 128 - cout),)).reshape(1, 128)
    return w3.astype(jnp.bfloat16), b3.astype(jnp.float32)


def pack_conv4(w_f, b_f, *, cin_pad=128, cout_pad=128):
    """(64,64,2,2) -> (2, 256, 128): per-row-tap weight, rows = (kx, padded ci)."""
    cout, cin, k, _ = w_f.shape
    wt = jnp.transpose(w_f, (2, 3, 1, 0))                             # (2,2,64,64)
    wt = jnp.pad(wt, ((0, 0), (0, 0), (0, cin_pad - cin), (0, cout_pad - cout)))
    w4 = wt.reshape(k, k * cin_pad, cout_pad)                         # (2, 256, 128)
    b4 = jnp.pad(b_f, ((0, cout_pad - cout),)).reshape(1, cout_pad)
    return w4.astype(jnp.bfloat16), b4.astype(jnp.float32)


def init_params(key):
    keys = iter(jax.random.split(key, 32))
    nxt = lambda: next(keys)

    def conv_bn(cout, cin, k):
        w = 0.05 * jax.random.normal(nxt(), (cout, cin, k, k), jnp.float32)
        b = 0.05 * jax.random.normal(nxt(), (cout,), jnp.float32)
        gamma = 1.0 + 0.1 * jax.random.normal(nxt(), (cout,), jnp.float32)
        beta = 0.1 * jax.random.normal(nxt(), (cout,), jnp.float32)
        mean = 0.1 * jax.random.normal(nxt(), (cout,), jnp.float32)
        var = 1.0 + 0.1 * jnp.abs(jax.random.normal(nxt(), (cout,), jnp.float32))
        return fold_conv_bn(w, b, gamma, beta, mean, var)

    params = {}
    params["conv1"] = pack_conv_matrix(*conv_bn(130, 1, 3), cout_pad=256)
    params["conv2"] = pack_conv_matrix(*conv_bn(32, 130, 3), cout_pad=128)
    params["conv3"] = pack_conv3(*conv_bn(64, 32, 3))
    params["conv4"] = pack_conv4(*conv_bn(64, 64, 2))

    # mlp1 (64*32*32 -> 10) and mlp2 (10 -> 1): no nonlinearity in between, so
    # fold them at init into one f32 vector (exact) permuted to NHWC flatten order.
    C, Hf, Wf = 64, 32, 32
    w1 = 0.01 * jax.random.normal(nxt(), (10, C * Hf * Wf), jnp.float32)
    b1 = 0.01 * jax.random.normal(nxt(), (10,), jnp.float32)
    w2 = 0.1 * jax.random.normal(nxt(), (1, 10), jnp.float32)
    b2 = 0.1 * jax.random.normal(nxt(), (1,), jnp.float32)
    w_comb = (w2 @ w1).reshape(C, Hf, Wf)                # torch (c, h, w) flatten order
    w_comb = jnp.transpose(w_comb, (1, 2, 0))            # -> (h, w, c)
    w_comb = jnp.pad(w_comb, ((0, 0), (0, 0), (0, 128 - C)))
    params["head_w"] = w_comb.reshape(Hf * Wf, 128).astype(jnp.float32)
    params["head_b"] = (w2 @ b1 + b2).reshape(1, 1).astype(jnp.float32)
    return params


# ----------------------------------------------------------------------------
# Forward pass (mirrors H2E.forward).
# ----------------------------------------------------------------------------
def h2e_forward(x_nchw, params):
    n = x_nchw.shape[0]
    x = jnp.transpose(x_nchw, (0, 2, 3, 1)).astype(jnp.bfloat16)      # NHWC bf16

    # conv1 + BN + ReLU: im2col rows + lane-dense matmul (3 parallel M steps).
    col, (_, h1, w1) = im2col(x, 3, 1, 2)                             # (648, 9)
    y = matmul_bias_act(col, *params["conv1"], tm=216)                # (648, 256)
    y = y.reshape(n, h1, w1, 256)[..., :130]                          # real channels only

    # conv2 + BN + ReLU (single full block).
    col, (_, h2, w2) = im2col(y, 3, 2, 1)                             # (162, 1170)
    y = matmul_bias_act(col, *params["conv2"], tm=None)               # (162, 128)
    y = y.reshape(n, h2, w2, 128)[..., :32]                           # (n, 9, 9, 32)

    # AdaptiveMaxPool2d((128,128)) + conv3 column-tap gather (tiny-data XLA glue),
    # then conv3 as a direct-conv Pallas kernel (no im2col / col array in HBM).
    x3 = build_conv3_input(y)                                         # (n, 130, 64, 96)
    y = conv3_direct(x3, *params["conv3"])                            # (n, 64, 64, 128)

    # conv4 + folded mlp1/mlp2 head in one kernel.  The reshape is a free
    # row-major view that folds adjacent column pairs into the lane dimension.
    x4 = y.reshape(n, 64, 32, 256)
    out = conv4_head(x4, *params["conv4"], params["head_w"])          # (n, 8, 128)
    return out[:, 0, :1] + params["head_b"]                           # (n, 1) f32


if __name__ == "__main__":
    key = jax.random.PRNGKey(0)
    k_x, k_p = jax.random.split(key)
    # Input consistent with the module (mlp1 expects 64*32*32 => 16x16 input).
    x = jax.random.normal(k_x, (2, 1, 16, 16), jnp.float32)
    params = init_params(k_p)

    fwd = jax.jit(h2e_forward)
    out = fwd(x, params)
    jax.block_until_ready(out)
    assert out.shape == (2, 1) and out.dtype == jnp.float32
    print("KERNEL_OK")
</pallas_src>

<mosaic_0001>
module attributes {stable_mosaic.version = 11 : i64} {
  func.func @_matmul_bias_relu_kernel(%arg0: i32, %arg1: memref<216x9xbf16, #tpu.memory_space<vmem>>, %arg2: memref<9x256xbf16, #tpu.memory_space<vmem>>, %arg3: memref<1x256xf32, #tpu.memory_space<vmem>>, %arg4: memref<216x256xbf16, #tpu.memory_space<vmem>>) attributes {dimension_semantics = [#tpu.dimension_semantics<parallel>], iteration_bounds = array<i64: 3>, scalar_prefetch = 0 : i64, scratch_operands = 0 : i64, tpu.core_type = #tpu.core_type<tc>, window_params = [{transform_indices = @transform_0, window_bounds = array<i64: 216, 9>}, {pipeline_mode = #tpu.pipeline_mode<synchronous>, transform_indices = @transform_1, window_bounds = array<i64: 9, 256>}, {pipeline_mode = #tpu.pipeline_mode<synchronous>, transform_indices = @transform_2, window_bounds = array<i64: 1, 256>}, {transform_indices = @transform_3, window_bounds = array<i64: 216, 256>}]} {
    %c0 = arith.constant 0 : index
    %c0_0 = arith.constant 0 : index
    %0 = vector.load %arg1[%c0, %c0_0] : memref<216x9xbf16, #tpu.memory_space<vmem>>, vector<216x9xbf16>
    %c0_1 = arith.constant 0 : index
    %c0_2 = arith.constant 0 : index
    %1 = vector.load %arg2[%c0_1, %c0_2] : memref<9x256xbf16, #tpu.memory_space<vmem>>, vector<9x256xbf16>
    %cst = arith.constant dense<0.000000e+00> : vector<216x256xf32>
    %2 = tpu.matmul %0, %1, %cst {dimension_numbers = #tpu.dot_dimension_numbers<[1], [0], [0], [1], [0, 0, 1, 1], [], []>} : vector<216x9xbf16>, vector<9x256xbf16>, vector<216x256xf32> -> vector<216x256xf32>
    %c0_3 = arith.constant 0 : index
    %c0_4 = arith.constant 0 : index
    %3 = vector.load %arg3[%c0_3, %c0_4] : memref<1x256xf32, #tpu.memory_space<vmem>>, vector<1x256xf32>
    %4 = vector.broadcast %3 : vector<1x256xf32> to vector<216x256xf32>
    %5 = arith.addf %2, %4 : vector<216x256xf32>
    %cst_5 = arith.constant 0.000000e+00 : f32
    %6 = vector.broadcast %cst_5 : f32 to vector<216x256xf32>
    %7 = arith.maximumf %5, %6 : vector<216x256xf32>
    %8 = arith.truncf %7 : vector<216x256xf32> to vector<216x256xbf16>
    %c0_6 = arith.constant 0 : index
    %c0_7 = arith.constant 0 : index
    %9 = vector.load %arg4[%c0_6, %c0_7] : memref<216x256xbf16, #tpu.memory_space<vmem>>, vector<216x256xbf16>
    tpu.vector_store %arg4[%c0_6, %c0_7], %8 {strides = array<i32>} : memref<216x256xbf16, #tpu.memory_space<vmem>>, vector<216x256xbf16>,
    return
  }
  func.func @transform_0(%arg0: i32) -> (i32, i32) {
    %c0_i32 = arith.constant 0 : i32
    %c0_i32_0 = arith.constant 0 : i32
    return %arg0, %c0_i32 : i32, i32
  }
  func.func @transform_1(%arg0: i32) -> (i32, i32) {
    %c0_i32 = arith.constant 0 : i32
    %c0_i32_0 = arith.constant 0 : i32
    %c0_i32_1 = arith.constant 0 : i32
    return %c0_i32, %c0_i32_0 : i32, i32
  }
  func.func @transform_2(%arg0: i32) -> (i32, i32) {
    %c0_i32 = arith.constant 0 : i32
    %c0_i32_0 = arith.constant 0 : i32
    %c0_i32_1 = arith.constant 0 : i32
    return %c0_i32, %c0_i32_0 : i32, i32
  }
  func.func @transform_3(%arg0: i32) -> (i32, i32) {
    %c0_i32 = arith.constant 0 : i32
    %c0_i32_0 = arith.constant 0 : i32
    return %arg0, %c0_i32 : i32, i32
  }
}

module attributes {stable_mosaic.version = 11 : i64} {
  func.func @_matmul_bias_relu_kernel(%arg0: i32, %arg1: memref<162x1170xbf16, #tpu.memory_space<vmem>>, %arg2: memref<1170x128xbf16, #tpu.memory_space<vmem>>, %arg3: memref<1x128xf32, #tpu.memory_space<vmem>>, %arg4: memref<162x128xbf16, #tpu.memory_space<vmem>>) attributes {dimension_semantics = [#tpu.dimension_semantics<parallel>], iteration_bounds = array<i64: 1>, scalar_prefetch = 0 : i64, scratch_operands = 0 : i64, tpu.core_type = #tpu.core_type<tc>, window_params = [{transform_indices = @transform_0, window_bounds = array<i64: 162, 1170>}, {pipeline_mode = #tpu.pipeline_mode<synchronous>, transform_indices = @transform_1, window_bounds = array<i64: 1170, 128>}, {pipeline_mode = #tpu.pipeline_mode<synchronous>, transform_indices = @transform_2, window_bounds = array<i64: 1, 128>}, {transform_indices = @transform_3, window_bounds = array<i64: 162, 128>}]} {
    %c0 = arith.constant 0 : index
    %c0_0 = arith.constant 0 : index
    %0 = vector.load %arg1[%c0, %c0_0] : memref<162x1170xbf16, #tpu.memory_space<vmem>>, vector<162x1170xbf16>
    %c0_1 = arith.constant 0 : index
    %c0_2 = arith.constant 0 : index
    %1 = vector.load %arg2[%c0_1, %c0_2] : memref<1170x128xbf16, #tpu.memory_space<vmem>>, vector<1170x128xbf16>
    %cst = arith.constant dense<0.000000e+00> : vector<162x128xf32>
    %2 = tpu.matmul %0, %1, %cst {dimension_numbers = #tpu.dot_dimension_numbers<[1], [0], [0], [1], [0, 0, 1, 1], [], []>} : vector<162x1170xbf16>, vector<1170x128xbf16>, vector<162x128xf32> -> vector<162x128xf32>
    %c0_3 = arith.constant 0 : index
    %c0_4 = arith.constant 0 : index
    %3 = vector.load %arg3[%c0_3, %c0_4] : memref<1x128xf32, #tpu.memory_space<vmem>>, vector<1x128xf32>
    %4 = vector.broadcast %3 : vector<1x128xf32> to vector<162x128xf32>
    %5 = arith.addf %2, %4 : vector<162x128xf32>
    %cst_5 = arith.constant 0.000000e+00 : f32
    %6 = vector.broadcast %cst_5 : f32 to vector<162x128xf32>
    %7 = arith.maximumf %5, %6 : vector<162x128xf32>
    %8 = arith.truncf %7 : vector<162x128xf32> to vector<162x128xbf16>
    %c0_6 = arith.constant 0 : index
    %c0_7 = arith.constant 0 : index
    %9 = vector.load %arg4[%c0_6, %c0_7] : memref<162x128xbf16, #tpu.memory_space<vmem>>, vector<162x128xbf16>
    tpu.vector_store %arg4[%c0_6, %c0_7], %8 {strides = array<i32>} : memref<162x128xbf16, #tpu.memory_space<vmem>>, vector<162x128xbf16>,
    return
  }
  func.func @transform_0(%arg0: i32) -> (i32, i32) {
    %c0_i32 = arith.constant 0 : i32
    %c0_i32_0 = arith.constant 0 : i32
    return %arg0, %c0_i32 : i32, i32
  }
  func.func @transform_1(%arg0: i32) -> (i32, i32) {
    %c0_i32 = arith.constant 0 : i32
    %c0_i32_0 = arith.constant 0 : i32
    %c0_i32_1 = arith.constant 0 : i32
    return %c0_i32, %c0_i32_0 : i32, i32
  }
  func.func @transform_2(%arg0: i32) -> (i32, i32) {
    %c0_i32 = arith.constant 0 : i32
    %c0_i32_0 = arith.constant 0 : i32
    %c0_i32_1 = arith.constant 0 : i32
    return %c0_i32, %c0_i32_0 : i32, i32
  }
  func.func @transform_3(%arg0: i32) -> (i32, i32) {
    %c0_i32 = arith.constant 0 : i32
    %c0_i32_0 = arith.constant 0 : i32
    return %arg0, %c0_i32 : i32, i32
  }
}

module attributes {stable_mosaic.version = 11 : i64} {
  func.func @_conv3_kernel(%arg0: i32, %arg1: i32, %arg2: memref<1x130x64x96xbf16, #tpu.memory_space<vmem>>, %arg3: memref<3x96x128xbf16, #tpu.memory_space<vmem>>, %arg4: memref<1x128xf32, #tpu.memory_space<vmem>>, %arg5: memref<1x32x64x128xbf16, #tpu.memory_space<vmem>>) attributes {dimension_semantics = [#tpu.dimension_semantics<parallel>, #tpu.dimension_semantics<parallel>], iteration_bounds = array<i64: 2, 2>, scalar_prefetch = 0 : i64, scratch_operands = 0 : i64, tpu.core_type = #tpu.core_type<tc>, window_params = [{transform_indices = @transform_0, window_bounds = array<i64: 1, 130, 64, 96>}, {pipeline_mode = #tpu.pipeline_mode<synchronous>, transform_indices = @transform_1, window_bounds = array<i64: 3, 96, 128>}, {pipeline_mode = #tpu.pipeline_mode<synchronous>, transform_indices = @transform_2, window_bounds = array<i64: 1, 128>}, {transform_indices = @transform_3, window_bounds = array<i64: 1, 32, 64, 128>}]} {
    %c64_i32 = arith.constant 64 : i32
    %0 = arith.muli %arg1, %c64_i32 : i32
    %1 = tpu.assume_multiple %0, 64 : i32
    %c0 = arith.constant 0 : index
    %2 = arith.index_cast %1 : i32 to index
    %c0_0 = arith.constant 0 : index
    %c0_1 = arith.constant 0 : index
    %3 = vector.load %arg2[%c0, %2, %c0_0, %c0_1] : memref<1x130x64x96xbf16, #tpu.memory_space<vmem>>, vector<1x66x64x96xbf16>
    %4 = vector.shape_cast %3 : vector<1x66x64x96xbf16> to vector<66x64x96xbf16>
    %5 = vector.shape_cast %4 : vector<66x64x96xbf16> to vector<33x2x64x96xbf16>
    %6 = vector.extract_strided_slice %5 {offsets = [0, 0, 0, 0], sizes = [32, 1, 64, 96], strides = [1, 1, 1, 1]} : vector<33x2x64x96xbf16> to vector<32x1x64x96xbf16>
    %7 = vector.shape_cast %6 : vector<32x1x64x96xbf16> to vector<32x64x96xbf16>
    %8 = vector.shape_cast %7 : vector<32x64x96xbf16> to vector<2048x96xbf16>
    %c0_2 = arith.constant 0 : index
    %c0_3 = arith.constant 0 : index
    %c0_4 = arith.constant 0 : index
    %9 = vector.load %arg3[%c0_2, %c0_3, %c0_4] : memref<3x96x128xbf16, #tpu.memory_space<vmem>>, vector<1x96x128xbf16>
    %10 = vector.shape_cast %9 : vector<1x96x128xbf16> to vector<96x128xbf16>
    %cst = arith.constant dense<0.000000e+00> : vector<2048x128xf32>
    %11 = tpu.matmul %8, %10, %cst {dimension_numbers = #tpu.dot_dimension_numbers<[1], [0], [0], [1], [0, 0, 1, 1], [], []>} : vector<2048x96xbf16>, vector<96x128xbf16>, vector<2048x128xf32> -> vector<2048x128xf32>
    %12 = vector.extract_strided_slice %5 {offsets = [0, 1, 0, 0], sizes = [32, 1, 64, 96], strides = [1, 1, 1, 1]} : vector<33x2x64x96xbf16> to vector<32x1x64x96xbf16>
    %13 = vector.shape_cast %12 : vector<32x1x64x96xbf16> to vector<32x64x96xbf16>
    %14 = vector.shape_cast %13 : vector<32x64x96xbf16> to vector<2048x96xbf16>
    %c1 = arith.constant 1 : index
    %c0_5 = arith.constant 0 : index
    %c0_6 = arith.constant 0 : index
    %15 = vector.load %arg3[%c1, %c0_5, %c0_6] : memref<3x96x128xbf16, #tpu.memory_space<vmem>>, vector<1x96x128xbf16>
    %16 = vector.shape_cast %15 : vector<1x96x128xbf16> to vector<96x128xbf16>
    %cst_7 = arith.constant dense<0.000000e+00> : vector<2048x128xf32>
    %17 = tpu.matmul %14, %16, %cst_7 {dimension_numbers = #tpu.dot_dimension_numbers<[1], [0], [0], [1], [0, 0, 1, 1], [], []>} : vector<2048x96xbf16>, vector<96x128xbf16>, vector<2048x128xf32> -> vector<2048x128xf32>
    %18 = arith.addf %11, %17 : vector<2048x128xf32>
    %19 = vector.extract_strided_slice %5 {offsets = [1, 0, 0, 0], sizes = [32, 1, 64, 96], strides = [1, 1, 1, 1]} : vector<33x2x64x96xbf16> to vector<32x1x64x96xbf16>
    %20 = vector.shape_cast %19 : vector<32x1x64x96xbf16> to vector<32x64x96xbf16>
    %21 = vector.shape_cast %20 : vector<32x64x96xbf16> to vector<2048x96xbf16>
    %c2 = arith.constant 2 : index
    %c0_8 = arith.constant 0 : index
    %c0_9 = arith.constant 0 : index
    %22 = vector.load %arg3[%c2, %c0_8, %c0_9] : memref<3x96x128xbf16, #tpu.memory_space<vmem>>, vector<1x96x128xbf16>
    %23 = vector.shape_cast %22 : vector<1x96x128xbf16> to vector<96x128xbf16>
    %cst_10 = arith.constant dense<0.000000e+00> : vector<2048x128xf32>
    %24 = tpu.matmul %21, %23, %cst_10 {dimension_numbers = #tpu.dot_dimension_numbers<[1], [0], [0], [1], [0, 0, 1, 1], [], []>} : vector<2048x96xbf16>, vector<96x128xbf16>, vector<2048x128xf32> -> vector<2048x128xf32>
    %25 = arith.addf %18, %24 : vector<2048x128xf32>
    %c0_11 = arith.constant 0 : index
    %c0_12 = arith.constant 0 : index
    %26 = vector.load %arg4[%c0_11, %c0_12] : memref<1x128xf32, #tpu.memory_space<vmem>>, vector<1x128xf32>
    %27 = vector.broadcast %26 : vector<1x128xf32> to vector<2048x128xf32>
    %28 = arith.addf %25, %27 : vector<2048x128xf32>
    %cst_13 = arith.constant 0.000000e+00 : f32
    %29 = vector.broadcast %cst_13 : f32 to vector<2048x128xf32>
    %30 = arith.maximumf %28, %29 : vector<2048x128xf32>
    %31 = vector.shape_cast %30 : vector<2048x128xf32> to vector<1x32x64x128xf32>
    %32 = arith.truncf %31 : vector<1x32x64x128xf32> to vector<1x32x64x128xbf16>
    %c0_14 = arith.constant 0 : index
    %c0_15 = arith.constant 0 : index
    %c0_16 = arith.constant 0 : index
    %c0_17 = arith.constant 0 : index
    %33 = vector.load %arg5[%c0_14, %c0_15, %c0_16, %c0_17] : memref<1x32x64x128xbf16, #tpu.memory_space<vmem>>, vector<1x32x64x128xbf16>
    tpu.vector_store %arg5[%c0_14, %c0_15, %c0_16, %c0_17], %32 {strides = array<i32>} : memref<1x32x64x128xbf16, #tpu.memory_space<vmem>>, vector<1x32x64x128xbf16>,
    return
  }
  func.func @transform_0(%arg0: i32, %arg1: i32) -> (i32, i32, i32, i32) {
    %c0_i32 = arith.constant 0 : i32
    %c0_i32_0 = arith.constant 0 : i32
    %c0_i32_1 = arith.constant 0 : i32
    %c0_i32_2 = arith.constant 0 : i32
    return %arg0, %c0_i32, %c0_i32_0, %c0_i32_1 : i32, i32, i32, i32
  }
  func.func @transform_1(%arg0: i32, %arg1: i32) -> (i32, i32, i32) {
    %c0_i32 = arith.constant 0 : i32
    %c0_i32_0 = arith.constant 0 : i32
    %c0_i32_1 = arith.constant 0 : i32
    %c0_i32_2 = arith.constant 0 : i32
    return %c0_i32, %c0_i32_0, %c0_i32_1 : i32, i32, i32
  }
  func.func @transform_2(%arg0: i32, %arg1: i32) -> (i32, i32) {
    %c0_i32 = arith.constant 0 : i32
    %c0_i32_0 = arith.constant 0 : i32
    %c0_i32_1 = arith.constant 0 : i32
    return %c0_i32, %c0_i32_0 : i32, i32
  }
  func.func @transform_3(%arg0: i32, %arg1: i32) -> (i32, i32, i32, i32) {
    %c0_i32 = arith.constant 0 : i32
    %c0_i32_0 = arith.constant 0 : i32
    %c0_i32_1 = arith.constant 0 : i32
    return %arg0, %arg1, %c0_i32, %c0_i32_0 : i32, i32, i32, i32
  }
}

module attributes {stable_mosaic.version = 11 : i64} {
  func.func @_conv4_head_kernel(%arg0: i32, %arg1: memref<1x64x32x256xbf16, #tpu.memory_space<vmem>>, %arg2: memref<2x256x128xbf16, #tpu.memory_space<vmem>>, %arg3: memref<1x128xf32, #tpu.memory_space<vmem>>, %arg4: memref<1024x128xf32, #tpu.memory_space<vmem>>, %arg5: memref<1x8x128xf32, #tpu.memory_space<vmem>>) attributes {dimension_semantics = [#tpu.dimension_semantics<parallel>], iteration_bounds = array<i64: 2>, scalar_prefetch = 0 : i64, scratch_operands = 0 : i64, tpu.core_type = #tpu.core_type<tc>, window_params = [{transform_indices = @transform_0, window_bounds = array<i64: 1, 64, 32, 256>}, {pipeline_mode = #tpu.pipeline_mode<synchronous>, transform_indices = @transform_1, window_bounds = array<i64: 2, 256, 128>}, {pipeline_mode = #tpu.pipeline_mode<synchronous>, transform_indices = @transform_2, window_bounds = array<i64: 1, 128>}, {pipeline_mode = #tpu.pipeline_mode<synchronous>, transform_indices = @transform_3, window_bounds = array<i64: 1024, 128>}, {transform_indices = @transform_4, window_bounds = array<i64: 1, 8, 128>}]} {
    %c0 = arith.constant 0 : index
    %c0_0 = arith.constant 0 : index
    %c0_1 = arith.constant 0 : index
    %c0_2 = arith.constant 0 : index
    %0 = vector.load %arg1[%c0, %c0_0, %c0_1, %c0_2] : memref<1x64x32x256xbf16, #tpu.memory_space<vmem>>, vector<1x64x32x256xbf16>
    %1 = vector.shape_cast %0 : vector<1x64x32x256xbf16> to vector<64x32x256xbf16>
    %2 = vector.shape_cast %1 : vector<64x32x256xbf16> to vector<32x2x32x256xbf16>
    %3 = vector.extract_strided_slice %2 {offsets = [0, 0, 0, 0], sizes = [32, 1, 32, 256], strides = [1, 1, 1, 1]} : vector<32x2x32x256xbf16> to vector<32x1x32x256xbf16>
    %4 = vector.shape_cast %3 : vector<32x1x32x256xbf16> to vector<32x32x256xbf16>
    %5 = vector.shape_cast %4 : vector<32x32x256xbf16> to vector<1024x256xbf16>
    %c0_3 = arith.constant 0 : index
    %c0_4 = arith.constant 0 : index
    %c0_5 = arith.constant 0 : index
    %6 = vector.load %arg2[%c0_3, %c0_4, %c0_5] : memref<2x256x128xbf16, #tpu.memory_space<vmem>>, vector<1x256x128xbf16>
    %7 = vector.shape_cast %6 : vector<1x256x128xbf16> to vector<256x128xbf16>
    %cst = arith.constant dense<0.000000e+00> : vector<1024x128xf32>
    %8 = tpu.matmul %5, %7, %cst {dimension_numbers = #tpu.dot_dimension_numbers<[1], [0], [0], [1], [0, 0, 1, 1], [], []>} : vector<1024x256xbf16>, vector<256x128xbf16>, vector<1024x128xf32> -> vector<1024x128xf32>
    %9 = vector.extract_strided_slice %2 {offsets = [0, 1, 0, 0], sizes = [32, 1, 32, 256], strides = [1, 1, 1, 1]} : vector<32x2x32x256xbf16> to vector<32x1x32x256xbf16>
    %10 = vector.shape_cast %9 : vector<32x1x32x256xbf16> to vector<32x32x256xbf16>
    %11 = vector.shape_cast %10 : vector<32x32x256xbf16> to vector<1024x256xbf16>
    %c1 = arith.constant 1 : index
    %c0_6 = arith.constant 0 : index
    %c0_7 = arith.constant 0 : index
    %12 = vector.load %arg2[%c1, %c0_6, %c0_7] : memref<2x256x128xbf16, #tpu.memory_space<vmem>>, vector<1x256x128xbf16>
    %13 = vector.shape_cast %12 : vector<1x256x128xbf16> to vector<256x128xbf16>
    %cst_8 = arith.constant dense<0.000000e+00> : vector<1024x128xf32>
    %14 = tpu.matmul %11, %13, %cst_8 {dimension_numbers = #tpu.dot_dimension_numbers<[1], [0], [0], [1], [0, 0, 1, 1], [], []>} : vector<1024x256xbf16>, vector<256x128xbf16>, vector<1024x128xf32> -> vector<1024x128xf32>
    %15 = arith.addf %8, %14 : vector<1024x128xf32>
    %c0_9 = arith.constant 0 : index
    %c0_10 = arith.constant 0 : index
    %16 = vector.load %arg3[%c0_9, %c0_10] : memref<1x128xf32, #tpu.memory_space<vmem>>, vector<1x128xf32>
    %17 = vector.broadcast %16 : vector<1x128xf32> to vector<1024x128xf32>
    %18 = arith.addf %15, %17 : vector<1024x128xf32>
    %cst_11 = arith.constant 0.000000e+00 : f32
    %19 = vector.broadcast %cst_11 : f32 to vector<1024x128xf32>
    %20 = arith.maximumf %18, %19 : vector<1024x128xf32>
    %c0_12 = arith.constant 0 : index
    %c0_13 = arith.constant 0 : index
    %21 = vector.load %arg4[%c0_12, %c0_13] : memref<1024x128xf32, #tpu.memory_space<vmem>>, vector<1024x128xf32>
    %22 = arith.mulf %20, %21 : vector<1024x128xf32>
    %23 = vector.shape_cast %22 : vector<1024x128xf32> to vector<1x1024x128xf32>
    %cst_14 = arith.constant dense<0.000000e+00> : vector<1xf32>
    %24 = vector.multi_reduction <add>, %23, %cst_14 [1, 2] : vector<1x1024x128xf32> to vector<1xf32>
    %25 = vector.shape_cast %24 : vector<1xf32> to vector<1x1x1xf32>
    %26 = vector.extract %25[0, 0, 0] : f32 from vector<1x1x1xf32>
    %27 = vector.broadcast %26 : f32 to vector<1x8x128xf32>
    %c0_15 = arith.constant 0 : index
    %c0_16 = arith.constant 0 : index
    %c0_17 = arith.constant 0 : index
    %28 = vector.load %arg5[%c0_15, %c0_16, %c0_17] : memref<1x8x128xf32, #tpu.memory_space<vmem>>, vector<1x8x128xf32>
    tpu.vector_store %arg5[%c0_15, %c0_16, %c0_17], %27 {strides = array<i32>} : memref<1x8x128xf32, #tpu.memory_space<vmem>>, vector<1x8x128xf32>,
    return
  }
  func.func @transform_0(%arg0: i32) -> (i32, i32, i32, i32) {
    %c0_i32 = arith.constant 0 : i32
    %c0_i32_0 = arith.constant 0 : i32
    %c0_i32_1 = arith.constant 0 : i32
    %c0_i32_2 = arith.constant 0 : i32
    return %arg0, %c0_i32, %c0_i32_0, %c0_i32_1 : i32, i32, i32, i32
  }
  func.func @transform_1(%arg0: i32) -> (i32, i32, i32) {
    %c0_i32 = arith.constant 0 : i32
    %c0_i32_0 = arith.constant 0 : i32
    %c0_i32_1 = arith.constant 0 : i32
    %c0_i32_2 = arith.constant 0 : i32
    return %c0_i32, %c0_i32_0, %c0_i32_1 : i32, i32, i32
  }
  func.func @transform_2(%arg0: i32) -> (i32, i32) {
    %c0_i32 = arith.constant 0 : i32
    %c0_i32_0 = arith.constant 0 : i32
    %c0_i32_1 = arith.constant 0 : i32
    return %c0_i32, %c0_i32_0 : i32, i32
  }
  func.func @transform_3(%arg0: i32) -> (i32, i32) {
    %c0_i32 = arith.constant 0 : i32
    %c0_i32_0 = arith.constant 0 : i32
    %c0_i32_1 = arith.constant 0 : i32
    return %c0_i32, %c0_i32_0 : i32, i32
  }
  func.func @transform_4(%arg0: i32) -> (i32, i32, i32) {
    %c0_i32 = arith.constant 0 : i32
    %c0_i32_0 = arith.constant 0 : i32
    %c0_i32_1 = arith.constant 0 : i32
    return %arg0, %c0_i32, %c0_i32_0 : i32, i32, i32
  }
}

</mosaic_0001>

<bundles_post_ra>
// kernel: h2e_forward.4
= control target key start
LH: loop header
LB: loop body
LE: loop exit
PB: predicated region body
PF: predicated region fallthrough
CT: control target
= control target key end

     0   :  { %8 = vsyncpa [#allocation3], 0  ;;  %s1337_s0 = inlined_call_operand.vmem [shape: bf16[648,9], index: 0, kind: input, shape index: {}]   ;;  %s1338_s1 = inlined_call_operand.hbm [shape: bf16[9,256], index: 1, kind: input, shape index: {}]   ;;  %s1339_s2 = inlined_call_operand.hbm [shape: f32[1,256], index: 2, kind: input, shape index: {}]   ;;  %s1340_s3 = inlined_call_operand.vmem [shape: bf16[648,256], index: 3, kind: output, shape index: {}]  }
   0x1   :  { %9 = vsyncpa [#allocation5], 0  ;;  %s1120_s12 = smov 0  }
   0x2 LB: > { %s871_s13 = sadd.s32 4294967295, %s1092_s12   ;;  %p873_p0 = scmp.ge.s32.totalorder %s1092_s12, 1  ;;  %s1092_s12 = sphi %s1120_s12, %s15_s12  }
   0x3   : > { %p114_p1 = scmp.lt.s32.totalorder %s1092_s12, 4  ;;  %s1094_s14 = smov [#allocation2]  }
   0x4   : > { %s126_s15 = sshll.u32 %s1094_s14, 4  ;;  %p1134_p3 = scmp.eq.s32.totalorder %s871_s13, 0  ;;  %s127_s15 = int_to_ptr.vmem [resolvable:$true] %s126_s15 }
   0x5   : > { %p1128_p2 = pnand %p873_p0, %p114_p1  ;;  %s1095_s18 = smov [#allocation4]  }
   0x6   : > { %s1345_s17 = scalar_select %p1134_p3, 1, 0 }
   0x7   : > { %s1344_s16 = scalar_select %p1128_p2, 1, 0 }
   0x8   : > { %p980_p4 = pneg %p1128_p2  ;;  %s140_s19 = sshll.u32 %s1095_s18, 4  ;;  %s1146_s19 = int_to_ptr.vmem [resolvable:$true] %s140_s19 }
   0x9   : > { %s1022_s23 = scalar_lea.hbm %s1338_s1, 256 }
   0xa   : > { %p1142_p5 = pnand %p1134_p3, %p980_p4  ;;  %p1023_p6 = scmp.ne.s32.totalorder %s1338_s1, %s1022_s23 }
   0xb   : > { %p1029_p10 = scmp.lt.u32.totalorder %s1022_s23, %s1338_s1 }
   0xc   : > { %p1024_p7 = pneg %p1142_p5 }
   0xe   : > { %p1025_p8 = pnand %p1024_p7, %p1023_p6 }
  0x10   : > { %p1026_p9 = pneg %p1025_p8 }
  0x12   : > { %p1031_p11 = pnand %p1029_p10, %p1026_p9 }
  0x14   : > { %1034 = shalt.err (!%p1031_p11)
}
  0x15   : > { %s1035_s28 = scalar_lea.vmem %s127_s15, 256  ;;  %p1043_p1 = scmp.lt.s32.totalorder %s127_s15, %s127_s15 }
  0x16   : > { %p1036_p12 = scmp.ne.s32.totalorder %s127_s15, %s1035_s28  ;;  %p1044_p4 = scmp.lt.s32.totalorder %s1035_s28, %s1035_s28 }
  0x18   : > { %p1038_p13 = pnand %p1036_p12, %p1024_p7  ;;  %p1045_p3 = por %p1044_p4, %p1043_p1 }
  0x1a   : > { %p1039_p0 = pneg %p1038_p13 }
  0x1c   : > { %p1046_p2 = pnand %p1045_p3, %p1039_p0 }
  0x1e   : > { %1049 = shalt.err (!%p1046_p2)
}
  0x1f   : > { %s1096_s29 = smov 128   ;;  %s1097_s30 = smov 8  }
  0x20   : > { %983 = dma.hbm_to_vmem [thread:$0]  (!%p1142_p5), %s1338_s1, 256, %s127_s15, [#allocation3], %s1096_s29, %s1096_s29, %s1097_s30  }
  0x21   : > { %s1050_s8 = scalar_lea.hbm %s1339_s2, 32 }
  0x22   : > { %p1051_p6 = scmp.ne.s32.totalorder %s1339_s2, %s1050_s8  ;;  %p1057_p8 = scmp.lt.u32.totalorder %s1050_s8, %s1339_s2 }
  0x24   : > { %p1053_p2 = pnand %p1051_p6, %p1024_p7 }
  0x26   : > { %p1054_p3 = pneg %p1053_p2 }
  0x28   : > { %p1059_p9 = pnand %p1057_p8, %p1054_p3 }
  0x2a   : > { %1062 = shalt.err (!%p1059_p9)
}
  0x2b   : > { %s1063_s15 = scalar_lea.vmem %s1146_s19, 32  ;;  %p1071_p13 = scmp.lt.s32.totalorder %s1146_s19, %s1146_s19 }
  0x2c   : > { %p1064_p10 = scmp.ne.s32.totalorder %s1146_s19, %s1063_s15  ;;  %p1072_p0 = scmp.lt.s32.totalorder %s1063_s15, %s1063_s15 }
  0x2e   : > { %p1066_p11 = pnand %p1064_p10, %p1024_p7  ;;  %p1073_p1 = por %p1072_p0, %p1071_p13 }
  0x30   : > { %p1067_p12 = pneg %p1066_p11 }
  0x32   : > { %p1074_p4 = pnand %p1073_p1, %p1067_p12 }
  0x34   : > { %1077 = shalt.err (!%p1074_p4)
}
  0x35   : > { %986 = dma.hbm_to_vmem [thread:$0]  (!%p1142_p5), %s1339_s2, 32, %s1146_s19, [#allocation5]  }
  0x36   : > { %p1347_p6 = scmp.ne.s32.totalorder %s1344_s16, 0 }
  0x37   : > { %p1348_p2 = scmp.ne.s32.totalorder (!%p1347_p6), %s1345_s17, 0 }
  0x38   : > { %162 = sbr.rel (%p1347_p6) target bundleno = 346 (0x15a), region = 32 }
  0x3f   : > { %1083 = dma.done.wait (%p1348_p2), [#allocation3], 256  }
  0x40   : > { %1085 = vsyncadd (%p1348_p2), [#allocation3], 4294967040 }
  0x41   : > { %1087 = dma.done.wait (%p1348_p2), [#allocation5], 32  }
  0x42   : > { %1089 = vsyncadd (%p1348_p2), [#allocation5], 4294967264  ;;  %vm365_vm0 = vcmask 1043456   ;;  %v1098_v0 = vmov 0   ;;  %s191_s16 = smul.u32 27, %s871_s13  ;;  %vm366_vm1 = vcmask 1044480   ;;  %v236_v22 = vlaneseq }
  0x43   : > { %407 = vmatprep.mubr.bf16.mxu0 %v1098_v0  ;;  %477 = vmatprep.mubr.bf16.mxu1 %v1098_v0  ;;  %v1099_v1 = vmov 65535   ;;  %v1005_v4 = vld [vmem:[#allocation2 + $0x4] ss:$8 sps:$4 sm:$0x1f]   ;;  %vm322_vm2 = vcmask 72704  }
  0x44   : > { %v367_v2 = vsel %vm365_vm0, 4294967295, %v1099_v1  ;;  %p192_p5 = scmp.lt.s32.totalorder %s191_s16, 80  ;;  %v1007_v5 = vld [vmem:[#allocation2] ss:$8 sps:$4 sm:$0x1f]   ;;  %v237_v23 = vshrl.u32 %v236_v22, 7 }
  0x45   : > { %v368_v3 = vsel %vm366_vm1, %v367_v2, 0  ;;  %v234_v25 = vld [vmem:[#allocation4] sm:$0x3] }
  0x46   : > { %s1350_s16 = smov (!%p192_p5, %s191_s16), 80  ;;  %v373_v6 = vand.u32 %v1005_v4, %v368_v3  ;;  %v370_v7 = vand.u32 %v1007_v5, %v368_v3  ;;  %v238_v24 = vsub.s32 0, %v237_v23  ;;  %v242_v26 = vsub.s32 1, %v237_v23 }
  0x47   : > { %s880_s19 = sshll.u32 %s1350_s16, 2  ;;  %s942_s13 = sshll.u32 %s1350_s16, 3 }
  0x48   : > { %s1213_s22 = scalar_lea.vmem %s1337_s0, %s880_s19  ;;  %375 = vmatprep.subr.bf16.mxu0 %v373_v6  ;;  %970 = vmatprep.subr.bf16.mxu1 %v373_v6  ;;  %v1243_v27 = vrot.slane %v234_v25, %v238_v24  ;;  %v1245_v28 = vrot.slane %v234_v25, %v242_v26  ;;  %s1259_s25 = scalar_lea.vmem %s1340_s3, %s942_s13 }
  0x49   : > { %v1008_v8 = vld [vmem:[%s1213_s22] sm:$0xff]   ;;  %v1009_v9 = vld [vmem:[%s1213_s22 + $0x38] sm:$0xff]   ;;  %376 = vmatpush1.bf16.msra.mxu0 %v370_v7  ;;  %971 = vmatpush1.bf16.msra.mxu1 %v370_v7  ;;  %v1010_v10 = vld [vmem:[%s1213_s22 + $0x8] sm:$0xff]  }
  0x4a   : > { %v1011_v11 = vld [vmem:[%s1213_s22 + $0x40] sm:$0xff]   ;;  %v1012_v12 = vld [vmem:[%s1213_s22 + $0x10] sm:$0xff]   ;;  %v1013_v13 = vld [vmem:[%s1213_s22 + $0x48] sm:$0xff]  }
  0x4b   : > { %v1014_v14 = vld [vmem:[%s1213_s22 + $0x18] sm:$0xff]   ;;  %v1015_v15 = vld [vmem:[%s1213_s22 + $0x50] sm:$0xff]   ;;  %v1016_v16 = vld [vmem:[%s1213_s22 + $0x20] sm:$0xff]  }
  0x4c   : > { %899 = vmatmul.mubr.msk.bf16.vlgmr.msra.gmra.mrb[0].mxu0 %vm322_vm2, %v1008_v8  ;;  %906 = vmatmul.mubr.msk.bf16.vlgmr.msra.gmra.mrb[0].mxu1 %vm322_vm2, %v1009_v9  ;;  %v1017_v17 = vld [vmem:[%s1213_s22 + $0x58] sm:$0xff]   ;;  %v1018_v18 = vld [vmem:[%s1213_s22 + $0x28] sm:$0xff]   ;;  %v1019_v19 = vld [vmem:[%s1213_s22 + $0x60] sm:$0xff]  }
  0x4d   : > { %417 = vmatprep.mubr.bf16.mxu0 %v1098_v0  ;;  %487 = vmatprep.mubr.bf16.mxu1 %v1098_v0  ;;  %v1020_v20 = vld [vmem:[%s1213_s22 + $0x30] sm:$0xff]   ;;  %v1021_v21 = vld [vmem:[%s1213_s22 + $0x68] ss:$0 sps:$4 sm:$0xff]  }
  0x54   : > { %900 = vmatmul.mubr.msk.bf16.gmra.mrb[4].mxu0 %vm322_vm2, %v1010_v10  ;;  %907 = vmatmul.mubr.msk.bf16.gmra.mrb[4].mxu1 %vm322_vm2, %v1011_v11 }
  0x55   : > { %427 = vmatprep.mubr.bf16.mxu0 %v1098_v0  ;;  %497 = vmatprep.mubr.bf16.mxu1 %v1098_v0 }
  0x5c   : > { %901 = vmatmul.mubr.msk.bf16.gmra.mrb[8].mxu0 %vm322_vm2, %v1012_v12  ;;  %908 = vmatmul.mubr.msk.bf16.gmra.mrb[8].mxu1 %vm322_vm2, %v1013_v13 }
  0x5d   : > { %437 = vmatprep.mubr.bf16.mxu0 %v1098_v0  ;;  %507 = vmatprep.mubr.bf16.mxu1 %v1098_v0 }
  0x64   : > { %902 = vmatmul.mubr.msk.bf16.gmra.mrb[12].mxu0 %vm322_vm2, %v1014_v14  ;;  %909 = vmatmul.mubr.msk.bf16.gmra.mrb[12].mxu1 %vm322_vm2, %v1015_v15 }
  0x65   : > { %447 = vmatprep.mubr.bf16.mxu0 %v1098_v0  ;;  %517 = vmatprep.mubr.bf16.mxu1 %v1098_v0 }
  0x6c   : > { %903 = vmatmul.mubr.msk.bf16.gmra.mrb[16].mxu0 %vm322_vm2, %v1016_v16  ;;  %910 = vmatmul.mubr.msk.bf16.gmra.mrb[16].mxu1 %vm322_vm2, %v1017_v17 }
  0x6d   : > { %457 = vmatprep.mubr.bf16.mxu0 %v1098_v0  ;;  %527 = vmatprep.mubr.bf16.mxu1 %v1098_v0 }
  0x74   : > { %904 = vmatmul.mubr.msk.bf16.gmra.mrb[20].mxu0 %vm322_vm2, %v1018_v18  ;;  %911 = vmatmul.mubr.msk.bf16.gmra.mrb[20].mxu1 %vm322_vm2, %v1019_v19 }
  0x75   : > { %467 = vmatprep.mubr.bf16.mxu0 %v1098_v0  ;;  %537 = vmatprep.mubr.bf16.mxu1 %v1098_v0 }
  0x7c   : > { %905 = vmatmul.mubr.msk.bf16.gmra.mrb[24].mxu0 %vm322_vm2, %v1020_v20  ;;  %912 = vmatmul.mubr.msk.bf16.gmra.mrb[24].mxu1 %vm322_vm2, %v1021_v21 }
 0x11f   : > { %v409_v29 = vpop.f32.mrb[0].mxu0  ;;  %v479_v30 = vpop.f32.mrb[0].mxu1 }
 0x120   : > { %v410_v31 = vadd.f32 %v409_v29, %v1243_v27  ;;  %v480_v32 = vadd.f32 %v479_v30, %v1243_v27  ;;  %v411_v33 = vpop.f32.mrb[1].mxu0  ;;  %v481_v34 = vpop.f32.mrb[1].mxu1 }
 0x121   : > { %v412_v35 = vadd.f32 %v411_v33, %v1245_v28  ;;  %v482_v36 = vadd.f32 %v481_v34, %v1245_v28  ;;  %v413_v37 = vpop.f32.mrb[2].mxu0  ;;  %v483_v38 = vpop.f32.mrb[2].mxu1 }
 0x122   : > { %v546_v39 = vmax.f32 %v410_v31, 0.0  ;;  %v574_v40 = vmax.f32 %v480_v32, 0.0  ;;  %v414_v41 = vadd.f32 %v413_v37, %v1243_v27  ;;  %v484_v42 = vadd.f32 %v483_v38, %v1243_v27  ;;  %v415_v43 = vpop.f32.mrb[3].mxu0  ;;  %v485_v44 = vpop.f32.mrb[3].mxu1 }
 0x123   : > { %v547_v45 = vmax.f32 %v412_v35, 0.0  ;;  %v575_v46 = vmax.f32 %v482_v36, 0.0  ;;  %v416_v47 = vadd.f32 %v415_v43, %v1245_v28  ;;  %v486_v48 = vadd.f32 %v485_v44, %v1245_v28 }
 0x124   : > { %v548_v49 = vmax.f32 %v414_v41, 0.0  ;;  %v576_v50 = vmax.f32 %v484_v42, 0.0 }
 0x125   : > { %v943_v51 = vpack.c.bf16 %v547_v45, %v546_v39  ;;  %v957_v52 = vpack.c.bf16 %v575_v46, %v574_v40  ;;  %v549_v53 = vmax.f32 %v416_v47, 0.0  ;;  %v577_v54 = vmax.f32 %v486_v48, 0.0 }
 0x127   : > { %764 = vst [vmem:[%s1259_s25] sm:$0xff] %v943_v51  ;;  %778 = vst [vmem:[%s1259_s25 + $0x70] sm:$0xff] %v957_v52  ;;  %v944_v55 = vpack.c.bf16 %v549_v53, %v548_v49  ;;  %v958_v56 = vpack.c.bf16 %v577_v54, %v576_v50  ;;  %v419_v57 = vpop.f32.mrb[4].mxu0  ;;  %v489_v58 = vpop.f32.mrb[4].mxu1 }
 0x128   : > { %v420_v59 = vadd.f32 %v419_v57, %v1243_v27  ;;  %v490_v60 = vadd.f32 %v489_v58, %v1243_v27  ;;  %v421_v61 = vpop.f32.mrb[5].mxu0  ;;  %v491_v62 = vpop.f32.mrb[5].mxu1 }
 0x129   : > { %765 = vst [vmem:[%s1259_s25 + $0x8] sm:$0xff] %v944_v55  ;;  %779 = vst [vmem:[%s1259_s25 + $0x78] sm:$0xff] %v958_v56  ;;  %v422_v63 = vadd.f32 %v421_v61, %v1245_v28  ;;  %v492_v0 = vadd.f32 %v491_v62, %v1245_v28  ;;  %v423_v1 = vpop.f32.mrb[6].mxu0  ;;  %v493_v2 = vpop.f32.mrb[6].mxu1 }
 0x12a   : > { %v550_v3 = vmax.f32 %v420_v59, 0.0  ;;  %v578_v4 = vmax.f32 %v490_v60, 0.0  ;;  %v424_v5 = vadd.f32 %v423_v1, %v1243_v27  ;;  %v494_v6 = vadd.f32 %v493_v2, %v1243_v27  ;;  %v425_v7 = vpop.f32.mrb[7].mxu0  ;;  %v495_v8 = vpop.f32.mrb[7].mxu1 }
 0x12b   : > { %v551_v9 = vmax.f32 %v422_v63, 0.0  ;;  %v579_v10 = vmax.f32 %v492_v0, 0.0  ;;  %v426_v11 = vadd.f32 %v425_v7, %v1245_v28  ;;  %v496_v12 = vadd.f32 %v495_v8, %v1245_v28 }
 0x12c   : > { %v552_v13 = vmax.f32 %v424_v5, 0.0  ;;  %v580_v14 = vmax.f32 %v494_v6, 0.0 }
 0x12d   : > { %v945_v15 = vpack.c.bf16 %v551_v9, %v550_v3  ;;  %v959_v16 = vpack.c.bf16 %v579_v10, %v578_v4  ;;  %v553_v17 = vmax.f32 %v426_v11, 0.0  ;;  %v581_v18 = vmax.f32 %v496_v12, 0.0 }
 0x12f   : > { %766 = vst [vmem:[%s1259_s25 + $0x10] sm:$0xff] %v945_v15  ;;  %780 = vst [vmem:[%s1259_s25 + $0x80] sm:$0xff] %v959_v16  ;;  %v946_v19 = vpack.c.bf16 %v553_v17, %v552_v13  ;;  %v960_v20 = vpack.c.bf16 %v581_v18, %v580_v14  ;;  %v429_v21 = vpop.f32.mrb[8].mxu0  ;;  %v499_v22 = vpop.f32.mrb[8].mxu1 }
 0x130   : > { %v430_v23 = vadd.f32 %v429_v21, %v1243_v27  ;;  %v500_v24 = vadd.f32 %v499_v22, %v1243_v27  ;;  %v431_v25 = vpop.f32.mrb[9].mxu0  ;;  %v501_v26 = vpop.f32.mrb[9].mxu1 }
 0x131   : > { %767 = vst [vmem:[%s1259_s25 + $0x18] sm:$0xff] %v946_v19  ;;  %781 = vst [vmem:[%s1259_s25 + $0x88] sm:$0xff] %v960_v20  ;;  %v432_v29 = vadd.f32 %v431_v25, %v1245_v28  ;;  %v502_v30 = vadd.f32 %v501_v26, %v1245_v28  ;;  %v433_v31 = vpop.f32.mrb[10].mxu0  ;;  %v503_v32 = vpop.f32.mrb[10].mxu1 }
 0x132   : > { %v554_v33 = vmax.f32 %v430_v23, 0.0  ;;  %v582_v34 = vmax.f32 %v500_v24, 0.0  ;;  %v434_v35 = vadd.f32 %v433_v31, %v1243_v27  ;;  %v504_v36 = vadd.f32 %v503_v32, %v1243_v27  ;;  %v435_v37 = vpop.f32.mrb[11].mxu0  ;;  %v505_v38 = vpop.f32.mrb[11].mxu1 }
 0x133   : > { %v555_v39 = vmax.f32 %v432_v29, 0.0  ;;  %v583_v40 = vmax.f32 %v502_v30, 0.0  ;;  %v436_v41 = vadd.f32 %v435_v37, %v1245_v28  ;;  %v506_v42 = vadd.f32 %v505_v38, %v1245_v28 }
 0x134   : > { %v556_v43 = vmax.f32 %v434_v35, 0.0  ;;  %v584_v44 = vmax.f32 %v504_v36, 0.0 }
 0x135   : > { %v947_v45 = vpack.c.bf16 %v555_v39, %v554_v33  ;;  %v961_v46 = vpack.c.bf16 %v583_v40, %v582_v34  ;;  %v557_v47 = vmax.f32 %v436_v41, 0.0  ;;  %v585_v48 = vmax.f32 %v506_v42, 0.0 }
 0x137   : > { %768 = vst [vmem:[%s1259_s25 + $0x20] sm:$0xff] %v947_v45  ;;  %782 = vst [vmem:[%s1259_s25 + $0x90] sm:$0xff] %v961_v46  ;;  %v948_v49 = vpack.c.bf16 %v557_v47, %v556_v43  ;;  %v962_v50 = vpack.c.bf16 %v585_v48, %v584_v44  ;;  %v439_v51 = vpop.f32.mrb[12].mxu0  ;;  %v509_v52 = vpop.f32.mrb[12].mxu1 }
 0x138   : > { %v440_v53 = vadd.f32 %v439_v51, %v1243_v27  ;;  %v510_v54 = vadd.f32 %v509_v52, %v1243_v27  ;;  %v441_v55 = vpop.f32.mrb[13].mxu0  ;;  %v511_v56 = vpop.f32.mrb[13].mxu1 }
 0x139   : > { %769 = vst [vmem:[%s1259_s25 + $0x28] sm:$0xff] %v948_v49  ;;  %783 = vst [vmem:[%s1259_s25 + $0x98] sm:$0xff] %v962_v50  ;;  %v442_v57 = vadd.f32 %v441_v55, %v1245_v28  ;;  %v512_v58 = vadd.f32 %v511_v56, %v1245_v28  ;;  %v443_v59 = vpop.f32.mrb[14].mxu0  ;;  %v513_v60 = vpop.f32.mrb[14].mxu1 }
 0x13a   : > { %v558_v61 = vmax.f32 %v440_v53, 0.0  ;;  %v586_v62 = vmax.f32 %v510_v54, 0.0  ;;  %v444_v63 = vadd.f32 %v443_v59, %v1243_v27  ;;  %v514_v0 = vadd.f32 %v513_v60, %v1243_v27  ;;  %v445_v1 = vpop.f32.mrb[15].mxu0  ;;  %v515_v2 = vpop.f32.mrb[15].mxu1 }
 0x13b   : > { %v559_v3 = vmax.f32 %v442_v57, 0.0  ;;  %v587_v4 = vmax.f32 %v512_v58, 0.0  ;;  %v446_v5 = vadd.f32 %v445_v1, %v1245_v28  ;;  %v516_v6 = vadd.f32 %v515_v2, %v1245_v28 }
 0x13c   : > { %v560_v7 = vmax.f32 %v444_v63, 0.0  ;;  %v588_v8 = vmax.f32 %v514_v0, 0.0 }
 0x13d   : > { %v949_v9 = vpack.c.bf16 %v559_v3, %v558_v61  ;;  %v963_v10 = vpack.c.bf16 %v587_v4, %v586_v62  ;;  %v561_v11 = vmax.f32 %v446_v5, 0.0  ;;  %v589_v12 = vmax.f32 %v516_v6, 0.0 }
 0x13f   : > { %770 = vst [vmem:[%s1259_s25 + $0x30] sm:$0xff] %v949_v9  ;;  %784 = vst [vmem:[%s1259_s25 + $0xa0] sm:$0xff] %v963_v10  ;;  %v950_v13 = vpack.c.bf16 %v561_v11, %v560_v7  ;;  %v964_v14 = vpack.c.bf16 %v589_v12, %v588_v8  ;;  %v449_v15 = vpop.f32.mrb[16].mxu0  ;;  %v519_v16 = vpop.f32.mrb[16].mxu1 }
 0x140   : > { %v450_v17 = vadd.f32 %v449_v15, %v1243_v27  ;;  %v520_v18 = vadd.f32 %v519_v16, %v1243_v27  ;;  %v451_v19 = vpop.f32.mrb[17].mxu0  ;;  %v521_v20 = vpop.f32.mrb[17].mxu1 }
 0x141   : > { %771 = vst [vmem:[%s1259_s25 + $0x38] sm:$0xff] %v950_v13  ;;  %785 = vst [vmem:[%s1259_s25 + $0xa8] sm:$0xff] %v964_v14  ;;  %v452_v21 = vadd.f32 %v451_v19, %v1245_v28  ;;  %v522_v22 = vadd.f32 %v521_v20, %v1245_v28  ;;  %v453_v23 = vpop.f32.mrb[18].mxu0  ;;  %v523_v24 = vpop.f32.mrb[18].mxu1 }
 0x142   : > { %v562_v25 = vmax.f32 %v450_v17, 0.0  ;;  %v590_v26 = vmax.f32 %v520_v18, 0.0  ;;  %v454_v29 = vadd.f32 %v453_v23, %v1243_v27  ;;  %v524_v30 = vadd.f32 %v523_v24, %v1243_v27  ;;  %v455_v31 = vpop.f32.mrb[19].mxu0  ;;  %v525_v32 = vpop.f32.mrb[19].mxu1 }
 0x143   : > { %v563_v33 = vmax.f32 %v452_v21, 0.0  ;;  %v591_v34 = vmax.f32 %v522_v22, 0.0  ;;  %v456_v35 = vadd.f32 %v455_v31, %v1245_v28  ;;  %v526_v36 = vadd.f32 %v525_v32, %v1245_v28 }
 0x144   : > { %v564_v37 = vmax.f32 %v454_v29, 0.0  ;;  %v592_v38 = vmax.f32 %v524_v30, 0.0 }
 0x145   : > { %v951_v39 = vpack.c.bf16 %v563_v33, %v562_v25  ;;  %v965_v40 = vpack.c.bf16 %v591_v34, %v590_v26  ;;  %v565_v41 = vmax.f32 %v456_v35, 0.0  ;;  %v593_v42 = vmax.f32 %v526_v36, 0.0 }
 0x147   : > { %772 = vst [vmem:[%s1259_s25 + $0x40] sm:$0xff] %v951_v39  ;;  %786 = vst [vmem:[%s1259_s25 + $0xb0] sm:$0xff] %v965_v40  ;;  %v952_v43 = vpack.c.bf16 %v565_v41, %v564_v37  ;;  %v966_v44 = vpack.c.bf16 %v593_v42, %v592_v38  ;;  %v459_v45 = vpop.f32.mrb[20].mxu0  ;;  %v529_v46 = vpop.f32.mrb[20].mxu1 }
 0x148   : > { %v460_v47 = vadd.f32 %v459_v45, %v1243_v27  ;;  %v530_v48 = vadd.f32 %v529_v46, %v1243_v27  ;;  %v461_v49 = vpop.f32.mrb[21].mxu0  ;;  %v531_v50 = vpop.f32.mrb[21].mxu1 }
 0x149   : > { %773 = vst [vmem:[%s1259_s25 + $0x48] sm:$0xff] %v952_v43  ;;  %787 = vst [vmem:[%s1259_s25 + $0xb8] sm:$0xff] %v966_v44  ;;  %v462_v51 = vadd.f32 %v461_v49, %v1245_v28  ;;  %v532_v52 = vadd.f32 %v531_v50, %v1245_v28  ;;  %v463_v53 = vpop.f32.mrb[22].mxu0  ;;  %v533_v54 = vpop.f32.mrb[22].mxu1 }
 0x14a   : > { %v566_v55 = vmax.f32 %v460_v47, 0.0  ;;  %v594_v56 = vmax.f32 %v530_v48, 0.0  ;;  %v464_v57 = vadd.f32 %v463_v53, %v1243_v27  ;;  %v534_v58 = vadd.f32 %v533_v54, %v1243_v27  ;;  %v465_v59 = vpop.f32.mrb[23].mxu0  ;;  %v535_v60 = vpop.f32.mrb[23].mxu1 }
 0x14b   : > { %v567_v61 = vmax.f32 %v462_v51, 0.0  ;;  %v595_v62 = vmax.f32 %v532_v52, 0.0  ;;  %v466_v63 = vadd.f32 %v465_v59, %v1245_v28  ;;  %v536_v0 = vadd.f32 %v535_v60, %v1245_v28 }
 0x14c   : > { %v568_v1 = vmax.f32 %v464_v57, 0.0  ;;  %v596_v2 = vmax.f32 %v534_v58, 0.0 }
 0x14d   : > { %v953_v3 = vpack.c.bf16 %v567_v61, %v566_v55  ;;  %v967_v4 = vpack.c.bf16 %v595_v62, %v594_v56  ;;  %v569_v5 = vmax.f32 %v466_v63, 0.0  ;;  %v597_v6 = vmax.f32 %v536_v0, 0.0 }
 0x14f   : > { %774 = vst [vmem:[%s1259_s25 + $0x50] sm:$0xff] %v953_v3  ;;  %788 = vst [vmem:[%s1259_s25 + $0xc0] sm:$0xff] %v967_v4  ;;  %v954_v7 = vpack.c.bf16 %v569_v5, %v568_v1  ;;  %v968_v8 = vpack.c.bf16 %v597_v6, %v596_v2  ;;  %v469_v9 = vpop.f32.mrb[24].mxu0  ;;  %v539_v10 = vpop.f32.mrb[24].mxu1 }
 0x150   : > { %v470_v11 = vadd.f32 %v469_v9, %v1243_v27  ;;  %v540_v12 = vadd.f32 %v539_v10, %v1243_v27  ;;  %v471_v13 = vpop.f32.mrb[25].mxu0  ;;  %v541_v14 = vpop.f32.mrb[25].mxu1 }
 0x151   : > { %775 = vst [vmem:[%s1259_s25 + $0x58] sm:$0xff] %v954_v7  ;;  %789 = vst [vmem:[%s1259_s25 + $0xc8] sm:$0xff] %v968_v8  ;;  %v472_v15 = vadd.f32 %v471_v13, %v1245_v28  ;;  %v542_v16 = vadd.f32 %v541_v14, %v1245_v28  ;;  %v473_v17 = vpop.f32.mrb[26].mxu0  ;;  %v543_v18 = vpop.f32.mrb[26].mxu1 }
 0x152   : > { %v570_v19 = vmax.f32 %v470_v11, 0.0  ;;  %v598_v20 = vmax.f32 %v540_v12, 0.0  ;;  %v474_v21 = vadd.f32 %v473_v17, %v1243_v27  ;;  %v475_v22 = vpop.f32.mrb[27].mxu0  ;;  %v544_v23 = vpop.f32.mrb[27].mxu1 }
 0x153   : > { %v571_v24 = vmax.f32 %v472_v15, 0.0  ;;  %v599_v25 = vmax.f32 %v542_v16, 0.0  ;;  %v476_v26 = vadd.f32 %v475_v22, %v1245_v28 }
 0x154   : > { %v572_v29 = vmax.f32 %v474_v21, 0.0 }
 0x155   : > { %v955_v30 = vpack.c.bf16 %v571_v24, %v570_v19  ;;  %v969_v31 = vpack.c.bf16 %v599_v25, %v598_v20  ;;  %v573_v32 = vmax.f32 %v476_v26, 0.0 }
 0x157   : > { %776 = vst [vmem:[%s1259_s25 + $0x60] sm:$0xff] %v955_v30  ;;  %790 = vst [vmem:[%s1259_s25 + $0xd0] sm:$0xff] %v969_v31  ;;  %v956_v33 = vpack.c.bf16 %v573_v32, %v572_v29 }
 0x159   : > { %777 = vst [vmem:[%s1259_s25 + $0x68] sm:$0xff] %v956_v33 }
 0x15a PF: > { %s15_s12 = sadd.s32 1, %s1092_s12  }
 0x15b   : > { %p12_p7 = scmp.ge.s32.totalorder %s15_s12, 5  }
 0x15d   :  { %14 = sbr.rel (!%p12_p7) target bundleno = 2 (0x2), region = 71 }
 0x164   :  { %815 = vsyncpa [#allocation3], 1 }
 0x165   :  { %817 = vsyncpa [#allocation3 + $0x1], 1 }
 0x166   :  { %818 = vsyncpa [#allocation5], 1 }

// kernel: h2e_forward.5
= control target key start
LH: loop header
LB: loop body
LE: loop exit
PB: predicated region body
PF: predicated region fallthrough
CT: control target
= control target key end

     0   :  { %vm1273_vm0 = vcmask 1040384   ;;  %vm1239_vm1 = vcmask 146432   ;;  %s3648_s1 = inlined_call_operand.vmem [shape: bf16[1170,128], index: 1, kind: input, shape index: {}]   ;;  %s3649_s0 = inlined_call_operand.vmem [shape: bf16[162,1170], index: 0, kind: input, shape index: {}]   ;;  %s3650_s2 = inlined_call_operand.vmem [shape: f32[1,128], index: 2, kind: input, shape index: {}]   ;;  %s3651_s3 = inlined_call_operand.vmem [shape: bf16[162,128], index: 3, kind: output, shape index: {}]  }
   0x1   :  { %v2650_v0 = vld [vmem:[%s3648_s1 + $0x40] sm:$0xff]   ;;  %v2652_v2 = vld [vmem:[%s3648_s1 + $0x48] sm:$0xff]   ;;  %v2654_v4 = vld [vmem:[%s3648_s1 + $0x50] sm:$0xff]  }
   0x2   :  { %v2651_v1 = vld [vmem:[%s3648_s1] sm:$0xff]   ;;  %2305 = vmatprep.subr.bf16.mxu0 %v2650_v0  ;;  %2633 = vmatprep.subr.bf16.mxu1 %v2650_v0  ;;  %v2653_v3 = vld [vmem:[%s3648_s1 + $0x8] sm:$0xff]   ;;  %v2655_v5 = vld [vmem:[%s3648_s1 + $0x10] sm:$0xff]  }
   0x3   :  { %2306 = vmatpush3.bf16.msra.mxu0 %v2651_v1  ;;  %2641 = vmatpush3.bf16.msra.mxu1 %v2651_v1  ;;  %v2656_v6 = vld [vmem:[%s3648_s1 + $0x58] sm:$0xff]   ;;  %v2658_v8 = vld [vmem:[%s3648_s1 + $0x60] sm:$0xff]   ;;  %v2660_v10 = vld [vmem:[%s3648_s1 + $0x68] sm:$0xff]  }
   0x4   :  { %2307 = vmatprep.subr.bf16.mxu0 %v2652_v2  ;;  %2634 = vmatprep.subr.bf16.mxu1 %v2652_v2  ;;  %v2657_v7 = vld [vmem:[%s3648_s1 + $0x18] sm:$0xff]   ;;  %v2659_v9 = vld [vmem:[%s3648_s1 + $0x20] sm:$0xff]   ;;  %v2661_v13 = vld [vmem:[%s3648_s1 + $0x28] sm:$0xff]  }
   0x5   :  { %v2668_v11 = vld [vmem:[%s3649_s0 + $0x4] ss:$40 sps:$4 sm:$0xff]   ;;  %v2662_v14 = vld [vmem:[%s3648_s1 + $0x70] sm:$0xff]   ;;  %v2664_v16 = vld [vmem:[%s3648_s1 + $0x78] sm:$0xff]  }
   0x6   :  { %v2671_v12 = vld [vmem:[%s3649_s0 + $0x1e4] ss:$40 sps:$4 sm:$0xff]   ;;  %1309 = vmatprep.mubr.bf16.mxu0 %v2668_v11  ;;  %v2663_v15 = vld [vmem:[%s3648_s1 + $0x30] sm:$0xff]   ;;  %v2665_v17 = vld [vmem:[%s3648_s1 + $0x38] sm:$0xff]  }
   0x7   :  { %2308 = vmatpush3.bf16.msra.mxu0 %v2653_v3  ;;  %2642 = vmatpush3.bf16.msra.mxu1 %v2653_v3  ;;  %v2672_v18 = vld [vmem:[%s3648_s1 + $0x140] sm:$0xff]   ;;  %v2676_v24 = vld [vmem:[%s3648_s1 + $0x148] sm:$0xff]   ;;  %v2677_v25 = vld [vmem:[%s3649_s0 + $0x54] ss:$40 sps:$4 sm:$0xff]  }
   0x8   :  { %2309 = vmatprep.subr.bf16.mxu0 %v2654_v4  ;;  %2635 = vmatprep.subr.bf16.mxu1 %v2654_v4  ;;  %v2666_v19 = vld [vmem:[%s3649_s0] ss:$40 sps:$4 sm:$0xff]   ;;  %v2679_v26 = vld [vmem:[%s3649_s0 + $0x234] ss:$40 sps:$4 sm:$0xff]   ;;  %v2682_v31 = vld [vmem:[%s3649_s0 + $0x50] ss:$40 sps:$4 sm:$0xff]  }
   0x9   :  { %1357 = vmatprep.mubr.bf16.mxu1 %v2671_v12  ;;  %v2669_v20 = vld [vmem:[%s3649_s0 + $0x1e0] ss:$40 sps:$4 sm:$0xff]   ;;  %v2686_v30 = vld [vmem:[%s3648_s1 + $0x150] sm:$0xff]   ;;  %v2690_v36 = vld [vmem:[%s3649_s0 + $0xa4] ss:$40 sps:$4 sm:$0xff]  }
   0xa   :  { %v2674_v21 = vld [vmem:[%s3648_s1 + $0xc0] sm:$0xff]   ;;  %v2684_v27 = vld [vmem:[%s3648_s1 + $0xc8] sm:$0xff]   ;;  %v2683_v32 = vld [vmem:[%s3649_s0 + $0x230] ss:$40 sps:$4 sm:$0xff]  }
   0xb   :  { %2310 = vmatpush3.bf16.msra.mxu0 %v2655_v5  ;;  %2643 = vmatpush3.bf16.msra.mxu1 %v2655_v5  ;;  %v2673_v22 = vld [vmem:[%s3648_s1 + $0x100] sm:$0xff]   ;;  %v2681_v28 = vld [vmem:[%s3648_s1 + $0x108] sm:$0xff]   ;;  %v2687_v33 = vld [vmem:[%s3648_s1 + $0xd0] sm:$0xff]  }
   0xc   :  { %2311 = vmatprep.subr.bf16.mxu0 %v2656_v6  ;;  %2636 = vmatprep.subr.bf16.mxu1 %v2656_v6  ;;  %v2675_v23 = vld [vmem:[%s3648_s1 + $0x80] sm:$0xff]   ;;  %v2685_v29 = vld [vmem:[%s3648_s1 + $0x88] sm:$0xff]   ;;  %v2688_v34 = vld [vmem:[%s3648_s1 + $0x110] sm:$0xff]  }
   0xd   :  { %v2689_v35 = vld [vmem:[%s3648_s1 + $0x90] sm:$0xff]   ;;  %v2692_v37 = vld [vmem:[%s3649_s0 + $0x284] ss:$40 sps:$4 sm:$0xff]   ;;  %v2696_v38 = vld [vmem:[%s3648_s1 + $0xd8] sm:$0xff]  }
   0xe   :  { %v2697_v39 = vld [vmem:[%s3648_s1 + $0x158] sm:$0xff]   ;;  %v2694_v42 = vld [vmem:[%s3649_s0 + $0xa0] ss:$40 sps:$4 sm:$0xff]   ;;  %v2719_v57 = vld [vmem:[%s3648_s1 + $0xf0] sm:$0xff]  }
   0xf   :  { %2312 = vmatpush3.bf16.msra.mxu0 %v2657_v7  ;;  %2644 = vmatpush3.bf16.msra.mxu1 %v2657_v7  ;;  %v2698_v40 = vld [vmem:[%s3648_s1 + $0x98] sm:$0xff]   ;;  %v2695_v43 = vld [vmem:[%s3649_s0 + $0x280] ss:$40 sps:$4 sm:$0xff]   ;;  %v2713_v58 = vld [vmem:[%s3649_s0 + $0x144] ss:$40 sps:$4 sm:$0xff]  }
  0x10   :  { %2313 = vmatprep.subr.bf16.mxu0 %v2658_v8  ;;  %2637 = vmatprep.subr.bf16.mxu1 %v2658_v8  ;;  %v2699_v41 = vld [vmem:[%s3648_s1 + $0x118] sm:$0xff]   ;;  %v2704_v44 = vld [vmem:[%s3648_s1 + $0xe0] sm:$0xff]   ;;  %v2710_v50 = vld [vmem:[%s3648_s1 + $0xe8] sm:$0xff]  }
  0x11   :  { %v2700_v45 = vld [vmem:[%s3649_s0 + $0xf4] ss:$40 sps:$4 sm:$0xff]   ;;  %v2708_v47 = vld [vmem:[%s3648_s1 + $0x160] sm:$0xff]   ;;  %v2712_v51 = vld [vmem:[%s3648_s1 + $0x168] sm:$0xff]  }
  0x12   :  { %v2702_v46 = vld [vmem:[%s3649_s0 + $0x2d4] ss:$40 sps:$4 sm:$0xff]   ;;  %v2707_v48 = vld [vmem:[%s3648_s1 + $0xa0] sm:$0xff]   ;;  %v2711_v52 = vld [vmem:[%s3648_s1 + $0xa8] sm:$0xff]  }
  0x13   :  { %2314 = vmatpush3.bf16.msra.mxu0 %v2659_v9  ;;  %2645 = vmatpush3.bf16.msra.mxu1 %v2659_v9  ;;  %v2709_v49 = vld [vmem:[%s3648_s1 + $0x120] sm:$0xff]   ;;  %v2705_v54 = vld [vmem:[%s3649_s0 + $0xf0] ss:$40 sps:$4 sm:$0xff]   ;;  %v2716_v56 = vld [vmem:[%s3648_s1 + $0x128] sm:$0xff]   ;;  %v2884_v9 = vmov 0  }
  0x14   :  { %2315 = vmatprep.subr.bf16.mxu0 %v2660_v10  ;;  %2638 = vmatprep.subr.bf16.mxu1 %v2660_v10  ;;  %v115_v53 = vld [vmem:[%s3649_s0 + $0x320] sm:$0x11]  ;;  %v2706_v55 = vld [vmem:[%s3649_s0 + $0x2d0] ss:$40 sps:$4 sm:$0xff]   ;;  %v2725_v2 = vld [vmem:[%s3649_s0 + $0x194] ss:$40 sps:$4 sm:$0xff]  }
  0x15   :  { %v2110_v59 = vcombine.high %v115_v53, %v115_v53  ;;  %v2720_v60 = vld [vmem:[%s3648_s1 + $0xb0] sm:$0xff]   ;;  %v2721_v62 = vld [vmem:[%s3648_s1 + $0xf8] sm:$0xff]   ;;  %v2717_v0 = vld [vmem:[%s3649_s0 + $0x140] ss:$40 sps:$4 sm:$0xff]   ;;  %v2109_v5 = vcombine.low %v115_v53, %v115_v53 }
  0x16   :  { %v2722_v61 = vld [vmem:[%s3648_s1 + $0x170] sm:$0xff]   ;;  %v2723_v1 = vld [vmem:[%s3648_s1 + $0xb8] sm:$0xff]   ;;  %v2733_v7 = vld [vmem:[%s3648_s1 + $0x1c0] sm:$0xff]  }
  0x17   :  { %2316 = vmatpush3.bf16.msra.mxu0 %v2661_v13  ;;  %2646 = vmatpush3.bf16.msra.mxu1 %v2661_v13  ;;  %v2724_v63 = vld [vmem:[%s3648_s1 + $0x130] sm:$0xff]   ;;  %v2731_v4 = vld [vmem:[%s3648_s1 + $0x178] sm:$0xff]   ;;  %v2734_v11 = vld [vmem:[%s3648_s1 + $0x180] sm:$0xff]  }
  0x18   :  { %2317 = vmatprep.subr.bf16.mxu0 %v2662_v14  ;;  %2639 = vmatprep.subr.bf16.mxu1 %v2662_v14  ;;  %v2729_v3 = vld [vmem:[%s3649_s0 + $0xc] ss:$40 sps:$4 sm:$0xff]   ;;  %v2732_v6 = vld [vmem:[%s3648_s1 + $0x138] sm:$0xff]   ;;  %v2727_v8 = vld [vmem:[%s3649_s0 + $0x8] ss:$40 sps:$4 sm:$0xff]  }
  0x19   :  { %v2730_v10 = vld [vmem:[%s3649_s0 + $0x190] ss:$40 sps:$4 sm:$0xff]   ;;  %v2735_v12 = vld [vmem:[%s3649_s0 + $0x5c] ss:$40 sps:$4 sm:$0xff]   ;;  %v2742_v14 = vld [vmem:[%s3648_s1 + $0x1c8] sm:$0xff]  }
  0x1a   :  { %v2739_v13 = vld [vmem:[%s3649_s0 + $0x14] ss:$40 sps:$4 sm:$0xff]   ;;  %v2778_v53 = vld [vmem:[%s3649_s0 + $0x1a4] ss:$40 sps:$4 sm:$0xff]  }
  0x1b   :  { %2318 = vmatpush3.bf16.msra.mxu0 %v2663_v15  ;;  %2647 = vmatpush3.bf16.msra.mxu1 %v2663_v15  ;;  %v2747_v15 = vld [vmem:[%s3648_s1 + $0x188] sm:$0xff]  }
  0x1c   :  { %2319 = vmatprep.subr.bf16.mxu0 %v2664_v16  ;;  %2640 = vmatprep.subr.bf16.mxu1 %v2664_v16  ;;  %v2737_v16 = vld [vmem:[%s3649_s0 + $0x10] ss:$40 sps:$4 sm:$0xff]  }
  0x1f   :  { %2320 = vmatpush3.bf16.msra.mxu0 %v2665_v17  ;;  %2648 = vmatpush3.bf16.msra.mxu1 %v2665_v17  ;;  %v2740_v17 = vld [vmem:[%s3649_s0 + $0x58] ss:$40 sps:$4 sm:$0xff]  }
  0x20   :  { %2469 = vmatprep.subr.bf16.mxu0 %v2672_v18  ;;  %2387 = vmatprep.subr.bf16.mxu1 %v2674_v21  ;;  %v2757_v18 = vld [vmem:[%s3648_s1 + $0x1d0] sm:$0xff]   ;;  %v2745_v21 = vld [vmem:[%s3649_s0 + $0x64] ss:$40 sps:$4 sm:$0xff]  }
  0x22   :  { %1310 = vmatmul.mubr.bf16.vlgmr.msra.gmra.mrb[0].mxu0 %v2666_v19  ;;  %1358 = vmatmul.mubr.bf16.vlgmr.msra.gmra.mrb[0].mxu1 %v2669_v20  ;;  %v2741_v19 = vld [vmem:[%s3648_s1 + $0x200] sm:$0xff]   ;;  %v2743_v20 = vld [vmem:[%s3649_s0 + $0xac] ss:$40 sps:$4 sm:$0xff]  }
  0x23   :  { %2470 = vmatpush3.bf16.msra.mxu0 %v2673_v22  ;;  %2388 = vmatpush3.bf16.msra.mxu1 %v2675_v23  ;;  %v2758_v22 = vld [vmem:[%s3648_s1 + $0x190] sm:$0xff]   ;;  %v2750_v23 = vld [vmem:[%s3648_s1 + $0x208] sm:$0xff]  }
  0x24   :  { %2471 = vmatprep.subr.bf16.mxu0 %v2676_v24  ;;  %1317 = vmatprep.mubr.bf16.mxu0 %v2677_v25  ;;  %v2766_v24 = vld [vmem:[%s3648_s1 + $0x1d8] sm:$0xff]   ;;  %v2748_v25 = vld [vmem:[%s3649_s0 + $0xa8] ss:$40 sps:$4 sm:$0xff]  }
  0x25   :  { %1365 = vmatprep.mubr.bf16.mxu1 %v2679_v26  ;;  %2389 = vmatprep.subr.bf16.mxu1 %v2684_v27  ;;  %v2768_v26 = vld [vmem:[%s3648_s1 + $0x198] sm:$0xff]   ;;  %v2749_v27 = vld [vmem:[%s3649_s0 + $0x60] ss:$40 sps:$4 sm:$0xff]  }
  0x27   :  { %2472 = vmatpush3.bf16.msra.mxu0 %v2681_v28  ;;  %2390 = vmatpush3.bf16.msra.mxu1 %v2685_v29  ;;  %v2751_v28 = vld [vmem:[%s3649_s0 + $0xfc] ss:$40 sps:$4 sm:$0xff]  }
  0x28   :  { %2473 = vmatprep.subr.bf16.mxu0 %v2686_v30  ;;  %2391 = vmatprep.subr.bf16.mxu1 %v2687_v33  ;;  %v2753_v29 = vld [vmem:[%s3649_s0 + $0xb4] ss:$40 sps:$4 sm:$0xff]  }
  0x29   :  { %v2759_v30 = vld [vmem:[%s3648_s1 + $0x210] sm:$0xff]   ;;  %v2767_v33 = vld [vmem:[%s3648_s1 + $0x218] sm:$0xff]  }
  0x2a   :  { %1318 = vmatmul.mubr.bf16.gmra.mrb[4].mxu0 %v2682_v31  ;;  %1366 = vmatmul.mubr.bf16.gmra.mrb[4].mxu1 %v2683_v32  ;;  %v2755_v31 = vld [vmem:[%s3649_s0 + $0xf8] ss:$40 sps:$4 sm:$0xff]  }
  0x2b   :  { %2474 = vmatpush3.bf16.msra.mxu0 %v2688_v34  ;;  %2392 = vmatpush3.bf16.msra.mxu1 %v2689_v35  ;;  %v2756_v32 = vld [vmem:[%s3649_s0 + $0xb0] ss:$40 sps:$4 sm:$0xff]   ;;  %v2780_v34 = vld [vmem:[%s3648_s1 + $0x1e0] sm:$0xff]  }
  0x2c   :  { %1325 = vmatprep.mubr.bf16.mxu0 %v2690_v36  ;;  %1373 = vmatprep.mubr.bf16.mxu1 %v2692_v37  ;;  %v2783_v35 = vld [vmem:[%s3648_s1 + $0x1a0] sm:$0xff]   ;;  %v2760_v36 = vld [vmem:[%s3649_s0 + $0x14c] ss:$40 sps:$4 sm:$0xff]  }
  0x2d   :  { %2393 = vmatprep.subr.bf16.mxu1 %v2696_v38  ;;  %2475 = vmatprep.subr.bf16.mxu0 %v2697_v39  ;;  %v2762_v37 = vld [vmem:[%s3649_s0 + $0x104] ss:$40 sps:$4 sm:$0xff]  }
  0x2e   :  { %v2775_v38 = vld [vmem:[%s3648_s1 + $0x220] sm:$0xff]   ;;  %v2791_v39 = vld [vmem:[%s3648_s1 + $0x1e8] sm:$0xff]  }
  0x2f   :  { %2394 = vmatpush3.bf16.msra.mxu1 %v2698_v40  ;;  %2476 = vmatpush3.bf16.msra.mxu0 %v2699_v41  ;;  %v2792_v40 = vld [vmem:[%s3648_s1 + $0x1a8] sm:$0xff]  }
  0x30   :  { %2395 = vmatprep.subr.bf16.mxu1 %v2704_v44  ;;  %2477 = vmatprep.subr.bf16.mxu0 %v2708_v47  ;;  %v2764_v41 = vld [vmem:[%s3649_s0 + $0x148] ss:$40 sps:$4 sm:$0xff]   ;;  %v2769_v44 = vld [vmem:[%s3649_s0 + $0x19c] ss:$40 sps:$4 sm:$0xff]  }
  0x31   :  { %v2800_v47 = vld [vmem:[%s3648_s1 + $0x1f0] sm:$0xff]  }
  0x32   :  { %1326 = vmatmul.mubr.bf16.gmra.mrb[8].mxu0 %v2694_v42  ;;  %1374 = vmatmul.mubr.bf16.gmra.mrb[8].mxu1 %v2695_v43  ;;  %v2784_v42 = vld [vmem:[%s3648_s1 + $0x228] sm:$0xff]  }
  0x33   :  { %1333 = vmatprep.mubr.bf16.mxu0 %v2700_v45  ;;  %1381 = vmatprep.mubr.bf16.mxu1 %v2702_v46  ;;  %v2765_v43 = vld [vmem:[%s3649_s0 + $0x100] ss:$40 sps:$4 sm:$0xff]   ;;  %v2771_v45 = vld [vmem:[%s3649_s0 + $0x154] ss:$40 sps:$4 sm:$0xff]  }
  0x34   :  { %2396 = vmatpush3.bf16.msra.mxu1 %v2707_v48  ;;  %2478 = vmatpush3.bf16.msra.mxu0 %v2709_v49  ;;  %v2793_v46 = vld [vmem:[%s3648_s1 + $0x230] sm:$0xff]   ;;  %v2773_v49 = vld [vmem:[%s3649_s0 + $0x198] ss:$40 sps:$4 sm:$0xff]  }
  0x35   :  { %2397 = vmatprep.subr.bf16.mxu1 %v2710_v50  ;;  %2479 = vmatprep.subr.bf16.mxu0 %v2712_v51  ;;  %v2801_v48 = vld [vmem:[%s3648_s1 + $0x1b0] sm:$0xff]   ;;  %v2806_v50 = vld [vmem:[%s3648_s1 + $0x238] sm:$0xff]  }
  0x36   :  { %v2774_v51 = vld [vmem:[%s3649_s0 + $0x150] ss:$40 sps:$4 sm:$0xff]  }
  0x38   :  { %2398 = vmatpush3.bf16.msra.mxu1 %v2711_v52  ;;  %2480 = vmatpush3.bf16.msra.mxu0 %v2716_v56  ;;  %v2776_v52 = vld [vmem:[%s3649_s0 + $0x1ec] ss:$40 sps:$4 sm:$0xff]   ;;  %v2816_v56 = vld [vmem:[%s3648_s1 + $0x1b8] sm:$0xff]  }
  0x39   :  { %2399 = vmatprep.subr.bf16.mxu1 %v2719_v57  ;;  %2481 = vmatprep.subr.bf16.mxu0 %v2722_v61  ;;  %v2822_v57 = vld [vmem:[%s3648_s1 + $0x248] ss:$0 sps:$4 sm:$0x11]  }
  0x3a   :  { %1334 = vmatmul.mubr.bf16.gmra.mrb[12].mxu0 %v2705_v54  ;;  %1382 = vmatmul.mubr.bf16.gmra.mrb[12].mxu1 %v2706_v55  ;;  %v2814_v54 = vld [vmem:[%s3648_s1 + $0x1f8] sm:$0xff]   ;;  %v2815_v55 = vld [vmem:[%s3648_s1 + $0x240] sm:$0xff]   ;;  %v1275_v61 = vsel %vm1273_vm0, %v2822_v57, 0 }
  0x3b   :  { %1341 = vmatprep.mubr.bf16.mxu0 %v2713_v58  ;;  %1389 = vmatprep.mubr.bf16.mxu1 %v2110_v59  ;;  %v2781_v58 = vld [vmem:[%s3649_s0 + $0x1e8] ss:$40 sps:$4 sm:$0xff]   ;;  %v2878_v57 = vld [vmem:[%s3649_s0 + $0x2f4] ss:$40 sps:$4 sm:$0xff]  }
  0x3c   :  { %2400 = vmatpush3.bf16.msra.mxu1 %v2720_v60  ;;  %2482 = vmatpush3.bf16.msra.mxu0 %v2724_v63  ;;  %v2782_v59 = vld [vmem:[%s3649_s0 + $0x1a0] ss:$40 sps:$4 sm:$0xff]   ;;  %v2785_v60 = vld [vmem:[%s3649_s0 + $0x23c] ss:$40 sps:$4 sm:$0xff]  }
  0x3d   :  { %2401 = vmatprep.subr.bf16.mxu1 %v2721_v62  ;;  %2483 = vmatprep.subr.bf16.mxu0 %v2731_v4  ;;  %v2787_v62 = vld [vmem:[%s3649_s0 + $0x1f4] ss:$40 sps:$4 sm:$0xff]   ;;  %v2789_v63 = vld [vmem:[%s3649_s0 + $0x238] ss:$40 sps:$4 sm:$0xff]  }
  0x3e   :  { %v2799_v4 = vld [vmem:[%s3649_s0 + $0x240] ss:$40 sps:$4 sm:$0xff]  }
  0x40   :  { %2402 = vmatpush3.bf16.msra.mxu1 %v2723_v1  ;;  %2484 = vmatpush3.bf16.msra.mxu0 %v2732_v6  ;;  %v2794_v1 = vld [vmem:[%s3649_s0 + $0x28c] ss:$40 sps:$4 sm:$0xff]  }
  0x41   :  { %2551 = vmatprep.subr.bf16.mxu1 %v2733_v7  ;;  %1757 = vmatprep.subr.bf16.mxu0 %v2884_v9  ;;  %v2804_v6 = vld [vmem:[%s3649_s0 + $0x294] ss:$40 sps:$4 sm:$0xff]   ;;  %v116_v7 = vld [vmem:[%s3649_s0 + $0x328] sm:$0x11] }
  0x42   :  { %1342 = vmatmul.mubr.bf16.gmra.mrb[16].mxu0 %v2717_v0  ;;  %1390 = vmatmul.mubr.bf16.gmra.mrb[16].mxu1 %v2109_v5  ;;  %v2790_v0 = vld [vmem:[%s3649_s0 + $0x1f0] ss:$40 sps:$4 sm:$0xff]   ;;  %v2802_v5 = vld [vmem:[%s3649_s0 + $0x2dc] ss:$40 sps:$4 sm:$0xff]  }
  0x43   :  { %1349 = vmatprep.mubr.bf16.mxu0 %v2725_v2  ;;  %1429 = vmatprep.mubr.bf16.mxu1 %v2729_v3  ;;  %v2796_v2 = vld [vmem:[%s3649_s0 + $0x244] ss:$40 sps:$4 sm:$0xff]   ;;  %v2798_v3 = vld [vmem:[%s3649_s0 + $0x288] ss:$40 sps:$4 sm:$0xff]  }
  0x4a   :  { %1350 = vmatmul.mubr.bf16.gmra.mrb[20].mxu0 %v2730_v10  ;;  %1430 = vmatmul.mubr.bf16.vlgmr.msra.gmra.mrb[20].mxu1 %v2727_v8  ;;  %v2807_v8 = vld [vmem:[%s3649_s0 + $0x2d8] ss:$40 sps:$4 sm:$0xff]   ;;  %v2112_v10 = vcombine.high %v116_v7, %v116_v7 }
  0x4b   :  { %2552 = vmatpush3.bf16.msra.mxu1 %v2734_v11  ;;  %1437 = vmatprep.mubr.bf16.mxu1 %v2735_v12  ;;  %v2810_v11 = vld [vmem:[%s3649_s0 + $0x2e4] ss:$40 sps:$4 sm:$0xff]   ;;  %v117_v12 = vld [vmem:[%s3649_s0 + $0x330] sm:$0x11] }
  0x4c   :  { %1549 = vmatprep.mubr.bf16.mxu0 %v2739_v13  ;;  %2553 = vmatprep.subr.bf16.mxu1 %v2742_v14  ;;  %v2111_v13 = vcombine.low %v116_v7, %v116_v7  ;;  %v2813_v14 = vld [vmem:[%s3649_s0 + $0x2e0] ss:$40 sps:$4 sm:$0xff]  }
  0x4f   :  { %2554 = vmatpush3.bf16.msra.mxu1 %v2747_v15  ;;  %v2114_v15 = vcombine.high %v117_v12, %v117_v12 }
  0x50   :  { %2555 = vmatprep.subr.bf16.mxu1 %v2757_v18  ;;  %v2113_v18 = vcombine.low %v117_v12, %v117_v12 }
  0x52   :  { %1438 = vmatmul.mubr.bf16.gmra.mrb[24].mxu1 %v2740_v17  ;;  %1550 = vmatmul.mubr.bf16.vlgmr.msra.gmra.mrb[24].mxu0 %v2737_v16  ;;  %v2820_v16 = vld [vmem:[%s3649_s0 + $0x1c] ss:$40 sps:$4 sm:$0xff]   ;;  %v2818_v17 = vld [vmem:[%s3649_s0 + $0x18] ss:$40 sps:$4 sm:$0xff]  }
  0x53   :  { %1758 = vmatpush1.bf16.msra.mxu0 %v2741_v19  ;;  %1445 = vmatprep.mubr.bf16.mxu1 %v2743_v20  ;;  %v2823_v19 = vld [vmem:[%s3649_s0 + $0x6c] ss:$40 sps:$4 sm:$0xff]  }
  0x54   :  { %1557 = vmatprep.mubr.bf16.mxu0 %v2745_v21  ;;  %1759 = vmatprep.subr.bf16.mxu0 %v2884_v9  ;;  %v2827_v20 = vld [vmem:[%s3649_s0 + $0x24] ss:$40 sps:$4 sm:$0xff]   ;;  %v2825_v21 = vld [vmem:[%s3649_s0 + $0x20] ss:$40 sps:$4 sm:$0xff]  }
  0x55   :  { %2556 = vmatpush3.bf16.msra.mxu1 %v2758_v22  ;;  %v2828_v22 = vld [vmem:[%s3649_s0 + $0x68] ss:$40 sps:$4 sm:$0xff]  }
  0x56   :  { %2557 = vmatprep.subr.bf16.mxu1 %v2766_v24  ;;  %v2831_v24 = vld [vmem:[%s3649_s0 + $0x74] ss:$40 sps:$4 sm:$0xff]  }
  0x57   :  { %1760 = vmatpush1.bf16.msra.mxu0 %v2750_v23  ;;  %v2829_v23 = vld [vmem:[%s3649_s0 + $0xbc] ss:$40 sps:$4 sm:$0xff]  }
  0x58   :  { %1761 = vmatprep.subr.bf16.mxu0 %v2884_v9 }
  0x59   :  { %2558 = vmatpush3.bf16.msra.mxu1 %v2768_v26  ;;  %v2834_v26 = vld [vmem:[%s3649_s0 + $0x70] ss:$40 sps:$4 sm:$0xff]  }
  0x5a   :  { %1446 = vmatmul.mubr.bf16.gmra.mrb[28].mxu1 %v2748_v25  ;;  %1558 = vmatmul.mubr.bf16.gmra.mrb[28].mxu0 %v2749_v27  ;;  %v2833_v25 = vld [vmem:[%s3649_s0 + $0xb8] ss:$40 sps:$4 sm:$0xff]   ;;  %v2835_v27 = vld [vmem:[%s3649_s0 + $0x10c] ss:$40 sps:$4 sm:$0xff]  }
  0x5b   :  { %1453 = vmatprep.mubr.bf16.mxu1 %v2751_v28  ;;  %1565 = vmatprep.mubr.bf16.mxu0 %v2753_v29  ;;  %v2837_v28 = vld [vmem:[%s3649_s0 + $0xc4] ss:$40 sps:$4 sm:$0xff]   ;;  %v2839_v29 = vld [vmem:[%s3649_s0 + $0x108] ss:$40 sps:$4 sm:$0xff]  }
  0x5c   :  { %1762 = vmatpush1.bf16.msra.mxu0 %v2759_v30  ;;  %2559 = vmatprep.subr.bf16.mxu1 %v2780_v34  ;;  %v2840_v30 = vld [vmem:[%s3649_s0 + $0xc0] ss:$40 sps:$4 sm:$0xff]   ;;  %v2846_v34 = vld [vmem:[%s3649_s0 + $0x110] ss:$40 sps:$4 sm:$0xff]  }
  0x5d   :  { %1763 = vmatprep.subr.bf16.mxu0 %v2884_v9  ;;  %2560 = vmatpush3.bf16.msra.mxu1 %v2783_v35  ;;  %v2847_v35 = vld [vmem:[%s3649_s0 + $0x1ac] ss:$40 sps:$4 sm:$0xff]  }
  0x5e   :  { %2561 = vmatprep.subr.bf16.mxu1 %v2791_v39  ;;  %v2853_v39 = vld [vmem:[%s3649_s0 + $0x1fc] ss:$40 sps:$4 sm:$0xff]  }
  0x60   :  { %1764 = vmatpush1.bf16.msra.mxu0 %v2767_v33  ;;  %v2845_v33 = vld [vmem:[%s3649_s0 + $0x158] ss:$40 sps:$4 sm:$0xff]  }
  0x61   :  { %1765 = vmatprep.subr.bf16.mxu0 %v2884_v9  ;;  %2562 = vmatpush3.bf16.msra.mxu1 %v2792_v40  ;;  %v2855_v40 = vld [vmem:[%s3649_s0 + $0x1b4] ss:$40 sps:$4 sm:$0xff]  }
  0x62   :  { %1454 = vmatmul.mubr.bf16.gmra.mrb[32].mxu1 %v2755_v31  ;;  %1566 = vmatmul.mubr.bf16.gmra.mrb[32].mxu0 %v2756_v32  ;;  %v2841_v31 = vld [vmem:[%s3649_s0 + $0x15c] ss:$40 sps:$4 sm:$0xff]  }
  0x63   :  { %1461 = vmatprep.mubr.bf16.mxu1 %v2760_v36  ;;  %1573 = vmatprep.mubr.bf16.mxu0 %v2762_v37  ;;  %v2843_v32 = vld [vmem:[%s3649_s0 + $0x114] ss:$40 sps:$4 sm:$0xff]   ;;  %v2849_v36 = vld [vmem:[%s3649_s0 + $0x164] ss:$40 sps:$4 sm:$0xff]   ;;  %v2851_v37 = vld [vmem:[%s3649_s0 + $0x1a8] ss:$40 sps:$4 sm:$0xff]  }
  0x64   :  { %1766 = vmatpush1.bf16.msra.mxu0 %v2775_v38  ;;  %2563 = vmatprep.subr.bf16.mxu1 %v2800_v47  ;;  %v2852_v38 = vld [vmem:[%s3649_s0 + $0x160] ss:$40 sps:$4 sm:$0xff]   ;;  %v2865_v47 = vld [vmem:[%s3649_s0 + $0x29c] ss:$40 sps:$4 sm:$0xff]  }
  0x65   :  { %1767 = vmatprep.subr.bf16.mxu0 %v2884_v9  ;;  %2564 = vmatpush3.bf16.msra.mxu1 %v2801_v48  ;;  %v2867_v48 = vld [vmem:[%s3649_s0 + $0x254] ss:$40 sps:$4 sm:$0xff]  }
  0x66   :  { %2565 = vmatprep.subr.bf16.mxu1 %v2814_v54  ;;  %v2875_v54 = vld [vmem:[%s3649_s0 + $0x2e8] ss:$40 sps:$4 sm:$0xff]  }
  0x68   :  { %1768 = vmatpush1.bf16.msra.mxu0 %v2784_v42  ;;  %v2858_v42 = vld [vmem:[%s3649_s0 + $0x1b0] ss:$40 sps:$4 sm:$0xff]  }
  0x69   :  { %1769 = vmatprep.subr.bf16.mxu0 %v2884_v9  ;;  %2566 = vmatpush3.bf16.msra.mxu1 %v2816_v56 }
  0x6a   :  { %1462 = vmatmul.mubr.bf16.gmra.mrb[36].mxu1 %v2764_v41  ;;  %1574 = vmatmul.mubr.bf16.gmra.mrb[36].mxu0 %v2765_v43  ;;  %v2857_v41 = vld [vmem:[%s3649_s0 + $0x1f8] ss:$40 sps:$4 sm:$0xff]   ;;  %v2859_v43 = vld [vmem:[%s3649_s0 + $0x24c] ss:$40 sps:$4 sm:$0xff]  }
  0x6b   :  { %1469 = vmatprep.mubr.bf16.mxu1 %v2769_v44  ;;  %1581 = vmatprep.mubr.bf16.mxu0 %v2771_v45  ;;  %v2861_v44 = vld [vmem:[%s3649_s0 + $0x204] ss:$40 sps:$4 sm:$0xff]   ;;  %v2863_v45 = vld [vmem:[%s3649_s0 + $0x248] ss:$40 sps:$4 sm:$0xff]  }
  0x6c   :  { %1770 = vmatpush1.bf16.msra.mxu0 %v2793_v46  ;;  %v2864_v46 = vld [vmem:[%s3649_s0 + $0x200] ss:$40 sps:$4 sm:$0xff]  }
  0x6d   :  { %1771 = vmatprep.subr.bf16.mxu0 %v2884_v9 }
  0x70   :  { %1772 = vmatpush1.bf16.msra.mxu0 %v2806_v50  ;;  %v2870_v50 = vld [vmem:[%s3649_s0 + $0x250] ss:$40 sps:$4 sm:$0xff]  }
  0x71   :  { %1773 = vmatprep.subr.bf16.mxu0 %v2884_v9 }
  0x72   :  { %1470 = vmatmul.mubr.bf16.gmra.mrb[40].mxu1 %v2773_v49  ;;  %1582 = vmatmul.mubr.bf16.gmra.mrb[40].mxu0 %v2774_v51  ;;  %v2869_v49 = vld [vmem:[%s3649_s0 + $0x298] ss:$40 sps:$4 sm:$0xff]   ;;  %v2871_v51 = vld [vmem:[%s3649_s0 + $0x2ec] ss:$40 sps:$4 sm:$0xff]  }
  0x73   :  { %1477 = vmatprep.mubr.bf16.mxu1 %v2776_v52  ;;  %1589 = vmatprep.mubr.bf16.mxu0 %v2778_v53  ;;  %v2873_v52 = vld [vmem:[%s3649_s0 + $0x2a4] ss:$40 sps:$4 sm:$0xff]   ;;  %v118_v53 = vld [vmem:[%s3649_s0 + $0x338] sm:$0x11] }
  0x74   :  { %1774 = vmatpush1.bf16.msra.mxu0 %v2815_v55  ;;  %v2876_v55 = vld [vmem:[%s3649_s0 + $0x2a0] ss:$40 sps:$4 sm:$0xff]   ;;  %v2116_v56 = vcombine.high %v118_v53, %v118_v53 }
  0x75   :  { %1775 = vmatprep.subr.bf16.mxu0 %v2884_v9  ;;  %v2808_v9 = vld [vmem:[%s3649_s0 + $0x290] ss:$40 sps:$4 sm:$0xff]  }
  0x78   :  { %1776 = vmatpush1.bf16.msra.mxu0 %v1275_v61 }
  0x7a   :  { %1478 = vmatmul.mubr.bf16.gmra.mrb[44].mxu1 %v2781_v58  ;;  %1590 = vmatmul.mubr.bf16.gmra.mrb[44].mxu0 %v2782_v59  ;;  %v119_v58 = vld [vmem:[%s3649_s0 + $0x340] sm:$0x11]  ;;  %v2115_v59 = vcombine.low %v118_v53, %v118_v53 }
  0x7b   :  { %1485 = vmatprep.mubr.bf16.mxu1 %v2785_v60  ;;  %1597 = vmatprep.mubr.bf16.mxu0 %v2787_v62  ;;  %v2881_v60 = vld [vmem:[%s3649_s0 + $0x2f0] ss:$40 sps:$4 sm:$0xff]   ;;  %v2118_v61 = vcombine.high %v119_v58, %v119_v58 }
  0x82   :  { %1486 = vmatmul.mubr.bf16.gmra.mrb[48].mxu1 %v2789_v63  ;;  %1598 = vmatmul.mubr.bf16.gmra.mrb[48].mxu0 %v2790_v0 }
  0x83   :  { %1493 = vmatprep.mubr.bf16.mxu1 %v2794_v1  ;;  %1605 = vmatprep.mubr.bf16.mxu0 %v2796_v2  ;;  %v2117_v2 = vcombine.low %v119_v58, %v119_v58 }
  0x8a   :  { %1494 = vmatmul.mubr.bf16.gmra.mrb[52].mxu1 %v2798_v3  ;;  %1606 = vmatmul.mubr.bf16.gmra.mrb[52].mxu0 %v2799_v4 }
  0x8b   :  { %1501 = vmatprep.mubr.bf16.mxu1 %v2802_v5  ;;  %1613 = vmatprep.mubr.bf16.mxu0 %v2804_v6 }
  0x92   :  { %1502 = vmatmul.mubr.bf16.gmra.mrb[56].mxu1 %v2807_v8  ;;  %1614 = vmatmul.mubr.bf16.gmra.mrb[56].mxu0 %v2808_v9 }
  0x93   :  { %1509 = vmatprep.mubr.bf16.mxu1 %v2112_v10  ;;  %1621 = vmatprep.mubr.bf16.mxu0 %v2810_v11 }
  0x9a   :  { %1510 = vmatmul.mubr.bf16.gmra.mrb[60].mxu1 %v2111_v13  ;;  %1622 = vmatmul.mubr.bf16.gmra.mrb[60].mxu0 %v2813_v14 }
  0x9b   :  { %1629 = vmatprep.mubr.bf16.mxu0 %v2114_v15  ;;  %1669 = vmatprep.mubr.bf16.mxu1 %v2820_v16 }
  0xa2   :  { %1630 = vmatmul.mubr.bf16.gmra.mrb[64].mxu0 %v2113_v18  ;;  %1670 = vmatmul.mubr.bf16.vlgmr.msra.gmra.mrb[64].mxu1 %v2818_v17 }
  0xa3   :  { %1677 = vmatprep.mubr.bf16.mxu1 %v2823_v19  ;;  %2193 = vmatprep.mubr.msk.bf16.mxu0 %vm1239_vm1, %v2827_v20 }
  0xaa   :  { %1678 = vmatmul.mubr.bf16.gmra.mrb[68].mxu1 %v2828_v22  ;;  %1790 = vmatmul.mubr.bf16.vlgmr.msra.gmra.mrb[68].mxu0 %v2825_v21 }
  0xab   :  { %1685 = vmatprep.mubr.bf16.mxu1 %v2829_v23  ;;  %2194 = vmatprep.mubr.msk.bf16.mxu0 %vm1239_vm1, %v2831_v24 }
  0xb2   :  { %1686 = vmatmul.mubr.bf16.gmra.mrb[72].mxu1 %v2833_v25  ;;  %1798 = vmatmul.mubr.bf16.gmra.mrb[72].mxu0 %v2834_v26 }
  0xb3   :  { %1693 = vmatprep.mubr.bf16.mxu1 %v2835_v27  ;;  %2195 = vmatprep.mubr.msk.bf16.mxu0 %vm1239_vm1, %v2837_v28 }
  0xba   :  { %1694 = vmatmul.mubr.bf16.gmra.mrb[76].mxu1 %v2839_v29  ;;  %1806 = vmatmul.mubr.bf16.gmra.mrb[76].mxu0 %v2840_v30 }
  0xbb   :  { %1701 = vmatprep.mubr.bf16.mxu1 %v2841_v31  ;;  %2196 = vmatprep.mubr.msk.bf16.mxu0 %vm1239_vm1, %v2843_v32  ;;  %v3484_v31 = vld [vmem:[%s3650_s2] ss:$0 sm:$0xff] }
  0xc2   :  { %1702 = vmatmul.mubr.bf16.gmra.mrb[80].mxu1 %v2845_v33  ;;  %1814 = vmatmul.mubr.bf16.gmra.mrb[80].mxu0 %v2846_v34 }
  0xc3   :  { %1709 = vmatprep.mubr.bf16.mxu1 %v2847_v35  ;;  %2197 = vmatprep.mubr.msk.bf16.mxu0 %vm1239_vm1, %v2849_v36 }
  0xca   :  { %1710 = vmatmul.mubr.bf16.gmra.mrb[84].mxu1 %v2851_v37  ;;  %1822 = vmatmul.mubr.bf16.gmra.mrb[84].mxu0 %v2852_v38 }
  0xcb   :  { %1717 = vmatprep.mubr.bf16.mxu1 %v2853_v39  ;;  %2198 = vmatprep.mubr.msk.bf16.mxu0 %vm1239_vm1, %v2855_v40 }
  0xd2   :  { %1718 = vmatmul.mubr.bf16.gmra.mrb[88].mxu1 %v2857_v41  ;;  %1830 = vmatmul.mubr.bf16.gmra.mrb[88].mxu0 %v2858_v42 }
  0xd3   :  { %1725 = vmatprep.mubr.bf16.mxu1 %v2859_v43  ;;  %2199 = vmatprep.mubr.msk.bf16.mxu0 %vm1239_vm1, %v2861_v44 }
  0xda   :  { %1726 = vmatmul.mubr.bf16.gmra.mrb[92].mxu1 %v2863_v45  ;;  %1838 = vmatmul.mubr.bf16.gmra.mrb[92].mxu0 %v2864_v46 }
  0xdb   :  { %1733 = vmatprep.mubr.bf16.mxu1 %v2865_v47  ;;  %2200 = vmatprep.mubr.msk.bf16.mxu0 %vm1239_vm1, %v2867_v48 }
  0xe2   :  { %1734 = vmatmul.mubr.bf16.gmra.mrb[96].mxu1 %v2869_v49  ;;  %1846 = vmatmul.mubr.bf16.gmra.mrb[96].mxu0 %v2870_v50 }
  0xe3   :  { %1741 = vmatprep.mubr.bf16.mxu1 %v2871_v51  ;;  %2201 = vmatprep.mubr.msk.bf16.mxu0 %vm1239_vm1, %v2873_v52 }
  0xea   :  { %1742 = vmatmul.mubr.bf16.gmra.mrb[100].mxu1 %v2875_v54  ;;  %1854 = vmatmul.mubr.bf16.gmra.mrb[100].mxu0 %v2876_v55 }
  0xeb   :  { %1749 = vmatprep.mubr.bf16.mxu1 %v2116_v56  ;;  %2202 = vmatprep.mubr.msk.bf16.mxu0 %vm1239_vm1, %v2878_v57 }
  0xf2   :  { %1750 = vmatmul.mubr.bf16.gmra.mrb[104].mxu1 %v2115_v59  ;;  %1862 = vmatmul.mubr.bf16.gmra.mrb[104].mxu0 %v2881_v60 }
  0xf3   :  { %2203 = vmatprep.mubr.msk.bf16.mxu0 %vm1239_vm1, %v2118_v61 }
  0xf5   :  { %v2321_v62 = vpop.f32.mrb[0].mxu0  ;;  %v2357_v63 = vpop.f32.mrb[0].mxu1 }
  0xf6   :  { %v2322_v0 = vpop.f32.mrb[1].mxu0  ;;  %v2358_v1 = vpop.f32.mrb[1].mxu1 }
  0xf7   :  { %v3463_v3 = vadd.f32 %v2322_v0, %v2321_v62  ;;  %v2324_v4 = vpop.f32.mrb[2].mxu0  ;;  %v3465_v5 = vadd.f32 %v2358_v1, %v2357_v63  ;;  %v2360_v6 = vpop.f32.mrb[2].mxu1 }
  0xf8   :  { %v2325_v7 = vpop.f32.mrb[3].mxu0  ;;  %v2361_v8 = vpop.f32.mrb[3].mxu1 }
  0xf9   :  { %v3467_v9 = vadd.f32 %v2325_v7, %v2324_v4  ;;  %v3469_v10 = vadd.f32 %v2361_v8, %v2360_v6  ;;  %v1312_v6 = vadd.f32 %v3463_v3, %v3484_v31 }
  0xfa   :  { %1870 = vmatmul.mubr.bf16.gmra.mrb[108].mxu0 %v2117_v2 }
  0xfd   :  { %v2327_v11 = vpop.f32.mrb[4].mxu0  ;;  %v2363_v12 = vpop.f32.mrb[4].mxu1 }
  0xfe   :  { %v2328_v13 = vpop.f32.mrb[5].mxu0  ;;  %v2364_v14 = vpop.f32.mrb[5].mxu1 }
  0xff   :  { %v3471_v15 = vadd.f32 %v2328_v13, %v2327_v11  ;;  %v2330_v16 = vpop.f32.mrb[6].mxu0  ;;  %v3473_v17 = vadd.f32 %v2364_v14, %v2363_v12  ;;  %v2366_v18 = vpop.f32.mrb[6].mxu1 }
 0x100   :  { %v2331_v19 = vpop.f32.mrb[7].mxu0  ;;  %v2367_v20 = vpop.f32.mrb[7].mxu1 }
 0x101   :  { %v3475_v21 = vadd.f32 %v2331_v19, %v2330_v16  ;;  %v3477_v22 = vadd.f32 %v2367_v20, %v2366_v18  ;;  %v1315_v16 = vadd.f32 %v3467_v9, %v3484_v31  ;;  %v1320_v3 = vadd.f32 %v3471_v15, %v3484_v31 }
 0x105   :  { %v2333_v23 = vpop.f32.mrb[8].mxu0  ;;  %v2369_v24 = vpop.f32.mrb[8].mxu1 }
 0x106   :  { %v2334_v25 = vpop.f32.mrb[9].mxu0  ;;  %v2370_v26 = vpop.f32.mrb[9].mxu1 }
 0x107   :  { %v3479_v27 = vadd.f32 %v2334_v25, %v2333_v23  ;;  %v2336_v28 = vpop.f32.mrb[10].mxu0  ;;  %v2371_v29 = vadd.f32 %v2370_v26, %v2369_v24  ;;  %v2372_v30 = vpop.f32.mrb[10].mxu1 }
 0x108   :  { %v2337_v32 = vpop.f32.mrb[11].mxu0  ;;  %v2373_v33 = vpop.f32.mrb[11].mxu1 }
 0x109   :  { %v3487_v34 = vadd.f32 %v2371_v29, %v3484_v31  ;;  %v3489_v35 = vadd.f32 %v2337_v32, %v2336_v28  ;;  %v2374_v36 = vadd.f32 %v2373_v33, %v2372_v30 }
 0x10b   :  { %v3492_v37 = vadd.f32 %v2374_v36, %v3484_v31  ;;  %v1323_v36 = vadd.f32 %v3475_v21, %v3484_v31 }
 0x10d   :  { %v2339_v38 = vpop.f32.mrb[12].mxu0  ;;  %v2375_v39 = vpop.f32.mrb[12].mxu1 }
 0x10e   :  { %v2340_v40 = vpop.f32.mrb[13].mxu0  ;;  %v2376_v41 = vpop.f32.mrb[13].mxu1 }
 0x10f   :  { %v3494_v42 = vadd.f32 %v2340_v40, %v2339_v38  ;;  %v2342_v43 = vpop.f32.mrb[14].mxu0  ;;  %v2377_v44 = vadd.f32 %v2376_v41, %v2375_v39  ;;  %v2378_v45 = vpop.f32.mrb[14].mxu1 }
 0x110   :  { %v2343_v46 = vpop.f32.mrb[15].mxu0  ;;  %v2379_v47 = vpop.f32.mrb[15].mxu1 }
 0x111   :  { %v3497_v48 = vadd.f32 %v2377_v44, %v3484_v31  ;;  %v3499_v49 = vadd.f32 %v2343_v46, %v2342_v43  ;;  %v2380_v50 = vadd.f32 %v2379_v47, %v2378_v45 }
 0x113   :  { %v3502_v51 = vadd.f32 %v2380_v50, %v3484_v31 }
 0x115   :  { %v2345_v52 = vpop.f32.mrb[16].mxu0  ;;  %v2381_v53 = vpop.f32.mrb[16].mxu1 }
 0x116   :  { %v2346_v54 = vpop.f32.mrb[17].mxu0  ;;  %v2382_v55 = vpop.f32.mrb[17].mxu1 }
 0x117   :  { %v3504_v56 = vadd.f32 %v2346_v54, %v2345_v52  ;;  %v2348_v57 = vpop.f32.mrb[18].mxu0  ;;  %v2383_v58 = vadd.f32 %v2382_v55, %v2381_v53  ;;  %v2384_v59 = vpop.f32.mrb[18].mxu1  ;;  %v1328_v52 = vadd.f32 %v3479_v27, %v3484_v31 }
 0x118   :  { %v2349_v60 = vpop.f32.mrb[19].mxu0  ;;  %v2385_v61 = vpop.f32.mrb[19].mxu1 }
 0x119   :  { %v3507_v62 = vadd.f32 %v2383_v58, %v3484_v31  ;;  %v3509_v63 = vadd.f32 %v2349_v60, %v2348_v57  ;;  %v1331_v57 = vadd.f32 %v3489_v35, %v3484_v31 }
 0x11d   :  { %v2351_v0 = vpop.f32.mrb[20].mxu0  ;;  %v2403_v1 = vpop.f32.mrb[20].mxu1 }
 0x11e   :  { %v2352_v2 = vpop.f32.mrb[21].mxu0  ;;  %v2404_v4 = vpop.f32.mrb[21].mxu1 }
 0x11f   :  { %v3513_v7 = vadd.f32 %v2352_v2, %v2351_v0  ;;  %v2405_v8 = vadd.f32 %v2404_v4, %v2403_v1  ;;  %v2354_v11 = vpop.f32.mrb[22].mxu0  ;;  %v2406_v12 = vpop.f32.mrb[22].mxu1 }
 0x120   :  { %v2355_v13 = vpop.f32.mrb[23].mxu0  ;;  %v2407_v14 = vpop.f32.mrb[23].mxu1 }
 0x121   :  { %v1432_v18 = vadd.f32 %v2405_v8, %v1312_v6  ;;  %v3517_v19 = vadd.f32 %v2355_v13, %v2354_v11  ;;  %v2408_v20 = vadd.f32 %v2407_v14, %v2406_v12  ;;  %v1336_v12 = vadd.f32 %v3494_v42, %v3484_v31 }
 0x123   :  { %v1435_v23 = vadd.f32 %v2408_v20, %v1315_v16 }
 0x125   :  { %v2409_v24 = vpop.f32.mrb[24].mxu1  ;;  %v2485_v25 = vpop.f32.mrb[24].mxu0 }
 0x126   :  { %v2410_v26 = vpop.f32.mrb[25].mxu1  ;;  %v2486_v28 = vpop.f32.mrb[25].mxu0 }
 0x127   :  { %v2411_v29 = vadd.f32 %v2410_v26, %v2409_v24  ;;  %v2487_v30 = vadd.f32 %v2486_v28, %v2485_v25  ;;  %v2412_v32 = vpop.f32.mrb[26].mxu1  ;;  %v2488_v33 = vpop.f32.mrb[26].mxu0 }
 0x128   :  { %v2413_v9 = vpop.f32.mrb[27].mxu1  ;;  %v2489_v38 = vpop.f32.mrb[27].mxu0 }
 0x129   :  { %v1440_v39 = vadd.f32 %v2411_v29, %v1320_v3  ;;  %v3523_v40 = vadd.f32 %v2487_v30, %v1432_v18  ;;  %v2414_v41 = vadd.f32 %v2413_v9, %v2412_v32  ;;  %v2490_v43 = vadd.f32 %v2489_v38, %v2488_v33 }
 0x12a   :  { %v1339_v18 = vadd.f32 %v3499_v49, %v3484_v31 }
 0x12b   :  { %v1443_v44 = vadd.f32 %v2414_v41, %v1323_v36  ;;  %v3525_v45 = vadd.f32 %v2490_v43, %v1435_v23  ;;  %v1344_v36 = vadd.f32 %v3504_v56, %v3484_v31  ;;  %v1347_v41 = vadd.f32 %v3509_v63, %v3484_v31 }
 0x12d   :  { %v2415_v46 = vpop.f32.mrb[28].mxu1  ;;  %v2491_v47 = vpop.f32.mrb[28].mxu0 }
 0x12e   :  { %v2416_v15 = vpop.f32.mrb[29].mxu1  ;;  %v2492_v50 = vpop.f32.mrb[29].mxu0 }
 0x12f   :  { %v2417_v53 = vadd.f32 %v2416_v15, %v2415_v46  ;;  %v2493_v54 = vadd.f32 %v2492_v50, %v2491_v47  ;;  %v2418_v21 = vpop.f32.mrb[30].mxu1  ;;  %v2494_v55 = vpop.f32.mrb[30].mxu0 }
 0x130   :  { %v2419_v58 = vpop.f32.mrb[31].mxu1  ;;  %v2495_v59 = vpop.f32.mrb[31].mxu0 }
 0x131   :  { %v1448_v60 = vadd.f32 %v2417_v53, %v1328_v52  ;;  %v3531_v61 = vadd.f32 %v2493_v54, %v1440_v39  ;;  %v2420_v0 = vadd.f32 %v2419_v58, %v2418_v21  ;;  %v2496_v1 = vadd.f32 %v2495_v59, %v2494_v55 }
 0x133   :  { %v1451_v2 = vadd.f32 %v2420_v0, %v1331_v57  ;;  %v3533_v4 = vadd.f32 %v2496_v1, %v1443_v44  ;;  %v1352_v57 = vadd.f32 %v3513_v7, %v3484_v31  ;;  %v1355_v0 = vadd.f32 %v3517_v19, %v3484_v31 }
 0x135   :  { %v2421_v6 = vpop.f32.mrb[32].mxu1  ;;  %v2497_v8 = vpop.f32.mrb[32].mxu0 }
 0x136   :  { %v2422_v27 = vpop.f32.mrb[33].mxu1  ;;  %v2498_v11 = vpop.f32.mrb[33].mxu0 }
 0x137   :  { %v2423_v13 = vadd.f32 %v2422_v27, %v2421_v6  ;;  %v2499_v14 = vadd.f32 %v2498_v11, %v2497_v8  ;;  %v2424_v35 = vpop.f32.mrb[34].mxu1  ;;  %v2500_v16 = vpop.f32.mrb[34].mxu0 }
 0x138   :  { %v2425_v20 = vpop.f32.mrb[35].mxu1  ;;  %v2501_v23 = vpop.f32.mrb[35].mxu0 }
 0x139   :  { %v1456_v24 = vadd.f32 %v2423_v13, %v1336_v12  ;;  %v3539_v25 = vadd.f32 %v2499_v14, %v1448_v60  ;;  %v2426_v26 = vadd.f32 %v2425_v20, %v2424_v35  ;;  %v2502_v28 = vadd.f32 %v2501_v23, %v2500_v16 }
 0x13b   :  { %v1459_v3 = vadd.f32 %v2426_v26, %v1339_v18  ;;  %v3541_v29 = vadd.f32 %v2502_v28, %v1451_v2  ;;  %v1360_v18 = vadd.f32 %v3465_v5, %v3484_v31  ;;  %v1363_v26 = vadd.f32 %v3469_v10, %v3484_v31 }
 0x13d   :  { %v2427_v30 = vpop.f32.mrb[36].mxu1  ;;  %v2503_v32 = vpop.f32.mrb[36].mxu0 }
 0x13e   :  { %v2428_v42 = vpop.f32.mrb[37].mxu1  ;;  %v2504_v33 = vpop.f32.mrb[37].mxu0 }
 0x13f   :  { %v2429_v9 = vadd.f32 %v2428_v42, %v2427_v30  ;;  %v2505_v38 = vadd.f32 %v2504_v33, %v2503_v32  ;;  %v2430_v49 = vpop.f32.mrb[38].mxu1  ;;  %v2506_v39 = vpop.f32.mrb[38].mxu0 }
 0x140   :  { %v2431_v43 = vpop.f32.mrb[39].mxu1  ;;  %v2507_v44 = vpop.f32.mrb[39].mxu0 }
 0x141   :  { %v1464_v46 = vadd.f32 %v2429_v9, %v1344_v36  ;;  %v3547_v47 = vadd.f32 %v2505_v38, %v1456_v24  ;;  %v2432_v15 = vadd.f32 %v2431_v43, %v2430_v49  ;;  %v2508_v50 = vadd.f32 %v2507_v44, %v2506_v39 }
 0x143   :  { %v1467_v52 = vadd.f32 %v2432_v15, %v1347_v41  ;;  %v3549_v53 = vadd.f32 %v2508_v50, %v1459_v3  ;;  %v1368_v41 = vadd.f32 %v3473_v17, %v3484_v31  ;;  %v1371_v15 = vadd.f32 %v3477_v22, %v3484_v31 }
 0x145   :  { %v2433_v54 = vpop.f32.mrb[40].mxu1  ;;  %v2509_v21 = vpop.f32.mrb[40].mxu0 }
 0x146   :  { %v2434_v56 = vpop.f32.mrb[41].mxu1  ;;  %v2510_v55 = vpop.f32.mrb[41].mxu0 }
 0x147   :  { %v2435_v58 = vadd.f32 %v2434_v56, %v2433_v54  ;;  %v2511_v59 = vadd.f32 %v2510_v55, %v2509_v21  ;;  %v2436_v63 = vpop.f32.mrb[42].mxu1  ;;  %v2512_v60 = vpop.f32.mrb[42].mxu0 }
 0x148   :  { %v2437_v1 = vpop.f32.mrb[43].mxu1  ;;  %v2513_v2 = vpop.f32.mrb[43].mxu0 }
 0x149   :  { %v1472_v6 = vadd.f32 %v2435_v58, %v1352_v57  ;;  %v3555_v8 = vadd.f32 %v2511_v59, %v1464_v46  ;;  %v2438_v27 = vadd.f32 %v2437_v1, %v2436_v63  ;;  %v2514_v11 = vadd.f32 %v2513_v2, %v2512_v60 }
 0x14b   :  { %v1475_v12 = vadd.f32 %v2438_v27, %v1355_v0  ;;  %v3557_v13 = vadd.f32 %v2514_v11, %v1467_v52 }
 0x14d   :  { %v2439_v14 = vpop.f32.mrb[44].mxu1  ;;  %v2515_v35 = vpop.f32.mrb[44].mxu0 }
 0x14e   :  { %v2440_v7 = vpop.f32.mrb[45].mxu1  ;;  %v2516_v16 = vpop.f32.mrb[45].mxu0 }
 0x14f   :  { %v2441_v20 = vadd.f32 %v2440_v7, %v2439_v14  ;;  %v2517_v23 = vadd.f32 %v2516_v16, %v2515_v35  ;;  %v2442_v19 = vpop.f32.mrb[46].mxu1  ;;  %v2518_v24 = vpop.f32.mrb[46].mxu0 }
 0x150   :  { %v2443_v28 = vpop.f32.mrb[47].mxu1  ;;  %v2519_v3 = vpop.f32.mrb[47].mxu0 }
 0x151   :  { %v1480_v30 = vadd.f32 %v2441_v20, %v1360_v18  ;;  %v3563_v32 = vadd.f32 %v2517_v23, %v1472_v6  ;;  %v2444_v42 = vadd.f32 %v2443_v28, %v2442_v19  ;;  %v2520_v33 = vadd.f32 %v2519_v3, %v2518_v24 }
 0x153   :  { %v1483_v36 = vadd.f32 %v2444_v42, %v1363_v26  ;;  %v3565_v9 = vadd.f32 %v2520_v33, %v1475_v12 }
 0x155   :  { %v2445_v38 = vpop.f32.mrb[48].mxu1  ;;  %v2521_v49 = vpop.f32.mrb[48].mxu0 }
 0x156   :  { %v2446_v5 = vpop.f32.mrb[49].mxu1  ;;  %v2522_v39 = vpop.f32.mrb[49].mxu0 }
 0x157   :  { %v2447_v43 = vadd.f32 %v2446_v5, %v2445_v38  ;;  %v2523_v44 = vadd.f32 %v2522_v39, %v2521_v49  ;;  %v2448_v10 = vpop.f32.mrb[50].mxu1  ;;  %v2524_v46 = vpop.f32.mrb[50].mxu0 }
 0x158   :  { %v2449_v50 = vpop.f32.mrb[51].mxu1  ;;  %v2525_v52 = vpop.f32.mrb[51].mxu0 }
 0x159   :  { %v1488_v54 = vadd.f32 %v2447_v43, %v1368_v41  ;;  %v3571_v21 = vadd.f32 %v2523_v44, %v1480_v30  ;;  %v2450_v56 = vadd.f32 %v2449_v50, %v2448_v10  ;;  %v2526_v55 = vadd.f32 %v2525_v52, %v2524_v46 }
 0x15b   :  { %v1491_v57 = vadd.f32 %v2450_v56, %v1371_v15  ;;  %v3573_v58 = vadd.f32 %v2526_v55, %v1483_v36 }
 0x15d   :  { %v2451_v59 = vpop.f32.mrb[52].mxu1  ;;  %v2527_v63 = vpop.f32.mrb[52].mxu0 }
 0x15e   :  { %v2452_v17 = vpop.f32.mrb[53].mxu1  ;;  %v2528_v60 = vpop.f32.mrb[53].mxu0 }
 0x15f   :  { %v2453_v0 = vadd.f32 %v2452_v17, %v2451_v59  ;;  %v2529_v1 = vadd.f32 %v2528_v60, %v2527_v63  ;;  %v2454_v2 = vpop.f32.mrb[54].mxu1  ;;  %v2530_v6 = vpop.f32.mrb[54].mxu0 }
 0x160   :  { %v2455_v27 = vpop.f32.mrb[55].mxu1  ;;  %v2531_v22 = vpop.f32.mrb[55].mxu0 }
 0x161   :  { %v1496_v31 = vadd.f32 %v2453_v0, %v3487_v34  ;;  %v3576_v11 = vadd.f32 %v2529_v1, %v1488_v54  ;;  %v2456_v12 = vadd.f32 %v2455_v27, %v2454_v2  ;;  %v2532_v14 = vadd.f32 %v2531_v22, %v2530_v6 }
 0x163   :  { %v1499_v35 = vadd.f32 %v2456_v12, %v3492_v37  ;;  %v3579_v7 = vadd.f32 %v2532_v14, %v1491_v57 }
 0x165   :  { %v2457_v16 = vpop.f32.mrb[56].mxu1  ;;  %v2533_v18 = vpop.f32.mrb[56].mxu0 }
 0x166   :  { %v2458_v20 = vpop.f32.mrb[57].mxu1  ;;  %v2534_v23 = vpop.f32.mrb[57].mxu0 }
 0x167   :  { %v2459_v19 = vadd.f32 %v2458_v20, %v2457_v16  ;;  %v2535_v24 = vadd.f32 %v2534_v23, %v2533_v18  ;;  %v2460_v26 = vpop.f32.mrb[58].mxu1  ;;  %v2536_v28 = vpop.f32.mrb[58].mxu0 }
 0x168   :  { %v2461_v3 = vpop.f32.mrb[59].mxu1  ;;  %v2537_v30 = vpop.f32.mrb[59].mxu0 }
 0x169   :  { %v1504_v34 = vadd.f32 %v2459_v19, %v3497_v48  ;;  %v3582_v42 = vadd.f32 %v2535_v24, %v1496_v31  ;;  %v2462_v33 = vadd.f32 %v2461_v3, %v2460_v26  ;;  %v2538_v36 = vadd.f32 %v2537_v30, %v2536_v28 }
 0x16b   :  { %v1507_v37 = vadd.f32 %v2462_v33, %v3502_v51  ;;  %v3585_v38 = vadd.f32 %v2538_v36, %v1499_v35 }
 0x16d   :  { %v2463_v49 = vpop.f32.mrb[60].mxu1  ;;  %v2539_v5 = vpop.f32.mrb[60].mxu0 }
 0x16e   :  { %v2464_v39 = vpop.f32.mrb[61].mxu1  ;;  %v2540_v41 = vpop.f32.mrb[61].mxu0 }
 0x16f   :  { %v2465_v43 = vadd.f32 %v2464_v39, %v2463_v49  ;;  %v2541_v44 = vadd.f32 %v2540_v41, %v2539_v5  ;;  %v2542_v10 = vpop.f32.mrb[62].mxu0  ;;  %v2466_v46 = vpop.f32.mrb[62].mxu1 }
 0x170   :  { %v2543_v15 = vpop.f32.mrb[63].mxu0  ;;  %v2467_v50 = vpop.f32.mrb[63].mxu1 }
 0x171   :  { %v1512_v48 = vadd.f32 %v2465_v43, %v3507_v62  ;;  %v3588_v52 = vadd.f32 %v2541_v44, %v1504_v34  ;;  %v2544_v54 = vadd.f32 %v2543_v15, %v2542_v10 }
 0x173   :  { %v3590_v56 = vadd.f32 %v2544_v54, %v1507_v37 }
 0x175   :  { %v2545_v51 = vpop.f32.mrb[64].mxu0  ;;  %v2567_v55 = vpop.f32.mrb[64].mxu1 }
 0x176   :  { %v2546_v57 = vpop.f32.mrb[65].mxu0  ;;  %v2568_v59 = vpop.f32.mrb[65].mxu1 }
 0x177   :  { %v2547_v63 = vadd.f32 %v2546_v57, %v2545_v51  ;;  %v2569_v17 = vadd.f32 %v2568_v59, %v2567_v55  ;;  %v2548_v60 = vpop.f32.mrb[66].mxu0  ;;  %v2570_v0 = vpop.f32.mrb[66].mxu1 }
 0x178   :  { %v2549_v1 = vpop.f32.mrb[67].mxu0  ;;  %v2571_v2 = vpop.f32.mrb[67].mxu1 }
 0x179   :  { %v3592_v6 = vadd.f32 %v2547_v63, %v1512_v48  ;;  %v2572_v27 = vadd.f32 %v2571_v2, %v2570_v0  ;;  %v1672_v62 = vadd.f32 %v2569_v17, %v3523_v40 }
 0x17b   :  { %v1675_v22 = vadd.f32 %v2572_v27, %v3525_v45 }
 0x17d   :  { %v2573_v31 = vpop.f32.mrb[68].mxu1  ;;  %v1791_v12 = vpop.f32.mrb[68].mxu0 }
 0x17e   :  { %v1792_v14 = vadd.f32 %v1791_v12, %v1672_v62  ;;  %v2574_v35 = vpop.f32.mrb[69].mxu1  ;;  %v1793_v16 = vpop.f32.mrb[69].mxu0 }
 0x17f   :  { %v2575_v18 = vadd.f32 %v2574_v35, %v2573_v31  ;;  %v2576_v20 = vpop.f32.mrb[70].mxu1  ;;  %v1794_v23 = vpop.f32.mrb[70].mxu0 }
 0x180   :  { %v1795_v19 = vadd.f32 %v1794_v23, %v1675_v22  ;;  %v2577_v24 = vpop.f32.mrb[71].mxu1  ;;  %v1796_v26 = vpop.f32.mrb[71].mxu0  ;;  %v1877_v30 = vmax.f32 %v1792_v14, 0.0 }
 0x181   :  { %v2578_v28 = vadd.f32 %v2577_v24, %v2576_v20  ;;  %v1680_v3 = vadd.f32 %v2575_v18, %v3531_v61 }
 0x182   :  { %v1878_v34 = vmax.f32 %v1795_v19, 0.0 }
 0x183   :  { %v1683_v40 = vadd.f32 %v2578_v28, %v3533_v4 }
 0x184   :  { %v2249_v33 = vpack.c.bf16 %v1878_v34, %v1877_v30 }
 0x185   :  { %v2579_v45 = vpop.f32.mrb[72].mxu1  ;;  %v1799_v36 = vpop.f32.mrb[72].mxu0 }
 0x186   :  { %2250 = vst [vmem:[%s3651_s3] sm:$0xff] %v2249_v33   ;;  %v1800_v37 = vadd.f32 %v1799_v36, %v1680_v3  ;;  %v2580_v49 = vpop.f32.mrb[73].mxu1  ;;  %v1801_v5 = vpop.f32.mrb[73].mxu0 }
 0x187   :  { %v2581_v39 = vadd.f32 %v2580_v49, %v2579_v45  ;;  %v2582_v41 = vpop.f32.mrb[74].mxu1  ;;  %v1802_v43 = vpop.f32.mrb[74].mxu0 }
 0x188   :  { %v1803_v44 = vadd.f32 %v1802_v43, %v1683_v40  ;;  %v2583_v10 = vpop.f32.mrb[75].mxu1  ;;  %v1804_v61 = vpop.f32.mrb[75].mxu0  ;;  %v1879_v4 = vmax.f32 %v1800_v37, 0.0 }
 0x189   :  { %v2584_v46 = vadd.f32 %v2583_v10, %v2582_v41  ;;  %v1688_v15 = vadd.f32 %v2581_v39, %v3539_v25 }
 0x18a   :  { %v1880_v50 = vmax.f32 %v1803_v44, 0.0 }
 0x18b   :  { %v1691_v48 = vadd.f32 %v2584_v46, %v3541_v29 }
 0x18c   :  { %v2254_v54 = vpack.c.bf16 %v1880_v50, %v1879_v4 }
 0x18d   :  { %v2585_v51 = vpop.f32.mrb[76].mxu1  ;;  %v1807_v55 = vpop.f32.mrb[76].mxu0 }
 0x18e   :  { %2296 = vst [vmem:[%s3651_s3 + $0x8] sm:$0xff] %v2254_v54   ;;  %v1808_v57 = vadd.f32 %v1807_v55, %v1688_v15  ;;  %v2586_v59 = vpop.f32.mrb[77].mxu1  ;;  %v1809_v63 = vpop.f32.mrb[77].mxu0 }
 0x18f   :  { %v2587_v17 = vadd.f32 %v2586_v59, %v2585_v51  ;;  %v2588_v60 = vpop.f32.mrb[78].mxu1  ;;  %v1810_v0 = vpop.f32.mrb[78].mxu0 }
 0x190   :  { %v1811_v1 = vadd.f32 %v1810_v0, %v1691_v48  ;;  %v2589_v2 = vpop.f32.mrb[79].mxu1  ;;  %v1812_v25 = vpop.f32.mrb[79].mxu0  ;;  %v1881_v29 = vmax.f32 %v1808_v57, 0.0 }
 0x191   :  { %v2590_v27 = vadd.f32 %v2589_v2, %v2588_v60  ;;  %v1696_v62 = vadd.f32 %v2587_v17, %v3547_v47 }
 0x192   :  { %v1882_v22 = vmax.f32 %v1811_v1, 0.0 }
 0x193   :  { %v1699_v31 = vadd.f32 %v2590_v27, %v3549_v53 }
 0x194   :  { %v2259_v12 = vpack.c.bf16 %v1882_v22, %v1881_v29 }
 0x195   :  { %v2591_v14 = vpop.f32.mrb[80].mxu1  ;;  %v1815_v35 = vpop.f32.mrb[80].mxu0 }
 0x196   :  { %2297 = vst [vmem:[%s3651_s3 + $0x10] sm:$0xff] %v2259_v12   ;;  %v1816_v16 = vadd.f32 %v1815_v35, %v1696_v62  ;;  %v2592_v18 = vpop.f32.mrb[81].mxu1  ;;  %v1817_v20 = vpop.f32.mrb[81].mxu0 }
 0x197   :  { %v2593_v23 = vadd.f32 %v2592_v18, %v2591_v14  ;;  %v2594_v19 = vpop.f32.mrb[82].mxu1  ;;  %v1818_v24 = vpop.f32.mrb[82].mxu0 }
 0x198   :  { %v1819_v26 = vadd.f32 %v1818_v24, %v1699_v31  ;;  %v2595_v28 = vpop.f32.mrb[83].mxu1  ;;  %v1820_v47 = vpop.f32.mrb[83].mxu0  ;;  %v1883_v53 = vmax.f32 %v1816_v16, 0.0 }
 0x199   :  { %v2596_v3 = vadd.f32 %v2595_v28, %v2594_v19  ;;  %v1704_v30 = vadd.f32 %v2593_v23, %v3555_v8 }
 0x19a   :  { %v1884_v34 = vmax.f32 %v1819_v26, 0.0 }
 0x19b   :  { %v1707_v40 = vadd.f32 %v2596_v3, %v3557_v13 }
 0x19c   :  { %v2264_v33 = vpack.c.bf16 %v1884_v34, %v1883_v53 }
 0x19d   :  { %v2597_v45 = vpop.f32.mrb[84].mxu1  ;;  %v1823_v36 = vpop.f32.mrb[84].mxu0 }
 0x19e   :  { %2298 = vst [vmem:[%s3651_s3 + $0x18] sm:$0xff] %v2264_v33   ;;  %v1824_v37 = vadd.f32 %v1823_v36, %v1704_v30  ;;  %v2598_v49 = vpop.f32.mrb[85].mxu1  ;;  %v1825_v5 = vpop.f32.mrb[85].mxu0 }
 0x19f   :  { %v2599_v39 = vadd.f32 %v2598_v49, %v2597_v45  ;;  %v2600_v41 = vpop.f32.mrb[86].mxu1  ;;  %v1826_v43 = vpop.f32.mrb[86].mxu0 }
 0x1a0   :  { %v1827_v44 = vadd.f32 %v1826_v43, %v1707_v40  ;;  %v2601_v10 = vpop.f32.mrb[87].mxu1  ;;  %v1828_v8 = vpop.f32.mrb[87].mxu0  ;;  %v1885_v13 = vmax.f32 %v1824_v37, 0.0 }
 0x1a1   :  { %v2602_v61 = vadd.f32 %v2601_v10, %v2600_v41  ;;  %v1712_v46 = vadd.f32 %v2599_v39, %v3563_v32 }
 0x1a2   :  { %v1886_v15 = vmax.f32 %v1827_v44, 0.0 }
 0x1a3   :  { %v1715_v4 = vadd.f32 %v2602_v61, %v3565_v9 }
 0x1a4   :  { %v2269_v50 = vpack.c.bf16 %v1886_v15, %v1885_v13 }
 0x1a5   :  { %v2603_v48 = vpop.f32.mrb[88].mxu1  ;;  %v1831_v54 = vpop.f32.mrb[88].mxu0 }
 0x1a6   :  { %2299 = vst [vmem:[%s3651_s3 + $0x20] sm:$0xff] %v2269_v50   ;;  %v1832_v51 = vadd.f32 %v1831_v54, %v1712_v46  ;;  %v2604_v55 = vpop.f32.mrb[89].mxu1  ;;  %v1833_v57 = vpop.f32.mrb[89].mxu0 }
 0x1a7   :  { %v2605_v59 = vadd.f32 %v2604_v55, %v2603_v48  ;;  %v2606_v63 = vpop.f32.mrb[90].mxu1  ;;  %v1834_v17 = vpop.f32.mrb[90].mxu0 }
 0x1a8   :  { %v1835_v60 = vadd.f32 %v1834_v17, %v1715_v4  ;;  %v2607_v0 = vpop.f32.mrb[91].mxu1  ;;  %v1836_v32 = vpop.f32.mrb[91].mxu0  ;;  %v1887_v9 = vmax.f32 %v1832_v51, 0.0 }
 0x1a9   :  { %v2608_v1 = vadd.f32 %v2607_v0, %v2606_v63  ;;  %v1720_v2 = vadd.f32 %v2605_v59, %v3571_v21 }
 0x1aa   :  { %v1888_v25 = vmax.f32 %v1835_v60, 0.0 }
 0x1ab   :  { %v1723_v27 = vadd.f32 %v2608_v1, %v3573_v58 }
 0x1ac   :  { %v2274_v62 = vpack.c.bf16 %v1888_v25, %v1887_v9 }
 0x1ad   :  { %v2609_v29 = vpop.f32.mrb[92].mxu1  ;;  %v1839_v22 = vpop.f32.mrb[92].mxu0 }
 0x1ae   :  { %2300 = vst [vmem:[%s3651_s3 + $0x28] sm:$0xff] %v2274_v62   ;;  %v1840_v31 = vadd.f32 %v1839_v22, %v1720_v2  ;;  %v2610_v12 = vpop.f32.mrb[93].mxu1  ;;  %v1841_v14 = vpop.f32.mrb[93].mxu0 }
 0x1af   :  { %v2611_v35 = vadd.f32 %v2610_v12, %v2609_v29  ;;  %v2612_v16 = vpop.f32.mrb[94].mxu1  ;;  %v1842_v18 = vpop.f32.mrb[94].mxu0 }
 0x1b0   :  { %v1843_v20 = vadd.f32 %v1842_v18, %v1723_v27  ;;  %v2613_v23 = vpop.f32.mrb[95].mxu1  ;;  %v1844_v21 = vpop.f32.mrb[95].mxu0  ;;  %v1889_v58 = vmax.f32 %v1840_v31, 0.0 }
 0x1b1   :  { %v2614_v19 = vadd.f32 %v2613_v23, %v2612_v16  ;;  %v1728_v24 = vadd.f32 %v2611_v35, %v3576_v11 }
 0x1b2   :  { %v1890_v26 = vmax.f32 %v1843_v20, 0.0 }
 0x1b3   :  { %v1731_v28 = vadd.f32 %v2614_v19, %v3579_v7 }
 0x1b4   :  { %v2279_v47 = vpack.c.bf16 %v1890_v26, %v1889_v58 }
 0x1b5   :  { %v2615_v3 = vpop.f32.mrb[96].mxu1  ;;  %v1847_v30 = vpop.f32.mrb[96].mxu0 }
 0x1b6   :  { %2301 = vst [vmem:[%s3651_s3 + $0x30] sm:$0xff] %v2279_v47   ;;  %v1848_v53 = vadd.f32 %v1847_v30, %v1728_v24  ;;  %v2616_v34 = vpop.f32.mrb[97].mxu1  ;;  %v1849_v40 = vpop.f32.mrb[97].mxu0 }
 0x1b7   :  { %v2617_v33 = vadd.f32 %v2616_v34, %v2615_v3  ;;  %v2618_v45 = vpop.f32.mrb[98].mxu1  ;;  %v1850_v36 = vpop.f32.mrb[98].mxu0 }
 0x1b8   :  { %v1851_v37 = vadd.f32 %v1850_v36, %v1731_v28  ;;  %v2619_v49 = vpop.f32.mrb[99].mxu1  ;;  %v1852_v11 = vpop.f32.mrb[99].mxu0  ;;  %v1891_v7 = vmax.f32 %v1848_v53, 0.0 }
 0x1b9   :  { %v2620_v5 = vadd.f32 %v2619_v49, %v2618_v45  ;;  %v1736_v39 = vadd.f32 %v2617_v33, %v3582_v42 }
 0x1ba   :  { %v1892_v41 = vmax.f32 %v1851_v37, 0.0 }
 0x1bb   :  { %v1739_v43 = vadd.f32 %v2620_v5, %v3585_v38 }
 0x1bc   :  { %v2284_v44 = vpack.c.bf16 %v1892_v41, %v1891_v7 }
 0x1bd   :  { %v2621_v10 = vpop.f32.mrb[100].mxu1  ;;  %v1855_v8 = vpop.f32.mrb[100].mxu0 }
 0x1be   :  { %2302 = vst [vmem:[%s3651_s3 + $0x38] sm:$0xff] %v2284_v44   ;;  %v1856_v61 = vadd.f32 %v1855_v8, %v1736_v39  ;;  %v2622_v46 = vpop.f32.mrb[101].mxu1  ;;  %v1857_v13 = vpop.f32.mrb[101].mxu0 }
 0x1bf   :  { %v2623_v15 = vadd.f32 %v2622_v46, %v2621_v10  ;;  %v2624_v4 = vpop.f32.mrb[102].mxu1  ;;  %v1858_v50 = vpop.f32.mrb[102].mxu0 }
 0x1c0   :  { %v1859_v48 = vadd.f32 %v1858_v50, %v1739_v43  ;;  %v2625_v54 = vpop.f32.mrb[103].mxu1  ;;  %v1860_v42 = vpop.f32.mrb[103].mxu0  ;;  %v1893_v38 = vmax.f32 %v1856_v61, 0.0 }
 0x1c1   :  { %v2626_v51 = vadd.f32 %v2625_v54, %v2624_v4  ;;  %v1744_v55 = vadd.f32 %v2623_v15, %v3588_v52 }
 0x1c2   :  { %v1894_v57 = vmax.f32 %v1859_v48, 0.0 }
 0x1c3   :  { %v1747_v59 = vadd.f32 %v2626_v51, %v3590_v56 }
 0x1c4   :  { %v2289_v63 = vpack.c.bf16 %v1894_v57, %v1893_v38 }
 0x1c5   :  { %v2627_v17 = vpop.f32.mrb[104].mxu1  ;;  %v1863_v60 = vpop.f32.mrb[104].mxu0 }
 0x1c6   :  { %2303 = vst [vmem:[%s3651_s3 + $0x40] sm:$0xff] %v2289_v63   ;;  %v1864_v0 = vadd.f32 %v1863_v60, %v1744_v55  ;;  %v2628_v32 = vpop.f32.mrb[105].mxu1  ;;  %v1865_v1 = vpop.f32.mrb[105].mxu0 }
 0x1c7   :  { %v2629_v2 = vadd.f32 %v2628_v32, %v2627_v17  ;;  %v1866_v9 = vpop.f32.mrb[106].mxu0  ;;  %v2630_v25 = vpop.f32.mrb[106].mxu1 }
 0x1c8   :  { %v1867_v27 = vadd.f32 %v1866_v9, %v1747_v59  ;;  %v1868_v62 = vpop.f32.mrb[107].mxu0  ;;  %v2631_v52 = vpop.f32.mrb[107].mxu1  ;;  %v1895_v22 = vmax.f32 %v1864_v0, 0.0 }
 0x1c9   :  { %v1752_v29 = vadd.f32 %v2629_v2, %v3592_v6 }
 0x1ca   :  { %v1896_v56 = vmax.f32 %v1867_v27, 0.0 }
 0x1cc   :  { %v2294_v31 = vpack.c.bf16 %v1896_v56, %v1895_v22 }
 0x1cd   :  { %v1871_v12 = vpop.f32.mrb[108].mxu0 }
 0x1ce   :  { %2304 = vst [vmem:[%s3651_s3 + $0x48] sm:$0xff] %v2294_v31   ;;  %v1872_v14 = vadd.f32 %v1871_v12, %v1752_v29  ;;  %v1873_v35 = vpop.f32.mrb[109].mxu0 }
 0x1cf   :  { %v1874_v16 = vpop.f32.mrb[110].mxu0 }
 0x1d0   :  { %v1897_v18 = vmax.f32 %v1872_v14, 0.0  ;;  %v1875_v20 = vpop.f32.mrb[111].mxu0 }
 0x1d2   :  { %v2245_v23 = vpack.c.bf16 %v1897_v18, %v1897_v18 }
 0x1d4   :  { %2003 = vst [vmem:[%s3651_s3 + $0x50] sm:$0x1] %v2245_v23 }

// kernel: h2e_forward.6
= control target key start
LH: loop header
LB: loop body
LE: loop exit
PB: predicated region body
PF: predicated region fallthrough
CT: control target
= control target key end

     0   :  { %s12394_s12 = smov 0   ;;  %s12396_s13 = smov 0   ;;  %s14326_s0 = inlined_call_operand.vmem [shape: bf16[2,130,64,96], index: 0, kind: input, shape index: {}]   ;;  %s14327_s1 = inlined_call_operand.vmem [shape: bf16[3,96,128], index: 1, kind: input, shape index: {}]   ;;  %s14328_s2 = inlined_call_operand.vmem [shape: f32[1,128], index: 2, kind: input, shape index: {}]   ;;  %s14329_s3 = inlined_call_operand.vmem [shape: bf16[2,64,64,128], index: 3, kind: output, shape index: {}]  }
   0x1   :  { %s12398_s14 = smov 0   ;;  %s12400_s15 = smov 0  }
   0x2   :  { %s12402_s16 = smov 0  }
   0x3 LB: > { %s22_s17 = sadd.s32 1, %s12364_s14  ;;  %s25_s18 = sadd.s32 1, %s12368_s15  ;;  %s12372_s16 = sphi %s12402_s16, %s13_s16   ;;  %s12368_s15 = sphi %s12400_s15, %s14497_s15   ;;  %s12364_s14 = sphi %s12398_s14, %s14496_s14   ;;  %s12360_s13 = sphi %s12396_s13, %s14495_s13   ;;  %s12356_s12 = sphi %s12394_s12, %s14494_s12  }
   0x4   : > { %p23_p0 = scmp.ge.s32.totalorder %s22_s17, 2  ;;  %p8270_p1 = scmp.ge.s32.totalorder %s12372_s16, 1 }
   0x5   : > { %p151_p2 = scmp.lt.s32.totalorder %s12372_s16, 5 }
   0x6   : > { %s14499_s17 = smov (%p23_p0, %s22_s17), 0  ;;  %s14501_s18 = smov (!%p23_p0, %s25_s18), %s12368_s15 }
   0x7   : > { %p152_p3 = pnand %p8270_p1, %p151_p2  ;;  %p27_p4 = scmp.ge.s32.totalorder %s14501_s18, 2 }
   0x9   : > { %s14503_s18 = smov (%p27_p4, %s14501_s18), 0  ;;  %155 = sbr.rel (%p152_p3) target bundleno = 1025 (0x401), region = 32 }
  0x10   : > { %v12020_v0 = vld [vmem:[%s14327_s1 + $0x30] sm:$0xff]   ;;  %p180_p5 = scmp.lt.s32.totalorder %s12360_s13, 1  ;;  %v12021_v1 = vld [vmem:[%s14327_s1] sm:$0xff]   ;;  %v12022_v2 = vld [vmem:[%s14327_s1 + $0x38] sm:$0xff]   ;;  %s9225_s8 = sshll.u32 %s12356_s12, 11  ;;  %vm1422_vm0 = vcmask 785408  }
  0x11   : > { %10651 = vmatprep.subr.bf16.mxu1 %v12020_v0  ;;  %10919 = vmatprep.subr.bf16.mxu0 %v12021_v1  ;;  %v12023_v3 = vld [vmem:[%s14327_s1 + $0x8] sm:$0xff]   ;;  %v12024_v4 = vld [vmem:[%s14327_s1 + $0x40] sm:$0xff]   ;;  %v12025_v5 = vld [vmem:[%s14327_s1 + $0x10] sm:$0xff]   ;;  %s8272_s22 = sshll.u32 %s12356_s12, 5 }
  0x12   : > { %s14505_s13 = smov (!%p180_p5, %s12360_s13), 1  ;;  %10652 = vmatpush3.bf16.msra.mxu1 %v12020_v0  ;;  %10920 = vmatpush3.bf16.msra.mxu0 %v12021_v1  ;;  %v12026_v6 = vld [vmem:[%s14327_s1 + $0x48] sm:$0xff]   ;;  %v12027_v7 = vld [vmem:[%s14327_s1 + $0x18] sm:$0xff]   ;;  %v12028_v8 = vld [vmem:[%s14327_s1 + $0x50] sm:$0xff]   ;;  %p188_p6 = scmp.lt.s32.totalorder %s8272_s22, 63 }
  0x13   : > { %10653 = vmatprep.subr.bf16.mxu1 %v12022_v2  ;;  %s11979_s29 = smul.u32 4160, %s14505_s13  ;;  %10921 = vmatprep.subr.bf16.mxu0 %v12023_v3  ;;  %v12029_v9 = vld [vmem:[%s14327_s1 + $0x20] sm:$0xff]   ;;  %v12030_v12 = vld [vmem:[%s14327_s1 + $0x58] sm:$0xff]   ;;  %v12031_v13 = vld [vmem:[%s14327_s1 + $0x28] sm:$0xff]   ;;  %s8274_s23 = sshll.u32 %s14505_s13, 9 }
  0x14   : > { %v12036_v14 = vld [vmem:[%s14327_s1 + $0x60] sm:$0xff]   ;;  %v12057_v24 = vld [vmem:[%s14327_s1 + $0x68] sm:$0xff]   ;;  %v12078_v36 = vld [vmem:[%s14327_s1 + $0x70] sm:$0xff]   ;;  %s14507_s22 = smov (!%p188_p6, %s8272_s22), 63 }
  0x15   : > { %s184_s7 = scalar_lea.vmem %s14326_s0, %s11979_s29  ;;  %v12103_v49 = vld [vmem:[%s14327_s1 + $0x78] sm:$0xff]   ;;  %v12124_v62 = vld [vmem:[%s14327_s1 + $0x80] sm:$0xff]   ;;  %s8273_s12 = sshll.u32 %s14507_s22, 3 }
  0x16   : > { %10654 = vmatpush3.bf16.msra.mxu1 %v12022_v2  ;;  %10922 = vmatpush3.bf16.msra.mxu0 %v12023_v3  ;;  %s12457_s20 = scalar_lea.vmem %s184_s7, %s9225_s8  ;;  %s192_s26 = sadd.s32 %s8274_s23, %s8273_s12 }
  0x17   : > { %10655 = vmatprep.subr.bf16.mxu1 %v12024_v4  ;;  %10923 = vmatprep.subr.bf16.mxu0 %v12025_v5  ;;  %v12032_v10 = vld [vmem:[%s12457_s20 + $0x20] sm:$0xff]   ;;  %v12034_v15 = vld [vmem:[%s12457_s20 + $0x28] sm:$0xff]   ;;  %v12037_v17 = vld [vmem:[%s12457_s20 + $0x30] sm:$0xff]   ;;  %s8275_s13 = sshll.u32 %s192_s26, 2 }
  0x18   : > { %v12033_v11 = vld [vmem:[%s12457_s20] sm:$0xff]   ;;  %10663 = vmatprep.mubr.msk.bf16.mxu1 %vm1422_vm0, %v12032_v10  ;;  %v12035_v16 = vld [vmem:[%s12457_s20 + $0x8] sm:$0xff]   ;;  %v12038_v18 = vld [vmem:[%s12457_s20 + $0x10] sm:$0xff]   ;;  %s13328_s29 = scalar_lea.vmem %s14329_s3, %s8275_s13 }
  0x19   : > { %10931 = vmatprep.mubr.msk.bf16.mxu0 %vm1422_vm0, %v12033_v11  ;;  %v12039_v19 = vld [vmem:[%s12457_s20 + $0x38] sm:$0xff]   ;;  %v12041_v21 = vld [vmem:[%s12457_s20 + $0x60] sm:$0xff]   ;;  %v12043_v23 = vld [vmem:[%s12457_s20 + $0x68] sm:$0xff]  }
  0x1a   : > { %10656 = vmatpush3.bf16.msra.mxu1 %v12024_v4  ;;  %10924 = vmatpush3.bf16.msra.mxu0 %v12025_v5  ;;  %v12040_v20 = vld [vmem:[%s12457_s20 + $0x18] sm:$0xff]   ;;  %v12042_v22 = vld [vmem:[%s12457_s20 + $0x40] sm:$0xff]   ;;  %v12044_v25 = vld [vmem:[%s12457_s20 + $0x48] sm:$0xff]  }
  0x1b   : > { %10657 = vmatprep.subr.bf16.mxu1 %v12026_v6  ;;  %10925 = vmatprep.subr.bf16.mxu0 %v12027_v7  ;;  %v12045_v26 = vld [vmem:[%s12457_s20 + $0x70] sm:$0xff]   ;;  %v12047_v28 = vld [vmem:[%s12457_s20 + $0x78] sm:$0xff]   ;;  %v12049_v30 = vld [vmem:[%s12457_s20 + $0xa0] sm:$0xff]  }
  0x1c   : > { %v12046_v27 = vld [vmem:[%s12457_s20 + $0x50] sm:$0xff]   ;;  %v12048_v29 = vld [vmem:[%s12457_s20 + $0x58] sm:$0xff]   ;;  %v12050_v31 = vld [vmem:[%s12457_s20 + $0x80] sm:$0xff]  }
  0x1d   : > { %v12051_v32 = vld [vmem:[%s12457_s20 + $0xa8] sm:$0xff]   ;;  %v12053_v34 = vld [vmem:[%s12457_s20 + $0xb0] sm:$0xff]   ;;  %v12055_v37 = vld [vmem:[%s12457_s20 + $0xb8] sm:$0xff]  }
  0x1e   : > { %10658 = vmatpush3.bf16.msra.mxu1 %v12026_v6  ;;  %10926 = vmatpush3.bf16.msra.mxu0 %v12027_v7  ;;  %v12052_v33 = vld [vmem:[%s12457_s20 + $0x88] sm:$0xff]   ;;  %v12054_v35 = vld [vmem:[%s12457_s20 + $0x90] sm:$0xff]   ;;  %v12056_v38 = vld [vmem:[%s12457_s20 + $0x98] sm:$0xff]  }
  0x1f   : > { %10659 = vmatprep.subr.bf16.mxu1 %v12028_v8  ;;  %10927 = vmatprep.subr.bf16.mxu0 %v12029_v9  ;;  %v12058_v39 = vld [vmem:[%s12457_s20 + $0xe0] sm:$0xff]   ;;  %v12060_v41 = vld [vmem:[%s12457_s20 + $0xe8] sm:$0xff]   ;;  %v12062_v43 = vld [vmem:[%s12457_s20 + $0xf0] sm:$0xff]  }
  0x20   : > { %v12059_v40 = vld [vmem:[%s12457_s20 + $0xc0] sm:$0xff]   ;;  %v12061_v42 = vld [vmem:[%s12457_s20 + $0xc8] sm:$0xff]   ;;  %v12063_v44 = vld [vmem:[%s12457_s20 + $0xd0] sm:$0xff]  }
  0x21   : > { %v12064_v45 = vld [vmem:[%s12457_s20 + $0xf8] sm:$0xff]   ;;  %v12066_v47 = vld [vmem:[%s12457_s20 + $0x120] sm:$0xff]   ;;  %v12068_v50 = vld [vmem:[%s12457_s20 + $0x128] sm:$0xff]  }
  0x22   : > { %10660 = vmatpush3.bf16.msra.mxu1 %v12028_v8  ;;  %10928 = vmatpush3.bf16.msra.mxu0 %v12029_v9  ;;  %v12065_v46 = vld [vmem:[%s12457_s20 + $0xd8] sm:$0xff]   ;;  %v12067_v48 = vld [vmem:[%s12457_s20 + $0x100] sm:$0xff]   ;;  %v12069_v51 = vld [vmem:[%s12457_s20 + $0x108] sm:$0xff]  }
  0x23   : > { %10661 = vmatprep.subr.bf16.mxu1 %v12030_v12  ;;  %10929 = vmatprep.subr.bf16.mxu0 %v12031_v13  ;;  %v12070_v52 = vld [vmem:[%s12457_s20 + $0x130] sm:$0xff]   ;;  %v12072_v54 = vld [vmem:[%s12457_s20 + $0x138] sm:$0xff]   ;;  %v12074_v56 = vld [vmem:[%s12457_s20 + $0x160] sm:$0xff]  }
  0x24   : > { %v12071_v53 = vld [vmem:[%s12457_s20 + $0x110] sm:$0xff]   ;;  %v12073_v55 = vld [vmem:[%s12457_s20 + $0x118] sm:$0xff]   ;;  %v12075_v57 = vld [vmem:[%s12457_s20 + $0x140] sm:$0xff]  }
  0x25   : > { %v12076_v58 = vld [vmem:[%s12457_s20 + $0x168] sm:$0xff]   ;;  %v12079_v60 = vld [vmem:[%s12457_s20 + $0x170] sm:$0xff]   ;;  %v12081_v63 = vld [vmem:[%s12457_s20 + $0x178] sm:$0xff]  }
  0x26   : > { %10662 = vmatpush3.bf16.msra.mxu1 %v12030_v12  ;;  %10930 = vmatpush3.bf16.msra.mxu0 %v12031_v13  ;;  %v12077_v59 = vld [vmem:[%s12457_s20 + $0x148] sm:$0xff]   ;;  %v12080_v61 = vld [vmem:[%s12457_s20 + $0x150] sm:$0xff]   ;;  %v12082_v0 = vld [vmem:[%s12457_s20 + $0x158] sm:$0xff]  }
  0x27   : > { %11455 = vmatprep.subr.bf16.mxu1 %v12021_v1  ;;  %11187 = vmatprep.subr.bf16.mxu0 %v12036_v14  ;;  %v12084_v2 = vld [vmem:[%s12457_s20 + $0x180] sm:$0xff]   ;;  %v12086_v4 = vld [vmem:[%s12457_s20 + $0x188] sm:$0xff]   ;;  %v12088_v6 = vld [vmem:[%s12457_s20 + $0x190] sm:$0xff]  }
  0x28   : > { %v12145_v8 = vld [vmem:[%s14327_s1 + $0x88] sm:$0xff]   ;;  %v12091_v10 = vld [vmem:[%s12457_s20 + $0x1e0] sm:$0xff]  }
  0x29   : > { %10664 = vmatmul.mubr.msk.bf16.vlgmr.msra.gmra.mrb[0].mxu1 %vm1422_vm0, %v12034_v15  ;;  %10932 = vmatmul.mubr.msk.bf16.vlgmr.msra.gmra.mrb[0].mxu0 %vm1422_vm0, %v12035_v16  ;;  %v12092_v11 = vld [vmem:[%s12457_s20 + $0x1c0] sm:$0xff]   ;;  %v12093_v12 = vld [vmem:[%s12457_s20 + $0x1e8] sm:$0xff]   ;;  %v12096_v15 = vld [vmem:[%s12457_s20 + $0x1d0] sm:$0xff]  }
  0x2a   : > { %11461 = vmatpush3.bf16.msra.mxu1 %v12021_v1  ;;  %11188 = vmatpush3.bf16.msra.mxu0 %v12036_v14  ;;  %v12083_v1 = vld [vmem:[%s12457_s20 + $0x1a0] sm:$0xff]   ;;  %v12095_v14 = vld [vmem:[%s12457_s20 + $0x1f0] sm:$0xff]   ;;  %v12097_v16 = vld [vmem:[%s12457_s20 + $0x1f8] sm:$0xff]  }
  0x2b   : > { %10667 = vmatprep.mubr.msk.bf16.mxu1 %vm1422_vm0, %v12037_v17  ;;  %10935 = vmatprep.mubr.msk.bf16.mxu0 %vm1422_vm0, %v12038_v18  ;;  %v12098_v17 = vld [vmem:[%s12457_s20 + $0x1d8] sm:$0xff]   ;;  %v12099_v18 = vld [vmem:[%s12457_s20 + $0x220] sm:$0xff]  }
  0x2c   : > { %11456 = vmatprep.subr.bf16.mxu1 %v12023_v3  ;;  %11189 = vmatprep.subr.bf16.mxu0 %v12057_v24 }
  0x2e   : > { %11462 = vmatpush3.bf16.msra.mxu1 %v12023_v3  ;;  %11190 = vmatpush3.bf16.msra.mxu0 %v12057_v24  ;;  %v12085_v3 = vld [vmem:[%s12457_s20 + $0x1a8] sm:$0xff]   ;;  %v12106_v24 = vld [vmem:[%s12457_s20 + $0x238] sm:$0xff]  }
  0x2f   : > { %11457 = vmatprep.subr.bf16.mxu1 %v12025_v5  ;;  %11191 = vmatprep.subr.bf16.mxu0 %v12078_v36 }
  0x31   : > { %10668 = vmatmul.mubr.msk.bf16.gmra.mrb[4].mxu1 %vm1422_vm0, %v12039_v19  ;;  %10936 = vmatmul.mubr.msk.bf16.gmra.mrb[4].mxu0 %vm1422_vm0, %v12040_v20  ;;  %v12100_v19 = vld [vmem:[%s12457_s20 + $0x200] sm:$0xff]   ;;  %v12101_v20 = vld [vmem:[%s12457_s20 + $0x228] sm:$0xff]  }
  0x32   : > { %10671 = vmatprep.mubr.msk.bf16.mxu1 %vm1422_vm0, %v12041_v21  ;;  %10939 = vmatprep.mubr.msk.bf16.mxu0 %vm1422_vm0, %v12042_v22  ;;  %v12102_v21 = vld [vmem:[%s12457_s20 + $0x208] sm:$0xff]   ;;  %v12104_v22 = vld [vmem:[%s12457_s20 + $0x230] sm:$0xff]  }
  0x33   : > { %11463 = vmatpush3.bf16.msra.mxu1 %v12025_v5  ;;  %11192 = vmatpush3.bf16.msra.mxu0 %v12078_v36  ;;  %v12087_v5 = vld [vmem:[%s12457_s20 + $0x1b0] sm:$0xff]   ;;  %v12118_v36 = vld [vmem:[%s12457_s20 + $0x2a8] sm:$0xff]  }
  0x34   : > { %11458 = vmatprep.subr.bf16.mxu1 %v12027_v7  ;;  %11193 = vmatprep.subr.bf16.mxu0 %v12103_v49 }
  0x37   : > { %11464 = vmatpush3.bf16.msra.mxu1 %v12027_v7  ;;  %11194 = vmatpush3.bf16.msra.mxu0 %v12103_v49  ;;  %v12089_v7 = vld [vmem:[%s12457_s20 + $0x1b8] sm:$0xff]  }
  0x38   : > { %11459 = vmatprep.subr.bf16.mxu1 %v12029_v9  ;;  %11195 = vmatprep.subr.bf16.mxu0 %v12124_v62  ;;  %v12709_v49 = vld [vmem:[%s12457_s20 + $0x2d8] sm:$0xff]  }
  0x39   : > { %10672 = vmatmul.mubr.msk.bf16.gmra.mrb[8].mxu1 %vm1422_vm0, %v12043_v23  ;;  %10940 = vmatmul.mubr.msk.bf16.gmra.mrb[8].mxu0 %vm1422_vm0, %v12044_v25  ;;  %v12105_v23 = vld [vmem:[%s12457_s20 + $0x210] sm:$0xff]   ;;  %v12107_v25 = vld [vmem:[%s12457_s20 + $0x218] sm:$0xff]  }
  0x3a   : > { %10675 = vmatprep.mubr.msk.bf16.mxu1 %vm1422_vm0, %v12045_v26  ;;  %10943 = vmatprep.mubr.msk.bf16.mxu0 %vm1422_vm0, %v12046_v27  ;;  %v12108_v26 = vld [vmem:[%s12457_s20 + $0x260] sm:$0xff]  }
  0x3b   : > { %11465 = vmatpush3.bf16.msra.mxu1 %v12029_v9  ;;  %11196 = vmatpush3.bf16.msra.mxu0 %v12124_v62  ;;  %v12090_v9 = vld [vmem:[%s12457_s20 + $0x198] sm:$0xff]   ;;  %v12109_v27 = vld [vmem:[%s12457_s20 + $0x240] sm:$0xff]   ;;  %v12146_v62 = vld [vmem:[%s12457_s20 + $0x370] sm:$0xff]  }
  0x3c   : > { %11460 = vmatprep.subr.bf16.mxu1 %v12031_v13  ;;  %11197 = vmatprep.subr.bf16.mxu0 %v12145_v8 }
  0x3f   : > { %11466 = vmatpush3.bf16.msra.mxu1 %v12031_v13  ;;  %11198 = vmatpush3.bf16.msra.mxu0 %v12145_v8  ;;  %v12094_v13 = vld [vmem:[%s12457_s20 + $0x1c8] sm:$0xff]  }
  0x41   : > { %10676 = vmatmul.mubr.msk.bf16.gmra.mrb[12].mxu1 %vm1422_vm0, %v12047_v28  ;;  %10944 = vmatmul.mubr.msk.bf16.gmra.mrb[12].mxu0 %vm1422_vm0, %v12048_v29  ;;  %v12110_v28 = vld [vmem:[%s12457_s20 + $0x268] sm:$0xff]  }
  0x42   : > { %10679 = vmatprep.mubr.msk.bf16.mxu1 %vm1422_vm0, %v12049_v30  ;;  %10947 = vmatprep.mubr.msk.bf16.mxu0 %vm1422_vm0, %v12050_v31  ;;  %v12639_v29 = vld [vmem:[%s12457_s20 + $0x248] sm:$0xff]   ;;  %v12112_v30 = vld [vmem:[%s12457_s20 + $0x270] sm:$0xff]  }
  0x43   : > { %v12643_v31 = vld [vmem:[%s12457_s20 + $0x250] sm:$0xff]  }
  0x49   : > { %10680 = vmatmul.mubr.msk.bf16.gmra.mrb[16].mxu1 %vm1422_vm0, %v12051_v32  ;;  %10948 = vmatmul.mubr.msk.bf16.gmra.mrb[16].mxu0 %vm1422_vm0, %v12052_v33  ;;  %v12114_v32 = vld [vmem:[%s12457_s20 + $0x278] sm:$0xff]  }
  0x4a   : > { %10683 = vmatprep.mubr.msk.bf16.mxu1 %vm1422_vm0, %v12053_v34  ;;  %10951 = vmatprep.mubr.msk.bf16.mxu0 %vm1422_vm0, %v12054_v35  ;;  %v12653_v33 = vld [vmem:[%s12457_s20 + $0x258] sm:$0xff]   ;;  %v12116_v34 = vld [vmem:[%s12457_s20 + $0x2a0] sm:$0xff]  }
  0x4b   : > { %v12657_v35 = vld [vmem:[%s12457_s20 + $0x280] sm:$0xff]  }
  0x51   : > { %10684 = vmatmul.mubr.msk.bf16.gmra.mrb[20].mxu1 %vm1422_vm0, %v12055_v37  ;;  %10952 = vmatmul.mubr.msk.bf16.gmra.mrb[20].mxu0 %vm1422_vm0, %v12056_v38  ;;  %v12667_v37 = vld [vmem:[%s12457_s20 + $0x288] sm:$0xff]   ;;  %v12120_v38 = vld [vmem:[%s12457_s20 + $0x2b0] sm:$0xff]  }
  0x52   : > { %10687 = vmatprep.mubr.msk.bf16.mxu1 %vm1422_vm0, %v12058_v39  ;;  %10955 = vmatprep.mubr.msk.bf16.mxu0 %vm1422_vm0, %v12059_v40  ;;  %v12671_v39 = vld [vmem:[%s12457_s20 + $0x290] sm:$0xff]   ;;  %v12122_v40 = vld [vmem:[%s12457_s20 + $0x2b8] sm:$0xff]  }
  0x59   : > { %10688 = vmatmul.mubr.msk.bf16.gmra.mrb[24].mxu1 %vm1422_vm0, %v12060_v41  ;;  %10956 = vmatmul.mubr.msk.bf16.gmra.mrb[24].mxu0 %vm1422_vm0, %v12061_v42  ;;  %v12681_v41 = vld [vmem:[%s12457_s20 + $0x298] sm:$0xff]   ;;  %v12125_v42 = vld [vmem:[%s12457_s20 + $0x2e0] sm:$0xff]  }
  0x5a   : > { %10691 = vmatprep.mubr.msk.bf16.mxu1 %vm1422_vm0, %v12062_v43  ;;  %10959 = vmatprep.mubr.msk.bf16.mxu0 %vm1422_vm0, %v12063_v44  ;;  %v12685_v43 = vld [vmem:[%s12457_s20 + $0x2c0] sm:$0xff]   ;;  %v12127_v44 = vld [vmem:[%s12457_s20 + $0x2e8] sm:$0xff]  }
  0x61   : > { %10692 = vmatmul.mubr.msk.bf16.gmra.mrb[28].mxu1 %vm1422_vm0, %v12064_v45  ;;  %10960 = vmatmul.mubr.msk.bf16.gmra.mrb[28].mxu0 %vm1422_vm0, %v12065_v46  ;;  %v12695_v45 = vld [vmem:[%s12457_s20 + $0x2c8] sm:$0xff]   ;;  %v12129_v46 = vld [vmem:[%s12457_s20 + $0x2f0] sm:$0xff]  }
  0x62   : > { %10695 = vmatprep.mubr.msk.bf16.mxu1 %vm1422_vm0, %v12066_v47  ;;  %10963 = vmatprep.mubr.msk.bf16.mxu0 %vm1422_vm0, %v12067_v48  ;;  %v12699_v47 = vld [vmem:[%s12457_s20 + $0x2d0] sm:$0xff]   ;;  %v12131_v48 = vld [vmem:[%s12457_s20 + $0x2f8] sm:$0xff]  }
  0x69   : > { %10696 = vmatmul.mubr.msk.bf16.gmra.mrb[32].mxu1 %vm1422_vm0, %v12068_v50  ;;  %10964 = vmatmul.mubr.msk.bf16.gmra.mrb[32].mxu0 %vm1422_vm0, %v12069_v51  ;;  %v12133_v50 = vld [vmem:[%s12457_s20 + $0x320] sm:$0xff]  }
  0x6a   : > { %10699 = vmatprep.mubr.msk.bf16.mxu1 %vm1422_vm0, %v12070_v52  ;;  %10967 = vmatprep.mubr.msk.bf16.mxu0 %vm1422_vm0, %v12071_v53  ;;  %v12713_v51 = vld [vmem:[%s12457_s20 + $0x300] sm:$0xff]   ;;  %v12135_v52 = vld [vmem:[%s12457_s20 + $0x328] sm:$0xff]  }
  0x6b   : > { %v12723_v53 = vld [vmem:[%s12457_s20 + $0x308] sm:$0xff]  }
  0x71   : > { %10700 = vmatmul.mubr.msk.bf16.gmra.mrb[36].mxu1 %vm1422_vm0, %v12072_v54  ;;  %10968 = vmatmul.mubr.msk.bf16.gmra.mrb[36].mxu0 %vm1422_vm0, %v12073_v55  ;;  %v12137_v54 = vld [vmem:[%s12457_s20 + $0x330] sm:$0xff]  }
  0x72   : > { %10703 = vmatprep.mubr.msk.bf16.mxu1 %vm1422_vm0, %v12074_v56  ;;  %10971 = vmatprep.mubr.msk.bf16.mxu0 %vm1422_vm0, %v12075_v57  ;;  %v12727_v55 = vld [vmem:[%s12457_s20 + $0x310] sm:$0xff]   ;;  %v12139_v56 = vld [vmem:[%s12457_s20 + $0x338] sm:$0xff]  }
  0x73   : > { %v12737_v57 = vld [vmem:[%s12457_s20 + $0x318] sm:$0xff]  }
  0x79   : > { %10704 = vmatmul.mubr.msk.bf16.gmra.mrb[40].mxu1 %vm1422_vm0, %v12076_v58  ;;  %10972 = vmatmul.mubr.msk.bf16.gmra.mrb[40].mxu0 %vm1422_vm0, %v12077_v59  ;;  %v12141_v58 = vld [vmem:[%s12457_s20 + $0x360] sm:$0xff]  }
  0x7a   : > { %10707 = vmatprep.mubr.msk.bf16.mxu1 %vm1422_vm0, %v12079_v60  ;;  %10975 = vmatprep.mubr.msk.bf16.mxu0 %vm1422_vm0, %v12080_v61  ;;  %v12741_v59 = vld [vmem:[%s12457_s20 + $0x340] sm:$0xff]   ;;  %v12143_v60 = vld [vmem:[%s12457_s20 + $0x368] sm:$0xff]  }
  0x7b   : > { %v12751_v61 = vld [vmem:[%s12457_s20 + $0x348] sm:$0xff]  }
  0x81   : > { %10708 = vmatmul.mubr.msk.bf16.gmra.mrb[44].mxu1 %vm1422_vm0, %v12081_v63  ;;  %10976 = vmatmul.mubr.msk.bf16.gmra.mrb[44].mxu0 %vm1422_vm0, %v12082_v0  ;;  %v12755_v63 = vld [vmem:[%s12457_s20 + $0x350] sm:$0xff]  }
  0x82   : > { %10711 = vmatprep.mubr.msk.bf16.mxu1 %vm1422_vm0, %v12083_v1  ;;  %10979 = vmatprep.mubr.msk.bf16.mxu0 %vm1422_vm0, %v12084_v2  ;;  %v12148_v1 = vld [vmem:[%s12457_s20 + $0x378] sm:$0xff]  }
  0x89   : > { %10712 = vmatmul.mubr.msk.bf16.gmra.mrb[48].mxu1 %vm1422_vm0, %v12085_v3  ;;  %10980 = vmatmul.mubr.msk.bf16.gmra.mrb[48].mxu0 %vm1422_vm0, %v12086_v4  ;;  %v12769_v3 = vld [vmem:[%s12457_s20 + $0x358] sm:$0xff]  }
  0x8a   : > { %10715 = vmatprep.mubr.msk.bf16.mxu1 %vm1422_vm0, %v12087_v5  ;;  %10983 = vmatprep.mubr.msk.bf16.mxu0 %vm1422_vm0, %v12088_v6  ;;  %v12150_v5 = vld [vmem:[%s12457_s20 + $0x3a0] sm:$0xff]  }
  0x91   : > { %10716 = vmatmul.mubr.msk.bf16.gmra.mrb[52].mxu1 %vm1422_vm0, %v12089_v7  ;;  %10984 = vmatmul.mubr.msk.bf16.gmra.mrb[52].mxu0 %vm1422_vm0, %v12090_v9  ;;  %v12777_v7 = vld [vmem:[%s12457_s20 + $0x380] sm:$0xff]  }
  0x92   : > { %10719 = vmatprep.mubr.msk.bf16.mxu1 %vm1422_vm0, %v12091_v10  ;;  %10987 = vmatprep.mubr.msk.bf16.mxu0 %vm1422_vm0, %v12092_v11  ;;  %v12152_v10 = vld [vmem:[%s12457_s20 + $0x3a8] sm:$0xff]  }
  0x99   : > { %10720 = vmatmul.mubr.msk.bf16.gmra.mrb[56].mxu1 %vm1422_vm0, %v12093_v12  ;;  %10988 = vmatmul.mubr.msk.bf16.gmra.mrb[56].mxu0 %vm1422_vm0, %v12094_v13  ;;  %v12793_v12 = vld [vmem:[%s12457_s20 + $0x388] sm:$0xff]   ;;  %v12154_v13 = vld [vmem:[%s12457_s20 + $0x3b0] sm:$0xff]  }
  0x9a   : > { %10723 = vmatprep.mubr.msk.bf16.mxu1 %vm1422_vm0, %v12095_v14  ;;  %10991 = vmatprep.mubr.msk.bf16.mxu0 %vm1422_vm0, %v12096_v15  ;;  %v12799_v15 = vld [vmem:[%s12457_s20 + $0x390] sm:$0xff]  }
  0xa1   : > { %10724 = vmatmul.mubr.msk.bf16.gmra.mrb[60].mxu1 %vm1422_vm0, %v12097_v16  ;;  %10992 = vmatmul.mubr.msk.bf16.gmra.mrb[60].mxu0 %vm1422_vm0, %v12098_v17 }
  0xa2   : > { %10727 = vmatprep.mubr.msk.bf16.mxu1 %vm1422_vm0, %v12099_v18  ;;  %10995 = vmatprep.mubr.msk.bf16.mxu0 %vm1422_vm0, %v12100_v19  ;;  %v12156_v18 = vld [vmem:[%s12457_s20 + $0x3b8] sm:$0xff]  }
  0xa9   : > { %10728 = vmatmul.mubr.msk.bf16.gmra.mrb[64].mxu1 %vm1422_vm0, %v12101_v20  ;;  %10996 = vmatmul.mubr.msk.bf16.gmra.mrb[64].mxu0 %vm1422_vm0, %v12102_v21  ;;  %v12815_v20 = vld [vmem:[%s12457_s20 + $0x398] sm:$0xff]   ;;  %v12158_v21 = vld [vmem:[%s12457_s20 + $0x3e0] sm:$0xff]  }
  0xaa   : > { %10731 = vmatprep.mubr.msk.bf16.mxu1 %vm1422_vm0, %v12104_v22  ;;  %10999 = vmatprep.mubr.msk.bf16.mxu0 %vm1422_vm0, %v12105_v23  ;;  %v12821_v23 = vld [vmem:[%s12457_s20 + $0x3c0] sm:$0xff]  }
  0xb1   : > { %10732 = vmatmul.mubr.msk.bf16.gmra.mrb[68].mxu1 %vm1422_vm0, %v12106_v24  ;;  %11000 = vmatmul.mubr.msk.bf16.gmra.mrb[68].mxu0 %vm1422_vm0, %v12107_v25 }
  0xb2   : > { %10735 = vmatprep.mubr.msk.bf16.mxu1 %vm1422_vm0, %v12108_v26  ;;  %11003 = vmatprep.mubr.msk.bf16.mxu0 %vm1422_vm0, %v12109_v27  ;;  %v12160_v26 = vld [vmem:[%s12457_s20 + $0x3e8] sm:$0xff]  }
  0xb9   : > { %10736 = vmatmul.mubr.msk.bf16.gmra.mrb[72].mxu1 %vm1422_vm0, %v12110_v28  ;;  %11004 = vmatmul.mubr.msk.bf16.gmra.mrb[72].mxu0 %vm1422_vm0, %v12639_v29  ;;  %v12837_v28 = vld [vmem:[%s12457_s20 + $0x3c8] sm:$0xff]  }
  0xba   : > { %10739 = vmatprep.mubr.msk.bf16.mxu1 %vm1422_vm0, %v12112_v30  ;;  %11007 = vmatprep.mubr.msk.bf16.mxu0 %vm1422_vm0, %v12643_v31  ;;  %v12162_v30 = vld [vmem:[%s12457_s20 + $0x3f0] sm:$0xff]  }
  0xc1   : > { %10740 = vmatmul.mubr.msk.bf16.gmra.mrb[76].mxu1 %vm1422_vm0, %v12114_v32  ;;  %11008 = vmatmul.mubr.msk.bf16.gmra.mrb[76].mxu0 %vm1422_vm0, %v12653_v33 }
  0xc2   : > { %10743 = vmatprep.mubr.msk.bf16.mxu1 %vm1422_vm0, %v12116_v34  ;;  %11011 = vmatprep.mubr.msk.bf16.mxu0 %vm1422_vm0, %v12657_v35  ;;  %v12843_v34 = vld [vmem:[%s12457_s20 + $0x3d0] sm:$0xff]  }
  0xc9   : > { %10744 = vmatmul.mubr.msk.bf16.gmra.mrb[80].mxu1 %vm1422_vm0, %v12118_v36  ;;  %11012 = vmatmul.mubr.msk.bf16.gmra.mrb[80].mxu0 %vm1422_vm0, %v12667_v37 }
  0xca   : > { %10747 = vmatprep.mubr.msk.bf16.mxu1 %vm1422_vm0, %v12120_v38  ;;  %11015 = vmatprep.mubr.msk.bf16.mxu0 %vm1422_vm0, %v12671_v39 }
  0xd1   : > { %10748 = vmatmul.mubr.msk.bf16.gmra.mrb[84].mxu1 %vm1422_vm0, %v12122_v40  ;;  %11016 = vmatmul.mubr.msk.bf16.gmra.mrb[84].mxu0 %vm1422_vm0, %v12681_v41  ;;  %v12164_v40 = vld [vmem:[%s12457_s20 + $0x3f8] sm:$0xff]  }
  0xd2   : > { %10751 = vmatprep.mubr.msk.bf16.mxu1 %vm1422_vm0, %v12125_v42  ;;  %11019 = vmatprep.mubr.msk.bf16.mxu0 %vm1422_vm0, %v12685_v43 }
  0xd9   : > { %10752 = vmatmul.mubr.msk.bf16.gmra.mrb[88].mxu1 %vm1422_vm0, %v12127_v44  ;;  %11020 = vmatmul.mubr.msk.bf16.gmra.mrb[88].mxu0 %vm1422_vm0, %v12695_v45  ;;  %v12859_v44 = vld [vmem:[%s12457_s20 + $0x3d8] sm:$0xff]  }
  0xda   : > { %10755 = vmatprep.mubr.msk.bf16.mxu1 %vm1422_vm0, %v12129_v46  ;;  %11023 = vmatprep.mubr.msk.bf16.mxu0 %vm1422_vm0, %v12699_v47  ;;  %v12166_v46 = vld [vmem:[%s12457_s20 + $0x420] sm:$0xff]  }
  0xe1   : > { %10756 = vmatmul.mubr.msk.bf16.gmra.mrb[92].mxu1 %vm1422_vm0, %v12131_v48  ;;  %11024 = vmatmul.mubr.msk.bf16.gmra.mrb[92].mxu0 %vm1422_vm0, %v12709_v49 }
  0xe2   : > { %10759 = vmatprep.mubr.msk.bf16.mxu1 %vm1422_vm0, %v12133_v50  ;;  %11027 = vmatprep.mubr.msk.bf16.mxu0 %vm1422_vm0, %v12713_v51  ;;  %v12298_v50 = vld [vmem:[%s12457_s20 + $0x40] sm:$0xff]  }
  0xe9   : > { %10760 = vmatmul.mubr.msk.bf16.gmra.mrb[96].mxu1 %vm1422_vm0, %v12135_v52  ;;  %11028 = vmatmul.mubr.msk.bf16.gmra.mrb[96].mxu0 %vm1422_vm0, %v12723_v53 }
  0xea   : > { %10763 = vmatprep.mubr.msk.bf16.mxu1 %vm1422_vm0, %v12137_v54  ;;  %11031 = vmatprep.mubr.msk.bf16.mxu0 %vm1422_vm0, %v12727_v55 }
  0xf1   : > { %10764 = vmatmul.mubr.msk.bf16.gmra.mrb[100].mxu1 %vm1422_vm0, %v12139_v56  ;;  %11032 = vmatmul.mubr.msk.bf16.gmra.mrb[100].mxu0 %vm1422_vm0, %v12737_v57  ;;  %v12167_v56 = vld [vmem:[%s12457_s20 + $0x428] sm:$0xff]  }
  0xf2   : > { %10767 = vmatprep.mubr.msk.bf16.mxu1 %vm1422_vm0, %v12141_v58  ;;  %11035 = vmatprep.mubr.msk.bf16.mxu0 %vm1422_vm0, %v12741_v59 }
  0xf9   : > { %10768 = vmatmul.mubr.msk.bf16.gmra.mrb[104].mxu1 %vm1422_vm0, %v12143_v60  ;;  %11036 = vmatmul.mubr.msk.bf16.gmra.mrb[104].mxu0 %vm1422_vm0, %v12751_v61  ;;  %v12168_v60 = vld [vmem:[%s12457_s20 + $0x430] sm:$0xff]  }
  0xfa   : > { %10771 = vmatprep.mubr.msk.bf16.mxu1 %vm1422_vm0, %v12146_v62  ;;  %11039 = vmatprep.mubr.msk.bf16.mxu0 %vm1422_vm0, %v12755_v63 }
  0xfc   : > { %v12763_v0 = vpop.f32.mrb[0].mxu1 }
  0xfd   : > { %v12766_v2 = vpop.f32.mrb[1].mxu1 }
  0xfe   : > { %v12771_v4 = vpop.f32.mrb[2].mxu1 }
  0xff   : > { %v12774_v6 = vpop.f32.mrb[3].mxu1 }
 0x101   : > { %10772 = vmatmul.mubr.msk.bf16.gmra.mrb[108].mxu1 %vm1422_vm0, %v12148_v1  ;;  %11040 = vmatmul.mubr.msk.bf16.gmra.mrb[108].mxu0 %vm1422_vm0, %v12769_v3  ;;  %v12299_v1 = vld [vmem:[%s12457_s20 + $0x48] sm:$0xff]  }
 0x102   : > { %10775 = vmatprep.mubr.msk.bf16.mxu1 %vm1422_vm0, %v12150_v5  ;;  %11043 = vmatprep.mubr.msk.bf16.mxu0 %vm1422_vm0, %v12777_v7  ;;  %v12300_v5 = vld [vmem:[%s12457_s20 + $0x50] sm:$0xff]  }
 0x104   : > { %v12785_v8 = vpop.f32.mrb[4].mxu1 }
 0x105   : > { %v12787_v9 = vpop.f32.mrb[5].mxu1 }
 0x106   : > { %v12790_v11 = vpop.f32.mrb[6].mxu1 }
 0x107   : > { %v12796_v14 = vpop.f32.mrb[7].mxu1 }
 0x109   : > { %10776 = vmatmul.mubr.msk.bf16.gmra.mrb[112].mxu1 %vm1422_vm0, %v12152_v10  ;;  %11044 = vmatmul.mubr.msk.bf16.gmra.mrb[112].mxu0 %vm1422_vm0, %v12793_v12 }
 0x10a   : > { %10779 = vmatprep.mubr.msk.bf16.mxu1 %vm1422_vm0, %v12154_v13  ;;  %11047 = vmatprep.mubr.msk.bf16.mxu0 %vm1422_vm0, %v12799_v15 }
 0x10c   : > { %v12807_v16 = vpop.f32.mrb[8].mxu1 }
 0x10d   : > { %v12809_v17 = vpop.f32.mrb[9].mxu1 }
 0x10e   : > { %v12812_v19 = vpop.f32.mrb[10].mxu1 }
 0x10f   : > { %v12818_v22 = vpop.f32.mrb[11].mxu1 }
 0x111   : > { %10780 = vmatmul.mubr.msk.bf16.gmra.mrb[116].mxu1 %vm1422_vm0, %v12156_v18  ;;  %11048 = vmatmul.mubr.msk.bf16.gmra.mrb[116].mxu0 %vm1422_vm0, %v12815_v20  ;;  %v12169_v18 = vld [vmem:[%s12457_s20 + $0x438] sm:$0xff]  }
 0x112   : > { %10783 = vmatprep.mubr.msk.bf16.mxu1 %vm1422_vm0, %v12158_v21  ;;  %11051 = vmatprep.mubr.msk.bf16.mxu0 %vm1422_vm0, %v12821_v23 }
 0x114   : > { %v12829_v24 = vpop.f32.mrb[12].mxu1 }
 0x115   : > { %v12831_v25 = vpop.f32.mrb[13].mxu1 }
 0x116   : > { %v12834_v27 = vpop.f32.mrb[14].mxu1 }
 0x117   : > { %v12840_v32 = vpop.f32.mrb[15].mxu1 }
 0x119   : > { %10784 = vmatmul.mubr.msk.bf16.gmra.mrb[120].mxu1 %vm1422_vm0, %v12160_v26  ;;  %11052 = vmatmul.mubr.msk.bf16.gmra.mrb[120].mxu0 %vm1422_vm0, %v12837_v28  ;;  %v12170_v26 = vld [vmem:[%s12457_s20 + $0x460] sm:$0xff]  }
 0x11a   : > { %10787 = vmatprep.mubr.msk.bf16.mxu1 %vm1422_vm0, %v12162_v30  ;;  %11055 = vmatprep.mubr.msk.bf16.mxu0 %vm1422_vm0, %v12843_v34 }
 0x11c   : > { %v12851_v36 = vpop.f32.mrb[16].mxu1 }
 0x11d   : > { %v12853_v38 = vpop.f32.mrb[17].mxu1 }
 0x11e   : > { %v12856_v42 = vpop.f32.mrb[18].mxu1 }
 0x11f   : > { %v12862_v48 = vpop.f32.mrb[19].mxu1 }
 0x121   : > { %10788 = vmatmul.mubr.msk.bf16.gmra.mrb[124].mxu1 %vm1422_vm0, %v12164_v40  ;;  %11056 = vmatmul.mubr.msk.bf16.gmra.mrb[124].mxu0 %vm1422_vm0, %v12859_v44  ;;  %v12301_v40 = vld [vmem:[%s12457_s20 + $0x58] sm:$0xff]  }
 0x122   : > { %10791 = vmatprep.mubr.msk.bf16.mxu1 %vm1422_vm0, %v12166_v46  ;;  %11199 = vmatprep.mubr.msk.bf16.mxu0 %vm1422_vm0, %v12298_v50  ;;  %v12302_v46 = vld [vmem:[%s12457_s20 + $0x80] sm:$0xff]  }
 0x124   : > { %v12870_v52 = vpop.f32.mrb[20].mxu1 }
 0x125   : > { %v12872_v54 = vpop.f32.mrb[21].mxu1 }
 0x126   : > { %v12875_v58 = vpop.f32.mrb[22].mxu1 }
 0x127   : > { %v12878_v62 = vpop.f32.mrb[23].mxu1 }
 0x129   : > { %10792 = vmatmul.mubr.msk.bf16.gmra.mrb[128].mxu1 %vm1422_vm0, %v12167_v56  ;;  %11200 = vmatmul.mubr.msk.bf16.vlgmr.msra.gmra.mrb[0].mxu0 %vm1422_vm0, %v12299_v1 }
 0x12a   : > { %10795 = vmatprep.mubr.msk.bf16.mxu1 %vm1422_vm0, %v12168_v60  ;;  %11203 = vmatprep.mubr.msk.bf16.mxu0 %vm1422_vm0, %v12300_v5  ;;  %v12171_v60 = vld [vmem:[%s12457_s20 + $0x468] sm:$0xff]   ;;  %v12172_v5 = vld [vmem:[%s12457_s20 + $0x470] sm:$0xff]  }
 0x12c   : > { %v12886_v10 = vpop.f32.mrb[24].mxu1 }
 0x12d   : > { %v12888_v13 = vpop.f32.mrb[25].mxu1 }
 0x12e   : > { %v12891_v21 = vpop.f32.mrb[26].mxu1 }
 0x12f   : > { %v12894_v30 = vpop.f32.mrb[27].mxu1 }
 0x130   : > { %14330 = vst [vmem:[#allocation2_spill] sm:$0xff] %v12894_v30 }
 0x131   : > { %10796 = vmatmul.mubr.msk.bf16.gmra.mrb[132].mxu1 %vm1422_vm0, %v12169_v18  ;;  %11204 = vmatmul.mubr.msk.bf16.gmra.mrb[4].mxu0 %vm1422_vm0, %v12301_v40  ;;  %v12304_v40 = vld [vmem:[%s12457_s20 + $0x90] sm:$0xff]  }
 0x132   : > { %10799 = vmatprep.mubr.msk.bf16.mxu1 %vm1422_vm0, %v12170_v26  ;;  %11207 = vmatprep.mubr.msk.bf16.mxu0 %vm1422_vm0, %v12302_v46  ;;  %v12303_v26 = vld [vmem:[%s12457_s20 + $0x88] sm:$0xff]  }
 0x134   : > { %v12902_v50 = vpop.f32.mrb[28].mxu1 }
 0x135   : > { %14331 = vst [vmem:[#allocation3_spill] sm:$0xff] %v12902_v50  ;;  %v12904_v56 = vpop.f32.mrb[29].mxu1 }
 0x136   : > { %14332 = vst [vmem:[#allocation4_spill] sm:$0xff] %v12904_v56  ;;  %v12907_v1 = vpop.f32.mrb[30].mxu1  ;;  %v12173_v56 = vld [vmem:[%s12457_s20 + $0x478] sm:$0xff]  }
 0x137   : > { %14333 = vst [vmem:[#allocation5_spill] sm:$0xff] %v12907_v1  ;;  %v12910_v18 = vpop.f32.mrb[31].mxu1 }
 0x138   : > { %14334 = vst [vmem:[#allocation6_spill] sm:$0xff] %v12910_v18 }
 0x139   : > { %10800 = vmatmul.mubr.msk.bf16.gmra.mrb[136].mxu1 %vm1422_vm0, %v12171_v60  ;;  %11208 = vmatmul.mubr.msk.bf16.gmra.mrb[8].mxu0 %vm1422_vm0, %v12303_v26  ;;  %v12174_v60 = vld [vmem:[%s12457_s20 + $0x4a0] sm:$0xff]  }
 0x13a   : > { %10803 = vmatprep.mubr.msk.bf16.mxu1 %vm1422_vm0, %v12172_v5  ;;  %11211 = vmatprep.mubr.msk.bf16.mxu0 %vm1422_vm0, %v12304_v40  ;;  %v12305_v5 = vld [vmem:[%s12457_s20 + $0x98] sm:$0xff]   ;;  %v12306_v26 = vld [vmem:[%s12457_s20 + $0xc0] sm:$0xff]  }
 0x13c   : > { %v12918_v46 = vpop.f32.mrb[32].mxu1 }
 0x13d   : > { %14335 = vst [vmem:[#allocation7_spill] sm:$0xff] %v12918_v46  ;;  %v12920_v1 = vpop.f32.mrb[33].mxu1 }
 0x13e   : > { %14336 = vst [vmem:[#allocation8_spill] sm:$0xff] %v12920_v1  ;;  %v12923_v50 = vpop.f32.mrb[34].mxu1  ;;  %v12175_v1 = vld [vmem:[%s12457_s20 + $0x4a8] sm:$0xff]  }
 0x13f   : > { %14337 = vst [vmem:[#allocation9_spill] sm:$0xff] %v12923_v50  ;;  %v12926_v18 = vpop.f32.mrb[35].mxu1 }
 0x140   : > { %14338 = vst [vmem:[#allocation10_spill] sm:$0xff] %v12926_v18 }
 0x141   : > { %10804 = vmatmul.mubr.msk.bf16.gmra.mrb[140].mxu1 %vm1422_vm0, %v12173_v56  ;;  %11212 = vmatmul.mubr.msk.bf16.gmra.mrb[12].mxu0 %vm1422_vm0, %v12305_v5  ;;  %v12176_v56 = vld [vmem:[%s12457_s20 + $0x4b0] sm:$0xff]  }
 0x142   : > { %10807 = vmatprep.mubr.msk.bf16.mxu1 %vm1422_vm0, %v12174_v60  ;;  %11215 = vmatprep.mubr.msk.bf16.mxu0 %vm1422_vm0, %v12306_v26  ;;  %v12307_v60 = vld [vmem:[%s12457_s20 + $0xc8] sm:$0xff]   ;;  %v12308_v5 = vld [vmem:[%s12457_s20 + $0xd0] sm:$0xff]  }
 0x144   : > { %v12934_v40 = vpop.f32.mrb[36].mxu1 }
 0x145   : > { %14339 = vst [vmem:[#allocation11_spill] sm:$0xff] %v12934_v40  ;;  %v12936_v50 = vpop.f32.mrb[37].mxu1 }
 0x146   : > { %14340 = vst [vmem:[#allocation12_spill] sm:$0xff] %v12936_v50  ;;  %v12939_v46 = vpop.f32.mrb[38].mxu1  ;;  %v12177_v50 = vld [vmem:[%s12457_s20 + $0x4b8] sm:$0xff]  }
 0x147   : > { %14341 = vst [vmem:[#allocation13_spill] sm:$0xff] %v12939_v46  ;;  %v12942_v18 = vpop.f32.mrb[39].mxu1 }
 0x148   : > { %14342 = vst [vmem:[#allocation14_spill] sm:$0xff] %v12942_v18 }
 0x149   : > { %10808 = vmatmul.mubr.msk.bf16.gmra.mrb[144].mxu1 %vm1422_vm0, %v12175_v1  ;;  %11216 = vmatmul.mubr.msk.bf16.gmra.mrb[16].mxu0 %vm1422_vm0, %v12307_v60  ;;  %v12178_v1 = vld [vmem:[%s12457_s20 + $0x4e0] sm:$0xff]  }
 0x14a   : > { %10811 = vmatprep.mubr.msk.bf16.mxu1 %vm1422_vm0, %v12176_v56  ;;  %11219 = vmatprep.mubr.msk.bf16.mxu0 %vm1422_vm0, %v12308_v5  ;;  %v12309_v56 = vld [vmem:[%s12457_s20 + $0xd8] sm:$0xff]   ;;  %v12310_v60 = vld [vmem:[%s12457_s20 + $0x100] sm:$0xff]  }
 0x14c   : > { %v12950_v26 = vpop.f32.mrb[40].mxu1 }
 0x14d   : > { %14343 = vst [vmem:[#allocation15_spill] sm:$0xff] %v12950_v26  ;;  %v12952_v46 = vpop.f32.mrb[41].mxu1 }
 0x14e   : > { %14344 = vst [vmem:[#allocation16_spill] sm:$0xff] %v12952_v46  ;;  %v12955_v40 = vpop.f32.mrb[42].mxu1  ;;  %v12179_v46 = vld [vmem:[%s12457_s20 + $0x4e8] sm:$0xff]  }
 0x14f   : > { %14345 = vst [vmem:[#allocation17_spill] sm:$0xff] %v12955_v40  ;;  %v12958_v18 = vpop.f32.mrb[43].mxu1 }
 0x150   : > { %14346 = vst [vmem:[#allocation18_spill] sm:$0xff] %v12958_v18 }
 0x151   : > { %10812 = vmatmul.mubr.msk.bf16.gmra.mrb[148].mxu1 %vm1422_vm0, %v12177_v50  ;;  %11220 = vmatmul.mubr.msk.bf16.gmra.mrb[20].mxu0 %vm1422_vm0, %v12309_v56  ;;  %v12180_v50 = vld [vmem:[%s12457_s20 + $0x4f0] sm:$0xff]  }
 0x152   : > { %10815 = vmatprep.mubr.msk.bf16.mxu1 %vm1422_vm0, %v12178_v1  ;;  %11223 = vmatprep.mubr.msk.bf16.mxu0 %vm1422_vm0, %v12310_v60  ;;  %v12311_v1 = vld [vmem:[%s12457_s20 + $0x108] sm:$0xff]   ;;  %v12312_v56 = vld [vmem:[%s12457_s20 + $0x110] sm:$0xff]  }
 0x154   : > { %v12966_v5 = vpop.f32.mrb[44].mxu1 }
 0x155   : > { %14347 = vst [vmem:[#allocation19_spill] sm:$0xff] %v12966_v5  ;;  %v12968_v40 = vpop.f32.mrb[45].mxu1 }
 0x156   : > { %14348 = vst [vmem:[#allocation20_spill] sm:$0xff] %v12968_v40  ;;  %v12971_v26 = vpop.f32.mrb[46].mxu1  ;;  %v12181_v40 = vld [vmem:[%s12457_s20 + $0x4f8] sm:$0xff]  }
 0x157   : > { %14349 = vst [vmem:[#allocation21_spill] sm:$0xff] %v12971_v26  ;;  %v12974_v18 = vpop.f32.mrb[47].mxu1 }
 0x158   : > { %14350 = vst [vmem:[#allocation22_spill] sm:$0xff] %v12974_v18 }
 0x159   : > { %10816 = vmatmul.mubr.msk.bf16.gmra.mrb[152].mxu1 %vm1422_vm0, %v12179_v46  ;;  %11224 = vmatmul.mubr.msk.bf16.gmra.mrb[24].mxu0 %vm1422_vm0, %v12311_v1  ;;  %v12182_v46 = vld [vmem:[%s12457_s20 + $0x520] sm:$0xff]  }
 0x15a   : > { %10819 = vmatprep.mubr.msk.bf16.mxu1 %vm1422_vm0, %v12180_v50  ;;  %11227 = vmatprep.mubr.msk.bf16.mxu0 %vm1422_vm0, %v12312_v56  ;;  %v12313_v50 = vld [vmem:[%s12457_s20 + $0x118] sm:$0xff]   ;;  %v12314_v1 = vld [vmem:[%s12457_s20 + $0x140] sm:$0xff]  }
 0x15c   : > { %v12982_v60 = vpop.f32.mrb[48].mxu1 }
 0x15d   : > { %14351 = vst [vmem:[#allocation23_spill] sm:$0xff] %v12982_v60  ;;  %v12984_v26 = vpop.f32.mrb[49].mxu1 }
 0x15e   : > { %14352 = vst [vmem:[#allocation24_spill] sm:$0xff] %v12984_v26  ;;  %v12987_v5 = vpop.f32.mrb[50].mxu1  ;;  %v12183_v26 = vld [vmem:[%s12457_s20 + $0x528] sm:$0xff]  }
 0x15f   : > { %14353 = vst [vmem:[#allocation25_spill] sm:$0xff] %v12987_v5  ;;  %v12990_v18 = vpop.f32.mrb[51].mxu1 }
 0x160   : > { %14354 = vst [vmem:[#allocation26_spill] sm:$0xff] %v12990_v18 }
 0x161   : > { %10820 = vmatmul.mubr.msk.bf16.gmra.mrb[156].mxu1 %vm1422_vm0, %v12181_v40  ;;  %11228 = vmatmul.mubr.msk.bf16.gmra.mrb[28].mxu0 %vm1422_vm0, %v12313_v50  ;;  %v12184_v40 = vld [vmem:[%s12457_s20 + $0x530] sm:$0xff]  }
 0x162   : > { %10823 = vmatprep.mubr.msk.bf16.mxu1 %vm1422_vm0, %v12182_v46  ;;  %11231 = vmatprep.mubr.msk.bf16.mxu0 %vm1422_vm0, %v12314_v1  ;;  %v12315_v46 = vld [vmem:[%s12457_s20 + $0x148] sm:$0xff]   ;;  %v12316_v50 = vld [vmem:[%s12457_s20 + $0x150] sm:$0xff]  }
 0x164   : > { %v12998_v56 = vpop.f32.mrb[52].mxu1 }
 0x165   : > { %14355 = vst [vmem:[#allocation27_spill] sm:$0xff] %v12998_v56  ;;  %v13000_v5 = vpop.f32.mrb[53].mxu1 }
 0x166   : > { %14356 = vst [vmem:[#allocation28_spill] sm:$0xff] %v13000_v5  ;;  %v13003_v60 = vpop.f32.mrb[54].mxu1  ;;  %v12185_v5 = vld [vmem:[%s12457_s20 + $0x538] sm:$0xff]  }
 0x167   : > { %14357 = vst [vmem:[#allocation29_spill] sm:$0xff] %v13003_v60  ;;  %v13006_v18 = vpop.f32.mrb[55].mxu1 }
 0x168   : > { %14358 = vst [vmem:[#allocation30_spill] sm:$0xff] %v13006_v18 }
 0x169   : > { %10824 = vmatmul.mubr.msk.bf16.gmra.mrb[160].mxu1 %vm1422_vm0, %v12183_v26  ;;  %11232 = vmatmul.mubr.msk.bf16.gmra.mrb[32].mxu0 %vm1422_vm0, %v12315_v46  ;;  %v12186_v26 = vld [vmem:[%s12457_s20 + $0x560] sm:$0xff]  }
 0x16a   : > { %10827 = vmatprep.mubr.msk.bf16.mxu1 %vm1422_vm0, %v12184_v40  ;;  %11235 = vmatprep.mubr.msk.bf16.mxu0 %vm1422_vm0, %v12316_v50  ;;  %v12317_v40 = vld [vmem:[%s12457_s20 + $0x158] sm:$0xff]   ;;  %v12318_v46 = vld [vmem:[%s12457_s20 + $0x180] sm:$0xff]  }
 0x16c   : > { %v13014_v1 = vpop.f32.mrb[56].mxu1 }
 0x16d   : > { %14359 = vst [vmem:[#allocation31_spill] sm:$0xff] %v13014_v1  ;;  %v13016_v60 = vpop.f32.mrb[57].mxu1 }
 0x16e   : > { %14360 = vst [vmem:[#allocation32_spill] sm:$0xff] %v13016_v60  ;;  %v13019_v56 = vpop.f32.mrb[58].mxu1  ;;  %v12187_v60 = vld [vmem:[%s12457_s20 + $0x568] sm:$0xff]  }
 0x16f   : > { %14361 = vst [vmem:[#allocation33_spill] sm:$0xff] %v13019_v56  ;;  %v13022_v18 = vpop.f32.mrb[59].mxu1 }
 0x170   : > { %14362 = vst [vmem:[#allocation34_spill] sm:$0xff] %v13022_v18 }
 0x171   : > { %10828 = vmatmul.mubr.msk.bf16.gmra.mrb[164].mxu1 %vm1422_vm0, %v12185_v5  ;;  %11236 = vmatmul.mubr.msk.bf16.gmra.mrb[36].mxu0 %vm1422_vm0, %v12317_v40  ;;  %v12188_v5 = vld [vmem:[%s12457_s20 + $0x570] sm:$0xff]  }
 0x172   : > { %10831 = vmatprep.mubr.msk.bf16.mxu1 %vm1422_vm0, %v12186_v26  ;;  %11239 = vmatprep.mubr.msk.bf16.mxu0 %vm1422_vm0, %v12318_v46  ;;  %v12319_v26 = vld [vmem:[%s12457_s20 + $0x188] sm:$0xff]   ;;  %v12320_v40 = vld [vmem:[%s12457_s20 + $0x190] sm:$0xff]  }
 0x174   : > { %v13030_v50 = vpop.f32.mrb[60].mxu1 }
 0x175   : > { %14363 = vst [vmem:[#allocation35_spill] sm:$0xff] %v13030_v50  ;;  %v13032_v56 = vpop.f32.mrb[61].mxu1 }
 0x176   : > { %14364 = vst [vmem:[#allocation36_spill] sm:$0xff] %v13032_v56  ;;  %v13035_v1 = vpop.f32.mrb[62].mxu1  ;;  %v12189_v56 = vld [vmem:[%s12457_s20 + $0x578] sm:$0xff]  }
 0x177   : > { %14365 = vst [vmem:[#allocation37_spill] sm:$0xff] %v13035_v1  ;;  %v13038_v18 = vpop.f32.mrb[63].mxu1 }
 0x178   : > { %14366 = vst [vmem:[#allocation38_spill] sm:$0xff] %v13038_v18 }
 0x179   : > { %10832 = vmatmul.mubr.msk.bf16.gmra.mrb[168].mxu1 %vm1422_vm0, %v12187_v60  ;;  %11240 = vmatmul.mubr.msk.bf16.gmra.mrb[40].mxu0 %vm1422_vm0, %v12319_v26  ;;  %v12190_v60 = vld [vmem:[%s12457_s20 + $0x5a0] sm:$0xff]  }
 0x17a   : > { %10835 = vmatprep.mubr.msk.bf16.mxu1 %vm1422_vm0, %v12188_v5  ;;  %11243 = vmatprep.mubr.msk.bf16.mxu0 %vm1422_vm0, %v12320_v40  ;;  %v12321_v5 = vld [vmem:[%s12457_s20 + $0x198] sm:$0xff]   ;;  %v12322_v26 = vld [vmem:[%s12457_s20 + $0x1c0] sm:$0xff]  }
 0x17c   : > { %v13046_v46 = vpop.f32.mrb[64].mxu1 }
 0x17d   : > { %14367 = vst [vmem:[#allocation39_spill] sm:$0xff] %v13046_v46  ;;  %v13048_v1 = vpop.f32.mrb[65].mxu1 }
 0x17e   : > { %14368 = vst [vmem:[#allocation40_spill] sm:$0xff] %v13048_v1  ;;  %v13051_v50 = vpop.f32.mrb[66].mxu1  ;;  %v12191_v1 = vld [vmem:[%s12457_s20 + $0x5a8] sm:$0xff]  }
 0x17f   : > { %14369 = vst [vmem:[#allocation41_spill] sm:$0xff] %v13051_v50  ;;  %v13054_v18 = vpop.f32.mrb[67].mxu1 }
 0x180   : > { %14370 = vst [vmem:[#allocation42_spill] sm:$0xff] %v13054_v18 }
 0x181   : > { %10836 = vmatmul.mubr.msk.bf16.gmra.mrb[172].mxu1 %vm1422_vm0, %v12189_v56  ;;  %11244 = vmatmul.mubr.msk.bf16.gmra.mrb[44].mxu0 %vm1422_vm0, %v12321_v5  ;;  %v12192_v56 = vld [vmem:[%s12457_s20 + $0x5b0] sm:$0xff]  }
 0x182   : > { %10839 = vmatprep.mubr.msk.bf16.mxu1 %vm1422_vm0, %v12190_v60  ;;  %11247 = vmatprep.mubr.msk.bf16.mxu0 %vm1422_vm0, %v12322_v26  ;;  %v12323_v60 = vld [vmem:[%s12457_s20 + $0x1c8] sm:$0xff]   ;;  %v12324_v5 = vld [vmem:[%s12457_s20 + $0x1d0] sm:$0xff]  }
 0x184   : > { %v13062_v40 = vpop.f32.mrb[68].mxu1 }
 0x185   : > { %14371 = vst [vmem:[#allocation43_spill] sm:$0xff] %v13062_v40  ;;  %v13064_v50 = vpop.f32.mrb[69].mxu1 }
 0x186   : > { %14372 = vst [vmem:[#allocation44_spill] sm:$0xff] %v13064_v50  ;;  %v13067_v46 = vpop.f32.mrb[70].mxu1  ;;  %v12193_v50 = vld [vmem:[%s12457_s20 + $0x5b8] sm:$0xff]  }
 0x187   : > { %14373 = vst [vmem:[#allocation45_spill] sm:$0xff] %v13067_v46  ;;  %v13070_v18 = vpop.f32.mrb[71].mxu1 }
 0x188   : > { %14374 = vst [vmem:[#allocation46_spill] sm:$0xff] %v13070_v18 }
 0x189   : > { %10840 = vmatmul.mubr.msk.bf16.gmra.mrb[176].mxu1 %vm1422_vm0, %v12191_v1  ;;  %11248 = vmatmul.mubr.msk.bf16.gmra.mrb[48].mxu0 %vm1422_vm0, %v12323_v60  ;;  %v12194_v1 = vld [vmem:[%s12457_s20 + $0x5e0] sm:$0xff]  }
 0x18a   : > { %10843 = vmatprep.mubr.msk.bf16.mxu1 %vm1422_vm0, %v12192_v56  ;;  %11251 = vmatprep.mubr.msk.bf16.mxu0 %vm1422_vm0, %v12324_v5  ;;  %v12325_v56 = vld [vmem:[%s12457_s20 + $0x1d8] sm:$0xff]   ;;  %v12326_v60 = vld [vmem:[%s12457_s20 + $0x200] sm:$0xff]  }
 0x18c   : > { %v13078_v26 = vpop.f32.mrb[72].mxu1 }
 0x18d   : > { %14375 = vst [vmem:[#allocation47_spill] sm:$0xff] %v13078_v26  ;;  %v13080_v46 = vpop.f32.mrb[73].mxu1 }
 0x18e   : > { %14376 = vst [vmem:[#allocation48_spill] sm:$0xff] %v13080_v46  ;;  %v13083_v40 = vpop.f32.mrb[74].mxu1  ;;  %v12195_v46 = vld [vmem:[%s12457_s20 + $0x5e8] sm:$0xff]  }
 0x18f   : > { %14377 = vst [vmem:[#allocation49_spill] sm:$0xff] %v13083_v40  ;;  %v13086_v18 = vpop.f32.mrb[75].mxu1 }
 0x190   : > { %14378 = vst [vmem:[#allocation50_spill] sm:$0xff] %v13086_v18 }
 0x191   : > { %10844 = vmatmul.mubr.msk.bf16.gmra.mrb[180].mxu1 %vm1422_vm0, %v12193_v50  ;;  %11252 = vmatmul.mubr.msk.bf16.gmra.mrb[52].mxu0 %vm1422_vm0, %v12325_v56  ;;  %v12196_v50 = vld [vmem:[%s12457_s20 + $0x5f0] sm:$0xff]  }
 0x192   : > { %10847 = vmatprep.mubr.msk.bf16.mxu1 %vm1422_vm0, %v12194_v1  ;;  %11255 = vmatprep.mubr.msk.bf16.mxu0 %vm1422_vm0, %v12326_v60  ;;  %v12327_v1 = vld [vmem:[%s12457_s20 + $0x208] sm:$0xff]   ;;  %v12328_v56 = vld [vmem:[%s12457_s20 + $0x210] sm:$0xff]  }
 0x194   : > { %v13094_v5 = vpop.f32.mrb[76].mxu1 }
 0x195   : > { %14379 = vst [vmem:[#allocation51_spill] sm:$0xff] %v13094_v5  ;;  %v13096_v40 = vpop.f32.mrb[77].mxu1 }
 0x196   : > { %14380 = vst [vmem:[#allocation52_spill] sm:$0xff] %v13096_v40  ;;  %v13099_v26 = vpop.f32.mrb[78].mxu1  ;;  %v12197_v40 = vld [vmem:[%s12457_s20 + $0x5f8] sm:$0xff]  }
 0x197   : > { %14381 = vst [vmem:[#allocation53_spill] sm:$0xff] %v13099_v26  ;;  %v13102_v18 = vpop.f32.mrb[79].mxu1 }
 0x198   : > { %14382 = vst [vmem:[#allocation54_spill] sm:$0xff] %v13102_v18  ;;  %v12198_v18 = vld [vmem:[%s12457_s20 + $0x620] sm:$0xff]  }
 0x199   : > { %10848 = vmatmul.mubr.msk.bf16.gmra.mrb[184].mxu1 %vm1422_vm0, %v12195_v46  ;;  %11256 = vmatmul.mubr.msk.bf16.gmra.mrb[56].mxu0 %vm1422_vm0, %v12327_v1  ;;  %v12329_v1 = vld [vmem:[%s12457_s20 + $0x218] sm:$0xff]  }
 0x19a   : > { %10851 = vmatprep.mubr.msk.bf16.mxu1 %vm1422_vm0, %v12196_v50  ;;  %11259 = vmatprep.mubr.msk.bf16.mxu0 %vm1422_vm0, %v12328_v56  ;;  %v12330_v50 = vld [vmem:[%s12457_s20 + $0x240] sm:$0xff]  }
 0x19c   : > { %v13110_v60 = vpop.f32.mrb[80].mxu1 }
 0x19d   : > { %14383 = vst [vmem:[#allocation55_spill] sm:$0xff] %v13110_v60  ;;  %v13112_v26 = vpop.f32.mrb[81].mxu1 }
 0x19e   : > { %14384 = vst [vmem:[#allocation56_spill] sm:$0xff] %v13112_v26  ;;  %v13115_v5 = vpop.f32.mrb[82].mxu1 }
 0x19f   : > { %14385 = vst [vmem:[#allocation57_spill] sm:$0xff] %v13115_v5  ;;  %v13118_v46 = vpop.f32.mrb[83].mxu1  ;;  %v12199_v5 = vld [vmem:[%s12457_s20 + $0x628] sm:$0xff]  }
 0x1a0   : > { %14386 = vst [vmem:[#allocation58_spill] sm:$0xff] %v13118_v46  ;;  %v12200_v46 = vld [vmem:[%s12457_s20 + $0x630] sm:$0xff]  }
 0x1a1   : > { %10852 = vmatmul.mubr.msk.bf16.gmra.mrb[188].mxu1 %vm1422_vm0, %v12197_v40  ;;  %11260 = vmatmul.mubr.msk.bf16.gmra.mrb[60].mxu0 %vm1422_vm0, %v12329_v1  ;;  %v12201_v1 = vld [vmem:[%s12457_s20 + $0x638] sm:$0xff]  }
 0x1a2   : > { %10855 = vmatprep.mubr.msk.bf16.mxu1 %vm1422_vm0, %v12198_v18  ;;  %11263 = vmatprep.mubr.msk.bf16.mxu0 %vm1422_vm0, %v12330_v50 }
 0x1a4   : > { %v13126_v56 = vpop.f32.mrb[84].mxu1 }
 0x1a5   : > { %v13128_v26 = vpop.f32.mrb[85].mxu1 }
 0x1a6   : > { %v13131_v60 = vpop.f32.mrb[86].mxu1 }
 0x1a7   : > { %14387 = vst [vmem:[#allocation59_spill] sm:$0xff] %v13131_v60  ;;  %v13134_v30 = vpop.f32.mrb[87].mxu1 }
 0x1a8   : > { %14388 = vst [vmem:[#allocation60_spill] sm:$0xff] %v13134_v30  ;;  %v12202_v30 = vld [vmem:[%s12457_s20 + $0x660] sm:$0xff]  }
 0x1a9   : > { %10856 = vmatmul.mubr.msk.bf16.gmra.mrb[192].mxu1 %vm1422_vm0, %v12199_v5  ;;  %11264 = vmatmul.mubr.msk.bf16.gmra.mrb[64].mxu0 %vm1422_vm0, %v12639_v29  ;;  %v12203_v5 = vld [vmem:[%s12457_s20 + $0x668] sm:$0xff]  }
 0x1aa   : > { %10859 = vmatprep.mubr.msk.bf16.mxu1 %vm1422_vm0, %v12200_v46  ;;  %11267 = vmatprep.mubr.msk.bf16.mxu0 %vm1422_vm0, %v12643_v31 }
 0x1ac   : > { %v13142_v18 = vpop.f32.mrb[88].mxu1 }
 0x1ad   : > { %v13144_v40 = vpop.f32.mrb[89].mxu1 }
 0x1ae   : > { %v13147_v50 = vpop.f32.mrb[90].mxu1 }
 0x1af   : > { %14389 = vst [vmem:[#allocation61_spill] sm:$0xff] %v13147_v50  ;;  %v13150_v60 = vpop.f32.mrb[91].mxu1 }
 0x1b0   : > { %14390 = vst [vmem:[#allocation62_spill] sm:$0xff] %v13150_v60  ;;  %v12204_v60 = vld [vmem:[%s12457_s20 + $0x670] sm:$0xff]  }
 0x1b1   : > { %10860 = vmatmul.mubr.msk.bf16.gmra.mrb[196].mxu1 %vm1422_vm0, %v12201_v1  ;;  %11268 = vmatmul.mubr.msk.bf16.gmra.mrb[68].mxu0 %vm1422_vm0, %v12653_v33 }
 0x1b2   : > { %10863 = vmatprep.mubr.msk.bf16.mxu1 %vm1422_vm0, %v12202_v30  ;;  %11271 = vmatprep.mubr.msk.bf16.mxu0 %vm1422_vm0, %v12657_v35  ;;  %v12205_v30 = vld [vmem:[%s12457_s20 + $0x678] sm:$0xff]  }
 0x1b4   : > { %v13158_v29 = vpop.f32.mrb[92].mxu1 }
 0x1b5   : > { %v13160_v31 = vpop.f32.mrb[93].mxu1 }
 0x1b6   : > { %v13163_v46 = vpop.f32.mrb[94].mxu1 }
 0x1b7   : > { %14391 = vst [vmem:[#allocation63_spill] sm:$0xff] %v13163_v46  ;;  %v13166_v50 = vpop.f32.mrb[95].mxu1 }
 0x1b8   : > { %14392 = vst [vmem:[#allocation64_spill] sm:$0xff] %v13166_v50  ;;  %v12206_v50 = vld [vmem:[%s12457_s20 + $0x6a0] sm:$0xff]  }
 0x1b9   : > { %10864 = vmatmul.mubr.msk.bf16.gmra.mrb[200].mxu1 %vm1422_vm0, %v12203_v5  ;;  %11272 = vmatmul.mubr.msk.bf16.gmra.mrb[72].mxu0 %vm1422_vm0, %v12667_v37 }
 0x1ba   : > { %10867 = vmatprep.mubr.msk.bf16.mxu1 %vm1422_vm0, %v12204_v60  ;;  %11275 = vmatprep.mubr.msk.bf16.mxu0 %vm1422_vm0, %v12671_v39  ;;  %v12207_v60 = vld [vmem:[%s12457_s20 + $0x6a8] sm:$0xff]  }
 0x1bc   : > { %v13174_v33 = vpop.f32.mrb[96].mxu1 }
 0x1bd   : > { %v13176_v35 = vpop.f32.mrb[97].mxu1 }
 0x1be   : > { %v13179_v1 = vpop.f32.mrb[98].mxu1 }
 0x1bf   : > { %14393 = vst [vmem:[#allocation65_spill] sm:$0xff] %v13179_v1  ;;  %v13182_v46 = vpop.f32.mrb[99].mxu1 }
 0x1c0   : > { %14394 = vst [vmem:[#allocation66_spill] sm:$0xff] %v13182_v46  ;;  %v12208_v46 = vld [vmem:[%s12457_s20 + $0x6b0] sm:$0xff]  }
 0x1c1   : > { %10868 = vmatmul.mubr.msk.bf16.gmra.mrb[204].mxu1 %vm1422_vm0, %v12205_v30  ;;  %11276 = vmatmul.mubr.msk.bf16.gmra.mrb[76].mxu0 %vm1422_vm0, %v12681_v41 }
 0x1c2   : > { %10871 = vmatprep.mubr.msk.bf16.mxu1 %vm1422_vm0, %v12206_v50  ;;  %11279 = vmatprep.mubr.msk.bf16.mxu0 %vm1422_vm0, %v12685_v43  ;;  %v12209_v50 = vld [vmem:[%s12457_s20 + $0x6b8] sm:$0xff]  }
 0x1c4   : > { %v13190_v37 = vpop.f32.mrb[100].mxu1 }
 0x1c5   : > { %v13192_v39 = vpop.f32.mrb[101].mxu1 }
 0x1c6   : > { %v13195_v5 = vpop.f32.mrb[102].mxu1 }
 0x1c7   : > { %14395 = vst [vmem:[#allocation67_spill] sm:$0xff] %v13195_v5  ;;  %v13198_v1 = vpop.f32.mrb[103].mxu1 }
 0x1c8   : > { %14396 = vst [vmem:[#allocation68_spill] sm:$0xff] %v13198_v1  ;;  %v12210_v1 = vld [vmem:[%s12457_s20 + $0x6e0] sm:$0xff]  }
 0x1c9   : > { %10872 = vmatmul.mubr.msk.bf16.gmra.mrb[208].mxu1 %vm1422_vm0, %v12207_v60  ;;  %11280 = vmatmul.mubr.msk.bf16.gmra.mrb[80].mxu0 %vm1422_vm0, %v12695_v45 }
 0x1ca   : > { %10875 = vmatprep.mubr.msk.bf16.mxu1 %vm1422_vm0, %v12208_v46  ;;  %11283 = vmatprep.mubr.msk.bf16.mxu0 %vm1422_vm0, %v12699_v47  ;;  %v12211_v46 = vld [vmem:[%s12457_s20 + $0x6e8] sm:$0xff]  }
 0x1cc   : > { %v13206_v41 = vpop.f32.mrb[104].mxu1 }
 0x1cd   : > { %v13208_v43 = vpop.f32.mrb[105].mxu1 }
 0x1ce   : > { %v13211_v30 = vpop.f32.mrb[106].mxu1 }
 0x1cf   : > { %14397 = vst [vmem:[#allocation69_spill] sm:$0xff] %v13211_v30  ;;  %v13214_v5 = vpop.f32.mrb[107].mxu1 }
 0x1d0   : > { %14398 = vst [vmem:[#allocation70_spill] sm:$0xff] %v13214_v5  ;;  %v12212_v5 = vld [vmem:[%s12457_s20 + $0x6f0] sm:$0xff]  }
 0x1d1   : > { %10876 = vmatmul.mubr.msk.bf16.gmra.mrb[212].mxu1 %vm1422_vm0, %v12209_v50  ;;  %11284 = vmatmul.mubr.msk.bf16.gmra.mrb[84].mxu0 %vm1422_vm0, %v12709_v49 }
 0x1d2   : > { %10879 = vmatprep.mubr.msk.bf16.mxu1 %vm1422_vm0, %v12210_v1  ;;  %11287 = vmatprep.mubr.msk.bf16.mxu0 %vm1422_vm0, %v12713_v51  ;;  %v12213_v1 = vld [vmem:[%s12457_s20 + $0x6f8] sm:$0xff]  }
 0x1d4   : > { %v13222_v45 = vpop.f32.mrb[108].mxu1 }
 0x1d5   : > { %v13224_v47 = vpop.f32.mrb[109].mxu1 }
 0x1d6   : > { %v13227_v60 = vpop.f32.mrb[110].mxu1 }
 0x1d7   : > { %14399 = vst [vmem:[#allocation71_spill] sm:$0xff] %v13227_v60  ;;  %v13230_v30 = vpop.f32.mrb[111].mxu1 }
 0x1d8   : > { %14400 = vst [vmem:[#allocation72_spill] sm:$0xff] %v13230_v30  ;;  %v12214_v30 = vld [vmem:[%s12457_s20 + $0x720] sm:$0xff]  }
 0x1d9   : > { %10880 = vmatmul.mubr.msk.bf16.gmra.mrb[216].mxu1 %vm1422_vm0, %v12211_v46  ;;  %11288 = vmatmul.mubr.msk.bf16.gmra.mrb[88].mxu0 %vm1422_vm0, %v12723_v53 }
 0x1da   : > { %10883 = vmatprep.mubr.msk.bf16.mxu1 %vm1422_vm0, %v12212_v5  ;;  %11291 = vmatprep.mubr.msk.bf16.mxu0 %vm1422_vm0, %v12727_v55  ;;  %v12215_v5 = vld [vmem:[%s12457_s20 + $0x728] sm:$0xff]  }
 0x1dc   : > { %v13238_v49 = vpop.f32.mrb[112].mxu1 }
 0x1dd   : > { %v13240_v51 = vpop.f32.mrb[113].mxu1 }
 0x1de   : > { %v13243_v50 = vpop.f32.mrb[114].mxu1 }
 0x1df   : > { %v13246_v60 = vpop.f32.mrb[115].mxu1 }
 0x1e0   : > { %14401 = vst [vmem:[#allocation73_spill] sm:$0xff] %v13246_v60  ;;  %v12216_v60 = vld [vmem:[%s12457_s20 + $0x730] sm:$0xff]  }
 0x1e1   : > { %10884 = vmatmul.mubr.msk.bf16.gmra.mrb[220].mxu1 %vm1422_vm0, %v12213_v1  ;;  %11292 = vmatmul.mubr.msk.bf16.gmra.mrb[92].mxu0 %vm1422_vm0, %v12737_v57 }
 0x1e2   : > { %10887 = vmatprep.mubr.msk.bf16.mxu1 %vm1422_vm0, %v12214_v30  ;;  %11295 = vmatprep.mubr.msk.bf16.mxu0 %vm1422_vm0, %v12741_v59  ;;  %v12217_v30 = vld [vmem:[%s12457_s20 + $0x738] sm:$0xff]  }
 0x1e4   : > { %v13254_v53 = vpop.f32.mrb[116].mxu1 }
 0x1e5   : > { %v13256_v55 = vpop.f32.mrb[117].mxu1 }
 0x1e6   : > { %14402 = vst [vmem:[#allocation74_spill] sm:$0xff] %v13256_v55  ;;  %v13259_v46 = vpop.f32.mrb[118].mxu1 }
 0x1e7   : > { %14403 = vst [vmem:[#allocation75_spill] sm:$0xff] %v13259_v46  ;;  %v13262_v1 = vpop.f32.mrb[119].mxu1 }
 0x1e8   : > { %14404 = vst [vmem:[#allocation76_spill] sm:$0xff] %v13262_v1  ;;  %v12218_v1 = vld [vmem:[%s12457_s20 + $0x760] sm:$0xff]  }
 0x1e9   : > { %10888 = vmatmul.mubr.msk.bf16.gmra.mrb[224].mxu1 %vm1422_vm0, %v12215_v5  ;;  %11296 = vmatmul.mubr.msk.bf16.gmra.mrb[96].mxu0 %vm1422_vm0, %v12751_v61 }
 0x1ea   : > { %10891 = vmatprep.mubr.msk.bf16.mxu1 %vm1422_vm0, %v12216_v60  ;;  %11299 = vmatprep.mubr.msk.bf16.mxu0 %vm1422_vm0, %v12755_v63  ;;  %v12219_v60 = vld [vmem:[%s12457_s20 + $0x768] sm:$0xff]  }
 0x1ec   : > { %v13270_v57 = vpop.f32.mrb[120].mxu1 }
 0x1ed   : > { %v13272_v59 = vpop.f32.mrb[121].mxu1 }
 0x1ee   : > { %14405 = vst [vmem:[#allocation77_spill] sm:$0xff] %v13272_v59  ;;  %v13275_v46 = vpop.f32.mrb[122].mxu1 }
 0x1ef   : > { %14406 = vst [vmem:[#allocation78_spill] sm:$0xff] %v13275_v46  ;;  %v13278_v55 = vpop.f32.mrb[123].mxu1 }
 0x1f0   : > { %14407 = vst [vmem:[#allocation79_spill] sm:$0xff] %v13278_v55 }
 0x1f1   : > { %10892 = vmatmul.mubr.msk.bf16.gmra.mrb[228].mxu1 %vm1422_vm0, %v12217_v30  ;;  %11300 = vmatmul.mubr.msk.bf16.gmra.mrb[100].mxu0 %vm1422_vm0, %v12769_v3  ;;  %v12220_v30 = vld [vmem:[%s12457_s20 + $0x770] sm:$0xff]  }
 0x1f2   : > { %10895 = vmatprep.mubr.msk.bf16.mxu1 %vm1422_vm0, %v12218_v1  ;;  %11303 = vmatprep.mubr.msk.bf16.mxu0 %vm1422_vm0, %v12777_v7  ;;  %v13307_v7 = vld [vmem:[%s14328_s2] ss:$0 sm:$0xff]  ;;  %v12221_v1 = vld [vmem:[%s12457_s20 + $0x778] sm:$0xff]  }
 0x1f4   : > { %v13287_v61 = vpop.f32.mrb[124].mxu1 }
 0x1f5   : > { %14408 = vst [vmem:[#allocation80_spill] sm:$0xff] %v13287_v61  ;;  %v13289_v63 = vpop.f32.mrb[125].mxu1 }
 0x1f6   : > { %14409 = vst [vmem:[#allocation81_spill] sm:$0xff] %v13289_v63  ;;  %v13292_v5 = vpop.f32.mrb[126].mxu1 }
 0x1f7   : > { %14410 = vst [vmem:[#allocation82_spill] sm:$0xff] %v13292_v5  ;;  %v13295_v55 = vpop.f32.mrb[127].mxu1  ;;  %v12222_v5 = vld [vmem:[%s12457_s20 + $0x7a0] sm:$0xff]  }
 0x1f8   : > { %14411 = vst [vmem:[#allocation83_spill] sm:$0xff] %v13295_v55 }
 0x1f9   : > { %10896 = vmatmul.mubr.msk.bf16.gmra.mrb[232].mxu1 %vm1422_vm0, %v12219_v60  ;;  %11304 = vmatmul.mubr.msk.bf16.gmra.mrb[104].mxu0 %vm1422_vm0, %v12793_v12 }
 0x1fa   : > { %10899 = vmatprep.mubr.msk.bf16.mxu1 %vm1422_vm0, %v12220_v30  ;;  %11307 = vmatprep.mubr.msk.bf16.mxu0 %vm1422_vm0, %v12799_v15 }
 0x1fc   : > { %v11201_v3 = vpop.f32.mrb[0].mxu0 }
 0x1fd   : > { %v11467_v55 = vadd.f32 %v11201_v3, %v12763_v0  ;;  %v5096_v60 = vpop.f32.mrb[1].mxu0 }
 0x1fe   : > { %v11468_v12 = vadd.f32 %v5096_v60, %v12766_v2  ;;  %v11202_v30 = vpop.f32.mrb[2].mxu0  ;;  %v12224_v60 = vld [vmem:[%s12457_s20 + $0x7b0] sm:$0xff]  }
 0x1ff   : > { %v6384_v63 = vadd.f32 %v11467_v55, %v13307_v7  ;;  %v11469_v15 = vadd.f32 %v11202_v30, %v12771_v4  ;;  %v5099_v61 = vpop.f32.mrb[3].mxu0 }
 0x200   : > { %v6382_v46 = vadd.f32 %v11468_v12, %v13307_v7  ;;  %v11470_v59 = vadd.f32 %v5099_v61, %v12774_v6 }
 0x201   : > { %10900 = vmatmul.mubr.msk.bf16.gmra.mrb[236].mxu1 %vm1422_vm0, %v12221_v1  ;;  %v6385_v0 = vadd.f32 %v11469_v15, %v13307_v7  ;;  %11308 = vmatmul.mubr.msk.bf16.gmra.mrb[108].mxu0 %vm1422_vm0, %v12815_v20  ;;  %v6640_v4 = vmax.f32 %v6384_v63, 0.0  ;;  %v12223_v20 = vld [vmem:[%s12457_s20 + $0x7a8] sm:$0xff]  }
 0x202   : > { %10903 = vmatprep.mubr.msk.bf16.mxu1 %vm1422_vm0, %v12222_v5  ;;  %v6383_v2 = vadd.f32 %v11470_v59, %v13307_v7  ;;  %11311 = vmatprep.mubr.msk.bf16.mxu0 %vm1422_vm0, %v12821_v23  ;;  %v6638_v3 = vmax.f32 %v6382_v46, 0.0 }
 0x203   : > { %v6641_v55 = vmax.f32 %v6385_v0, 0.0 }
 0x204   : > { %v6639_v6 = vmax.f32 %v6383_v2, 0.0  ;;  %v11205_v61 = vpop.f32.mrb[4].mxu0 }
 0x205   : > { %v9490_v1 = vpack.c.bf16 %v6641_v55, %v6640_v4  ;;  %v11471_v5 = vadd.f32 %v11205_v61, %v12785_v8  ;;  %v5112_v59 = vpop.f32.mrb[5].mxu0 }
 0x206   : > { %v9485_v12 = vpack.c.bf16 %v6639_v6, %v6638_v3  ;;  %v11472_v23 = vadd.f32 %v5112_v59, %v12787_v9  ;;  %v11206_v63 = vpop.f32.mrb[6].mxu0  ;;  %v12225_v6 = vld [vmem:[%s12457_s20 + $0x7b8] sm:$0xff]  }
 0x207   : > { %10122 = vst [vmem:[%s13328_s29 + $0x8] sm:$0xff] %v9490_v1   ;;  %v6388_v46 = vadd.f32 %v11471_v5, %v13307_v7  ;;  %v11473_v30 = vadd.f32 %v11206_v63, %v12790_v11  ;;  %v5115_v15 = vpop.f32.mrb[7].mxu0  ;;  %v12226_v1 = vld [vmem:[%s12457_s20 + $0x7e0] sm:$0xff]  }
 0x208   : > { %9486 = vst [vmem:[%s13328_s29] sm:$0xff] %v9485_v12   ;;  %v6386_v0 = vadd.f32 %v11472_v23, %v13307_v7  ;;  %v11474_v2 = vadd.f32 %v5115_v15, %v12796_v14  ;;  %v13353_v12 = vld [vmem:[%s12457_s20 + $0x400] sm:$0xff]  }
 0x209   : > { %10904 = vmatmul.mubr.msk.bf16.gmra.mrb[240].mxu1 %vm1422_vm0, %v12223_v20  ;;  %v6389_v8 = vadd.f32 %v11473_v30, %v13307_v7  ;;  %11312 = vmatmul.mubr.msk.bf16.gmra.mrb[112].mxu0 %vm1422_vm0, %v12837_v28  ;;  %v6644_v11 = vmax.f32 %v6388_v46, 0.0 }
 0x20a   : > { %10907 = vmatprep.mubr.msk.bf16.mxu1 %vm1422_vm0, %v12224_v60  ;;  %v6387_v9 = vadd.f32 %v11474_v2, %v13307_v7  ;;  %11315 = vmatprep.mubr.msk.bf16.mxu0 %vm1422_vm0, %v12843_v34  ;;  %v6642_v14 = vmax.f32 %v6386_v0, 0.0 }
 0x20b   : > { %v6645_v4 = vmax.f32 %v6389_v8, 0.0  ;;  %v12228_v8 = vld [vmem:[%s12457_s20 + $0x7e8] sm:$0xff]  }
 0x20c   : > { %v6643_v55 = vmax.f32 %v6387_v9, 0.0  ;;  %v11209_v3 = vpop.f32.mrb[8].mxu0 }
 0x20d   : > { %v9500_v61 = vpack.c.bf16 %v6645_v4, %v6644_v11  ;;  %v11475_v20 = vadd.f32 %v11209_v3, %v12807_v16  ;;  %v5128_v28 = vpop.f32.mrb[9].mxu0  ;;  %v13372_v4 = vld [vmem:[%s12457_s20 + $0x408] sm:$0xff]  }
 0x20e   : > { %v9495_v5 = vpack.c.bf16 %v6643_v55, %v6642_v14  ;;  %v11476_v59 = vadd.f32 %v5128_v28, %v12809_v17  ;;  %v11210_v60 = vpop.f32.mrb[10].mxu0  ;;  %v12230_v14 = vld [vmem:[%s12457_s20 + $0x7f0] sm:$0xff]  }
 0x20f   : > { %10124 = vst [vmem:[%s13328_s29 + $0x18] sm:$0xff] %v9500_v61   ;;  %v6392_v34 = vadd.f32 %v11475_v20, %v13307_v7  ;;  %v11477_v23 = vadd.f32 %v11210_v60, %v12812_v19  ;;  %v5131_v63 = vpop.f32.mrb[11].mxu0  ;;  %v13377_v61 = vld [vmem:[%s12457_s20 + $0x410] sm:$0xff]  }
 0x210   : > { %10123 = vst [vmem:[%s13328_s29 + $0x10] sm:$0xff] %v9495_v5   ;;  %v6390_v46 = vadd.f32 %v11476_v59, %v13307_v7  ;;  %v11478_v16 = vadd.f32 %v5131_v63, %v12818_v22  ;;  %v12232_v63 = vld [vmem:[%s12457_s20 + $0x7f8] sm:$0xff]  }
 0x211   : > { %10908 = vmatmul.mubr.msk.bf16.gmra.mrb[244].mxu1 %vm1422_vm0, %v12225_v6  ;;  %v6393_v17 = vadd.f32 %v11477_v23, %v13307_v7  ;;  %11316 = vmatmul.mubr.msk.bf16.gmra.mrb[116].mxu0 %vm1422_vm0, %v12859_v44  ;;  %v6648_v30 = vmax.f32 %v6392_v34, 0.0 }
 0x212   : > { %10911 = vmatprep.mubr.msk.bf16.mxu1 %vm1422_vm0, %v12226_v1  ;;  %v6391_v19 = vadd.f32 %v11478_v16, %v13307_v7  ;;  %11319 = vmatprep.mubr.msk.bf16.mxu0 %vm1422_vm0, %v13353_v12  ;;  %v6646_v15 = vmax.f32 %v6390_v46, 0.0 }
 0x213   : > { %v6649_v22 = vmax.f32 %v6393_v17, 0.0 }
 0x214   : > { %v6647_v0 = vmax.f32 %v6391_v19, 0.0  ;;  %v11213_v2 = vpop.f32.mrb[12].mxu0  ;;  %v13396_v19 = vld [vmem:[%s12457_s20 + $0x418] sm:$0xff]  }
 0x215   : > { %v9510_v9 = vpack.c.bf16 %v6649_v22, %v6648_v30  ;;  %v11479_v11 = vadd.f32 %v11213_v2, %v12829_v24  ;;  %v5144_v44 = vpop.f32.mrb[13].mxu0 }
 0x216   : > { %v9505_v55 = vpack.c.bf16 %v6647_v0, %v6646_v15  ;;  %v11480_v3 = vadd.f32 %v5144_v44, %v12831_v25  ;;  %v11214_v6 = vpop.f32.mrb[14].mxu0  ;;  %v13400_v0 = vld [vmem:[%s12457_s20 + $0x440] sm:$0xff]  }
 0x217   : > { %10126 = vst [vmem:[%s13328_s29 + $0x28] sm:$0xff] %v9510_v9   ;;  %v6396_v20 = vadd.f32 %v11479_v11, %v13307_v7  ;;  %v11481_v28 = vadd.f32 %v11214_v6, %v12834_v27  ;;  %v5147_v1 = vpop.f32.mrb[15].mxu0 }
 0x218   : > { %10125 = vst [vmem:[%s13328_s29 + $0x20] sm:$0xff] %v9505_v55   ;;  %v6394_v24 = vadd.f32 %v11480_v3, %v13307_v7  ;;  %v11482_v5 = vadd.f32 %v5147_v1, %v12840_v32  ;;  %v13419_v1 = vld [vmem:[%s12457_s20 + $0x448] sm:$0xff]  }
 0x219   : > { %10912 = vmatmul.mubr.msk.bf16.gmra.mrb[248].mxu1 %vm1422_vm0, %v12228_v8  ;;  %v6397_v25 = vadd.f32 %v11481_v28, %v13307_v7  ;;  %11320 = vmatmul.mubr.msk.bf16.gmra.mrb[120].mxu0 %vm1422_vm0, %v13372_v4  ;;  %v6652_v59 = vmax.f32 %v6396_v20, 0.0 }
 0x21a   : > { %10915 = vmatprep.mubr.msk.bf16.mxu1 %vm1422_vm0, %v12230_v14  ;;  %v6395_v27 = vadd.f32 %v11482_v5, %v13307_v7  ;;  %11323 = vmatprep.mubr.msk.bf16.mxu0 %vm1422_vm0, %v13377_v61  ;;  %v6650_v32 = vmax.f32 %v6394_v24, 0.0 }
 0x21b   : > { %v6653_v60 = vmax.f32 %v6397_v25, 0.0  ;;  %v13423_v25 = vld [vmem:[%s12457_s20 + $0x450] sm:$0xff]  }
 0x21c   : > { %v6651_v34 = vmax.f32 %v6395_v27, 0.0  ;;  %v11217_v23 = vpop.f32.mrb[16].mxu0 }
 0x21d   : > { %v9520_v46 = vpack.c.bf16 %v6653_v60, %v6652_v59  ;;  %v11483_v16 = vadd.f32 %v11217_v23, %v12851_v36  ;;  %v5160_v17 = vpop.f32.mrb[17].mxu0 }
 0x21e   : > { %v9515_v30 = vpack.c.bf16 %v6651_v34, %v6650_v32  ;;  %v11484_v22 = vadd.f32 %v5160_v17, %v12853_v38  ;;  %v11218_v15 = vpop.f32.mrb[18].mxu0 }
 0x21f   : > { %10128 = vst [vmem:[%s13328_s29 + $0x38] sm:$0xff] %v9520_v46   ;;  %v6400_v2 = vadd.f32 %v11483_v16, %v13307_v7  ;;  %v11485_v8 = vadd.f32 %v11218_v15, %v12856_v42  ;;  %v5163_v9 = vpop.f32.mrb[19].mxu0 }
 0x220   : > { %10127 = vst [vmem:[%s13328_s29 + $0x30] sm:$0xff] %v9515_v30   ;;  %v6398_v11 = vadd.f32 %v11484_v22, %v13307_v7  ;;  %v11486_v36 = vadd.f32 %v5163_v9, %v12862_v48  ;;  %v13443_v30 = vld [vmem:[%s12457_s20 + $0x458] sm:$0xff]  }
 0x221   : > { %10916 = vmatmul.mubr.msk.bf16.gmra.mrb[252].mxu1 %vm1422_vm0, %v12232_v63  ;;  %v6401_v44 = vadd.f32 %v11485_v8, %v13307_v7  ;;  %11324 = vmatmul.mubr.msk.bf16.gmra.mrb[124].mxu0 %vm1422_vm0, %v13396_v19  ;;  %v6656_v42 = vmax.f32 %v6400_v2, 0.0  ;;  %v13447_v2 = vld [vmem:[%s12457_s20 + $0x480] sm:$0xff]  }
 0x222   : > { %11059 = vmatprep.mubr.msk.bf16.mxu1 %vm1422_vm0, %v13353_v12  ;;  %v6399_v38 = vadd.f32 %v11486_v36, %v13307_v7  ;;  %11327 = vmatprep.mubr.msk.bf16.mxu0 %vm1422_vm0, %v13400_v0  ;;  %v6654_v48 = vmax.f32 %v6398_v11, 0.0 }
 0x223   : > { %v6657_v14 = vmax.f32 %v6401_v44, 0.0  ;;  %v14412_v44 = vld [vmem:[#allocation2_spill] sm:$0xff] }
 0x224   : > { %v6655_v55 = vmax.f32 %v6399_v38, 0.0  ;;  %v11221_v3 = vpop.f32.mrb[20].mxu0 }
 0x225   : > { %v9530_v6 = vpack.c.bf16 %v6657_v14, %v6656_v42  ;;  %v11487_v20 = vadd.f32 %v11221_v3, %v12870_v52  ;;  %v5176_v28 = vpop.f32.mrb[21].mxu0  ;;  %v14413_v3 = vld [vmem:[#allocation3_spill] sm:$0xff] }
 0x226   : > { %v9525_v24 = vpack.c.bf16 %v6655_v55, %v6654_v48  ;;  %v11488_v12 = vadd.f32 %v5176_v28, %v12872_v54  ;;  %v11222_v5 = vpop.f32.mrb[22].mxu0  ;;  %v13467_v28 = vld [vmem:[%s12457_s20 + $0x488] sm:$0xff]  }
 0x227   : > { %10130 = vst [vmem:[%s13328_s29 + $0x48] sm:$0xff] %v9530_v6   ;;  %v6404_v27 = vadd.f32 %v11487_v20, %v13307_v7  ;;  %v11489_v59 = vadd.f32 %v11222_v5, %v12875_v58  ;;  %v5179_v60 = vpop.f32.mrb[23].mxu0 }
 0x228   : > { %10129 = vst [vmem:[%s13328_s29 + $0x40] sm:$0xff] %v9525_v24   ;;  %v6402_v32 = vadd.f32 %v11488_v12, %v13307_v7  ;;  %v11490_v52 = vadd.f32 %v5179_v60, %v12878_v62  ;;  %v14415_v60 = vld [vmem:[#allocation5_spill] sm:$0xff] }
 0x229   : > { %11060 = vmatmul.mubr.msk.bf16.vlgmr.msra.gmra.mrb[128].mxu1 %vm1422_vm0, %v13372_v4  ;;  %v6405_v54 = vadd.f32 %v11489_v59, %v13307_v7  ;;  %11328 = vmatmul.mubr.msk.bf16.gmra.mrb[128].mxu0 %vm1422_vm0, %v13419_v1  ;;  %v6660_v34 = vmax.f32 %v6404_v27, 0.0  ;;  %v13471_v27 = vld [vmem:[%s12457_s20 + $0x490] sm:$0xff]  }
 0x22a   : > { %11063 = vmatprep.mubr.msk.bf16.mxu1 %vm1422_vm0, %v13377_v61  ;;  %v6403_v58 = vadd.f32 %v11490_v52, %v13307_v7  ;;  %11331 = vmatprep.mubr.msk.bf16.mxu0 %vm1422_vm0, %v13423_v25  ;;  %v6658_v23 = vmax.f32 %v6402_v32, 0.0 }
 0x22b   : > { %v6661_v62 = vmax.f32 %v6405_v54, 0.0 }
 0x22c   : > { %v6659_v4 = vmax.f32 %v6403_v58, 0.0  ;;  %v11225_v63 = vpop.f32.mrb[24].mxu0  ;;  %v14416_v58 = vld [vmem:[#allocation6_spill] sm:$0xff] }
 0x22d   : > { %v9540_v46 = vpack.c.bf16 %v6661_v62, %v6660_v34  ;;  %v11491_v16 = vadd.f32 %v11225_v63, %v12886_v10  ;;  %v5192_v17 = vpop.f32.mrb[25].mxu0 }
 0x22e   : > { %v9535_v22 = vpack.c.bf16 %v6659_v4, %v6658_v23  ;;  %v11492_v61 = vadd.f32 %v5192_v17, %v12888_v13  ;;  %v11226_v15 = vpop.f32.mrb[26].mxu0 }
 0x22f   : > { %10132 = vst [vmem:[%s13328_s29 + $0x58] sm:$0xff] %v9540_v46   ;;  %v6408_v8 = vadd.f32 %v11491_v16, %v13307_v7  ;;  %v11493_v9 = vadd.f32 %v11226_v15, %v12891_v21  ;;  %v5195_v11 = vpop.f32.mrb[27].mxu0 }
 0x230   : > { %10131 = vst [vmem:[%s13328_s29 + $0x50] sm:$0xff] %v9535_v22   ;;  %v6406_v36 = vadd.f32 %v11492_v61, %v13307_v7  ;;  %v11494_v10 = vadd.f32 %v5195_v11, %v14412_v44  ;;  %v14417_v22 = vld [vmem:[#allocation7_spill] sm:$0xff]  ;;  %v13495_v44 = vld [vmem:[%s12457_s20 + $0x4c0] sm:$0xff]  }
 0x231   : > { %11064 = vmatmul.mubr.msk.bf16.gmra.mrb[132].mxu1 %vm1422_vm0, %v13396_v19  ;;  %v6409_v13 = vadd.f32 %v11493_v9, %v13307_v7  ;;  %11332 = vmatmul.mubr.msk.bf16.gmra.mrb[132].mxu0 %vm1422_vm0, %v13443_v30  ;;  %v6664_v38 = vmax.f32 %v6408_v8, 0.0  ;;  %v13491_v8 = vld [vmem:[%s12457_s20 + $0x498] sm:$0xff]  }
 0x232   : > { %11067 = vmatprep.mubr.msk.bf16.mxu1 %vm1422_vm0, %v13400_v0  ;;  %v6407_v21 = vadd.f32 %v11494_v10, %v13307_v7  ;;  %11335 = vmatprep.mubr.msk.bf16.mxu0 %vm1422_vm0, %v13447_v2  ;;  %v6662_v14 = vmax.f32 %v6406_v36, 0.0  ;;  %v14414_v0 = vld [vmem:[#allocation4_spill] sm:$0xff] }
 0x233   : > { %v6665_v42 = vmax.f32 %v6409_v13, 0.0  ;;  %v14419_v13 = vld [vmem:[#allocation9_spill] sm:$0xff] }
 0x234   : > { %v6663_v19 = vmax.f32 %v6407_v21, 0.0  ;;  %v11229_v48 = vpop.f32.mrb[28].mxu0 }
 0x235   : > { %v9550_v55 = vpack.c.bf16 %v6665_v42, %v6664_v38  ;;  %v11495_v6 = vadd.f32 %v11229_v48, %v14413_v3  ;;  %v5208_v20 = vpop.f32.mrb[29].mxu0 }
 0x236   : > { %v9545_v24 = vpack.c.bf16 %v6663_v19, %v6662_v14  ;;  %v11496_v12 = vadd.f32 %v5208_v20, %v14414_v0  ;;  %v11230_v5 = vpop.f32.mrb[30].mxu0  ;;  %v14420_v14 = vld [vmem:[#allocation10_spill] sm:$0xff] }
 0x237   : > { %10134 = vst [vmem:[%s13328_s29 + $0x68] sm:$0xff] %v9550_v55   ;;  %v6412_v59 = vadd.f32 %v11495_v6, %v13307_v7  ;;  %v11497_v32 = vadd.f32 %v11230_v5, %v14415_v60  ;;  %v5211_v52 = vpop.f32.mrb[31].mxu0  ;;  %v13515_v60 = vld [vmem:[%s12457_s20 + $0x4c8] sm:$0xff]  }
 0x238   : > { %10133 = vst [vmem:[%s13328_s29 + $0x60] sm:$0xff] %v9545_v24   ;;  %v6410_v54 = vadd.f32 %v11496_v12, %v13307_v7  ;;  %v11498_v34 = vadd.f32 %v5211_v52, %v14416_v58  ;;  %v14421_v12 = vld [vmem:[#allocation11_spill] sm:$0xff]  ;;  %v13519_v58 = vld [vmem:[%s12457_s20 + $0x4d0] sm:$0xff]  }
 0x239   : > { %11068 = vmatmul.mubr.msk.bf16.gmra.mrb[136].mxu1 %vm1422_vm0, %v13419_v1  ;;  %v6413_v62 = vadd.f32 %v11497_v32, %v13307_v7  ;;  %11336 = vmatmul.mubr.msk.bf16.gmra.mrb[136].mxu0 %vm1422_vm0, %v13467_v28  ;;  %v6668_v4 = vmax.f32 %v6412_v59, 0.0 }
 0x23a   : > { %11071 = vmatprep.mubr.msk.bf16.mxu1 %vm1422_vm0, %v13423_v25  ;;  %v6411_v23 = vadd.f32 %v11498_v34, %v13307_v7  ;;  %11339 = vmatprep.mubr.msk.bf16.mxu0 %vm1422_vm0, %v13471_v27  ;;  %v6666_v46 = vmax.f32 %v6410_v54, 0.0  ;;  %v14418_v25 = vld [vmem:[#allocation8_spill] sm:$0xff] }
 0x23b   : > { %v6669_v63 = vmax.f32 %v6413_v62, 0.0  ;;  %v14423_v62 = vld [vmem:[#allocation13_spill] sm:$0xff] }
 0x23c   : > { %v6667_v1 = vmax.f32 %v6411_v23, 0.0  ;;  %v11233_v16 = vpop.f32.mrb[32].mxu0 }
 0x23d   : > { %v9560_v17 = vpack.c.bf16 %v6669_v63, %v6668_v4  ;;  %v11499_v61 = vadd.f32 %v11233_v16, %v14417_v22  ;;  %v5224_v15 = vpop.f32.mrb[33].mxu0 }
 0x23e   : > { %v9555_v9 = vpack.c.bf16 %v6667_v1, %v6666_v46  ;;  %v11500_v11 = vadd.f32 %v5224_v15, %v14418_v25  ;;  %v11234_v36 = vpop.f32.mrb[34].mxu0  ;;  %v14424_v46 = vld [vmem:[#allocation14_spill] sm:$0xff] }
 0x23f   : > { %10136 = vst [vmem:[%s13328_s29 + $0x78] sm:$0xff] %v9560_v17   ;;  %v6416_v10 = vadd.f32 %v11499_v61, %v13307_v7  ;;  %v11501_v21 = vadd.f32 %v11234_v36, %v14419_v13  ;;  %v5227_v38 = vpop.f32.mrb[35].mxu0  ;;  %v13539_v13 = vld [vmem:[%s12457_s20 + $0x4d8] sm:$0xff]  }
 0x240   : > { %10135 = vst [vmem:[%s13328_s29 + $0x70] sm:$0xff] %v9555_v9   ;;  %v6414_v42 = vadd.f32 %v11500_v11, %v13307_v7  ;;  %v11502_v19 = vadd.f32 %v5227_v38, %v14420_v14  ;;  %v14425_v11 = vld [vmem:[#allocation15_spill] sm:$0xff]  ;;  %v13543_v14 = vld [vmem:[%s12457_s20 + $0x500] sm:$0xff]  }
 0x241   : > { %11072 = vmatmul.mubr.msk.bf16.gmra.mrb[140].mxu1 %vm1422_vm0, %v13443_v30  ;;  %v6417_v48 = vadd.f32 %v11501_v21, %v13307_v7  ;;  %11340 = vmatmul.mubr.msk.bf16.gmra.mrb[140].mxu0 %vm1422_vm0, %v13491_v8  ;;  %v6672_v3 = vmax.f32 %v6416_v10, 0.0 }
 0x242   : > { %11075 = vmatprep.mubr.msk.bf16.mxu1 %vm1422_vm0, %v13447_v2  ;;  %v6415_v55 = vadd.f32 %v11502_v19, %v13307_v7  ;;  %11343 = vmatprep.mubr.msk.bf16.mxu0 %vm1422_vm0, %v13495_v44  ;;  %v6670_v20 = vmax.f32 %v6414_v42, 0.0  ;;  %v14422_v2 = vld [vmem:[#allocation12_spill] sm:$0xff] }
 0x243   : > { %v6673_v6 = vmax.f32 %v6417_v48, 0.0  ;;  %v14427_v48 = vld [vmem:[#allocation17_spill] sm:$0xff] }
 0x244   : > { %v6671_v30 = vmax.f32 %v6415_v55, 0.0  ;;  %v11237_v24 = vpop.f32.mrb[36].mxu0 }
 0x245   : > { %v9570_v0 = vpack.c.bf16 %v6673_v6, %v6672_v3  ;;  %v11503_v5 = vadd.f32 %v11237_v24, %v14421_v12  ;;  %v5240_v59 = vpop.f32.mrb[37].mxu0 }
 0x246   : > { %v9565_v32 = vpack.c.bf16 %v6671_v30, %v6670_v20  ;;  %v11504_v52 = vadd.f32 %v5240_v59, %v14422_v2  ;;  %v11238_v54 = vpop.f32.mrb[38].mxu0  ;;  %v14428_v20 = vld [vmem:[#allocation18_spill] sm:$0xff] }
 0x247   : > { %10138 = vst [vmem:[%s13328_s29 + $0x88] sm:$0xff] %v9570_v0   ;;  %v6420_v34 = vadd.f32 %v11503_v5, %v13307_v7  ;;  %v11505_v23 = vadd.f32 %v11238_v54, %v14423_v62  ;;  %v5243_v4 = vpop.f32.mrb[39].mxu0  ;;  %v13563_v62 = vld [vmem:[%s12457_s20 + $0x508] sm:$0xff]  }
 0x248   : > { %10137 = vst [vmem:[%s13328_s29 + $0x80] sm:$0xff] %v9565_v32   ;;  %v6418_v63 = vadd.f32 %v11504_v52, %v13307_v7  ;;  %v11506_v1 = vadd.f32 %v5243_v4, %v14424_v46  ;;  %v14429_v52 = vld [vmem:[#allocation19_spill] sm:$0xff]  ;;  %v13567_v46 = vld [vmem:[%s12457_s20 + $0x510] sm:$0xff]  }
 0x249   : > { %11076 = vmatmul.mubr.msk.bf16.gmra.mrb[144].mxu1 %vm1422_vm0, %v13467_v28  ;;  %v6421_v16 = vadd.f32 %v11505_v23, %v13307_v7  ;;  %11344 = vmatmul.mubr.msk.bf16.gmra.mrb[144].mxu0 %vm1422_vm0, %v13515_v60  ;;  %v6676_v22 = vmax.f32 %v6420_v34, 0.0 }
 0x24a   : > { %11079 = vmatprep.mubr.msk.bf16.mxu1 %vm1422_vm0, %v13471_v27  ;;  %v6419_v17 = vadd.f32 %v11506_v1, %v13307_v7  ;;  %11347 = vmatprep.mubr.msk.bf16.mxu0 %vm1422_vm0, %v13519_v58  ;;  %v6674_v15 = vmax.f32 %v6418_v63, 0.0  ;;  %v14426_v27 = vld [vmem:[#allocation16_spill] sm:$0xff] }
 0x24b   : > { %v6677_v61 = vmax.f32 %v6421_v16, 0.0  ;;  %v14431_v16 = vld [vmem:[#allocation21_spill] sm:$0xff] }
 0x24c   : > { %v6675_v28 = vmax.f32 %v6419_v17, 0.0  ;;  %v11241_v9 = vpop.f32.mrb[40].mxu0 }
 0x24d   : > { %v9580_v25 = vpack.c.bf16 %v6677_v61, %v6676_v22  ;;  %v11507_v36 = vadd.f32 %v11241_v9, %v14425_v11  ;;  %v5256_v10 = vpop.f32.mrb[41].mxu0 }
 0x24e   : > { %v9575_v21 = vpack.c.bf16 %v6675_v28, %v6674_v15  ;;  %v11508_v38 = vadd.f32 %v5256_v10, %v14426_v27  ;;  %v11242_v42 = vpop.f32.mrb[42].mxu0  ;;  %v14432_v15 = vld [vmem:[#allocation22_spill] sm:$0xff] }
 0x24f   : > { %10140 = vst [vmem:[%s13328_s29 + $0x98] sm:$0xff] %v9580_v25   ;;  %v6424_v19 = vadd.f32 %v11507_v36, %v13307_v7  ;;  %v11509_v55 = vadd.f32 %v11242_v42, %v14427_v48  ;;  %v5259_v3 = vpop.f32.mrb[43].mxu0  ;;  %v13587_v48 = vld [vmem:[%s12457_s20 + $0x518] sm:$0xff]  }
 0x250   : > { %10139 = vst [vmem:[%s13328_s29 + $0x90] sm:$0xff] %v9575_v21   ;;  %v6422_v6 = vadd.f32 %v11508_v38, %v13307_v7  ;;  %v11510_v30 = vadd.f32 %v5259_v3, %v14428_v20  ;;  %v14433_v38 = vld [vmem:[#allocation23_spill] sm:$0xff]  ;;  %v13591_v20 = vld [vmem:[%s12457_s20 + $0x540] sm:$0xff]  }
 0x251   : > { %11080 = vmatmul.mubr.msk.bf16.gmra.mrb[148].mxu1 %vm1422_vm0, %v13491_v8  ;;  %v6425_v24 = vadd.f32 %v11509_v55, %v13307_v7  ;;  %11348 = vmatmul.mubr.msk.bf16.gmra.mrb[148].mxu0 %vm1422_vm0, %v13539_v13  ;;  %v6680_v12 = vmax.f32 %v6424_v19, 0.0 }
 0x252   : > { %11083 = vmatprep.mubr.msk.bf16.mxu1 %vm1422_vm0, %v13495_v44  ;;  %v6423_v0 = vadd.f32 %v11510_v30, %v13307_v7  ;;  %11351 = vmatprep.mubr.msk.bf16.mxu0 %vm1422_vm0, %v13543_v14  ;;  %v6678_v59 = vmax.f32 %v6422_v6, 0.0  ;;  %v14430_v44 = vld [vmem:[#allocation20_spill] sm:$0xff] }
 0x253   : > { %v6681_v5 = vmax.f32 %v6425_v24, 0.0  ;;  %v14435_v24 = vld [vmem:[#allocation25_spill] sm:$0xff] }
 0x254   : > { %v6679_v8 = vmax.f32 %v6423_v0, 0.0  ;;  %v11245_v32 = vpop.f32.mrb[44].mxu0 }
 0x255   : > { %v9590_v2 = vpack.c.bf16 %v6681_v5, %v6680_v12  ;;  %v11511_v54 = vadd.f32 %v11245_v32, %v14429_v52  ;;  %v5272_v34 = vpop.f32.mrb[45].mxu0 }
 0x256   : > { %v9585_v23 = vpack.c.bf16 %v6679_v8, %v6678_v59  ;;  %v11512_v4 = vadd.f32 %v5272_v34, %v14430_v44  ;;  %v11246_v63 = vpop.f32.mrb[46].mxu0  ;;  %v14436_v59 = vld [vmem:[#allocation26_spill] sm:$0xff] }
 0x257   : > { %10142 = vst [vmem:[%s13328_s29 + $0xa8] sm:$0xff] %v9590_v2   ;;  %v6428_v1 = vadd.f32 %v11511_v54, %v13307_v7  ;;  %v11513_v17 = vadd.f32 %v11246_v63, %v14431_v16  ;;  %v5275_v22 = vpop.f32.mrb[47].mxu0  ;;  %v13611_v16 = vld [vmem:[%s12457_s20 + $0x548] sm:$0xff]  }
 0x258   : > { %10141 = vst [vmem:[%s13328_s29 + $0xa0] sm:$0xff] %v9585_v23   ;;  %v6426_v61 = vadd.f32 %v11512_v4, %v13307_v7  ;;  %v11514_v28 = vadd.f32 %v5275_v22, %v14432_v15  ;;  %v14437_v4 = vld [vmem:[#allocation27_spill] sm:$0xff]  ;;  %v13615_v15 = vld [vmem:[%s12457_s20 + $0x550] sm:$0xff]  }
 0x259   : > { %11084 = vmatmul.mubr.msk.bf16.gmra.mrb[152].mxu1 %vm1422_vm0, %v13515_v60  ;;  %v6429_v9 = vadd.f32 %v11513_v17, %v13307_v7  ;;  %11352 = vmatmul.mubr.msk.bf16.gmra.mrb[152].mxu0 %vm1422_vm0, %v13563_v62  ;;  %v6684_v11 = vmax.f32 %v6428_v1, 0.0 }
 0x25a   : > { %11087 = vmatprep.mubr.msk.bf16.mxu1 %vm1422_vm0, %v13519_v58  ;;  %v6427_v25 = vadd.f32 %v11514_v28, %v13307_v7  ;;  %11355 = vmatprep.mubr.msk.bf16.mxu0 %vm1422_vm0, %v13567_v46  ;;  %v6682_v10 = vmax.f32 %v6426_v61, 0.0  ;;  %v14434_v58 = vld [vmem:[#allocation24_spill] sm:$0xff] }
 0x25b   : > { %v6685_v36 = vmax.f32 %v6429_v9, 0.0  ;;  %v14439_v9 = vld [vmem:[#allocation29_spill] sm:$0xff] }
 0x25c   : > { %v6683_v60 = vmax.f32 %v6427_v25, 0.0  ;;  %v11249_v21 = vpop.f32.mrb[48].mxu0 }
 0x25d   : > { %v9600_v27 = vpack.c.bf16 %v6685_v36, %v6684_v11  ;;  %v11515_v42 = vadd.f32 %v11249_v21, %v14433_v38  ;;  %v5288_v19 = vpop.f32.mrb[49].mxu0 }
 0x25e   : > { %v9595_v55 = vpack.c.bf16 %v6683_v60, %v6682_v10  ;;  %v11516_v3 = vadd.f32 %v5288_v19, %v14434_v58  ;;  %v11250_v6 = vpop.f32.mrb[50].mxu0  ;;  %v14440_v10 = vld [vmem:[#allocation30_spill] sm:$0xff] }
 0x25f   : > { %10144 = vst [vmem:[%s13328_s29 + $0xb8] sm:$0xff] %v9600_v27   ;;  %v6432_v30 = vadd.f32 %v11515_v42, %v13307_v7  ;;  %v11517_v0 = vadd.f32 %v11250_v6, %v14435_v24  ;;  %v5291_v12 = vpop.f32.mrb[51].mxu0  ;;  %v13635_v24 = vld [vmem:[%s12457_s20 + $0x558] sm:$0xff]  }
 0x260   : > { %10143 = vst [vmem:[%s13328_s29 + $0xb0] sm:$0xff] %v9595_v55   ;;  %v6430_v5 = vadd.f32 %v11516_v3, %v13307_v7  ;;  %v11518_v8 = vadd.f32 %v5291_v12, %v14436_v59  ;;  %v14441_v3 = vld [vmem:[#allocation31_spill] sm:$0xff]  ;;  %v13639_v59 = vld [vmem:[%s12457_s20 + $0x580] sm:$0xff]  }
 0x261   : > { %11088 = vmatmul.mubr.msk.bf16.gmra.mrb[156].mxu1 %vm1422_vm0, %v13539_v13  ;;  %v6433_v32 = vadd.f32 %v11517_v0, %v13307_v7  ;;  %11356 = vmatmul.mubr.msk.bf16.gmra.mrb[156].mxu0 %vm1422_vm0, %v13587_v48  ;;  %v6688_v52 = vmax.f32 %v6432_v30, 0.0 }
 0x262   : > { %11091 = vmatprep.mubr.msk.bf16.mxu1 %vm1422_vm0, %v13543_v14  ;;  %v6431_v2 = vadd.f32 %v11518_v8, %v13307_v7  ;;  %11359 = vmatprep.mubr.msk.bf16.mxu0 %vm1422_vm0, %v13591_v20  ;;  %v6686_v34 = vmax.f32 %v6430_v5, 0.0  ;;  %v14438_v14 = vld [vmem:[#allocation28_spill] sm:$0xff] }
 0x263   : > { %v6689_v54 = vmax.f32 %v6433_v32, 0.0  ;;  %v14443_v32 = vld [vmem:[#allocation33_spill] sm:$0xff] }
 0x264   : > { %v6687_v13 = vmax.f32 %v6431_v2, 0.0  ;;  %v11253_v23 = vpop.f32.mrb[52].mxu0 }
 0x265   : > { %v9610_v44 = vpack.c.bf16 %v6689_v54, %v6688_v52  ;;  %v11519_v63 = vadd.f32 %v11253_v23, %v14437_v4  ;;  %v5304_v1 = vpop.f32.mrb[53].mxu0 }
 0x266   : > { %v9605_v17 = vpack.c.bf16 %v6687_v13, %v6686_v34  ;;  %v11520_v22 = vadd.f32 %v5304_v1, %v14438_v14  ;;  %v11254_v61 = vpop.f32.mrb[54].mxu0  ;;  %v14444_v34 = vld [vmem:[#allocation34_spill] sm:$0xff] }
 0x267   : > { %10146 = vst [vmem:[%s13328_s29 + $0xc8] sm:$0xff] %v9610_v44   ;;  %v6436_v28 = vadd.f32 %v11519_v63, %v13307_v7  ;;  %v11521_v25 = vadd.f32 %v11254_v61, %v14439_v9  ;;  %v5307_v11 = vpop.f32.mrb[55].mxu0  ;;  %v13659_v9 = vld [vmem:[%s12457_s20 + $0x588] sm:$0xff]  }
 0x268   : > { %10145 = vst [vmem:[%s13328_s29 + $0xc0] sm:$0xff] %v9605_v17   ;;  %v6434_v36 = vadd.f32 %v11520_v22, %v13307_v7  ;;  %v11522_v60 = vadd.f32 %v5307_v11, %v14440_v10  ;;  %v14445_v22 = vld [vmem:[#allocation35_spill] sm:$0xff]  ;;  %v13663_v10 = vld [vmem:[%s12457_s20 + $0x590] sm:$0xff]  }
 0x269   : > { %11092 = vmatmul.mubr.msk.bf16.gmra.mrb[160].mxu1 %vm1422_vm0, %v13563_v62  ;;  %v6437_v21 = vadd.f32 %v11521_v25, %v13307_v7  ;;  %11360 = vmatmul.mubr.msk.bf16.gmra.mrb[160].mxu0 %vm1422_vm0, %v13611_v16  ;;  %v6692_v38 = vmax.f32 %v6436_v28, 0.0 }
 0x26a   : > { %11095 = vmatprep.mubr.msk.bf16.mxu1 %vm1422_vm0, %v13567_v46  ;;  %v6435_v27 = vadd.f32 %v11522_v60, %v13307_v7  ;;  %11363 = vmatprep.mubr.msk.bf16.mxu0 %vm1422_vm0, %v13615_v15  ;;  %v6690_v19 = vmax.f32 %v6434_v36, 0.0  ;;  %v14442_v46 = vld [vmem:[#allocation32_spill] sm:$0xff] }
 0x26b   : > { %v6693_v42 = vmax.f32 %v6437_v21, 0.0  ;;  %v14447_v21 = vld [vmem:[#allocation37_spill] sm:$0xff] }
 0x26c   : > { %v6691_v62 = vmax.f32 %v6435_v27, 0.0  ;;  %v11257_v55 = vpop.f32.mrb[56].mxu0 }
 0x26d   : > { %v9620_v58 = vpack.c.bf16 %v6693_v42, %v6692_v38  ;;  %v11523_v6 = vadd.f32 %v11257_v55, %v14441_v3  ;;  %v5320_v30 = vpop.f32.mrb[57].mxu0 }
 0x26e   : > { %v9615_v0 = vpack.c.bf16 %v6691_v62, %v6690_v19  ;;  %v11524_v12 = vadd.f32 %v5320_v30, %v14442_v46  ;;  %v11258_v5 = vpop.f32.mrb[58].mxu0  ;;  %v14448_v19 = vld [vmem:[#allocation38_spill] sm:$0xff] }
 0x26f   : > { %10148 = vst [vmem:[%s13328_s29 + $0xd8] sm:$0xff] %v9620_v58   ;;  %v6440_v8 = vadd.f32 %v11523_v6, %v13307_v7  ;;  %v11525_v2 = vadd.f32 %v11258_v5, %v14443_v32  ;;  %v5323_v52 = vpop.f32.mrb[59].mxu0  ;;  %v13683_v32 = vld [vmem:[%s12457_s20 + $0x598] sm:$0xff]  }
 0x270   : > { %10147 = vst [vmem:[%s13328_s29 + $0xd0] sm:$0xff] %v9615_v0   ;;  %v6438_v54 = vadd.f32 %v11524_v12, %v13307_v7  ;;  %v11526_v13 = vadd.f32 %v5323_v52, %v14444_v34  ;;  %v14449_v12 = vld [vmem:[#allocation39_spill] sm:$0xff]  ;;  %v13687_v34 = vld [vmem:[%s12457_s20 + $0x5c0] sm:$0xff]  }
 0x271   : > { %11096 = vmatmul.mubr.msk.bf16.gmra.mrb[164].mxu1 %vm1422_vm0, %v13587_v48  ;;  %v6441_v23 = vadd.f32 %v11525_v2, %v13307_v7  ;;  %11364 = vmatmul.mubr.msk.bf16.gmra.mrb[164].mxu0 %vm1422_vm0, %v13635_v24  ;;  %v6696_v4 = vmax.f32 %v6440_v8, 0.0 }
 0x272   : > { %11099 = vmatprep.mubr.msk.bf16.mxu1 %vm1422_vm0, %v13591_v20  ;;  %v6439_v44 = vadd.f32 %v11526_v13, %v13307_v7  ;;  %11367 = vmatprep.mubr.msk.bf16.mxu0 %vm1422_vm0, %v13639_v59  ;;  %v6694_v1 = vmax.f32 %v6438_v54, 0.0  ;;  %v14446_v20 = vld [vmem:[#allocation36_spill] sm:$0xff] }
 0x273   : > { %v6697_v63 = vmax.f32 %v6441_v23, 0.0  ;;  %v14451_v23 = vld [vmem:[#allocation41_spill] sm:$0xff] }
 0x274   : > { %v6695_v48 = vmax.f32 %v6439_v44, 0.0  ;;  %v11261_v17 = vpop.f32.mrb[60].mxu0 }
 0x275   : > { %v9630_v14 = vpack.c.bf16 %v6697_v63, %v6696_v4  ;;  %v11527_v61 = vadd.f32 %v11261_v17, %v14445_v22  ;;  %v5336_v28 = vpop.f32.mrb[61].mxu0 }
 0x276   : > { %v9625_v25 = vpack.c.bf16 %v6695_v48, %v6694_v1  ;;  %v11528_v11 = vadd.f32 %v5336_v28, %v14446_v20  ;;  %v11262_v36 = vpop.f32.mrb[62].mxu0  ;;  %v14452_v1 = vld [vmem:[#allocation42_spill] sm:$0xff] }
 0x277   : > { %10150 = vst [vmem:[%s13328_s29 + $0xe8] sm:$0xff] %v9630_v14   ;;  %v6444_v60 = vadd.f32 %v11527_v61, %v13307_v7  ;;  %v11529_v27 = vadd.f32 %v11262_v36, %v14447_v21  ;;  %v5339_v38 = vpop.f32.mrb[63].mxu0  ;;  %v13707_v21 = vld [vmem:[%s12457_s20 + $0x5c8] sm:$0xff]  }
 0x278   : > { %10149 = vst [vmem:[%s13328_s29 + $0xe0] sm:$0xff] %v9625_v25   ;;  %v6442_v42 = vadd.f32 %v11528_v11, %v13307_v7  ;;  %v11530_v62 = vadd.f32 %v5339_v38, %v14448_v19  ;;  %v14453_v11 = vld [vmem:[#allocation43_spill] sm:$0xff]  ;;  %v13711_v19 = vld [vmem:[%s12457_s20 + $0x5d0] sm:$0xff]  }
 0x279   : > { %11100 = vmatmul.mubr.msk.bf16.gmra.mrb[168].mxu1 %vm1422_vm0, %v13611_v16  ;;  %v6445_v55 = vadd.f32 %v11529_v27, %v13307_v7  ;;  %11368 = vmatmul.mubr.msk.bf16.gmra.mrb[168].mxu0 %vm1422_vm0, %v13659_v9  ;;  %v6700_v3 = vmax.f32 %v6444_v60, 0.0 }
 0x27a   : > { %11103 = vmatprep.mubr.msk.bf16.mxu1 %vm1422_vm0, %v13615_v15  ;;  %v6443_v58 = vadd.f32 %v11530_v62, %v13307_v7  ;;  %11371 = vmatprep.mubr.msk.bf16.mxu0 %vm1422_vm0, %v13663_v10  ;;  %v6698_v30 = vmax.f32 %v6442_v42, 0.0  ;;  %v14450_v15 = vld [vmem:[#allocation40_spill] sm:$0xff] }
 0x27b   : > { %v6701_v6 = vmax.f32 %v6445_v55, 0.0  ;;  %v14455_v55 = vld [vmem:[#allocation45_spill] sm:$0xff] }
 0x27c   : > { %v6699_v16 = vmax.f32 %v6443_v58, 0.0  ;;  %v11265_v0 = vpop.f32.mrb[64].mxu0 }
 0x27d   : > { %v9640_v46 = vpack.c.bf16 %v6701_v6, %v6700_v3  ;;  %v11531_v5 = vadd.f32 %v11265_v0, %v14449_v12  ;;  %v5352_v8 = vpop.f32.mrb[65].mxu0 }
 0x27e   : > { %v9635_v2 = vpack.c.bf16 %v6699_v16, %v6698_v30  ;;  %v11532_v52 = vadd.f32 %v5352_v8, %v14450_v15  ;;  %v11266_v54 = vpop.f32.mrb[66].mxu0  ;;  %v14456_v30 = vld [vmem:[#allocation46_spill] sm:$0xff] }
 0x27f   : > { %10152 = vst [vmem:[%s13328_s29 + $0xf8] sm:$0xff] %v9640_v46   ;;  %v6448_v13 = vadd.f32 %v11531_v5, %v13307_v7  ;;  %v11533_v44 = vadd.f32 %v11266_v54, %v14451_v23  ;;  %v5355_v4 = vpop.f32.mrb[67].mxu0  ;;  %v13731_v23 = vld [vmem:[%s12457_s20 + $0x5d8] sm:$0xff]  }
 0x280   : > { %10151 = vst [vmem:[%s13328_s29 + $0xf0] sm:$0xff] %v9635_v2   ;;  %v6446_v63 = vadd.f32 %v11532_v52, %v13307_v7  ;;  %v11534_v48 = vadd.f32 %v5355_v4, %v14452_v1  ;;  %v14457_v52 = vld [vmem:[#allocation47_spill] sm:$0xff]  ;;  %v13735_v1 = vld [vmem:[%s12457_s20 + $0x600] sm:$0xff]  }
 0x281   : > { %11104 = vmatmul.mubr.msk.bf16.gmra.mrb[172].mxu1 %vm1422_vm0, %v13635_v24  ;;  %v6449_v17 = vadd.f32 %v11533_v44, %v13307_v7  ;;  %11372 = vmatmul.mubr.msk.bf16.gmra.mrb[172].mxu0 %vm1422_vm0, %v13683_v32  ;;  %v6704_v22 = vmax.f32 %v6448_v13, 0.0 }
 0x282   : > { %11107 = vmatprep.mubr.msk.bf16.mxu1 %vm1422_vm0, %v13639_v59  ;;  %v6447_v14 = vadd.f32 %v11534_v48, %v13307_v7  ;;  %11375 = vmatprep.mubr.msk.bf16.mxu0 %vm1422_vm0, %v13687_v34  ;;  %v6702_v28 = vmax.f32 %v6446_v63, 0.0  ;;  %v14454_v59 = vld [vmem:[#allocation44_spill] sm:$0xff] }
 0x283   : > { %v6705_v61 = vmax.f32 %v6449_v17, 0.0  ;;  %v14459_v17 = vld [vmem:[#allocation49_spill] sm:$0xff] }
 0x284   : > { %v6703_v24 = vmax.f32 %v6447_v14, 0.0  ;;  %v11269_v25 = vpop.f32.mrb[68].mxu0 }
 0x285   : > { %v9650_v20 = vpack.c.bf16 %v6705_v61, %v6704_v22  ;;  %v11535_v36 = vadd.f32 %v11269_v25, %v14453_v11  ;;  %v5368_v60 = vpop.f32.mrb[69].mxu0 }
 0x286   : > { %v9645_v27 = vpack.c.bf16 %v6703_v24, %v6702_v28  ;;  %v11536_v38 = vadd.f32 %v5368_v60, %v14454_v59  ;;  %v11270_v42 = vpop.f32.mrb[70].mxu0  ;;  %v14460_v28 = vld [vmem:[#allocation50_spill] sm:$0xff] }
 0x287   : > { %10154 = vst [vmem:[%s13328_s29 + $0x108] sm:$0xff] %v9650_v20   ;;  %v6452_v62 = vadd.f32 %v11535_v36, %v13307_v7  ;;  %v11537_v58 = vadd.f32 %v11270_v42, %v14455_v55  ;;  %v5371_v3 = vpop.f32.mrb[71].mxu0  ;;  %v13755_v55 = vld [vmem:[%s12457_s20 + $0x608] sm:$0xff]  }
 0x288   : > { %10153 = vst [vmem:[%s13328_s29 + $0x100] sm:$0xff] %v9645_v27   ;;  %v6450_v6 = vadd.f32 %v11536_v38, %v13307_v7  ;;  %v11538_v16 = vadd.f32 %v5371_v3, %v14456_v30  ;;  %v14461_v38 = vld [vmem:[#allocation51_spill] sm:$0xff]  ;;  %v13759_v30 = vld [vmem:[%s12457_s20 + $0x610] sm:$0xff]  }
 0x289   : > { %11108 = vmatmul.mubr.msk.bf16.gmra.mrb[176].mxu1 %vm1422_vm0, %v13659_v9  ;;  %v6453_v0 = vadd.f32 %v11537_v58, %v13307_v7  ;;  %11376 = vmatmul.mubr.msk.bf16.gmra.mrb[176].mxu0 %vm1422_vm0, %v13707_v21  ;;  %v6708_v12 = vmax.f32 %v6452_v62, 0.0 }
 0x28a   : > { %11111 = vmatprep.mubr.msk.bf16.mxu1 %vm1422_vm0, %v13663_v10  ;;  %v6451_v46 = vadd.f32 %v11538_v16, %v13307_v7  ;;  %11379 = vmatprep.mubr.msk.bf16.mxu0 %vm1422_vm0, %v13711_v19  ;;  %v6706_v8 = vmax.f32 %v6450_v6, 0.0  ;;  %v14458_v10 = vld [vmem:[#allocation48_spill] sm:$0xff] }
 0x28b   : > { %v6709_v5 = vmax.f32 %v6453_v0, 0.0  ;;  %v14463_v0 = vld [vmem:[#allocation53_spill] sm:$0xff] }
 0x28c   : > { %v6707_v9 = vmax.f32 %v6451_v46, 0.0  ;;  %v11273_v2 = vpop.f32.mrb[72].mxu0 }
 0x28d   : > { %v9660_v15 = vpack.c.bf16 %v6709_v5, %v6708_v12  ;;  %v11539_v54 = vadd.f32 %v11273_v2, %v14457_v52  ;;  %v5384_v13 = vpop.f32.mrb[73].mxu0  ;;  %v13772_v2 = vld [vmem:[%s14328_s2] ss:$0 sm:$0xff] }
 0x28e   : > { %v9655_v44 = vpack.c.bf16 %v6707_v9, %v6706_v8  ;;  %v11540_v4 = vadd.f32 %v5384_v13, %v14458_v10  ;;  %v11274_v63 = vpop.f32.mrb[74].mxu0  ;;  %v14464_v8 = vld [vmem:[#allocation54_spill] sm:$0xff] }
 0x28f   : > { %10156 = vst [vmem:[%s13328_s29 + $0x118] sm:$0xff] %v9660_v15   ;;  %v6456_v48 = vadd.f32 %v11539_v54, %v13307_v7  ;;  %v11541_v14 = vadd.f32 %v11274_v63, %v14459_v17  ;;  %v5387_v22 = vpop.f32.mrb[75].mxu0  ;;  %v13784_v17 = vld [vmem:[%s12457_s20 + $0x618] sm:$0xff]  }
 0x290   : > { %10155 = vst [vmem:[%s13328_s29 + $0x110] sm:$0xff] %v9655_v44   ;;  %v6454_v61 = vadd.f32 %v11540_v4, %v13307_v7  ;;  %v11542_v24 = vadd.f32 %v5387_v22, %v14460_v28  ;;  %v14465_v4 = vld [vmem:[#allocation55_spill] sm:$0xff]  ;;  %v13788_v28 = vld [vmem:[%s12457_s20 + $0x640] sm:$0xff]  }
 0x291   : > { %11112 = vmatmul.mubr.msk.bf16.gmra.mrb[180].mxu1 %vm1422_vm0, %v13683_v32  ;;  %v6457_v25 = vadd.f32 %v11541_v14, %v13307_v7  ;;  %11380 = vmatmul.mubr.msk.bf16.gmra.mrb[180].mxu0 %vm1422_vm0, %v13731_v23  ;;  %v6712_v11 = vmax.f32 %v6456_v48, 0.0 }
 0x292   : > { %11115 = vmatprep.mubr.msk.bf16.mxu1 %vm1422_vm0, %v13687_v34  ;;  %v6455_v20 = vadd.f32 %v11542_v24, %v13307_v7  ;;  %11383 = vmatprep.mubr.msk.bf16.mxu0 %vm1422_vm0, %v13735_v1  ;;  %v6710_v60 = vmax.f32 %v6454_v61, 0.0  ;;  %v14462_v34 = vld [vmem:[#allocation52_spill] sm:$0xff] }
 0x293   : > { %v6713_v36 = vmax.f32 %v6457_v25, 0.0  ;;  %v14467_v25 = vld [vmem:[#allocation57_spill] sm:$0xff] }
 0x294   : > { %v6711_v32 = vmax.f32 %v6455_v20, 0.0  ;;  %v11277_v27 = vpop.f32.mrb[76].mxu0 }
 0x295   : > { %v9670_v59 = vpack.c.bf16 %v6713_v36, %v6712_v11  ;;  %v11543_v42 = vadd.f32 %v11277_v27, %v14461_v38  ;;  %v5400_v62 = vpop.f32.mrb[77].mxu0 }
 0x296   : > { %v9665_v58 = vpack.c.bf16 %v6711_v32, %v6710_v60  ;;  %v11544_v3 = vadd.f32 %v5400_v62, %v14462_v34  ;;  %v11278_v6 = vpop.f32.mrb[78].mxu0  ;;  %v14468_v60 = vld [vmem:[#allocation58_spill] sm:$0xff] }
 0x297   : > { %10158 = vst [vmem:[%s13328_s29 + $0x128] sm:$0xff] %v9670_v59   ;;  %v6460_v16 = vadd.f32 %v11543_v42, %v13307_v7  ;;  %v11545_v46 = vadd.f32 %v11278_v6, %v14463_v0  ;;  %v5403_v12 = vpop.f32.mrb[79].mxu0 }
 0x298   : > { %10157 = vst [vmem:[%s13328_s29 + $0x120] sm:$0xff] %v9665_v58   ;;  %v6458_v5 = vadd.f32 %v11544_v3, %v13307_v7  ;;  %v11546_v9 = vadd.f32 %v5403_v12, %v14464_v8  ;;  %v13812_v12 = vld [vmem:[%s12457_s20 + $0x650] sm:$0xff]   ;;  %v14469_v8 = vld [vmem:[#allocation59_spill] sm:$0xff] }
 0x299   : > { %11116 = vmatmul.mubr.msk.bf16.gmra.mrb[184].mxu1 %vm1422_vm0, %v13707_v21  ;;  %v6461_v15 = vadd.f32 %v13772_v2, %v11545_v46  ;;  %11384 = vmatmul.mubr.msk.bf16.gmra.mrb[184].mxu0 %vm1422_vm0, %v13755_v55  ;;  %v6716_v21 = vmax.f32 %v6460_v16, 0.0  ;;  %v13808_v16 = vld [vmem:[%s12457_s20 + $0x648] sm:$0xff]  }
 0x29a   : > { %11119 = vmatprep.mubr.msk.bf16.mxu1 %vm1422_vm0, %v13711_v19  ;;  %v6459_v7 = vadd.f32 %v13772_v2, %v11546_v9  ;;  %11387 = vmatprep.mubr.msk.bf16.mxu0 %vm1422_vm0, %v13759_v30  ;;  %v6714_v54 = vmax.f32 %v6458_v5, 0.0  ;;  %v14466_v19 = vld [vmem:[#allocation56_spill] sm:$0xff] }
 0x29b   : > { %v6717_v52 = vmax.f32 %v6461_v15, 0.0 }
 0x29c   : > { %v6715_v13 = vmax.f32 %v6459_v7, 0.0  ;;  %v11281_v44 = vpop.f32.mrb[80].mxu0 }
 0x29d   : > { %v9680_v10 = vpack.c.bf16 %v6717_v52, %v6716_v21  ;;  %v11547_v63 = vadd.f32 %v11281_v44, %v14465_v4  ;;  %v5416_v48 = vpop.f32.mrb[81].mxu0  ;;  %v14470_v21 = vld [vmem:[#allocation60_spill] sm:$0xff] }
 0x29e   : > { %v9675_v14 = vpack.c.bf16 %v6715_v13, %v6714_v54  ;;  %v11548_v22 = vadd.f32 %v5416_v48, %v14466_v19  ;;  %v11282_v61 = vpop.f32.mrb[82].mxu0 }
 0x29f   : > { %10160 = vst [vmem:[%s13328_s29 + $0x138] sm:$0xff] %v9680_v10   ;;  %v6464_v24 = vadd.f32 %v13772_v2, %v11547_v63  ;;  %v11549_v20 = vadd.f32 %v11282_v61, %v14467_v25  ;;  %v5419_v11 = vpop.f32.mrb[83].mxu0  ;;  %v13836_v61 = vld [vmem:[%s12457_s20 + $0x680] sm:$0xff]   ;;  %v14471_v25 = vld [vmem:[#allocation61_spill] sm:$0xff] }
 0x2a0   : > { %10159 = vst [vmem:[%s13328_s29 + $0x130] sm:$0xff] %v9675_v14   ;;  %v6462_v36 = vadd.f32 %v13772_v2, %v11548_v22  ;;  %v11550_v32 = vadd.f32 %v5419_v11, %v14468_v60  ;;  %v13832_v14 = vld [vmem:[%s12457_s20 + $0x658] sm:$0xff]   ;;  %v14472_v60 = vld [vmem:[#allocation62_spill] sm:$0xff] }
 0x2a1   : > { %11120 = vmatmul.mubr.msk.bf16.gmra.mrb[188].mxu1 %vm1422_vm0, %v13731_v23  ;;  %v6465_v27 = vadd.f32 %v13772_v2, %v11549_v20  ;;  %11388 = vmatmul.mubr.msk.bf16.gmra.mrb[188].mxu0 %vm1422_vm0, %v13784_v17  ;;  %v6720_v38 = vmax.f32 %v6464_v24, 0.0 }
 0x2a2   : > { %11123 = vmatprep.mubr.msk.bf16.mxu1 %vm1422_vm0, %v13735_v1  ;;  %v6463_v59 = vadd.f32 %v13772_v2, %v11550_v32  ;;  %11391 = vmatprep.mubr.msk.bf16.mxu0 %vm1422_vm0, %v13788_v28  ;;  %v6718_v62 = vmax.f32 %v6462_v36, 0.0 }
 0x2a3   : > { %v6721_v42 = vmax.f32 %v6465_v27, 0.0 }
 0x2a4   : > { %v6719_v23 = vmax.f32 %v6463_v59, 0.0  ;;  %v11285_v58 = vpop.f32.mrb[84].mxu0 }
 0x2a5   : > { %v9690_v34 = vpack.c.bf16 %v6721_v42, %v6720_v38  ;;  %v11551_v3 = vadd.f32 %v11285_v58, %v13126_v56  ;;  %v5432_v6 = vpop.f32.mrb[85].mxu0 }
 0x2a6   : > { %v9685_v0 = vpack.c.bf16 %v6719_v23, %v6718_v62  ;;  %v11552_v1 = vadd.f32 %v5432_v6, %v13128_v26  ;;  %v11286_v46 = vpop.f32.mrb[86].mxu0 }
 0x2a7   : > { %10162 = vst [vmem:[%s13328_s29 + $0x148] sm:$0xff] %v9690_v34   ;;  %v6468_v5 = vadd.f32 %v13772_v2, %v11551_v3  ;;  %v11553_v9 = vadd.f32 %v11286_v46, %v14469_v8  ;;  %v5435_v15 = vpop.f32.mrb[87].mxu0  ;;  %v13856_v34 = vld [vmem:[%s12457_s20 + $0x688] sm:$0xff]  }
 0x2a8   : > { %10161 = vst [vmem:[%s13328_s29 + $0x140] sm:$0xff] %v9685_v0   ;;  %v6466_v7 = vadd.f32 %v13772_v2, %v11552_v1  ;;  %v11554_v56 = vadd.f32 %v5435_v15, %v14470_v21  ;;  %v13860_v0 = vld [vmem:[%s12457_s20 + $0x690] sm:$0xff]   ;;  %v14473_v46 = vld [vmem:[#allocation63_spill] sm:$0xff] }
 0x2a9   : > { %11124 = vmatmul.mubr.msk.bf16.gmra.mrb[192].mxu1 %vm1422_vm0, %v13755_v55  ;;  %v6469_v26 = vadd.f32 %v13772_v2, %v11553_v9  ;;  %11392 = vmatmul.mubr.msk.bf16.gmra.mrb[192].mxu0 %vm1422_vm0, %v13808_v16  ;;  %v6724_v54 = vmax.f32 %v6468_v5, 0.0  ;;  %v14474_v15 = vld [vmem:[#allocation64_spill] sm:$0xff] }
 0x2aa   : > { %11127 = vmatprep.mubr.msk.bf16.mxu1 %vm1422_vm0, %v13759_v30  ;;  %v6467_v52 = vadd.f32 %v13772_v2, %v11554_v56  ;;  %11395 = vmatprep.mubr.msk.bf16.mxu0 %vm1422_vm0, %v13812_v12  ;;  %v6722_v44 = vmax.f32 %v6466_v7, 0.0 }
 0x2ab   : > { %v6725_v13 = vmax.f32 %v6469_v26, 0.0 }
 0x2ac   : > { %v6723_v55 = vmax.f32 %v6467_v52, 0.0  ;;  %v11289_v10 = vpop.f32.mrb[88].mxu0 }
 0x2ad   : > { %v9700_v4 = vpack.c.bf16 %v6725_v13, %v6724_v54  ;;  %v11555_v63 = vadd.f32 %v11289_v10, %v13142_v18  ;;  %v5448_v48 = vpop.f32.mrb[89].mxu0 }
 0x2ae   : > { %v9695_v19 = vpack.c.bf16 %v6723_v55, %v6722_v44  ;;  %v11556_v30 = vadd.f32 %v5448_v48, %v13144_v40  ;;  %v11290_v22 = vpop.f32.mrb[90].mxu0  ;;  %v13880_v55 = vld [vmem:[%s12457_s20 + $0x698] sm:$0xff]  }
 0x2af   : > { %10164 = vst [vmem:[%s13328_s29 + $0x158] sm:$0xff] %v9700_v4   ;;  %v6472_v24 = vadd.f32 %v13772_v2, %v11555_v63  ;;  %v11557_v20 = vadd.f32 %v11290_v22, %v14471_v25  ;;  %v5451_v11 = vpop.f32.mrb[91].mxu0  ;;  %v13884_v63 = vld [vmem:[%s12457_s20 + $0x6c0] sm:$0xff]  }
 0x2b0   : > { %10163 = vst [vmem:[%s13328_s29 + $0x150] sm:$0xff] %v9695_v19   ;;  %v6470_v36 = vadd.f32 %v13772_v2, %v11556_v30  ;;  %v11558_v18 = vadd.f32 %v5451_v11, %v14472_v60  ;;  %v14475_v19 = vld [vmem:[#allocation65_spill] sm:$0xff]  ;;  %v14476_v25 = vld [vmem:[#allocation66_spill] sm:$0xff] }
 0x2b1   : > { %11128 = vmatmul.mubr.msk.bf16.gmra.mrb[196].mxu1 %vm1422_vm0, %v13784_v17  ;;  %v6473_v40 = vadd.f32 %v13772_v2, %v11557_v20  ;;  %11396 = vmatmul.mubr.msk.bf16.gmra.mrb[196].mxu0 %vm1422_vm0, %v13832_v14  ;;  %v6728_v27 = vmax.f32 %v6472_v24, 0.0 }
 0x2b2   : > { %11131 = vmatprep.mubr.msk.bf16.mxu1 %vm1422_vm0, %v13788_v28  ;;  %v6471_v32 = vadd.f32 %v13772_v2, %v11558_v18  ;;  %11399 = vmatprep.mubr.msk.bf16.mxu0 %vm1422_vm0, %v13836_v61  ;;  %v6726_v38 = vmax.f32 %v6470_v36, 0.0 }
 0x2b3   : > { %v6729_v59 = vmax.f32 %v6473_v40, 0.0 }
 0x2b4   : > { %v6727_v17 = vmax.f32 %v6471_v32, 0.0  ;;  %v11293_v42 = vpop.f32.mrb[92].mxu0 }
 0x2b5   : > { %v9710_v62 = vpack.c.bf16 %v6729_v59, %v6728_v27  ;;  %v11559_v23 = vadd.f32 %v11293_v42, %v13158_v29  ;;  %v5464_v58 = vpop.f32.mrb[93].mxu0  ;;  %v13904_v59 = vld [vmem:[%s12457_s20 + $0x6c8] sm:$0xff]   ;;  %v13908_v42 = vld [vmem:[%s12457_s20 + $0x6d0] sm:$0xff]  }
 0x2b6   : > { %v9705_v3 = vpack.c.bf16 %v6727_v17, %v6726_v38  ;;  %v11560_v28 = vadd.f32 %v5464_v58, %v13160_v31  ;;  %v11294_v6 = vpop.f32.mrb[94].mxu0 }
 0x2b7   : > { %10166 = vst [vmem:[%s13328_s29 + $0x168] sm:$0xff] %v9710_v62   ;;  %v6476_v1 = vadd.f32 %v13772_v2, %v11559_v23  ;;  %v11561_v5 = vadd.f32 %v11294_v6, %v14473_v46  ;;  %v5467_v8 = vpop.f32.mrb[95].mxu0  ;;  %v14477_v23 = vld [vmem:[#allocation67_spill] sm:$0xff]  ;;  %v14478_v6 = vld [vmem:[#allocation68_spill] sm:$0xff] }
 0x2b8   : > { %10165 = vst [vmem:[%s13328_s29 + $0x160] sm:$0xff] %v9705_v3   ;;  %v6474_v9 = vadd.f32 %v13772_v2, %v11560_v28  ;;  %v11562_v29 = vadd.f32 %v5467_v8, %v14474_v15 }
 0x2b9   : > { %11132 = vmatmul.mubr.msk.bf16.gmra.mrb[200].mxu1 %vm1422_vm0, %v13808_v16  ;;  %v6477_v31 = vadd.f32 %v13772_v2, %v11561_v5  ;;  %11400 = vmatmul.mubr.msk.bf16.gmra.mrb[200].mxu0 %vm1422_vm0, %v13856_v34  ;;  %v6732_v21 = vmax.f32 %v6476_v1, 0.0 }
 0x2ba   : > { %11135 = vmatprep.mubr.msk.bf16.mxu1 %vm1422_vm0, %v13812_v12  ;;  %v6475_v7 = vadd.f32 %v13772_v2, %v11562_v29  ;;  %11403 = vmatprep.mubr.msk.bf16.mxu0 %vm1422_vm0, %v13860_v0  ;;  %v6730_v26 = vmax.f32 %v6474_v9, 0.0 }
 0x2bb   : > { %v6733_v56 = vmax.f32 %v6477_v31, 0.0 }
 0x2bc   : > { %v6731_v16 = vmax.f32 %v6475_v7, 0.0  ;;  %v11297_v52 = vpop.f32.mrb[96].mxu0  ;;  %v13928_v7 = vld [vmem:[%s12457_s20 + $0x6d8] sm:$0xff]  }
 0x2bd   : > { %v9720_v54 = vpack.c.bf16 %v6733_v56, %v6732_v21  ;;  %v11563_v13 = vadd.f32 %v11297_v52, %v13174_v33  ;;  %v5480_v44 = vpop.f32.mrb[97].mxu0  ;;  %v14479_v52 = vld [vmem:[#allocation69_spill] sm:$0xff] }
 0x2be   : > { %v9715_v10 = vpack.c.bf16 %v6731_v16, %v6730_v26  ;;  %v11564_v12 = vadd.f32 %v5480_v44, %v13176_v35  ;;  %v11298_v4 = vpop.f32.mrb[98].mxu0  ;;  %v13932_v26 = vld [vmem:[%s12457_s20 + $0x700] sm:$0xff]  }
 0x2bf   : > { %10168 = vst [vmem:[%s13328_s29 + $0x178] sm:$0xff] %v9720_v54   ;;  %v6480_v48 = vadd.f32 %v13772_v2, %v11563_v13  ;;  %v11565_v30 = vadd.f32 %v11298_v4, %v14475_v19  ;;  %v5483_v22 = vpop.f32.mrb[99].mxu0 }
 0x2c0   : > { %10167 = vst [vmem:[%s13328_s29 + $0x170] sm:$0xff] %v9715_v10   ;;  %v6478_v24 = vadd.f32 %v13772_v2, %v11564_v12  ;;  %v11566_v33 = vadd.f32 %v5483_v22, %v14476_v25  ;;  %v14480_v10 = vld [vmem:[#allocation70_spill] sm:$0xff] }
 0x2c1   : > { %11136 = vmatmul.mubr.msk.bf16.gmra.mrb[204].mxu1 %vm1422_vm0, %v13832_v14  ;;  %v6481_v35 = vadd.f32 %v13772_v2, %v11565_v30  ;;  %11404 = vmatmul.mubr.msk.bf16.gmra.mrb[204].mxu0 %vm1422_vm0, %v13880_v55  ;;  %v6736_v11 = vmax.f32 %v6480_v48, 0.0 }
 0x2c2   : > { %11139 = vmatprep.mubr.msk.bf16.mxu1 %vm1422_vm0, %v13836_v61  ;;  %v6479_v20 = vadd.f32 %v13772_v2, %v11566_v33  ;;  %11407 = vmatprep.mubr.msk.bf16.mxu0 %vm1422_vm0, %v13884_v63  ;;  %v6734_v60 = vmax.f32 %v6478_v24, 0.0  ;;  %v13952_v33 = vld [vmem:[%s12457_s20 + $0x708] sm:$0xff]  }
 0x2c3   : > { %v6737_v36 = vmax.f32 %v6481_v35, 0.0 }
 0x2c4   : > { %v6735_v14 = vmax.f32 %v6479_v20, 0.0  ;;  %v11301_v18 = vpop.f32.mrb[100].mxu0 }
 0x2c5   : > { %v9730_v40 = vpack.c.bf16 %v6737_v36, %v6736_v11  ;;  %v11567_v32 = vadd.f32 %v11301_v18, %v13190_v37  ;;  %v5496_v27 = vpop.f32.mrb[101].mxu0  ;;  %v13956_v11 = vld [vmem:[%s12457_s20 + $0x710] sm:$0xff]  }
 0x2c6   : > { %v9725_v38 = vpack.c.bf16 %v6735_v14, %v6734_v60  ;;  %v11568_v61 = vadd.f32 %v5496_v27, %v13192_v39  ;;  %v11302_v17 = vpop.f32.mrb[102].mxu0  ;;  %v14481_v60 = vld [vmem:[#allocation71_spill] sm:$0xff] }
 0x2c7   : > { %10170 = vst [vmem:[%s13328_s29 + $0x188] sm:$0xff] %v9730_v40   ;;  %v6484_v62 = vadd.f32 %v13772_v2, %v11567_v32  ;;  %v11569_v58 = vadd.f32 %v11302_v17, %v14477_v23  ;;  %v5499_v3 = vpop.f32.mrb[103].mxu0  ;;  %v14482_v32 = vld [vmem:[#allocation72_spill] sm:$0xff] }
 0x2c8   : > { %10169 = vst [vmem:[%s13328_s29 + $0x180] sm:$0xff] %v9725_v38   ;;  %v6482_v28 = vadd.f32 %v13772_v2, %v11568_v61  ;;  %v11570_v37 = vadd.f32 %v5499_v3, %v14478_v6 }
 0x2c9   : > { %11140 = vmatmul.mubr.msk.bf16.gmra.mrb[208].mxu1 %vm1422_vm0, %v13856_v34  ;;  %v6485_v39 = vadd.f32 %v13772_v2, %v11569_v58  ;;  %11408 = vmatmul.mubr.msk.bf16.gmra.mrb[208].mxu0 %vm1422_vm0, %v13904_v59  ;;  %v6740_v46 = vmax.f32 %v6484_v62, 0.0 }
 0x2ca   : > { %11143 = vmatprep.mubr.msk.bf16.mxu1 %vm1422_vm0, %v13860_v0  ;;  %v6483_v1 = vadd.f32 %v13772_v2, %v11570_v37  ;;  %11411 = vmatprep.mubr.msk.bf16.mxu0 %vm1422_vm0, %v13908_v42  ;;  %v6738_v8 = vmax.f32 %v6482_v28, 0.0  ;;  %v13976_v28 = vld [vmem:[%s12457_s20 + $0x718] sm:$0xff]  }
 0x2cb   : > { %v6741_v5 = vmax.f32 %v6485_v39, 0.0  ;;  %v13980_v39 = vld [vmem:[%s12457_s20 + $0x740] sm:$0xff]  }
 0x2cc   : > { %v6739_v34 = vmax.f32 %v6483_v1, 0.0  ;;  %v11305_v9 = vpop.f32.mrb[104].mxu0 }
 0x2cd   : > { %v9740_v15 = vpack.c.bf16 %v6741_v5, %v6740_v46  ;;  %v11571_v29 = vadd.f32 %v11305_v9, %v13206_v41  ;;  %v5512_v31 = vpop.f32.mrb[105].mxu0 }
 0x2ce   : > { %v9735_v21 = vpack.c.bf16 %v6739_v34, %v6738_v8  ;;  %v11572_v0 = vadd.f32 %v5512_v31, %v13208_v43  ;;  %v11306_v56 = vpop.f32.mrb[106].mxu0  ;;  %v14483_v34 = vld [vmem:[#allocation73_spill] sm:$0xff] }
 0x2cf   : > { %10172 = vst [vmem:[%s13328_s29 + $0x198] sm:$0xff] %v9740_v15   ;;  %v6488_v16 = vadd.f32 %v13772_v2, %v11571_v29  ;;  %v11573_v54 = vadd.f32 %v11306_v56, %v14479_v52  ;;  %v5515_v13 = vpop.f32.mrb[107].mxu0 }
 0x2d0   : > { %10171 = vst [vmem:[%s13328_s29 + $0x190] sm:$0xff] %v9735_v21   ;;  %v6486_v44 = vadd.f32 %v13772_v2, %v11572_v0  ;;  %v11574_v41 = vadd.f32 %v5515_v13, %v14480_v10 }
 0x2d1   : > { %11144 = vmatmul.mubr.msk.bf16.gmra.mrb[212].mxu1 %vm1422_vm0, %v13880_v55  ;;  %v6489_v43 = vadd.f32 %v13772_v2, %v11573_v54  ;;  %11412 = vmatmul.mubr.msk.bf16.gmra.mrb[212].mxu0 %vm1422_vm0, %v13928_v7  ;;  %v6744_v4 = vmax.f32 %v6488_v16, 0.0  ;;  %v14000_v16 = vld [vmem:[%s12457_s20 + $0x748] sm:$0xff]  }
 0x2d2   : > { %11147 = vmatprep.mubr.msk.bf16.mxu1 %vm1422_vm0, %v13884_v63  ;;  %v6487_v12 = vadd.f32 %v13772_v2, %v11574_v41  ;;  %11415 = vmatprep.mubr.msk.bf16.mxu0 %vm1422_vm0, %v13932_v26  ;;  %v6742_v19 = vmax.f32 %v6486_v44, 0.0  ;;  %v14004_v44 = vld [vmem:[%s12457_s20 + $0x750] sm:$0xff]   ;;  %v14485_v41 = vld [vmem:[#allocation75_spill] sm:$0xff] }
 0x2d3   : > { %v6745_v48 = vmax.f32 %v6489_v43, 0.0 }
 0x2d4   : > { %v6743_v55 = vmax.f32 %v6487_v12, 0.0  ;;  %v11309_v30 = vpop.f32.mrb[108].mxu0 }
 0x2d5   : > { %v9750_v22 = vpack.c.bf16 %v6745_v48, %v6744_v4  ;;  %v11575_v24 = vadd.f32 %v11309_v30, %v13222_v45  ;;  %v5528_v25 = vpop.f32.mrb[109].mxu0  ;;  %v14486_v48 = vld [vmem:[#allocation76_spill] sm:$0xff] }
 0x2d6   : > { %v9745_v35 = vpack.c.bf16 %v6743_v55, %v6742_v19  ;;  %v11576_v63 = vadd.f32 %v5528_v25, %v13224_v47  ;;  %v11310_v20 = vpop.f32.mrb[110].mxu0 }
 0x2d7   : > { %10174 = vst [vmem:[%s13328_s29 + $0x1a8] sm:$0xff] %v9750_v22   ;;  %v6492_v36 = vadd.f32 %v13772_v2, %v11575_v24  ;;  %v11577_v14 = vadd.f32 %v11310_v20, %v14481_v60  ;;  %v5531_v18 = vpop.f32.mrb[111].mxu0 }
 0x2d8   : > { %10173 = vst [vmem:[%s13328_s29 + $0x1a0] sm:$0xff] %v9745_v35   ;;  %v6490_v40 = vadd.f32 %v13772_v2, %v11576_v63  ;;  %v11578_v45 = vadd.f32 %v5531_v18, %v14482_v32 }
 0x2d9   : > { %11148 = vmatmul.mubr.msk.bf16.gmra.mrb[216].mxu1 %vm1422_vm0, %v13904_v59  ;;  %v6493_v47 = vadd.f32 %v13772_v2, %v11577_v14  ;;  %11416 = vmatmul.mubr.msk.bf16.gmra.mrb[216].mxu0 %vm1422_vm0, %v13952_v33  ;;  %v6748_v38 = vmax.f32 %v6492_v36, 0.0  ;;  %v14024_v36 = vld [vmem:[%s12457_s20 + $0x758] sm:$0xff]  }
 0x2da   : > { %11151 = vmatprep.mubr.msk.bf16.mxu1 %vm1422_vm0, %v13908_v42  ;;  %v6491_v27 = vadd.f32 %v13772_v2, %v11578_v45  ;;  %11419 = vmatprep.mubr.msk.bf16.mxu0 %vm1422_vm0, %v13956_v11  ;;  %v6746_v17 = vmax.f32 %v6490_v40, 0.0  ;;  %v14028_v40 = vld [vmem:[%s12457_s20 + $0x780] sm:$0xff]  }
 0x2db   : > { %v6749_v61 = vmax.f32 %v6493_v47, 0.0  ;;  %v14488_v45 = vld [vmem:[#allocation78_spill] sm:$0xff] }
 0x2dc   : > { %v6747_v59 = vmax.f32 %v6491_v27, 0.0  ;;  %v11313_v62 = vpop.f32.mrb[112].mxu0 }
 0x2dd   : > { %v9760_v23 = vpack.c.bf16 %v6749_v61, %v6748_v38  ;;  %v11579_v58 = vadd.f32 %v11313_v62, %v13238_v49  ;;  %v5544_v3 = vpop.f32.mrb[113].mxu0  ;;  %v14489_v61 = vld [vmem:[#allocation79_spill] sm:$0xff] }
 0x2de   : > { %v9755_v6 = vpack.c.bf16 %v6747_v59, %v6746_v17  ;;  %v11580_v42 = vadd.f32 %v5544_v3, %v13240_v51  ;;  %v11314_v37 = vpop.f32.mrb[114].mxu0 }
 0x2df   : > { %10176 = vst [vmem:[%s13328_s29 + $0x1b8] sm:$0xff] %v9760_v23   ;;  %v6496_v1 = vadd.f32 %v13772_v2, %v11579_v58  ;;  %v11581_v46 = vadd.f32 %v11314_v37, %v13243_v50  ;;  %v5547_v5 = vpop.f32.mrb[115].mxu0 }
 0x2e0   : > { %10175 = vst [vmem:[%s13328_s29 + $0x1b0] sm:$0xff] %v9755_v6   ;;  %v6494_v8 = vadd.f32 %v13772_v2, %v11580_v42  ;;  %v11582_v49 = vadd.f32 %v5547_v5, %v14483_v34  ;;  %v14490_v42 = vld [vmem:[#allocation80_spill] sm:$0xff] }
 0x2e1   : > { %11152 = vmatmul.mubr.msk.bf16.gmra.mrb[220].mxu1 %vm1422_vm0, %v13928_v7  ;;  %v6497_v51 = vadd.f32 %v13772_v2, %v11581_v46  ;;  %11420 = vmatmul.mubr.msk.bf16.gmra.mrb[220].mxu0 %vm1422_vm0, %v13976_v28  ;;  %v6752_v9 = vmax.f32 %v6496_v1, 0.0  ;;  %v14048_v46 = vld [vmem:[%s12457_s20 + $0x788] sm:$0xff]  }
 0x2e2   : > { %11155 = vmatprep.mubr.msk.bf16.mxu1 %vm1422_vm0, %v13932_v26  ;;  %v6495_v50 = vadd.f32 %v13772_v2, %v11582_v49  ;;  %11423 = vmatprep.mubr.msk.bf16.mxu0 %vm1422_vm0, %v13980_v39  ;;  %v6750_v29 = vmax.f32 %v6494_v8, 0.0  ;;  %v14484_v26 = vld [vmem:[#allocation74_spill] sm:$0xff]  ;;  %v14052_v49 = vld [vmem:[%s12457_s20 + $0x790] sm:$0xff]  }
 0x2e3   : > { %v6753_v15 = vmax.f32 %v6497_v51, 0.0 }
 0x2e4   : > { %v6751_v31 = vmax.f32 %v6495_v50, 0.0  ;;  %v11317_v7 = vpop.f32.mrb[116].mxu0  ;;  %v14492_v50 = vld [vmem:[#allocation82_spill] sm:$0xff] }
 0x2e5   : > { %v9770_v21 = vpack.c.bf16 %v6753_v15, %v6752_v9  ;;  %v11583_v0 = vadd.f32 %v11317_v7, %v13254_v53  ;;  %v5560_v56 = vpop.f32.mrb[117].mxu0 }
 0x2e6   : > { %v9765_v52 = vpack.c.bf16 %v6751_v31, %v6750_v29  ;;  %v11584_v54 = vadd.f32 %v5560_v56, %v14484_v26  ;;  %v11318_v13 = vpop.f32.mrb[118].mxu0  ;;  %v14493_v31 = vld [vmem:[#allocation83_spill] sm:$0xff] }
 0x2e7   : > { %10178 = vst [vmem:[%s13328_s29 + $0x1c8] sm:$0xff] %v9770_v21   ;;  %v6500_v10 = vadd.f32 %v13772_v2, %v11583_v0  ;;  %v11585_v43 = vadd.f32 %v11318_v13, %v14485_v41  ;;  %v5563_v12 = vpop.f32.mrb[119].mxu0 }
 0x2e8   : > { %10177 = vst [vmem:[%s13328_s29 + $0x1c0] sm:$0xff] %v9765_v52   ;;  %v6498_v4 = vadd.f32 %v13772_v2, %v11584_v54  ;;  %v11586_v53 = vadd.f32 %v5563_v12, %v14486_v48 }
 0x2e9   : > { %11156 = vmatmul.mubr.msk.bf16.gmra.mrb[224].mxu1 %vm1422_vm0, %v13952_v33  ;;  %v6501_v19 = vadd.f32 %v13772_v2, %v11585_v43  ;;  %11424 = vmatmul.mubr.msk.bf16.gmra.mrb[224].mxu0 %vm1422_vm0, %v14000_v16  ;;  %v6756_v30 = vmax.f32 %v6500_v10, 0.0 }
 0x2ea   : > { %11159 = vmatprep.mubr.msk.bf16.mxu1 %vm1422_vm0, %v13956_v11  ;;  %v6499_v55 = vadd.f32 %v13772_v2, %v11586_v53  ;;  %11427 = vmatprep.mubr.msk.bf16.mxu0 %vm1422_vm0, %v14004_v44  ;;  %v6754_v24 = vmax.f32 %v6498_v4, 0.0  ;;  %v14487_v11 = vld [vmem:[#allocation77_spill] sm:$0xff] }
 0x2eb   : > { %v6757_v22 = vmax.f32 %v6501_v19, 0.0 }
 0x2ec   : > { %v6755_v25 = vmax.f32 %v6499_v55, 0.0  ;;  %v11321_v33 = vpop.f32.mrb[120].mxu0 }
 0x2ed   : > { %v9780_v35 = vpack.c.bf16 %v6757_v22, %v6756_v30  ;;  %v11587_v63 = vadd.f32 %v11321_v33, %v13270_v57  ;;  %v5576_v20 = vpop.f32.mrb[121].mxu0  ;;  %v14074_v30 = vld [vmem:[%s12457_s20 + $0x7c0] sm:$0xff]  }
 0x2ee   : > { %v9775_v60 = vpack.c.bf16 %v6755_v25, %v6754_v24  ;;  %v11588_v14 = vadd.f32 %v5576_v20, %v14487_v11  ;;  %v11322_v18 = vpop.f32.mrb[122].mxu0 }
 0x2ef   : > { %10180 = vst [vmem:[%s13328_s29 + $0x1d8] sm:$0xff] %v9780_v35   ;;  %v6504_v32 = vadd.f32 %v13772_v2, %v11587_v63  ;;  %v11589_v47 = vadd.f32 %v11322_v18, %v14488_v45  ;;  %v5579_v27 = vpop.f32.mrb[123].mxu0 }
 0x2f0   : > { %10179 = vst [vmem:[%s13328_s29 + $0x1d0] sm:$0xff] %v9775_v60   ;;  %v6502_v38 = vadd.f32 %v13772_v2, %v11588_v14  ;;  %v11590_v57 = vadd.f32 %v5579_v27, %v14489_v61 }
 0x2f1   : > { %11160 = vmatmul.mubr.msk.bf16.gmra.mrb[228].mxu1 %vm1422_vm0, %v13976_v28  ;;  %v6505_v17 = vadd.f32 %v13772_v2, %v11589_v47  ;;  %11428 = vmatmul.mubr.msk.bf16.gmra.mrb[228].mxu0 %vm1422_vm0, %v14024_v36  ;;  %v6760_v62 = vmax.f32 %v6504_v32, 0.0 }
 0x2f2   : > { %11163 = vmatprep.mubr.msk.bf16.mxu1 %vm1422_vm0, %v13980_v39  ;;  %v6503_v59 = vadd.f32 %v13772_v2, %v11590_v57  ;;  %11431 = vmatprep.mubr.msk.bf16.mxu0 %vm1422_vm0, %v14028_v40  ;;  %v6758_v58 = vmax.f32 %v6502_v38, 0.0  ;;  %v14491_v39 = vld [vmem:[#allocation81_spill] sm:$0xff] }
 0x2f3   : > { %v6761_v23 = vmax.f32 %v6505_v17, 0.0 }
 0x2f4   : > { %v6759_v3 = vmax.f32 %v6503_v59, 0.0  ;;  %v11325_v28 = vpop.f32.mrb[124].mxu0 }
 0x2f5   : > { %v9790_v6 = vpack.c.bf16 %v6761_v23, %v6760_v62  ;;  %v11591_v37 = vadd.f32 %v11325_v28, %v14490_v42  ;;  %v5592_v1 = vpop.f32.mrb[125].mxu0  ;;  %v14094_v23 = vld [vmem:[%s12457_s20 + $0x7d0] sm:$0xff]  }
 0x2f6   : > { %v9785_v5 = vpack.c.bf16 %v6759_v3, %v6758_v58  ;;  %v11592_v8 = vadd.f32 %v5592_v1, %v14491_v39  ;;  %v11326_v34 = vpop.f32.mrb[126].mxu0 }
 0x2f7   : > { %10182 = vst [vmem:[%s13328_s29 + $0x1e8] sm:$0xff] %v9790_v6   ;;  %v6508_v51 = vadd.f32 %v13772_v2, %v11591_v37  ;;  %v11593_v9 = vadd.f32 %v11326_v34, %v14492_v50  ;;  %v5595_v15 = vpop.f32.mrb[127].mxu0 }
 0x2f8   : > { %10181 = vst [vmem:[%s13328_s29 + $0x1e0] sm:$0xff] %v9785_v5   ;;  %v6506_v29 = vadd.f32 %v13772_v2, %v11592_v8  ;;  %v11594_v7 = vadd.f32 %v5595_v15, %v14493_v31 }
 0x2f9   : > { %11164 = vmatmul.mubr.msk.bf16.gmra.mrb[232].mxu1 %vm1422_vm0, %v14000_v16  ;;  %v6509_v21 = vadd.f32 %v13772_v2, %v11593_v9  ;;  %11432 = vmatmul.mubr.msk.bf16.gmra.mrb[232].mxu0 %vm1422_vm0, %v14048_v46  ;;  %v6764_v56 = vmax.f32 %v6508_v51, 0.0 }
 0x2fa   : > { %11167 = vmatprep.mubr.msk.bf16.mxu1 %vm1422_vm0, %v14004_v44  ;;  %v6507_v0 = vadd.f32 %v13772_v2, %v11594_v7  ;;  %11435 = vmatprep.mubr.msk.bf16.mxu0 %vm1422_vm0, %v14052_v49  ;;  %v6762_v16 = vmax.f32 %v6506_v29, 0.0  ;;  %v14071_v44 = vld [vmem:[%s12457_s20 + $0x798] sm:$0xff]  }
 0x2fb   : > { %v6765_v52 = vmax.f32 %v6509_v21, 0.0 }
 0x2fc   : > { %v11061_v26 = vpop.f32.mrb[128].mxu1  ;;  %v6763_v54 = vmax.f32 %v6507_v0, 0.0  ;;  %v11329_v13 = vpop.f32.mrb[128].mxu0 }
 0x2fd   : > { %v4470_v10 = vpop.f32.mrb[129].mxu1  ;;  %v9800_v41 = vpack.c.bf16 %v6765_v52, %v6764_v56  ;;  %v11595_v43 = vadd.f32 %v11329_v13, %v11061_v26  ;;  %v5608_v12 = vpop.f32.mrb[129].mxu0  ;;  %v12294_v52 = vld [vmem:[%s12457_s20 + $0x800] sm:$0xff]  }
 0x2fe   : > { %v11062_v4 = vpop.f32.mrb[130].mxu1  ;;  %v9795_v48 = vpack.c.bf16 %v6763_v54, %v6762_v16  ;;  %v11596_v53 = vadd.f32 %v5608_v12, %v4470_v10  ;;  %v11330_v19 = vpop.f32.mrb[130].mxu0 }
 0x2ff   : > { %v4473_v55 = vpop.f32.mrb[131].mxu1  ;;  %10184 = vst [vmem:[%s13328_s29 + $0x1f8] sm:$0xff] %v9800_v41   ;;  %v6512_v22 = vadd.f32 %v13772_v2, %v11595_v43  ;;  %v11597_v24 = vadd.f32 %v11330_v19, %v11062_v4  ;;  %v5611_v25 = vpop.f32.mrb[131].mxu0 }
 0x300   : > { %10183 = vst [vmem:[%s13328_s29 + $0x1f0] sm:$0xff] %v9795_v48   ;;  %v6510_v33 = vadd.f32 %v13772_v2, %v11596_v53  ;;  %v11598_v35 = vadd.f32 %v5611_v25, %v4473_v55 }
 0x301   : > { %11168 = vmatmul.mubr.msk.bf16.gmra.mrb[236].mxu1 %vm1422_vm0, %v14024_v36  ;;  %v6513_v63 = vadd.f32 %v13772_v2, %v11597_v24  ;;  %11436 = vmatmul.mubr.msk.bf16.gmra.mrb[236].mxu0 %vm1422_vm0, %v14071_v44  ;;  %v6768_v60 = vmax.f32 %v6512_v22, 0.0 }
 0x302   : > { %11171 = vmatprep.mubr.msk.bf16.mxu1 %vm1422_vm0, %v14028_v40  ;;  %v6511_v20 = vadd.f32 %v13772_v2, %v11598_v35  ;;  %11439 = vmatprep.mubr.msk.bf16.mxu0 %vm1422_vm0, %v14074_v30  ;;  %v6766_v36 = vmax.f32 %v6510_v33, 0.0  ;;  %v14091_v40 = vld [vmem:[%s12457_s20 + $0x7c8] sm:$0xff]  }
 0x303   : > { %v6769_v11 = vmax.f32 %v6513_v63, 0.0  ;;  %v12295_v35 = vld [vmem:[%s12457_s20 + $0x808] sm:$0xff]  }
 0x304   : > { %v11065_v14 = vpop.f32.mrb[132].mxu1  ;;  %v6767_v18 = vmax.f32 %v6511_v20, 0.0  ;;  %v11333_v32 = vpop.f32.mrb[132].mxu0 }
 0x305   : > { %v4486_v45 = vpop.f32.mrb[133].mxu1  ;;  %v9810_v47 = vpack.c.bf16 %v6769_v11, %v6768_v60  ;;  %v11599_v27 = vadd.f32 %v11333_v32, %v11065_v14  ;;  %v5624_v38 = vpop.f32.mrb[133].mxu0  ;;  %v12296_v11 = vld [vmem:[%s12457_s20 + $0x810] sm:$0xff]  }
 0x306   : > { %v11066_v61 = vpop.f32.mrb[134].mxu1  ;;  %v9805_v57 = vpack.c.bf16 %v6767_v18, %v6766_v36  ;;  %v11600_v17 = vadd.f32 %v5624_v38, %v4486_v45  ;;  %v11334_v59 = vpop.f32.mrb[134].mxu0 }
 0x307   : > { %v4489_v62 = vpop.f32.mrb[135].mxu1  ;;  %10186 = vst [vmem:[%s13328_s29 + $0x208] sm:$0xff] %v9810_v47   ;;  %v6516_v58 = vadd.f32 %v13772_v2, %v11599_v27  ;;  %v11601_v3 = vadd.f32 %v11334_v59, %v11066_v61  ;;  %v5627_v28 = vpop.f32.mrb[135].mxu0 }
 0x308   : > { %10185 = vst [vmem:[%s13328_s29 + $0x200] sm:$0xff] %v9805_v57   ;;  %v6514_v6 = vadd.f32 %v13772_v2, %v11600_v17  ;;  %v11602_v42 = vadd.f32 %v5627_v28, %v4489_v62 }
 0x309   : > { %11172 = vmatmul.mubr.msk.bf16.gmra.mrb[240].mxu1 %vm1422_vm0, %v14048_v46  ;;  %v6517_v37 = vadd.f32 %v13772_v2, %v11601_v3  ;;  %11440 = vmatmul.mubr.msk.bf16.gmra.mrb[240].mxu0 %vm1422_vm0, %v14091_v40  ;;  %v6772_v5 = vmax.f32 %v6516_v58, 0.0 }
 0x30a   : > { %11175 = vmatprep.mubr.msk.bf16.mxu1 %vm1422_vm0, %v14052_v49  ;;  %v6515_v1 = vadd.f32 %v13772_v2, %v11602_v42  ;;  %11443 = vmatprep.mubr.msk.bf16.mxu0 %vm1422_vm0, %v14094_v23  ;;  %v6770_v46 = vmax.f32 %v6514_v6, 0.0  ;;  %v14111_v49 = vld [vmem:[%s12457_s20 + $0x7d8] sm:$0xff]  }
 0x30b   : > { %v6773_v39 = vmax.f32 %v6517_v37, 0.0  ;;  %v12297_v42 = vld [vmem:[%s12457_s20 + $0x818] sm:$0xff]  }
 0x30c   : > { %v11069_v8 = vpop.f32.mrb[136].mxu1  ;;  %v6771_v34 = vmax.f32 %v6515_v1, 0.0  ;;  %v11337_v51 = vpop.f32.mrb[136].mxu0 }
 0x30d   : > { %v4502_v50 = vpop.f32.mrb[137].mxu1  ;;  %v9820_v9 = vpack.c.bf16 %v6773_v39, %v6772_v5  ;;  %v11603_v15 = vadd.f32 %v11337_v51, %v11069_v8  ;;  %v5640_v29 = vpop.f32.mrb[137].mxu0 }
 0x30e   : > { %v11070_v31 = vpop.f32.mrb[138].mxu1  ;;  %v9815_v7 = vpack.c.bf16 %v6771_v34, %v6770_v46  ;;  %v11604_v21 = vadd.f32 %v5640_v29, %v4502_v50  ;;  %v11338_v0 = vpop.f32.mrb[138].mxu0 }
 0x30f   : > { %v4505_v56 = vpop.f32.mrb[139].mxu1  ;;  %10188 = vst [vmem:[%s13328_s29 + $0x218] sm:$0xff] %v9820_v9   ;;  %v6520_v26 = vadd.f32 %v13772_v2, %v11603_v15  ;;  %v11605_v16 = vadd.f32 %v11338_v0, %v11070_v31  ;;  %v5643_v54 = vpop.f32.mrb[139].mxu0 }
 0x310   : > { %10187 = vst [vmem:[%s13328_s29 + $0x210] sm:$0xff] %v9815_v7   ;;  %v6518_v13 = vadd.f32 %v13772_v2, %v11604_v21  ;;  %v11606_v10 = vadd.f32 %v5643_v54, %v4505_v56 }
 0x311   : > { %11176 = vmatmul.mubr.msk.bf16.gmra.mrb[244].mxu1 %vm1422_vm0, %v14071_v44  ;;  %v6521_v41 = vadd.f32 %v13772_v2, %v11605_v16  ;;  %11444 = vmatmul.mubr.msk.bf16.gmra.mrb[244].mxu0 %vm1422_vm0, %v14111_v49  ;;  %v6776_v12 = vmax.f32 %v6520_v26, 0.0 }
 0x312   : > { %11179 = vmatprep.mubr.msk.bf16.mxu1 %vm1422_vm0, %v14074_v30  ;;  %v6519_v43 = vadd.f32 %v13772_v2, %v11606_v10  ;;  %11447 = vmatprep.mubr.msk.bf16.mxu0 %vm1422_vm0, %v12294_v52  ;;  %v6774_v53 = vmax.f32 %v6518_v13, 0.0 }
 0x313   : > { %v6777_v4 = vmax.f32 %v6521_v41, 0.0 }
 0x314   : > { %v11073_v48 = vpop.f32.mrb[140].mxu1  ;;  %v6775_v44 = vmax.f32 %v6519_v43, 0.0  ;;  %v11341_v19 = vpop.f32.mrb[140].mxu0 }
 0x315   : > { %v4518_v55 = vpop.f32.mrb[141].mxu1  ;;  %v9830_v22 = vpack.c.bf16 %v6777_v4, %v6776_v12  ;;  %v11607_v24 = vadd.f32 %v11341_v19, %v11073_v48  ;;  %v5656_v25 = vpop.f32.mrb[141].mxu0 }
 0x316   : > { %v11074_v33 = vpop.f32.mrb[142].mxu1  ;;  %v9825_v30 = vpack.c.bf16 %v6775_v44, %v6774_v53  ;;  %v11608_v63 = vadd.f32 %v5656_v25, %v4518_v55  ;;  %v11342_v20 = vpop.f32.mrb[142].mxu0 }
 0x317   : > { %v4521_v60 = vpop.f32.mrb[143].mxu1  ;;  %10190 = vst [vmem:[%s13328_s29 + $0x228] sm:$0xff] %v9830_v22   ;;  %v6524_v14 = vadd.f32 %v13772_v2, %v11607_v24  ;;  %v11609_v36 = vadd.f32 %v11342_v20, %v11074_v33  ;;  %v5659_v18 = vpop.f32.mrb[143].mxu0 }
 0x318   : > { %10189 = vst [vmem:[%s13328_s29 + $0x220] sm:$0xff] %v9825_v30   ;;  %v6522_v32 = vadd.f32 %v13772_v2, %v11608_v63  ;;  %v11610_v45 = vadd.f32 %v5659_v18, %v4521_v60 }
 0x319   : > { %11180 = vmatmul.mubr.msk.bf16.gmra.mrb[248].mxu1 %vm1422_vm0, %v14091_v40  ;;  %v6525_v47 = vadd.f32 %v13772_v2, %v11609_v36  ;;  %11448 = vmatmul.mubr.msk.bf16.gmra.mrb[248].mxu0 %vm1422_vm0, %v12295_v35  ;;  %v6780_v38 = vmax.f32 %v6524_v14, 0.0 }
 0x31a   : > { %11183 = vmatprep.mubr.msk.bf16.mxu1 %vm1422_vm0, %v14094_v23  ;;  %v6523_v27 = vadd.f32 %v13772_v2, %v11610_v45  ;;  %11451 = vmatprep.mubr.msk.bf16.mxu0 %vm1422_vm0, %v12296_v11  ;;  %v6778_v17 = vmax.f32 %v6522_v32, 0.0 }
 0x31b   : > { %v6781_v61 = vmax.f32 %v6525_v47, 0.0 }
 0x31c   : > { %v11077_v57 = vpop.f32.mrb[144].mxu1  ;;  %v6779_v59 = vmax.f32 %v6523_v27, 0.0  ;;  %v11345_v40 = vpop.f32.mrb[144].mxu0 }
 0x31d   : > { %v4534_v62 = vpop.f32.mrb[145].mxu1  ;;  %v9840_v58 = vpack.c.bf16 %v6781_v61, %v6780_v38  ;;  %v11611_v3 = vadd.f32 %v11345_v40, %v11077_v57  ;;  %v5672_v28 = vpop.f32.mrb[145].mxu0 }
 0x31e   : > { %v11078_v6 = vpop.f32.mrb[146].mxu1  ;;  %v9835_v37 = vpack.c.bf16 %v6779_v59, %v6778_v17  ;;  %v11612_v23 = vadd.f32 %v5672_v28, %v4534_v62  ;;  %v11346_v1 = vpop.f32.mrb[146].mxu0 }
 0x31f   : > { %v4537_v5 = vpop.f32.mrb[147].mxu1  ;;  %10192 = vst [vmem:[%s13328_s29 + $0x238] sm:$0xff] %v9840_v58   ;;  %v6528_v39 = vadd.f32 %v13772_v2, %v11611_v3  ;;  %v11613_v8 = vadd.f32 %v11346_v1, %v11078_v6  ;;  %v5675_v46 = vpop.f32.mrb[147].mxu0 }
 0x320   : > { %10191 = vst [vmem:[%s13328_s29 + $0x230] sm:$0xff] %v9835_v37   ;;  %v6526_v34 = vadd.f32 %v13772_v2, %v11612_v23  ;;  %v11614_v51 = vadd.f32 %v5675_v46, %v4537_v5 }
 0x321   : > { %11184 = vmatmul.mubr.msk.bf16.gmra.mrb[252].mxu1 %vm1422_vm0, %v14111_v49  ;;  %v6529_v50 = vadd.f32 %v13772_v2, %v11613_v8  ;;  %11452 = vmatmul.mubr.msk.bf16.gmra.mrb[252].mxu0 %vm1422_vm0, %v12297_v42  ;;  %v6784_v15 = vmax.f32 %v6528_v39, 0.0 }
 0x322   : > { %v6527_v9 = vadd.f32 %v13772_v2, %v11614_v51  ;;  %v6782_v7 = vmax.f32 %v6526_v34, 0.0 }
 0x323   : > { %v6785_v29 = vmax.f32 %v6529_v50, 0.0 }
 0x324   : > { %v11081_v31 = vpop.f32.mrb[148].mxu1  ;;  %v6783_v21 = vmax.f32 %v6527_v9, 0.0  ;;  %v11349_v0 = vpop.f32.mrb[148].mxu0 }
 0x325   : > { %v4550_v56 = vpop.f32.mrb[149].mxu1  ;;  %v9850_v52 = vpack.c.bf16 %v6785_v29, %v6784_v15  ;;  %v11615_v26 = vadd.f32 %v11349_v0, %v11081_v31  ;;  %v5688_v16 = vpop.f32.mrb[149].mxu0 }
 0x326   : > { %v11082_v54 = vpop.f32.mrb[150].mxu1  ;;  %v9845_v49 = vpack.c.bf16 %v6783_v21, %v6782_v7  ;;  %v11616_v13 = vadd.f32 %v5688_v16, %v4550_v56  ;;  %v11350_v10 = vpop.f32.mrb[150].mxu0 }
 0x327   : > { %v4553_v41 = vpop.f32.mrb[151].mxu1  ;;  %10194 = vst [vmem:[%s13328_s29 + $0x248] sm:$0xff] %v9850_v52   ;;  %v6532_v43 = vadd.f32 %v13772_v2, %v11615_v26  ;;  %v11617_v12 = vadd.f32 %v11350_v10, %v11082_v54  ;;  %v5691_v4 = vpop.f32.mrb[151].mxu0 }
 0x328   : > { %10193 = vst [vmem:[%s13328_s29 + $0x240] sm:$0xff] %v9845_v49   ;;  %v6530_v48 = vadd.f32 %v13772_v2, %v11616_v13  ;;  %v11618_v53 = vadd.f32 %v5691_v4, %v4553_v41 }
 0x329   : > { %v6533_v44 = vadd.f32 %v13772_v2, %v11617_v12  ;;  %v6788_v55 = vmax.f32 %v6532_v43, 0.0 }
 0x32a   : > { %v6531_v19 = vadd.f32 %v13772_v2, %v11618_v53  ;;  %v6786_v25 = vmax.f32 %v6530_v48, 0.0 }
 0x32b   : > { %v6789_v22 = vmax.f32 %v6533_v44, 0.0 }
 0x32c   : > { %v11085_v24 = vpop.f32.mrb[152].mxu1  ;;  %v6787_v33 = vmax.f32 %v6531_v19, 0.0  ;;  %v11353_v35 = vpop.f32.mrb[152].mxu0 }
 0x32d   : > { %v4566_v30 = vpop.f32.mrb[153].mxu1  ;;  %v9860_v63 = vpack.c.bf16 %v6789_v22, %v6788_v55  ;;  %v11619_v20 = vadd.f32 %v11353_v35, %v11085_v24  ;;  %v5704_v60 = vpop.f32.mrb[153].mxu0 }
 0x32e   : > { %v11086_v11 = vpop.f32.mrb[154].mxu1  ;;  %v9855_v14 = vpack.c.bf16 %v6787_v33, %v6786_v25  ;;  %v11620_v36 = vadd.f32 %v5704_v60, %v4566_v30  ;;  %v11354_v18 = vpop.f32.mrb[154].mxu0 }
 0x32f   : > { %v4569_v32 = vpop.f32.mrb[155].mxu1  ;;  %10196 = vst [vmem:[%s13328_s29 + $0x258] sm:$0xff] %v9860_v63   ;;  %v6536_v45 = vadd.f32 %v13772_v2, %v11619_v20  ;;  %v11621_v47 = vadd.f32 %v11354_v18, %v11086_v11  ;;  %v5707_v27 = vpop.f32.mrb[155].mxu0 }
 0x330   : > { %10195 = vst [vmem:[%s13328_s29 + $0x250] sm:$0xff] %v9855_v14   ;;  %v6534_v38 = vadd.f32 %v13772_v2, %v11620_v36  ;;  %v11622_v61 = vadd.f32 %v5707_v27, %v4569_v32 }
 0x331   : > { %v6537_v57 = vadd.f32 %v13772_v2, %v11621_v47  ;;  %v6792_v59 = vmax.f32 %v6536_v45, 0.0 }
 0x332   : > { %v6535_v17 = vadd.f32 %v13772_v2, %v11622_v61  ;;  %v6790_v58 = vmax.f32 %v6534_v38, 0.0  ;;  %v14167_v2 = vld [vmem:[%s14328_s2] ss:$0 sm:$0xff] }
 0x333   : > { %v6793_v40 = vmax.f32 %v6537_v57, 0.0 }
 0x334   : > { %v11089_v62 = vpop.f32.mrb[156].mxu1  ;;  %v6791_v3 = vmax.f32 %v6535_v17, 0.0  ;;  %v11357_v28 = vpop.f32.mrb[156].mxu0 }
 0x335   : > { %v4582_v6 = vpop.f32.mrb[157].mxu1  ;;  %v9870_v42 = vpack.c.bf16 %v6793_v40, %v6792_v59  ;;  %v11623_v37 = vadd.f32 %v11357_v28, %v11089_v62  ;;  %v5720_v23 = vpop.f32.mrb[157].mxu0 }
 0x336   : > { %v11090_v1 = vpop.f32.mrb[158].mxu1  ;;  %v9865_v5 = vpack.c.bf16 %v6791_v3, %v6790_v58  ;;  %v11624_v39 = vadd.f32 %v5720_v23, %v4582_v6  ;;  %v11358_v8 = vpop.f32.mrb[158].mxu0 }
 0x337   : > { %v4585_v46 = vpop.f32.mrb[159].mxu1  ;;  %10198 = vst [vmem:[%s13328_s29 + $0x268] sm:$0xff] %v9870_v42   ;;  %v6540_v34 = vadd.f32 %v14167_v2, %v11623_v37  ;;  %v11625_v51 = vadd.f32 %v11358_v8, %v11090_v1  ;;  %v5723_v50 = vpop.f32.mrb[159].mxu0 }
 0x338   : > { %10197 = vst [vmem:[%s13328_s29 + $0x260] sm:$0xff] %v9865_v5   ;;  %v6538_v9 = vadd.f32 %v14167_v2, %v11624_v39  ;;  %v11626_v15 = vadd.f32 %v5723_v50, %v4585_v46 }
 0x339   : > { %v6541_v29 = vadd.f32 %v14167_v2, %v11625_v51  ;;  %v6796_v7 = vmax.f32 %v6540_v34, 0.0 }
 0x33a   : > { %v6539_v31 = vadd.f32 %v14167_v2, %v11626_v15  ;;  %v6794_v56 = vmax.f32 %v6538_v9, 0.0 }
 0x33b   : > { %v6797_v21 = vmax.f32 %v6541_v29, 0.0 }
 0x33c   : > { %v11093_v0 = vpop.f32.mrb[160].mxu1  ;;  %v6795_v52 = vmax.f32 %v6539_v31, 0.0  ;;  %v11361_v26 = vpop.f32.mrb[160].mxu0 }
 0x33d   : > { %v4598_v16 = vpop.f32.mrb[161].mxu1  ;;  %v9880_v54 = vpack.c.bf16 %v6797_v21, %v6796_v7  ;;  %v11627_v49 = vadd.f32 %v11361_v26, %v11093_v0  ;;  %v5736_v13 = vpop.f32.mrb[161].mxu0 }
 0x33e   : > { %v11094_v10 = vpop.f32.mrb[162].mxu1  ;;  %v9875_v41 = vpack.c.bf16 %v6795_v52, %v6794_v56  ;;  %v11628_v43 = vadd.f32 %v5736_v13, %v4598_v16  ;;  %v11362_v12 = vpop.f32.mrb[162].mxu0 }
 0x33f   : > { %v4601_v4 = vpop.f32.mrb[163].mxu1  ;;  %10200 = vst [vmem:[%s13328_s29 + $0x278] sm:$0xff] %v9880_v54   ;;  %v6544_v48 = vadd.f32 %v14167_v2, %v11627_v49  ;;  %v11629_v53 = vadd.f32 %v11362_v12, %v11094_v10  ;;  %v5739_v44 = vpop.f32.mrb[163].mxu0 }
 0x340   : > { %10199 = vst [vmem:[%s13328_s29 + $0x270] sm:$0xff] %v9875_v41   ;;  %v6542_v19 = vadd.f32 %v14167_v2, %v11628_v43  ;;  %v11630_v55 = vadd.f32 %v5739_v44, %v4601_v4 }
 0x341   : > { %v6545_v22 = vadd.f32 %v14167_v2, %v11629_v53  ;;  %v6800_v25 = vmax.f32 %v6544_v48, 0.0 }
 0x342   : > { %v6543_v24 = vadd.f32 %v14167_v2, %v11630_v55  ;;  %v6798_v30 = vmax.f32 %v6542_v19, 0.0 }
 0x343   : > { %v6801_v33 = vmax.f32 %v6545_v22, 0.0 }
 0x344   : > { %v11097_v35 = vpop.f32.mrb[164].mxu1  ;;  %v6799_v63 = vmax.f32 %v6543_v24, 0.0  ;;  %v11365_v20 = vpop.f32.mrb[164].mxu0 }
 0x345   : > { %v4614_v60 = vpop.f32.mrb[165].mxu1  ;;  %v9890_v11 = vpack.c.bf16 %v6801_v33, %v6800_v25  ;;  %v11631_v14 = vadd.f32 %v11365_v20, %v11097_v35  ;;  %v5752_v36 = vpop.f32.mrb[165].mxu0 }
 0x346   : > { %v11098_v18 = vpop.f32.mrb[166].mxu1  ;;  %v9885_v32 = vpack.c.bf16 %v6799_v63, %v6798_v30  ;;  %v11632_v45 = vadd.f32 %v5752_v36, %v4614_v60  ;;  %v11366_v47 = vpop.f32.mrb[166].mxu0 }
 0x347   : > { %v4617_v27 = vpop.f32.mrb[167].mxu1  ;;  %10202 = vst [vmem:[%s13328_s29 + $0x288] sm:$0xff] %v9890_v11   ;;  %v6548_v38 = vadd.f32 %v14167_v2, %v11631_v14  ;;  %v11633_v61 = vadd.f32 %v11366_v47, %v11098_v18  ;;  %v5755_v57 = vpop.f32.mrb[167].mxu0 }
 0x348   : > { %10201 = vst [vmem:[%s13328_s29 + $0x280] sm:$0xff] %v9885_v32   ;;  %v6546_v17 = vadd.f32 %v14167_v2, %v11632_v45  ;;  %v11634_v59 = vadd.f32 %v5755_v57, %v4617_v27 }
 0x349   : > { %v6549_v40 = vadd.f32 %v14167_v2, %v11633_v61  ;;  %v6804_v58 = vmax.f32 %v6548_v38, 0.0 }
 0x34a   : > { %v6547_v62 = vadd.f32 %v14167_v2, %v11634_v59  ;;  %v6802_v6 = vmax.f32 %v6546_v17, 0.0 }
 0x34b   : > { %v6805_v3 = vmax.f32 %v6549_v40, 0.0 }
 0x34c   : > { %v11101_v28 = vpop.f32.mrb[168].mxu1  ;;  %v6803_v42 = vmax.f32 %v6547_v62, 0.0  ;;  %v11369_v37 = vpop.f32.mrb[168].mxu0 }
 0x34d   : > { %v4630_v23 = vpop.f32.mrb[169].mxu1  ;;  %v9900_v1 = vpack.c.bf16 %v6805_v3, %v6804_v58  ;;  %v11635_v5 = vadd.f32 %v11369_v37, %v11101_v28  ;;  %v5768_v39 = vpop.f32.mrb[169].mxu0 }
 0x34e   : > { %v11102_v8 = vpop.f32.mrb[170].mxu1  ;;  %v9895_v46 = vpack.c.bf16 %v6803_v42, %v6802_v6  ;;  %v11636_v34 = vadd.f32 %v5768_v39, %v4630_v23  ;;  %v11370_v51 = vpop.f32.mrb[170].mxu0 }
 0x34f   : > { %v4633_v50 = vpop.f32.mrb[171].mxu1  ;;  %10204 = vst [vmem:[%s13328_s29 + $0x298] sm:$0xff] %v9900_v1   ;;  %v6552_v9 = vadd.f32 %v14167_v2, %v11635_v5  ;;  %v11637_v15 = vadd.f32 %v11370_v51, %v11102_v8  ;;  %v5771_v29 = vpop.f32.mrb[171].mxu0 }
 0x350   : > { %10203 = vst [vmem:[%s13328_s29 + $0x290] sm:$0xff] %v9895_v46   ;;  %v6550_v31 = vadd.f32 %v14167_v2, %v11636_v34  ;;  %v11638_v7 = vadd.f32 %v5771_v29, %v4633_v50 }
 0x351   : > { %v6553_v21 = vadd.f32 %v14167_v2, %v11637_v15  ;;  %v6808_v56 = vmax.f32 %v6552_v9, 0.0 }
 0x352   : > { %v6551_v0 = vadd.f32 %v14167_v2, %v11638_v7  ;;  %v6806_v16 = vmax.f32 %v6550_v31, 0.0 }
 0x353   : > { %v6809_v52 = vmax.f32 %v6553_v21, 0.0 }
 0x354   : > { %v11105_v26 = vpop.f32.mrb[172].mxu1  ;;  %v6807_v54 = vmax.f32 %v6551_v0, 0.0  ;;  %v11373_v49 = vpop.f32.mrb[172].mxu0 }
 0x355   : > { %v4646_v13 = vpop.f32.mrb[173].mxu1  ;;  %v9910_v10 = vpack.c.bf16 %v6809_v52, %v6808_v56  ;;  %v11639_v41 = vadd.f32 %v11373_v49, %v11105_v26  ;;  %v5784_v43 = vpop.f32.mrb[173].mxu0 }
 0x356   : > { %v11106_v12 = vpop.f32.mrb[174].mxu1  ;;  %v9905_v4 = vpack.c.bf16 %v6807_v54, %v6806_v16  ;;  %v11640_v48 = vadd.f32 %v5784_v43, %v4646_v13  ;;  %v11374_v53 = vpop.f32.mrb[174].mxu0 }
 0x357   : > { %v4649_v44 = vpop.f32.mrb[175].mxu1  ;;  %10206 = vst [vmem:[%s13328_s29 + $0x2a8] sm:$0xff] %v9910_v10   ;;  %v6556_v19 = vadd.f32 %v14167_v2, %v11639_v41  ;;  %v11641_v55 = vadd.f32 %v11374_v53, %v11106_v12  ;;  %v5787_v22 = vpop.f32.mrb[175].mxu0 }
 0x358   : > { %10205 = vst [vmem:[%s13328_s29 + $0x2a0] sm:$0xff] %v9905_v4   ;;  %v6554_v24 = vadd.f32 %v14167_v2, %v11640_v48  ;;  %v11642_v25 = vadd.f32 %v5787_v22, %v4649_v44 }
 0x359   : > { %v6557_v33 = vadd.f32 %v14167_v2, %v11641_v55  ;;  %v6812_v30 = vmax.f32 %v6556_v19, 0.0 }
 0x35a   : > { %v6555_v35 = vadd.f32 %v14167_v2, %v11642_v25  ;;  %v6810_v60 = vmax.f32 %v6554_v24, 0.0 }
 0x35b   : > { %v6813_v63 = vmax.f32 %v6557_v33, 0.0 }
 0x35c   : > { %v11109_v20 = vpop.f32.mrb[176].mxu1  ;;  %v6811_v11 = vmax.f32 %v6555_v35, 0.0  ;;  %v11377_v14 = vpop.f32.mrb[176].mxu0 }
 0x35d   : > { %v4662_v36 = vpop.f32.mrb[177].mxu1  ;;  %v9920_v18 = vpack.c.bf16 %v6813_v63, %v6812_v30  ;;  %v11643_v32 = vadd.f32 %v11377_v14, %v11109_v20  ;;  %v5800_v45 = vpop.f32.mrb[177].mxu0 }
 0x35e   : > { %v11110_v47 = vpop.f32.mrb[178].mxu1  ;;  %v9915_v27 = vpack.c.bf16 %v6811_v11, %v6810_v60  ;;  %v11644_v38 = vadd.f32 %v5800_v45, %v4662_v36  ;;  %v11378_v61 = vpop.f32.mrb[178].mxu0 }
 0x35f   : > { %v4665_v57 = vpop.f32.mrb[179].mxu1  ;;  %10208 = vst [vmem:[%s13328_s29 + $0x2b8] sm:$0xff] %v9920_v18   ;;  %v6560_v17 = vadd.f32 %v14167_v2, %v11643_v32  ;;  %v11645_v59 = vadd.f32 %v11378_v61, %v11110_v47  ;;  %v5803_v40 = vpop.f32.mrb[179].mxu0 }
 0x360   : > { %10207 = vst [vmem:[%s13328_s29 + $0x2b0] sm:$0xff] %v9915_v27   ;;  %v6558_v62 = vadd.f32 %v14167_v2, %v11644_v38  ;;  %v11646_v58 = vadd.f32 %v5803_v40, %v4665_v57 }
 0x361   : > { %v6561_v3 = vadd.f32 %v14167_v2, %v11645_v59  ;;  %v6816_v6 = vmax.f32 %v6560_v17, 0.0 }
 0x362   : > { %v6559_v28 = vadd.f32 %v14167_v2, %v11646_v58  ;;  %v6814_v23 = vmax.f32 %v6558_v62, 0.0 }
 0x363   : > { %v6817_v42 = vmax.f32 %v6561_v3, 0.0 }
 0x364   : > { %v11113_v37 = vpop.f32.mrb[180].mxu1  ;;  %v6815_v1 = vmax.f32 %v6559_v28, 0.0  ;;  %v11381_v5 = vpop.f32.mrb[180].mxu0 }
 0x365   : > { %v4678_v39 = vpop.f32.mrb[181].mxu1  ;;  %v9930_v8 = vpack.c.bf16 %v6817_v42, %v6816_v6  ;;  %v11647_v46 = vadd.f32 %v11381_v5, %v11113_v37  ;;  %v5816_v34 = vpop.f32.mrb[181].mxu0 }
 0x366   : > { %v11114_v51 = vpop.f32.mrb[182].mxu1  ;;  %v9925_v50 = vpack.c.bf16 %v6815_v1, %v6814_v23  ;;  %v11648_v9 = vadd.f32 %v5816_v34, %v4678_v39  ;;  %v11382_v15 = vpop.f32.mrb[182].mxu0 }
 0x367   : > { %v4681_v29 = vpop.f32.mrb[183].mxu1  ;;  %10210 = vst [vmem:[%s13328_s29 + $0x2c8] sm:$0xff] %v9930_v8   ;;  %v6564_v31 = vadd.f32 %v14167_v2, %v11647_v46  ;;  %v11649_v7 = vadd.f32 %v11382_v15, %v11114_v51  ;;  %v5819_v21 = vpop.f32.mrb[183].mxu0 }
 0x368   : > { %10209 = vst [vmem:[%s13328_s29 + $0x2c0] sm:$0xff] %v9925_v50   ;;  %v6562_v0 = vadd.f32 %v14167_v2, %v11648_v9  ;;  %v11650_v56 = vadd.f32 %v5819_v21, %v4681_v29 }
 0x369   : > { %v6565_v52 = vadd.f32 %v14167_v2, %v11649_v7  ;;  %v6820_v16 = vmax.f32 %v6564_v31, 0.0 }
 0x36a   : > { %v6563_v26 = vadd.f32 %v14167_v2, %v11650_v56  ;;  %v6818_v13 = vmax.f32 %v6562_v0, 0.0 }
 0x36b   : > { %v6821_v54 = vmax.f32 %v6565_v52, 0.0 }
 0x36c   : > { %v11117_v49 = vpop.f32.mrb[184].mxu1  ;;  %v6819_v10 = vmax.f32 %v6563_v26, 0.0  ;;  %v11385_v41 = vpop.f32.mrb[184].mxu0 }
 0x36d   : > { %v4694_v43 = vpop.f32.mrb[185].mxu1  ;;  %v9940_v12 = vpack.c.bf16 %v6821_v54, %v6820_v16  ;;  %v11651_v4 = vadd.f32 %v11385_v41, %v11117_v49  ;;  %v5832_v48 = vpop.f32.mrb[185].mxu0 }
 0x36e   : > { %v11118_v53 = vpop.f32.mrb[186].mxu1  ;;  %v9935_v44 = vpack.c.bf16 %v6819_v10, %v6818_v13  ;;  %v11652_v19 = vadd.f32 %v5832_v48, %v4694_v43  ;;  %v11386_v55 = vpop.f32.mrb[186].mxu0 }
 0x36f   : > { %v4697_v22 = vpop.f32.mrb[187].mxu1  ;;  %10212 = vst [vmem:[%s13328_s29 + $0x2d8] sm:$0xff] %v9940_v12   ;;  %v6568_v24 = vadd.f32 %v14167_v2, %v11651_v4  ;;  %v11653_v25 = vadd.f32 %v11386_v55, %v11118_v53  ;;  %v5835_v33 = vpop.f32.mrb[187].mxu0 }
 0x370   : > { %10211 = vst [vmem:[%s13328_s29 + $0x2d0] sm:$0xff] %v9935_v44   ;;  %v6566_v35 = vadd.f32 %v14167_v2, %v11652_v19  ;;  %v11654_v30 = vadd.f32 %v5835_v33, %v4697_v22 }
 0x371   : > { %v6569_v63 = vadd.f32 %v14167_v2, %v11653_v25  ;;  %v6824_v60 = vmax.f32 %v6568_v24, 0.0 }
 0x372   : > { %v6567_v20 = vadd.f32 %v14167_v2, %v11654_v30  ;;  %v6822_v36 = vmax.f32 %v6566_v35, 0.0 }
 0x373   : > { %v6825_v11 = vmax.f32 %v6569_v63, 0.0 }
 0x374   : > { %v11121_v14 = vpop.f32.mrb[188].mxu1  ;;  %v6823_v18 = vmax.f32 %v6567_v20, 0.0  ;;  %v11389_v32 = vpop.f32.mrb[188].mxu0 }
 0x375   : > { %v4710_v45 = vpop.f32.mrb[189].mxu1  ;;  %v9950_v47 = vpack.c.bf16 %v6825_v11, %v6824_v60  ;;  %v11655_v27 = vadd.f32 %v11389_v32, %v11121_v14  ;;  %v5848_v38 = vpop.f32.mrb[189].mxu0 }
 0x376   : > { %v11122_v61 = vpop.f32.mrb[190].mxu1  ;;  %v9945_v57 = vpack.c.bf16 %v6823_v18, %v6822_v36  ;;  %v11656_v17 = vadd.f32 %v5848_v38, %v4710_v45  ;;  %v11390_v59 = vpop.f32.mrb[190].mxu0 }
 0x377   : > { %v4713_v40 = vpop.f32.mrb[191].mxu1  ;;  %10214 = vst [vmem:[%s13328_s29 + $0x2e8] sm:$0xff] %v9950_v47   ;;  %v6572_v62 = vadd.f32 %v14167_v2, %v11655_v27  ;;  %v11657_v58 = vadd.f32 %v11390_v59, %v11122_v61  ;;  %v5851_v3 = vpop.f32.mrb[191].mxu0 }
 0x378   : > { %10213 = vst [vmem:[%s13328_s29 + $0x2e0] sm:$0xff] %v9945_v57   ;;  %v6570_v28 = vadd.f32 %v14167_v2, %v11656_v17  ;;  %v11658_v6 = vadd.f32 %v5851_v3, %v4713_v40 }
 0x379   : > { %v6573_v42 = vadd.f32 %v14167_v2, %v11657_v58  ;;  %v6828_v23 = vmax.f32 %v6572_v62, 0.0 }
 0x37a   : > { %v6571_v37 = vadd.f32 %v14167_v2, %v11658_v6  ;;  %v6826_v39 = vmax.f32 %v6570_v28, 0.0 }
 0x37b   : > { %v6829_v1 = vmax.f32 %v6573_v42, 0.0 }
 0x37c   : > { %v11125_v5 = vpop.f32.mrb[192].mxu1  ;;  %v6827_v8 = vmax.f32 %v6571_v37, 0.0  ;;  %v11393_v46 = vpop.f32.mrb[192].mxu0 }
 0x37d   : > { %v4726_v34 = vpop.f32.mrb[193].mxu1  ;;  %v9960_v51 = vpack.c.bf16 %v6829_v1, %v6828_v23  ;;  %v11659_v50 = vadd.f32 %v11393_v46, %v11125_v5  ;;  %v5864_v9 = vpop.f32.mrb[193].mxu0 }
 0x37e   : > { %v11126_v15 = vpop.f32.mrb[194].mxu1  ;;  %v9955_v29 = vpack.c.bf16 %v6827_v8, %v6826_v39  ;;  %v11660_v31 = vadd.f32 %v5864_v9, %v4726_v34  ;;  %v11394_v7 = vpop.f32.mrb[194].mxu0 }
 0x37f   : > { %v4729_v21 = vpop.f32.mrb[195].mxu1  ;;  %10216 = vst [vmem:[%s13328_s29 + $0x2f8] sm:$0xff] %v9960_v51   ;;  %v6576_v0 = vadd.f32 %v14167_v2, %v11659_v50  ;;  %v11661_v56 = vadd.f32 %v11394_v7, %v11126_v15  ;;  %v5867_v52 = vpop.f32.mrb[195].mxu0 }
 0x380   : > { %10215 = vst [vmem:[%s13328_s29 + $0x2f0] sm:$0xff] %v9955_v29   ;;  %v6574_v26 = vadd.f32 %v14167_v2, %v11660_v31  ;;  %v11662_v16 = vadd.f32 %v5867_v52, %v4729_v21 }
 0x381   : > { %v6577_v54 = vadd.f32 %v14167_v2, %v11661_v56  ;;  %v6832_v13 = vmax.f32 %v6576_v0, 0.0 }
 0x382   : > { %v6575_v49 = vadd.f32 %v14167_v2, %v11662_v16  ;;  %v6830_v43 = vmax.f32 %v6574_v26, 0.0 }
 0x383   : > { %v6833_v10 = vmax.f32 %v6577_v54, 0.0 }
 0x384   : > { %v11129_v41 = vpop.f32.mrb[196].mxu1  ;;  %v6831_v12 = vmax.f32 %v6575_v49, 0.0  ;;  %v11397_v4 = vpop.f32.mrb[196].mxu0 }
 0x385   : > { %v4742_v48 = vpop.f32.mrb[197].mxu1  ;;  %v9970_v53 = vpack.c.bf16 %v6833_v10, %v6832_v13  ;;  %v11663_v44 = vadd.f32 %v11397_v4, %v11129_v41  ;;  %v5880_v19 = vpop.f32.mrb[197].mxu0 }
 0x386   : > { %v11130_v55 = vpop.f32.mrb[198].mxu1  ;;  %v9965_v22 = vpack.c.bf16 %v6831_v12, %v6830_v43  ;;  %v11664_v24 = vadd.f32 %v5880_v19, %v4742_v48  ;;  %v11398_v25 = vpop.f32.mrb[198].mxu0 }
 0x387   : > { %v4745_v33 = vpop.f32.mrb[199].mxu1  ;;  %10218 = vst [vmem:[%s13328_s29 + $0x308] sm:$0xff] %v9970_v53   ;;  %v6580_v35 = vadd.f32 %v14167_v2, %v11663_v44  ;;  %v11665_v30 = vadd.f32 %v11398_v25, %v11130_v55  ;;  %v5883_v63 = vpop.f32.mrb[199].mxu0 }
 0x388   : > { %10217 = vst [vmem:[%s13328_s29 + $0x300] sm:$0xff] %v9965_v22   ;;  %v6578_v20 = vadd.f32 %v14167_v2, %v11664_v24  ;;  %v11666_v60 = vadd.f32 %v5883_v63, %v4745_v33 }
 0x389   : > { %v6581_v11 = vadd.f32 %v14167_v2, %v11665_v30  ;;  %v6836_v36 = vmax.f32 %v6580_v35, 0.0 }
 0x38a   : > { %v6579_v14 = vadd.f32 %v14167_v2, %v11666_v60  ;;  %v6834_v45 = vmax.f32 %v6578_v20, 0.0 }
 0x38b   : > { %v6837_v18 = vmax.f32 %v6581_v11, 0.0 }
 0x38c   : > { %v11133_v32 = vpop.f32.mrb[200].mxu1  ;;  %v6835_v47 = vmax.f32 %v6579_v14, 0.0  ;;  %v11401_v27 = vpop.f32.mrb[200].mxu0 }
 0x38d   : > { %v4758_v38 = vpop.f32.mrb[201].mxu1  ;;  %v9980_v61 = vpack.c.bf16 %v6837_v18, %v6836_v36  ;;  %v11667_v57 = vadd.f32 %v11401_v27, %v11133_v32  ;;  %v5896_v17 = vpop.f32.mrb[201].mxu0 }
 0x38e   : > { %v11134_v59 = vpop.f32.mrb[202].mxu1  ;;  %v9975_v40 = vpack.c.bf16 %v6835_v47, %v6834_v45  ;;  %v11668_v62 = vadd.f32 %v5896_v17, %v4758_v38  ;;  %v11402_v58 = vpop.f32.mrb[202].mxu0 }
 0x38f   : > { %v4761_v3 = vpop.f32.mrb[203].mxu1  ;;  %10220 = vst [vmem:[%s13328_s29 + $0x318] sm:$0xff] %v9980_v61   ;;  %v6584_v28 = vadd.f32 %v14167_v2, %v11667_v57  ;;  %v11669_v6 = vadd.f32 %v11402_v58, %v11134_v59  ;;  %v5899_v42 = vpop.f32.mrb[203].mxu0 }
 0x390   : > { %10219 = vst [vmem:[%s13328_s29 + $0x310] sm:$0xff] %v9975_v40   ;;  %v6582_v37 = vadd.f32 %v14167_v2, %v11668_v62  ;;  %v11670_v23 = vadd.f32 %v5899_v42, %v4761_v3 }
 0x391   : > { %v6585_v1 = vadd.f32 %v14167_v2, %v11669_v6  ;;  %v6840_v39 = vmax.f32 %v6584_v28, 0.0 }
 0x392   : > { %v6583_v5 = vadd.f32 %v14167_v2, %v11670_v23  ;;  %v6838_v34 = vmax.f32 %v6582_v37, 0.0 }
 0x393   : > { %v6841_v8 = vmax.f32 %v6585_v1, 0.0 }
 0x394   : > { %v11137_v46 = vpop.f32.mrb[204].mxu1  ;;  %v6839_v51 = vmax.f32 %v6583_v5, 0.0  ;;  %v11405_v50 = vpop.f32.mrb[204].mxu0 }
 0x395   : > { %v4774_v9 = vpop.f32.mrb[205].mxu1  ;;  %v9990_v15 = vpack.c.bf16 %v6841_v8, %v6840_v39  ;;  %v11671_v29 = vadd.f32 %v11405_v50, %v11137_v46  ;;  %v5912_v31 = vpop.f32.mrb[205].mxu0 }
 0x396   : > { %v11138_v7 = vpop.f32.mrb[206].mxu1  ;;  %v9985_v21 = vpack.c.bf16 %v6839_v51, %v6838_v34  ;;  %v11672_v0 = vadd.f32 %v5912_v31, %v4774_v9  ;;  %v11406_v56 = vpop.f32.mrb[206].mxu0 }
 0x397   : > { %v4777_v52 = vpop.f32.mrb[207].mxu1  ;;  %10222 = vst [vmem:[%s13328_s29 + $0x328] sm:$0xff] %v9990_v15   ;;  %v6588_v26 = vadd.f32 %v14167_v2, %v11671_v29  ;;  %v11673_v16 = vadd.f32 %v11406_v56, %v11138_v7  ;;  %v5915_v54 = vpop.f32.mrb[207].mxu0 }
 0x398   : > { %10221 = vst [vmem:[%s13328_s29 + $0x320] sm:$0xff] %v9985_v21   ;;  %v6586_v49 = vadd.f32 %v14167_v2, %v11672_v0  ;;  %v11674_v13 = vadd.f32 %v5915_v54, %v4777_v52 }
 0x399   : > { %v6589_v10 = vadd.f32 %v14167_v2, %v11673_v16  ;;  %v6844_v43 = vmax.f32 %v6588_v26, 0.0 }
 0x39a   : > { %v6587_v41 = vadd.f32 %v14167_v2, %v11674_v13  ;;  %v6842_v48 = vmax.f32 %v6586_v49, 0.0 }
 0x39b   : > { %v6845_v12 = vmax.f32 %v6589_v10, 0.0 }
 0x39c   : > { %v11141_v4 = vpop.f32.mrb[208].mxu1  ;;  %v6843_v53 = vmax.f32 %v6587_v41, 0.0  ;;  %v11409_v44 = vpop.f32.mrb[208].mxu0 }
 0x39d   : > { %v4790_v19 = vpop.f32.mrb[209].mxu1  ;;  %v10000_v55 = vpack.c.bf16 %v6845_v12, %v6844_v43  ;;  %v11675_v22 = vadd.f32 %v11409_v44, %v11141_v4  ;;  %v5928_v24 = vpop.f32.mrb[209].mxu0 }
 0x39e   : > { %v11142_v25 = vpop.f32.mrb[210].mxu1  ;;  %v9995_v33 = vpack.c.bf16 %v6843_v53, %v6842_v48  ;;  %v11676_v35 = vadd.f32 %v5928_v24, %v4790_v19  ;;  %v11410_v30 = vpop.f32.mrb[210].mxu0 }
 0x39f   : > { %v4793_v63 = vpop.f32.mrb[211].mxu1  ;;  %10224 = vst [vmem:[%s13328_s29 + $0x338] sm:$0xff] %v10000_v55   ;;  %v6592_v20 = vadd.f32 %v14167_v2, %v11675_v22  ;;  %v11677_v60 = vadd.f32 %v11410_v30, %v11142_v25  ;;  %v5931_v11 = vpop.f32.mrb[211].mxu0 }
 0x3a0   : > { %10223 = vst [vmem:[%s13328_s29 + $0x330] sm:$0xff] %v9995_v33   ;;  %v6590_v14 = vadd.f32 %v14167_v2, %v11676_v35  ;;  %v11678_v36 = vadd.f32 %v5931_v11, %v4793_v63 }
 0x3a1   : > { %v6593_v18 = vadd.f32 %v14167_v2, %v11677_v60  ;;  %v6848_v45 = vmax.f32 %v6592_v20, 0.0 }
 0x3a2   : > { %v6591_v32 = vadd.f32 %v14167_v2, %v11678_v36  ;;  %v6846_v38 = vmax.f32 %v6590_v14, 0.0 }
 0x3a3   : > { %v6849_v47 = vmax.f32 %v6593_v18, 0.0 }
 0x3a4   : > { %v11145_v27 = vpop.f32.mrb[212].mxu1  ;;  %v6847_v61 = vmax.f32 %v6591_v32, 0.0  ;;  %v11413_v57 = vpop.f32.mrb[212].mxu0 }
 0x3a5   : > { %v4806_v17 = vpop.f32.mrb[213].mxu1  ;;  %v10010_v59 = vpack.c.bf16 %v6849_v47, %v6848_v45  ;;  %v11679_v40 = vadd.f32 %v11413_v57, %v11145_v27  ;;  %v5944_v62 = vpop.f32.mrb[213].mxu0 }
 0x3a6   : > { %v11146_v58 = vpop.f32.mrb[214].mxu1  ;;  %v10005_v3 = vpack.c.bf16 %v6847_v61, %v6846_v38  ;;  %v11680_v28 = vadd.f32 %v5944_v62, %v4806_v17  ;;  %v11414_v6 = vpop.f32.mrb[214].mxu0 }
 0x3a7   : > { %v4809_v42 = vpop.f32.mrb[215].mxu1  ;;  %10226 = vst [vmem:[%s13328_s29 + $0x348] sm:$0xff] %v10010_v59   ;;  %v6596_v37 = vadd.f32 %v14167_v2, %v11679_v40  ;;  %v11681_v23 = vadd.f32 %v11414_v6, %v11146_v58  ;;  %v5947_v1 = vpop.f32.mrb[215].mxu0 }
 0x3a8   : > { %10225 = vst [vmem:[%s13328_s29 + $0x340] sm:$0xff] %v10005_v3   ;;  %v6594_v5 = vadd.f32 %v14167_v2, %v11680_v28  ;;  %v11682_v39 = vadd.f32 %v5947_v1, %v4809_v42 }
 0x3a9   : > { %v6597_v8 = vadd.f32 %v14167_v2, %v11681_v23  ;;  %v6852_v34 = vmax.f32 %v6596_v37, 0.0 }
 0x3aa   : > { %v6595_v46 = vadd.f32 %v14167_v2, %v11682_v39  ;;  %v6850_v9 = vmax.f32 %v6594_v5, 0.0 }
 0x3ab   : > { %v6853_v51 = vmax.f32 %v6597_v8, 0.0 }
 0x3ac   : > { %v11149_v50 = vpop.f32.mrb[216].mxu1  ;;  %v6851_v15 = vmax.f32 %v6595_v46, 0.0  ;;  %v11417_v29 = vpop.f32.mrb[216].mxu0 }
 0x3ad   : > { %v4822_v31 = vpop.f32.mrb[217].mxu1  ;;  %v10020_v7 = vpack.c.bf16 %v6853_v51, %v6852_v34  ;;  %v11683_v21 = vadd.f32 %v11417_v29, %v11149_v50  ;;  %v5960_v0 = vpop.f32.mrb[217].mxu0 }
 0x3ae   : > { %v11150_v56 = vpop.f32.mrb[218].mxu1  ;;  %v10015_v52 = vpack.c.bf16 %v6851_v15, %v6850_v9  ;;  %v11684_v26 = vadd.f32 %v5960_v0, %v4822_v31  ;;  %v11418_v16 = vpop.f32.mrb[218].mxu0 }
 0x3af   : > { %v4825_v54 = vpop.f32.mrb[219].mxu1  ;;  %10228 = vst [vmem:[%s13328_s29 + $0x358] sm:$0xff] %v10020_v7   ;;  %v6600_v49 = vadd.f32 %v14167_v2, %v11683_v21  ;;  %v11685_v13 = vadd.f32 %v11418_v16, %v11150_v56  ;;  %v5963_v10 = vpop.f32.mrb[219].mxu0 }
 0x3b0   : > { %10227 = vst [vmem:[%s13328_s29 + $0x350] sm:$0xff] %v10015_v52   ;;  %v6598_v41 = vadd.f32 %v14167_v2, %v11684_v26  ;;  %v11686_v43 = vadd.f32 %v5963_v10, %v4825_v54 }
 0x3b1   : > { %v6601_v12 = vadd.f32 %v14167_v2, %v11685_v13  ;;  %v6856_v48 = vmax.f32 %v6600_v49, 0.0 }
 0x3b2   : > { %v6599_v4 = vadd.f32 %v14167_v2, %v11686_v43  ;;  %v6854_v19 = vmax.f32 %v6598_v41, 0.0 }
 0x3b3   : > { %v6857_v53 = vmax.f32 %v6601_v12, 0.0 }
 0x3b4   : > { %v11153_v44 = vpop.f32.mrb[220].mxu1  ;;  %v6855_v55 = vmax.f32 %v6599_v4, 0.0  ;;  %v11421_v22 = vpop.f32.mrb[220].mxu0 }
 0x3b5   : > { %v4838_v24 = vpop.f32.mrb[221].mxu1  ;;  %v10030_v25 = vpack.c.bf16 %v6857_v53, %v6856_v48  ;;  %v11687_v33 = vadd.f32 %v11421_v22, %v11153_v44  ;;  %v5976_v35 = vpop.f32.mrb[221].mxu0 }
 0x3b6   : > { %v11154_v30 = vpop.f32.mrb[222].mxu1  ;;  %v10025_v63 = vpack.c.bf16 %v6855_v55, %v6854_v19  ;;  %v11688_v20 = vadd.f32 %v5976_v35, %v4838_v24  ;;  %v11422_v60 = vpop.f32.mrb[222].mxu0 }
 0x3b7   : > { %v4841_v11 = vpop.f32.mrb[223].mxu1  ;;  %10230 = vst [vmem:[%s13328_s29 + $0x368] sm:$0xff] %v10030_v25   ;;  %v6604_v14 = vadd.f32 %v14167_v2, %v11687_v33  ;;  %v11689_v36 = vadd.f32 %v11422_v60, %v11154_v30  ;;  %v5979_v18 = vpop.f32.mrb[223].mxu0 }
 0x3b8   : > { %10229 = vst [vmem:[%s13328_s29 + $0x360] sm:$0xff] %v10025_v63   ;;  %v6602_v32 = vadd.f32 %v14167_v2, %v11688_v20  ;;  %v11690_v45 = vadd.f32 %v5979_v18, %v4841_v11 }
 0x3b9   : > { %v6605_v47 = vadd.f32 %v14167_v2, %v11689_v36  ;;  %v6860_v38 = vmax.f32 %v6604_v14, 0.0 }
 0x3ba   : > { %v6603_v27 = vadd.f32 %v14167_v2, %v11690_v45  ;;  %v6858_v17 = vmax.f32 %v6602_v32, 0.0 }
 0x3bb   : > { %v6861_v61 = vmax.f32 %v6605_v47, 0.0 }
 0x3bc   : > { %v11157_v57 = vpop.f32.mrb[224].mxu1  ;;  %v6859_v59 = vmax.f32 %v6603_v27, 0.0  ;;  %v11425_v40 = vpop.f32.mrb[224].mxu0 }
 0x3bd   : > { %v4854_v62 = vpop.f32.mrb[225].mxu1  ;;  %v10040_v58 = vpack.c.bf16 %v6861_v61, %v6860_v38  ;;  %v11691_v3 = vadd.f32 %v11425_v40, %v11157_v57  ;;  %v5992_v28 = vpop.f32.mrb[225].mxu0 }
 0x3be   : > { %v11158_v6 = vpop.f32.mrb[226].mxu1  ;;  %v10035_v42 = vpack.c.bf16 %v6859_v59, %v6858_v17  ;;  %v11692_v37 = vadd.f32 %v5992_v28, %v4854_v62  ;;  %v11426_v23 = vpop.f32.mrb[226].mxu0 }
 0x3bf   : > { %v4857_v1 = vpop.f32.mrb[227].mxu1  ;;  %10232 = vst [vmem:[%s13328_s29 + $0x378] sm:$0xff] %v10040_v58   ;;  %v6608_v5 = vadd.f32 %v14167_v2, %v11691_v3  ;;  %v11693_v39 = vadd.f32 %v11426_v23, %v11158_v6  ;;  %v5995_v8 = vpop.f32.mrb[227].mxu0 }
 0x3c0   : > { %10231 = vst [vmem:[%s13328_s29 + $0x370] sm:$0xff] %v10035_v42   ;;  %v6606_v46 = vadd.f32 %v14167_v2, %v11692_v37  ;;  %v11694_v34 = vadd.f32 %v5995_v8, %v4857_v1 }
 0x3c1   : > { %v6609_v51 = vadd.f32 %v14167_v2, %v11693_v39  ;;  %v6864_v9 = vmax.f32 %v6608_v5, 0.0 }
 0x3c2   : > { %v6607_v50 = vadd.f32 %v14167_v2, %v11694_v34  ;;  %v6862_v31 = vmax.f32 %v6606_v46, 0.0 }
 0x3c3   : > { %v6865_v15 = vmax.f32 %v6609_v51, 0.0 }
 0x3c4   : > { %v11161_v29 = vpop.f32.mrb[228].mxu1  ;;  %v6863_v7 = vmax.f32 %v6607_v50, 0.0  ;;  %v11429_v21 = vpop.f32.mrb[228].mxu0 }
 0x3c5   : > { %v4870_v0 = vpop.f32.mrb[229].mxu1  ;;  %v10050_v56 = vpack.c.bf16 %v6865_v15, %v6864_v9  ;;  %v11695_v52 = vadd.f32 %v11429_v21, %v11161_v29  ;;  %v6008_v26 = vpop.f32.mrb[229].mxu0 }
 0x3c6   : > { %v11162_v16 = vpop.f32.mrb[230].mxu1  ;;  %v10045_v54 = vpack.c.bf16 %v6863_v7, %v6862_v31  ;;  %v11696_v49 = vadd.f32 %v6008_v26, %v4870_v0  ;;  %v11430_v13 = vpop.f32.mrb[230].mxu0 }
 0x3c7   : > { %v4873_v10 = vpop.f32.mrb[231].mxu1  ;;  %10234 = vst [vmem:[%s13328_s29 + $0x388] sm:$0xff] %v10050_v56   ;;  %v6612_v41 = vadd.f32 %v14167_v2, %v11695_v52  ;;  %v11697_v43 = vadd.f32 %v11430_v13, %v11162_v16  ;;  %v6011_v12 = vpop.f32.mrb[231].mxu0 }
 0x3c8   : > { %10233 = vst [vmem:[%s13328_s29 + $0x380] sm:$0xff] %v10045_v54   ;;  %v6610_v4 = vadd.f32 %v14167_v2, %v11696_v49  ;;  %v11698_v48 = vadd.f32 %v6011_v12, %v4873_v10 }
 0x3c9   : > { %v6613_v53 = vadd.f32 %v14167_v2, %v11697_v43  ;;  %v6868_v19 = vmax.f32 %v6612_v41, 0.0 }
 0x3ca   : > { %v6611_v44 = vadd.f32 %v14167_v2, %v11698_v48  ;;  %v6866_v24 = vmax.f32 %v6610_v4, 0.0 }
 0x3cb   : > { %v6869_v55 = vmax.f32 %v6613_v53, 0.0 }
 0x3cc   : > { %v11165_v22 = vpop.f32.mrb[232].mxu1  ;;  %v6867_v25 = vmax.f32 %v6611_v44, 0.0  ;;  %v11433_v33 = vpop.f32.mrb[232].mxu0 }
 0x3cd   : > { %v4886_v35 = vpop.f32.mrb[233].mxu1  ;;  %v10060_v30 = vpack.c.bf16 %v6869_v55, %v6868_v19  ;;  %v11699_v63 = vadd.f32 %v11433_v33, %v11165_v22  ;;  %v6024_v20 = vpop.f32.mrb[233].mxu0 }
 0x3ce   : > { %v11166_v60 = vpop.f32.mrb[234].mxu1  ;;  %v10055_v11 = vpack.c.bf16 %v6867_v25, %v6866_v24  ;;  %v11700_v14 = vadd.f32 %v6024_v20, %v4886_v35  ;;  %v11434_v36 = vpop.f32.mrb[234].mxu0 }
 0x3cf   : > { %v4889_v18 = vpop.f32.mrb[235].mxu1  ;;  %10236 = vst [vmem:[%s13328_s29 + $0x398] sm:$0xff] %v10060_v30   ;;  %v6616_v32 = vadd.f32 %v14167_v2, %v11699_v63  ;;  %v11701_v45 = vadd.f32 %v11434_v36, %v11166_v60  ;;  %v6027_v47 = vpop.f32.mrb[235].mxu0 }
 0x3d0   : > { %10235 = vst [vmem:[%s13328_s29 + $0x390] sm:$0xff] %v10055_v11   ;;  %v6614_v27 = vadd.f32 %v14167_v2, %v11700_v14  ;;  %v11702_v38 = vadd.f32 %v6027_v47, %v4889_v18 }
 0x3d1   : > { %v6617_v61 = vadd.f32 %v14167_v2, %v11701_v45  ;;  %v6872_v17 = vmax.f32 %v6616_v32, 0.0 }
 0x3d2   : > { %v6615_v57 = vadd.f32 %v14167_v2, %v11702_v38  ;;  %v6870_v62 = vmax.f32 %v6614_v27, 0.0 }
 0x3d3   : > { %v6873_v59 = vmax.f32 %v6617_v61, 0.0 }
 0x3d4   : > { %v11169_v40 = vpop.f32.mrb[236].mxu1  ;;  %v6871_v58 = vmax.f32 %v6615_v57, 0.0  ;;  %v11437_v3 = vpop.f32.mrb[236].mxu0 }
 0x3d5   : > { %v4902_v28 = vpop.f32.mrb[237].mxu1  ;;  %v10070_v6 = vpack.c.bf16 %v6873_v59, %v6872_v17  ;;  %v11703_v42 = vadd.f32 %v11437_v3, %v11169_v40  ;;  %v6040_v37 = vpop.f32.mrb[237].mxu0 }
 0x3d6   : > { %v11170_v23 = vpop.f32.mrb[238].mxu1  ;;  %v10065_v1 = vpack.c.bf16 %v6871_v58, %v6870_v62  ;;  %v11704_v5 = vadd.f32 %v6040_v37, %v4902_v28  ;;  %v11438_v39 = vpop.f32.mrb[238].mxu0 }
 0x3d7   : > { %v4905_v8 = vpop.f32.mrb[239].mxu1  ;;  %10238 = vst [vmem:[%s13328_s29 + $0x3a8] sm:$0xff] %v10070_v6   ;;  %v6620_v46 = vadd.f32 %v14167_v2, %v11703_v42  ;;  %v11705_v34 = vadd.f32 %v11438_v39, %v11170_v23  ;;  %v6043_v51 = vpop.f32.mrb[239].mxu0 }
 0x3d8   : > { %10237 = vst [vmem:[%s13328_s29 + $0x3a0] sm:$0xff] %v10065_v1   ;;  %v6618_v50 = vadd.f32 %v14167_v2, %v11704_v5  ;;  %v11706_v9 = vadd.f32 %v6043_v51, %v4905_v8 }
 0x3d9   : > { %v6621_v15 = vadd.f32 %v14167_v2, %v11705_v34  ;;  %v6876_v31 = vmax.f32 %v6620_v46, 0.0 }
 0x3da   : > { %v6619_v29 = vadd.f32 %v14167_v2, %v11706_v9  ;;  %v6874_v0 = vmax.f32 %v6618_v50, 0.0 }
 0x3db   : > { %v6877_v7 = vmax.f32 %v6621_v15, 0.0 }
 0x3dc   : > { %v11173_v21 = vpop.f32.mrb[240].mxu1  ;;  %v6875_v56 = vmax.f32 %v6619_v29, 0.0  ;;  %v11441_v52 = vpop.f32.mrb[240].mxu0 }
 0x3dd   : > { %v4918_v26 = vpop.f32.mrb[241].mxu1  ;;  %v10080_v16 = vpack.c.bf16 %v6877_v7, %v6876_v31  ;;  %v11707_v54 = vadd.f32 %v11441_v52, %v11173_v21  ;;  %v6056_v49 = vpop.f32.mrb[241].mxu0 }
 0x3de   : > { %v11174_v13 = vpop.f32.mrb[242].mxu1  ;;  %v10075_v10 = vpack.c.bf16 %v6875_v56, %v6874_v0  ;;  %v11708_v41 = vadd.f32 %v6056_v49, %v4918_v26  ;;  %v11442_v43 = vpop.f32.mrb[242].mxu0 }
 0x3df   : > { %v4921_v12 = vpop.f32.mrb[243].mxu1  ;;  %10240 = vst [vmem:[%s13328_s29 + $0x3b8] sm:$0xff] %v10080_v16   ;;  %v6624_v4 = vadd.f32 %v14167_v2, %v11707_v54  ;;  %v11709_v48 = vadd.f32 %v11442_v43, %v11174_v13  ;;  %v6059_v53 = vpop.f32.mrb[243].mxu0 }
 0x3e0   : > { %10239 = vst [vmem:[%s13328_s29 + $0x3b0] sm:$0xff] %v10075_v10   ;;  %v6622_v44 = vadd.f32 %v14167_v2, %v11708_v41  ;;  %v11710_v19 = vadd.f32 %v6059_v53, %v4921_v12 }
 0x3e1   : > { %v6625_v55 = vadd.f32 %v14167_v2, %v11709_v48  ;;  %v6880_v24 = vmax.f32 %v6624_v4, 0.0 }
 0x3e2   : > { %v6623_v22 = vadd.f32 %v14167_v2, %v11710_v19  ;;  %v6878_v35 = vmax.f32 %v6622_v44, 0.0  ;;  %v12333_v2 = vld [vmem:[%s14328_s2] ss:$0 sm:$0xff] }
 0x3e3   : > { %v6881_v25 = vmax.f32 %v6625_v55, 0.0 }
 0x3e4   : > { %v11177_v33 = vpop.f32.mrb[244].mxu1  ;;  %v6879_v30 = vmax.f32 %v6623_v22, 0.0  ;;  %v11445_v63 = vpop.f32.mrb[244].mxu0 }
 0x3e5   : > { %v4934_v20 = vpop.f32.mrb[245].mxu1  ;;  %v10090_v60 = vpack.c.bf16 %v6881_v25, %v6880_v24  ;;  %v11711_v11 = vadd.f32 %v11445_v63, %v11177_v33  ;;  %v6072_v14 = vpop.f32.mrb[245].mxu0 }
 0x3e6   : > { %v11178_v36 = vpop.f32.mrb[246].mxu1  ;;  %v10085_v18 = vpack.c.bf16 %v6879_v30, %v6878_v35  ;;  %v11712_v32 = vadd.f32 %v6072_v14, %v4934_v20  ;;  %v11446_v45 = vpop.f32.mrb[246].mxu0 }
 0x3e7   : > { %v4937_v47 = vpop.f32.mrb[247].mxu1  ;;  %10242 = vst [vmem:[%s13328_s29 + $0x3c8] sm:$0xff] %v10090_v60   ;;  %v6628_v27 = vadd.f32 %v12333_v2, %v11711_v11  ;;  %v11713_v38 = vadd.f32 %v11446_v45, %v11178_v36  ;;  %v6075_v61 = vpop.f32.mrb[247].mxu0 }
 0x3e8   : > { %10241 = vst [vmem:[%s13328_s29 + $0x3c0] sm:$0xff] %v10085_v18   ;;  %v6626_v57 = vadd.f32 %v12333_v2, %v11712_v32  ;;  %v11714_v17 = vadd.f32 %v6075_v61, %v4937_v47 }
 0x3e9   : > { %v6629_v59 = vadd.f32 %v12333_v2, %v11713_v38  ;;  %v6884_v62 = vmax.f32 %v6628_v27, 0.0 }
 0x3ea   : > { %v6627_v40 = vadd.f32 %v12333_v2, %v11714_v17  ;;  %v6882_v28 = vmax.f32 %v6626_v57, 0.0 }
 0x3eb   : > { %v6885_v58 = vmax.f32 %v6629_v59, 0.0 }
 0x3ec   : > { %v11181_v3 = vpop.f32.mrb[248].mxu1  ;;  %v6883_v6 = vmax.f32 %v6627_v40, 0.0  ;;  %v11449_v42 = vpop.f32.mrb[248].mxu0 }
 0x3ed   : > { %v4950_v37 = vpop.f32.mrb[249].mxu1  ;;  %v10100_v23 = vpack.c.bf16 %v6885_v58, %v6884_v62  ;;  %v11715_v1 = vadd.f32 %v11449_v42, %v11181_v3  ;;  %v6088_v5 = vpop.f32.mrb[249].mxu0 }
 0x3ee   : > { %v11182_v39 = vpop.f32.mrb[250].mxu1  ;;  %v10095_v8 = vpack.c.bf16 %v6883_v6, %v6882_v28  ;;  %v11716_v46 = vadd.f32 %v6088_v5, %v4950_v37  ;;  %v11450_v34 = vpop.f32.mrb[250].mxu0 }
 0x3ef   : > { %v4953_v51 = vpop.f32.mrb[251].mxu1  ;;  %10244 = vst [vmem:[%s13328_s29 + $0x3d8] sm:$0xff] %v10100_v23   ;;  %v6632_v50 = vadd.f32 %v12333_v2, %v11715_v1  ;;  %v11717_v9 = vadd.f32 %v11450_v34, %v11182_v39  ;;  %v6091_v15 = vpop.f32.mrb[251].mxu0 }
 0x3f0   : > { %10243 = vst [vmem:[%s13328_s29 + $0x3d0] sm:$0xff] %v10095_v8   ;;  %v6630_v29 = vadd.f32 %v12333_v2, %v11716_v46  ;;  %v11718_v31 = vadd.f32 %v6091_v15, %v4953_v51 }
 0x3f1   : > { %v6633_v7 = vadd.f32 %v12333_v2, %v11717_v9  ;;  %v6888_v0 = vmax.f32 %v6632_v50, 0.0 }
 0x3f2   : > { %v6631_v21 = vadd.f32 %v12333_v2, %v11718_v31  ;;  %v6886_v26 = vmax.f32 %v6630_v29, 0.0 }
 0x3f3   : > { %v6889_v56 = vmax.f32 %v6633_v7, 0.0 }
 0x3f4   : > { %v11185_v52 = vpop.f32.mrb[252].mxu1  ;;  %v6887_v16 = vmax.f32 %v6631_v21, 0.0  ;;  %v11453_v54 = vpop.f32.mrb[252].mxu0 }
 0x3f5   : > { %v4966_v49 = vpop.f32.mrb[253].mxu1  ;;  %v10110_v13 = vpack.c.bf16 %v6889_v56, %v6888_v0  ;;  %v11719_v10 = vadd.f32 %v11453_v54, %v11185_v52  ;;  %v6104_v41 = vpop.f32.mrb[253].mxu0 }
 0x3f6   : > { %v11186_v43 = vpop.f32.mrb[254].mxu1  ;;  %v10105_v12 = vpack.c.bf16 %v6887_v16, %v6886_v26  ;;  %v11720_v4 = vadd.f32 %v6104_v41, %v4966_v49  ;;  %v11454_v48 = vpop.f32.mrb[254].mxu0 }
 0x3f7   : > { %v4969_v53 = vpop.f32.mrb[255].mxu1  ;;  %10246 = vst [vmem:[%s13328_s29 + $0x3e8] sm:$0xff] %v10110_v13   ;;  %v6636_v44 = vadd.f32 %v12333_v2, %v11719_v10  ;;  %v11721_v19 = vadd.f32 %v11454_v48, %v11186_v43  ;;  %v6107_v55 = vpop.f32.mrb[255].mxu0 }
 0x3f8   : > { %10245 = vst [vmem:[%s13328_s29 + $0x3e0] sm:$0xff] %v10105_v12   ;;  %v6634_v22 = vadd.f32 %v12333_v2, %v11720_v4  ;;  %v11722_v24 = vadd.f32 %v6107_v55, %v4969_v53 }
 0x3f9   : > { %v6637_v25 = vadd.f32 %v12333_v2, %v11721_v19  ;;  %v6892_v35 = vmax.f32 %v6636_v44, 0.0 }
 0x3fa   : > { %v6635_v33 = vadd.f32 %v12333_v2, %v11722_v24  ;;  %v6890_v63 = vmax.f32 %v6634_v22, 0.0 }
 0x3fb   : > { %v6893_v30 = vmax.f32 %v6637_v25, 0.0 }
 0x3fc   : > { %v6891_v20 = vmax.f32 %v6635_v33, 0.0 }
 0x3fd   : > { %v10120_v60 = vpack.c.bf16 %v6893_v30, %v6892_v35 }
 0x3fe   : > { %v10115_v11 = vpack.c.bf16 %v6891_v20, %v6890_v63 }
 0x3ff   : > { %10248 = vst [vmem:[%s13328_s29 + $0x3f8] sm:$0xff] %v10120_v60  }
 0x400   : > { %10247 = vst [vmem:[%s13328_s29 + $0x3f0] sm:$0xff] %v10115_v11  }
 0x401 PF: > { %s13_s16 = sadd.s32 1, %s12372_s16   ;;  %s14494_s12 = smov %s12364_s14 }
 0x402   : > { %p10_p7 = scmp.ge.s32.totalorder %s13_s16, 6   ;;  %s14495_s13 = smov %s12368_s15 }
 0x403   : > { %s14496_s14 = smov %s14499_s17  ;;  %s14497_s15 = smov %s14503_s18 }
 0x404   :  { %12 = sbr.rel (!%p10_p7) target bundleno = 3 (0x3), region = 65 }

// kernel: h2e_forward.7
= control target key start
LH: loop header
LB: loop body
LE: loop exit
PB: predicated region body
PF: predicated region fallthrough
CT: control target
= control target key end

     0   :  { %s4586_s15 = smov 0   ;;  %s5525_s0 = inlined_call_operand.vmem [shape: bf16[2,64,32,256], index: 0, kind: input, shape index: {}]   ;;  %s5526_s1 = inlined_call_operand.vmem [shape: bf16[2,256,128], index: 1, kind: input, shape index: {}]   ;;  %s5527_s2 = inlined_call_operand.vmem [shape: f32[1,128], index: 2, kind: input, shape index: {}]   ;;  %s5528_s3 = inlined_call_operand.vmem [shape: f32[1024,128], index: 3, kind: input, shape index: {}]   ;;  %s5529_s4 = inlined_call_operand.vmem [shape: f32[2,8,128], index: 4, kind: output, shape index: {}]  }
   0x1 LB: > { %s3790_s16 = sadd.s32 4294967295, %s4558_s15   ;;  %p3794_p0 = scmp.ge.s32.totalorder %s4558_s15, 1  ;;  %s4558_s15 = sphi %s4586_s15, %s14_s15  }
   0x2   : > { %p162_p1 = scmp.lt.s32.totalorder %s4558_s15, 3 }
   0x4   : > { %p163_p2 = pnand %p3794_p0, %p162_p1 }
   0x5   : > { %v4133_v0 = vld [vmem:[%s5526_s1 + $0x80] sm:$0xff] (!%p163_p2)   ;;  %v4560_v1 = vmov (!%p163_p2), 0   ;;  %v4135_v3 = vld [vmem:[%s5526_s1 + $0x88] sm:$0xff] (!%p163_p2)   ;;  %v4137_v5 = vld [vmem:[%s5526_s1 + $0x90] sm:$0xff] (!%p163_p2)   ;;  %p187_p3 = scmp.lt.s32.totalorder (!%p163_p2), %s3790_s16, 1 }
   0x6   : > { %166 = sbr.rel (%p163_p2) target bundleno = 1004 (0x3ec), region = 36  ;;  %1254 = vmatprep.subr.bf16.mxu0 (!%p163_p2), %v4560_v1  ;;  %2535 = vmatprep.subr.bf16.mxu1 (!%p163_p2), %v4560_v1  ;;  %v4134_v2 = vld [vmem:[%s5526_s1] sm:$0xff] (!%p163_p2)   ;;  %v4136_v4 = vld [vmem:[%s5526_s1 + $0x8] sm:$0xff] (!%p163_p2)   ;;  %v4138_v6 = vld [vmem:[%s5526_s1 + $0x10] sm:$0xff] (!%p163_p2)  }
   0x7   : > { %1255 = vmatpush1.bf16.msra.mxu0 (!%p163_p2), %v4133_v0  ;;  %2536 = vmatpush1.bf16.msra.mxu1 (!%p163_p2), %v4134_v2  ;;  %v4139_v7 = vld [vmem:[%s5526_s1 + $0x98] sm:$0xff] (!%p163_p2)   ;;  %v4141_v9 = vld [vmem:[%s5526_s1 + $0xa0] sm:$0xff] (!%p163_p2)   ;;  %v4143_v11 = vld [vmem:[%s5526_s1 + $0xa8] sm:$0xff] (!%p163_p2)  }
   0x8   : > { %1256 = vmatprep.subr.bf16.mxu0 (!%p163_p2), %v4560_v1  ;;  %2537 = vmatprep.subr.bf16.mxu1 (!%p163_p2), %v4560_v1  ;;  %v4140_v8 = vld [vmem:[%s5526_s1 + $0x18] sm:$0xff] (!%p163_p2)   ;;  %v4142_v10 = vld [vmem:[%s5526_s1 + $0x20] sm:$0xff] (!%p163_p2)   ;;  %v4144_v12 = vld [vmem:[%s5526_s1 + $0x28] sm:$0xff] (!%p163_p2)  }
   0x9   : > { %v4145_v13 = vld [vmem:[%s5526_s1 + $0xb0] sm:$0xff] (!%p163_p2)   ;;  %v4147_v15 = vld [vmem:[%s5526_s1 + $0xb8] sm:$0xff] (!%p163_p2)   ;;  %v4149_v17 = vld [vmem:[%s5526_s1 + $0xc0] sm:$0xff] (!%p163_p2)  }
   0xa   : > { %v4146_v14 = vld [vmem:[%s5526_s1 + $0x30] sm:$0xff] (!%p163_p2)   ;;  %v4148_v16 = vld [vmem:[%s5526_s1 + $0x38] sm:$0xff] (!%p163_p2)   ;;  %v4150_v18 = vld [vmem:[%s5526_s1 + $0x40] sm:$0xff] (!%p163_p2)  }
   0xb   : > { %1257 = vmatpush1.bf16.msra.mxu0 (!%p163_p2), %v4135_v3  ;;  %2538 = vmatpush1.bf16.msra.mxu1 (!%p163_p2), %v4136_v4  ;;  %v4151_v20 = vld [vmem:[%s5526_s1 + $0xc8] sm:$0xff] (!%p163_p2)   ;;  %v4153_v23 = vld [vmem:[%s5526_s1 + $0xd0] sm:$0xff] (!%p163_p2)   ;;  %v4155_v25 = vld [vmem:[%s5526_s1 + $0xd8] sm:$0xff] (!%p163_p2)  }
   0xc   : > { %1258 = vmatprep.subr.bf16.mxu0 (!%p163_p2), %v4560_v1  ;;  %2539 = vmatprep.subr.bf16.mxu1 (!%p163_p2), %v4560_v1  ;;  %v4152_v22 = vld [vmem:[%s5526_s1 + $0x48] sm:$0xff] (!%p163_p2)   ;;  %v4154_v24 = vld [vmem:[%s5526_s1 + $0x50] sm:$0xff] (!%p163_p2)   ;;  %v4156_v26 = vld [vmem:[%s5526_s1 + $0x58] sm:$0xff] (!%p163_p2)  }
   0xd   : > { %s5531_s16 = smov (!%p187_p3, %s3790_s16), 1  ;;  %v4157_v27 = vld [vmem:[%s5526_s1 + $0xe0] sm:$0xff]   ;;  %v4159_v29 = vld [vmem:[%s5526_s1 + $0xe8] sm:$0xff]   ;;  %v4161_v31 = vld [vmem:[%s5526_s1 + $0xf0] sm:$0xff]  }
   0xe   : > { %s4121_s25 = sshll.u32 %s5531_s16, 11  ;;  %v4158_v28 = vld [vmem:[%s5526_s1 + $0x60] sm:$0xff]   ;;  %v4160_v30 = vld [vmem:[%s5526_s1 + $0x68] sm:$0xff]   ;;  %v4162_v32 = vld [vmem:[%s5526_s1 + $0x70] sm:$0xff]   ;;  %s3797_s20 = sshll.u32 %s5531_s16, 3 }
   0xf   : > { %1259 = vmatpush1.bf16.msra.mxu0 %v4137_v5  ;;  %2540 = vmatpush1.bf16.msra.mxu1 %v4138_v6  ;;  %s4671_s30 = scalar_lea.vmem %s5525_s0, %s4121_s25  ;;  %v4163_v33 = vld [vmem:[%s5526_s1 + $0xf8] sm:$0xff]   ;;  %s195_s23 = scalar_lea.vmem %s5529_s4, %s3797_s20 }
  0x10   : > { %1260 = vmatprep.subr.bf16.mxu0 %v4560_v1  ;;  %2541 = vmatprep.subr.bf16.mxu1 %v4560_v1  ;;  %v4167_v19 = vld [vmem:[%s4671_s30 + $0x24] ss:$8 sps:$4 sm:$0xff]   ;;  %v4164_v34 = vld [vmem:[%s5526_s1 + $0x78] sm:$0xff]   ;;  %v4165_v35 = vld [vmem:[%s4671_s30 + $0x20] ss:$8 sps:$4 sm:$0xff]  }
  0x11   : > { %v4170_v21 = vld [vmem:[%s4671_s30 + $0x4] ss:$8 sps:$4 sm:$0xff]   ;;  %1286 = vmatprep.mubr.bf16.mxu0 %v4167_v19  ;;  %v4168_v36 = vld [vmem:[%s4671_s30] ss:$8 sps:$4 sm:$0xff]   ;;  %v4171_v37 = vld [vmem:[%s4671_s30 + $0x34] ss:$8 sps:$4 sm:$0xff]  }
  0x12   : > { %2567 = vmatprep.mubr.bf16.mxu1 %v4170_v21  ;;  %v4173_v38 = vld [vmem:[%s4671_s30 + $0x14] ss:$8 sps:$4 sm:$0xff]   ;;  %v4175_v39 = vld [vmem:[%s4671_s30 + $0x30] ss:$8 sps:$4 sm:$0xff]   ;;  %v4177_v41 = vld [vmem:[%s4671_s30 + $0x64] ss:$8 sps:$4 sm:$0xff]  }
  0x13   : > { %1261 = vmatpush1.bf16.msra.mxu0 %v4139_v7  ;;  %2542 = vmatpush1.bf16.msra.mxu1 %v4140_v8  ;;  %v4176_v40 = vld [vmem:[%s4671_s30 + $0x10] ss:$8 sps:$4 sm:$0xff]   ;;  %v4179_v42 = vld [vmem:[%s4671_s30 + $0x44] ss:$8 sps:$4 sm:$0xff]   ;;  %v4181_v43 = vld [vmem:[%s4671_s30 + $0x60] ss:$8 sps:$4 sm:$0xff]  }
  0x14   : > { %1262 = vmatprep.subr.bf16.mxu0 %v4560_v1  ;;  %2543 = vmatprep.subr.bf16.mxu1 %v4560_v1  ;;  %v4182_v44 = vld [vmem:[%s4671_s30 + $0x40] ss:$8 sps:$4 sm:$0xff]   ;;  %v4183_v45 = vld [vmem:[%s4671_s30 + $0x74] ss:$8 sps:$4 sm:$0xff]   ;;  %v4187_v47 = vld [vmem:[%s4671_s30 + $0x70] ss:$8 sps:$4 sm:$0xff]  }
  0x15   : > { %v4185_v46 = vld [vmem:[%s4671_s30 + $0x54] ss:$8 sps:$4 sm:$0xff]   ;;  %v4188_v48 = vld [vmem:[%s4671_s30 + $0x50] ss:$8 sps:$4 sm:$0xff]   ;;  %v4189_v49 = vld [vmem:[%s4671_s30 + $0xa4] ss:$8 sps:$4 sm:$0xff]  }
  0x16   : > { %v4191_v50 = vld [vmem:[%s4671_s30 + $0x84] ss:$8 sps:$4 sm:$0xff]   ;;  %v4193_v51 = vld [vmem:[%s4671_s30 + $0xa0] ss:$8 sps:$4 sm:$0xff]   ;;  %v4195_v53 = vld [vmem:[%s4671_s30 + $0xb4] ss:$8 sps:$4 sm:$0xff]  }
  0x17   : > { %1263 = vmatpush1.bf16.msra.mxu0 %v4141_v9  ;;  %2544 = vmatpush1.bf16.msra.mxu1 %v4142_v10  ;;  %v4194_v52 = vld [vmem:[%s4671_s30 + $0x80] ss:$8 sps:$4 sm:$0xff]   ;;  %v4197_v54 = vld [vmem:[%s4671_s30 + $0x94] ss:$8 sps:$4 sm:$0xff]   ;;  %v4199_v55 = vld [vmem:[%s4671_s30 + $0xb0] ss:$8 sps:$4 sm:$0xff]  }
  0x18   : > { %1264 = vmatprep.subr.bf16.mxu0 %v4560_v1  ;;  %2545 = vmatprep.subr.bf16.mxu1 %v4560_v1  ;;  %v4200_v56 = vld [vmem:[%s4671_s30 + $0x90] ss:$8 sps:$4 sm:$0xff]   ;;  %v4201_v57 = vld [vmem:[%s4671_s30 + $0xe4] ss:$8 sps:$4 sm:$0xff]   ;;  %v4205_v59 = vld [vmem:[%s4671_s30 + $0xe0] ss:$8 sps:$4 sm:$0xff]  }
  0x19   : > { %v4203_v58 = vld [vmem:[%s4671_s30 + $0xc4] ss:$8 sps:$4 sm:$0xff]   ;;  %v4206_v60 = vld [vmem:[%s4671_s30 + $0xc0] ss:$8 sps:$4 sm:$0xff]   ;;  %v4207_v61 = vld [vmem:[%s4671_s30 + $0xf4] ss:$8 sps:$4 sm:$0xff]  }
  0x1a   : > { %v4209_v62 = vld [vmem:[%s4671_s30 + $0xd4] ss:$8 sps:$4 sm:$0xff]   ;;  %v4211_v63 = vld [vmem:[%s4671_s30 + $0xf0] ss:$8 sps:$4 sm:$0xff]   ;;  %v4215_v2 = vld [vmem:[%s4671_s30 + $0x104] ss:$8 sps:$4 sm:$0xff]  }
  0x1b   : > { %1265 = vmatpush1.bf16.msra.mxu0 %v4143_v11  ;;  %2546 = vmatpush1.bf16.msra.mxu1 %v4144_v12  ;;  %v4212_v0 = vld [vmem:[%s4671_s30 + $0xd0] ss:$8 sps:$4 sm:$0xff]   ;;  %v4217_v3 = vld [vmem:[%s4671_s30 + $0x120] ss:$8 sps:$4 sm:$0xff]   ;;  %v4219_v5 = vld [vmem:[%s4671_s30 + $0x134] ss:$8 sps:$4 sm:$0xff]  }
  0x1c   : > { %1266 = vmatprep.subr.bf16.mxu0 %v4560_v1  ;;  %2547 = vmatprep.subr.bf16.mxu1 %v4560_v1  ;;  %v4218_v4 = vld [vmem:[%s4671_s30 + $0x100] ss:$8 sps:$4 sm:$0xff]   ;;  %v4221_v6 = vld [vmem:[%s4671_s30 + $0x114] ss:$8 sps:$4 sm:$0xff]   ;;  %v4223_v7 = vld [vmem:[%s4671_s30 + $0x130] ss:$8 sps:$4 sm:$0xff]  }
  0x1d   : > { %v4224_v8 = vld [vmem:[%s4671_s30 + $0x110] ss:$8 sps:$4 sm:$0xff]   ;;  %v4225_v9 = vld [vmem:[%s4671_s30 + $0x164] ss:$8 sps:$4 sm:$0xff]   ;;  %v4229_v11 = vld [vmem:[%s4671_s30 + $0x160] ss:$8 sps:$4 sm:$0xff]  }
  0x1e   : > { %v4227_v10 = vld [vmem:[%s4671_s30 + $0x144] ss:$8 sps:$4 sm:$0xff]   ;;  %v4230_v12 = vld [vmem:[%s4671_s30 + $0x140] ss:$8 sps:$4 sm:$0xff]   ;;  %v4243_v21 = vld [vmem:[%s4671_s30 + $0x1b4] ss:$8 sps:$4 sm:$0xff]  }
  0x1f   : > { %1267 = vmatpush1.bf16.msra.mxu0 %v4145_v13  ;;  %2548 = vmatpush1.bf16.msra.mxu1 %v4146_v14  ;;  %v4231_v13 = vld [vmem:[%s4671_s30 + $0x174] ss:$8 sps:$4 sm:$0xff]   ;;  %v4241_v19 = vld [vmem:[%s4671_s30 + $0x1a0] ss:$8 sps:$4 sm:$0xff]  }
  0x20   : > { %1268 = vmatprep.subr.bf16.mxu0 %v4560_v1  ;;  %2549 = vmatprep.subr.bf16.mxu1 %v4560_v1  ;;  %v4233_v14 = vld [vmem:[%s4671_s30 + $0x154] ss:$8 sps:$4 sm:$0xff]  }
  0x23   : > { %1269 = vmatpush1.bf16.msra.mxu0 %v4147_v15  ;;  %2550 = vmatpush1.bf16.msra.mxu1 %v4148_v16  ;;  %v4235_v15 = vld [vmem:[%s4671_s30 + $0x170] ss:$8 sps:$4 sm:$0xff]  }
  0x24   : > { %1270 = vmatprep.subr.bf16.mxu0 %v4560_v1  ;;  %2551 = vmatprep.subr.bf16.mxu1 %v4560_v1  ;;  %v4236_v16 = vld [vmem:[%s4671_s30 + $0x150] ss:$8 sps:$4 sm:$0xff]  }
  0x27   : > { %1271 = vmatpush1.bf16.msra.mxu0 %v4149_v17  ;;  %2552 = vmatpush1.bf16.msra.mxu1 %v4150_v18  ;;  %v4237_v17 = vld [vmem:[%s4671_s30 + $0x1a4] ss:$8 sps:$4 sm:$0xff]  }
  0x28   : > { %1272 = vmatprep.subr.bf16.mxu0 %v4560_v1  ;;  %2553 = vmatprep.subr.bf16.mxu1 %v4560_v1  ;;  %v4239_v18 = vld [vmem:[%s4671_s30 + $0x184] ss:$8 sps:$4 sm:$0xff]  }
  0x2b   : > { %1273 = vmatpush1.bf16.msra.mxu0 %v4151_v20  ;;  %2554 = vmatpush1.bf16.msra.mxu1 %v4152_v22  ;;  %v4242_v20 = vld [vmem:[%s4671_s30 + $0x180] ss:$8 sps:$4 sm:$0xff]   ;;  %v4245_v22 = vld [vmem:[%s4671_s30 + $0x194] ss:$8 sps:$4 sm:$0xff]  }
  0x2c   : > { %1274 = vmatprep.subr.bf16.mxu0 %v4560_v1  ;;  %2555 = vmatprep.subr.bf16.mxu1 %v4560_v1 }
  0x2f   : > { %1275 = vmatpush1.bf16.msra.mxu0 %v4153_v23  ;;  %2556 = vmatpush1.bf16.msra.mxu1 %v4154_v24  ;;  %v4247_v23 = vld [vmem:[%s4671_s30 + $0x1b0] ss:$8 sps:$4 sm:$0xff]  }
  0x30   : > { %1276 = vmatprep.subr.bf16.mxu0 %v4560_v1  ;;  %2557 = vmatprep.subr.bf16.mxu1 %v4560_v1  ;;  %v4248_v24 = vld [vmem:[%s4671_s30 + $0x190] ss:$8 sps:$4 sm:$0xff]  }
  0x33   : > { %1277 = vmatpush1.bf16.msra.mxu0 %v4155_v25  ;;  %2558 = vmatpush1.bf16.msra.mxu1 %v4156_v26  ;;  %v4249_v25 = vld [vmem:[%s4671_s30 + $0x1e4] ss:$8 sps:$4 sm:$0xff]  }
  0x34   : > { %1278 = vmatprep.subr.bf16.mxu0 %v4560_v1  ;;  %2559 = vmatprep.subr.bf16.mxu1 %v4560_v1  ;;  %v4251_v26 = vld [vmem:[%s4671_s30 + $0x1c4] ss:$8 sps:$4 sm:$0xff]  }
  0x37   : > { %1279 = vmatpush1.bf16.msra.mxu0 %v4157_v27  ;;  %2560 = vmatpush1.bf16.msra.mxu1 %v4158_v28  ;;  %v4253_v27 = vld [vmem:[%s4671_s30 + $0x1e0] ss:$8 sps:$4 sm:$0xff]  }
  0x38   : > { %1280 = vmatprep.subr.bf16.mxu0 %v4560_v1  ;;  %2561 = vmatprep.subr.bf16.mxu1 %v4560_v1  ;;  %v4254_v28 = vld [vmem:[%s4671_s30 + $0x1c0] ss:$8 sps:$4 sm:$0xff]  }
  0x3b   : > { %1281 = vmatpush1.bf16.msra.mxu0 %v4159_v29  ;;  %2562 = vmatpush1.bf16.msra.mxu1 %v4160_v30  ;;  %v4255_v29 = vld [vmem:[%s4671_s30 + $0x1f4] ss:$8 sps:$4 sm:$0xff]  }
  0x3c   : > { %1282 = vmatprep.subr.bf16.mxu0 %v4560_v1  ;;  %2563 = vmatprep.subr.bf16.mxu1 %v4560_v1  ;;  %v4257_v30 = vld [vmem:[%s4671_s30 + $0x1d4] ss:$8 sps:$4 sm:$0xff]  }
  0x3f   : > { %1283 = vmatpush1.bf16.msra.mxu0 %v4161_v31  ;;  %2564 = vmatpush1.bf16.msra.mxu1 %v4162_v32  ;;  %v4259_v31 = vld [vmem:[%s4671_s30 + $0x1f0] ss:$8 sps:$4 sm:$0xff]  }
  0x40   : > { %1284 = vmatprep.subr.bf16.mxu0 %v4560_v1  ;;  %2565 = vmatprep.subr.bf16.mxu1 %v4560_v1  ;;  %v4213_v1 = vld [vmem:[%s4671_s30 + $0x124] ss:$8 sps:$4 sm:$0xff]   ;;  %v4260_v32 = vld [vmem:[%s4671_s30 + $0x1d0] ss:$8 sps:$4 sm:$0xff]  }
  0x43   : > { %1285 = vmatpush1.bf16.msra.mxu0 %v4163_v33  ;;  %2566 = vmatpush1.bf16.msra.mxu1 %v4164_v34  ;;  %v4261_v33 = vld [vmem:[%s4671_s30 + $0x224] ss:$8 sps:$4 sm:$0xff]  }
  0x44   : > { %v4263_v34 = vld [vmem:[%s4671_s30 + $0x204] ss:$8 sps:$4 sm:$0xff]  }
  0x46   : > { %1287 = vmatmul.mubr.bf16.vlgmr.msra.gmra.mrb[0].mxu0 %v4165_v35  ;;  %2568 = vmatmul.mubr.bf16.vlgmr.msra.gmra.mrb[0].mxu1 %v4168_v36  ;;  %v4265_v35 = vld [vmem:[%s4671_s30 + $0x220] ss:$8 sps:$4 sm:$0xff]  }
  0x47   : > { %1294 = vmatprep.mubr.bf16.mxu0 %v4171_v37  ;;  %2575 = vmatprep.mubr.bf16.mxu1 %v4173_v38  ;;  %v4266_v36 = vld [vmem:[%s4671_s30 + $0x200] ss:$8 sps:$4 sm:$0xff]   ;;  %v4267_v37 = vld [vmem:[%s4671_s30 + $0x234] ss:$8 sps:$4 sm:$0xff]  }
  0x48   : > { %v4269_v38 = vld [vmem:[%s4671_s30 + $0x214] ss:$8 sps:$4 sm:$0xff]  }
  0x4e   : > { %1295 = vmatmul.mubr.bf16.gmra.mrb[4].mxu0 %v4175_v39  ;;  %2576 = vmatmul.mubr.bf16.gmra.mrb[4].mxu1 %v4176_v40  ;;  %v4271_v39 = vld [vmem:[%s4671_s30 + $0x230] ss:$8 sps:$4 sm:$0xff]  }
  0x4f   : > { %1302 = vmatprep.mubr.bf16.mxu0 %v4177_v41  ;;  %2583 = vmatprep.mubr.bf16.mxu1 %v4179_v42  ;;  %v4272_v40 = vld [vmem:[%s4671_s30 + $0x210] ss:$8 sps:$4 sm:$0xff]   ;;  %v4273_v41 = vld [vmem:[%s4671_s30 + $0x264] ss:$8 sps:$4 sm:$0xff]  }
  0x50   : > { %v4275_v42 = vld [vmem:[%s4671_s30 + $0x244] ss:$8 sps:$4 sm:$0xff]  }
  0x56   : > { %1303 = vmatmul.mubr.bf16.gmra.mrb[8].mxu0 %v4181_v43  ;;  %2584 = vmatmul.mubr.bf16.gmra.mrb[8].mxu1 %v4182_v44  ;;  %v4277_v43 = vld [vmem:[%s4671_s30 + $0x260] ss:$8 sps:$4 sm:$0xff]  }
  0x57   : > { %1310 = vmatprep.mubr.bf16.mxu0 %v4183_v45  ;;  %2591 = vmatprep.mubr.bf16.mxu1 %v4185_v46  ;;  %v4278_v44 = vld [vmem:[%s4671_s30 + $0x240] ss:$8 sps:$4 sm:$0xff]   ;;  %v4279_v45 = vld [vmem:[%s4671_s30 + $0x274] ss:$8 sps:$4 sm:$0xff]  }
  0x58   : > { %v4281_v46 = vld [vmem:[%s4671_s30 + $0x254] ss:$8 sps:$4 sm:$0xff]  }
  0x5e   : > { %1311 = vmatmul.mubr.bf16.gmra.mrb[12].mxu0 %v4187_v47  ;;  %2592 = vmatmul.mubr.bf16.gmra.mrb[12].mxu1 %v4188_v48  ;;  %v4283_v47 = vld [vmem:[%s4671_s30 + $0x270] ss:$8 sps:$4 sm:$0xff]  }
  0x5f   : > { %1318 = vmatprep.mubr.bf16.mxu0 %v4189_v49  ;;  %2599 = vmatprep.mubr.bf16.mxu1 %v4191_v50  ;;  %v4284_v48 = vld [vmem:[%s4671_s30 + $0x250] ss:$8 sps:$4 sm:$0xff]   ;;  %v4285_v49 = vld [vmem:[%s4671_s30 + $0x2a4] ss:$8 sps:$4 sm:$0xff]  }
  0x60   : > { %v4287_v50 = vld [vmem:[%s4671_s30 + $0x284] ss:$8 sps:$4 sm:$0xff]  }
  0x66   : > { %1319 = vmatmul.mubr.bf16.gmra.mrb[16].mxu0 %v4193_v51  ;;  %2600 = vmatmul.mubr.bf16.gmra.mrb[16].mxu1 %v4194_v52  ;;  %v4289_v51 = vld [vmem:[%s4671_s30 + $0x2a0] ss:$8 sps:$4 sm:$0xff]  }
  0x67   : > { %1326 = vmatprep.mubr.bf16.mxu0 %v4195_v53  ;;  %2607 = vmatprep.mubr.bf16.mxu1 %v4197_v54  ;;  %v4290_v52 = vld [vmem:[%s4671_s30 + $0x280] ss:$8 sps:$4 sm:$0xff]   ;;  %v4291_v53 = vld [vmem:[%s4671_s30 + $0x2b4] ss:$8 sps:$4 sm:$0xff]  }
  0x68   : > { %v4293_v54 = vld [vmem:[%s4671_s30 + $0x294] ss:$8 sps:$4 sm:$0xff]  }
  0x6e   : > { %1327 = vmatmul.mubr.bf16.gmra.mrb[20].mxu0 %v4199_v55  ;;  %2608 = vmatmul.mubr.bf16.gmra.mrb[20].mxu1 %v4200_v56  ;;  %v4295_v55 = vld [vmem:[%s4671_s30 + $0x2b0] ss:$8 sps:$4 sm:$0xff]  }
  0x6f   : > { %1334 = vmatprep.mubr.bf16.mxu0 %v4201_v57  ;;  %2615 = vmatprep.mubr.bf16.mxu1 %v4203_v58  ;;  %v4296_v56 = vld [vmem:[%s4671_s30 + $0x290] ss:$8 sps:$4 sm:$0xff]   ;;  %v4297_v57 = vld [vmem:[%s4671_s30 + $0x2e4] ss:$8 sps:$4 sm:$0xff]  }
  0x70   : > { %v4299_v58 = vld [vmem:[%s4671_s30 + $0x2c4] ss:$8 sps:$4 sm:$0xff]  }
  0x76   : > { %1335 = vmatmul.mubr.bf16.gmra.mrb[24].mxu0 %v4205_v59  ;;  %2616 = vmatmul.mubr.bf16.gmra.mrb[24].mxu1 %v4206_v60  ;;  %v4301_v59 = vld [vmem:[%s4671_s30 + $0x2e0] ss:$8 sps:$4 sm:$0xff]  }
  0x77   : > { %1342 = vmatprep.mubr.bf16.mxu0 %v4207_v61  ;;  %2623 = vmatprep.mubr.bf16.mxu1 %v4209_v62  ;;  %v4302_v60 = vld [vmem:[%s4671_s30 + $0x2c0] ss:$8 sps:$4 sm:$0xff]   ;;  %v4303_v61 = vld [vmem:[%s4671_s30 + $0x2f4] ss:$8 sps:$4 sm:$0xff]  }
  0x78   : > { %v4305_v62 = vld [vmem:[%s4671_s30 + $0x2d4] ss:$8 sps:$4 sm:$0xff]  }
  0x7e   : > { %1343 = vmatmul.mubr.bf16.gmra.mrb[28].mxu0 %v4211_v63  ;;  %2624 = vmatmul.mubr.bf16.gmra.mrb[28].mxu1 %v4212_v0  ;;  %v4307_v63 = vld [vmem:[%s4671_s30 + $0x2f0] ss:$8 sps:$4 sm:$0xff]  }
  0x7f   : > { %1350 = vmatprep.mubr.bf16.mxu0 %v4213_v1  ;;  %2631 = vmatprep.mubr.bf16.mxu1 %v4215_v2  ;;  %v4308_v0 = vld [vmem:[%s4671_s30 + $0x2d0] ss:$8 sps:$4 sm:$0xff]   ;;  %v4309_v1 = vld [vmem:[%s4671_s30 + $0x324] ss:$8 sps:$4 sm:$0xff]  }
  0x80   : > { %v4311_v2 = vld [vmem:[%s4671_s30 + $0x304] ss:$8 sps:$4 sm:$0xff]  }
  0x86   : > { %1351 = vmatmul.mubr.bf16.gmra.mrb[32].mxu0 %v4217_v3  ;;  %2632 = vmatmul.mubr.bf16.gmra.mrb[32].mxu1 %v4218_v4  ;;  %v4313_v3 = vld [vmem:[%s4671_s30 + $0x320] ss:$8 sps:$4 sm:$0xff]  }
  0x87   : > { %1358 = vmatprep.mubr.bf16.mxu0 %v4219_v5  ;;  %2639 = vmatprep.mubr.bf16.mxu1 %v4221_v6  ;;  %v4314_v4 = vld [vmem:[%s4671_s30 + $0x300] ss:$8 sps:$4 sm:$0xff]   ;;  %v4315_v5 = vld [vmem:[%s4671_s30 + $0x334] ss:$8 sps:$4 sm:$0xff]  }
  0x88   : > { %v4317_v6 = vld [vmem:[%s4671_s30 + $0x314] ss:$8 sps:$4 sm:$0xff]  }
  0x8e   : > { %1359 = vmatmul.mubr.bf16.gmra.mrb[36].mxu0 %v4223_v7  ;;  %2640 = vmatmul.mubr.bf16.gmra.mrb[36].mxu1 %v4224_v8  ;;  %v4319_v7 = vld [vmem:[%s4671_s30 + $0x330] ss:$8 sps:$4 sm:$0xff]  }
  0x8f   : > { %1366 = vmatprep.mubr.bf16.mxu0 %v4225_v9  ;;  %2647 = vmatprep.mubr.bf16.mxu1 %v4227_v10  ;;  %v4320_v8 = vld [vmem:[%s4671_s30 + $0x310] ss:$8 sps:$4 sm:$0xff]   ;;  %v4321_v9 = vld [vmem:[%s4671_s30 + $0x364] ss:$8 sps:$4 sm:$0xff]  }
  0x90   : > { %v4323_v10 = vld [vmem:[%s4671_s30 + $0x344] ss:$8 sps:$4 sm:$0xff]  }
  0x96   : > { %1367 = vmatmul.mubr.bf16.gmra.mrb[40].mxu0 %v4229_v11  ;;  %2648 = vmatmul.mubr.bf16.gmra.mrb[40].mxu1 %v4230_v12  ;;  %v4325_v11 = vld [vmem:[%s4671_s30 + $0x360] ss:$8 sps:$4 sm:$0xff]  }
  0x97   : > { %1374 = vmatprep.mubr.bf16.mxu0 %v4231_v13  ;;  %2655 = vmatprep.mubr.bf16.mxu1 %v4233_v14  ;;  %v4326_v12 = vld [vmem:[%s4671_s30 + $0x340] ss:$8 sps:$4 sm:$0xff]   ;;  %v4327_v13 = vld [vmem:[%s4671_s30 + $0x374] ss:$8 sps:$4 sm:$0xff]  }
  0x98   : > { %v4329_v14 = vld [vmem:[%s4671_s30 + $0x354] ss:$8 sps:$4 sm:$0xff]  }
  0x9e   : > { %1375 = vmatmul.mubr.bf16.gmra.mrb[44].mxu0 %v4235_v15  ;;  %2656 = vmatmul.mubr.bf16.gmra.mrb[44].mxu1 %v4236_v16 }
  0x9f   : > { %1382 = vmatprep.mubr.bf16.mxu0 %v4237_v17  ;;  %2663 = vmatprep.mubr.bf16.mxu1 %v4239_v18  ;;  %v4847_v17 = vld [vmem:[%s5527_s2] ss:$0 sm:$0xff] }
  0xa6   : > { %1383 = vmatmul.mubr.bf16.gmra.mrb[48].mxu0 %v4241_v19  ;;  %2664 = vmatmul.mubr.bf16.gmra.mrb[48].mxu1 %v4242_v20  ;;  %v4331_v19 = vld [vmem:[%s4671_s30 + $0x370] ss:$8 sps:$4 sm:$0xff]  }
  0xa7   : > { %1390 = vmatprep.mubr.bf16.mxu0 %v4243_v21  ;;  %2671 = vmatprep.mubr.bf16.mxu1 %v4245_v22 }
  0xae   : > { %1391 = vmatmul.mubr.bf16.gmra.mrb[52].mxu0 %v4247_v23  ;;  %2672 = vmatmul.mubr.bf16.gmra.mrb[52].mxu1 %v4248_v24  ;;  %v4332_v23 = vld [vmem:[%s4671_s30 + $0x350] ss:$8 sps:$4 sm:$0xff]   ;;  %v4333_v24 = vld [vmem:[%s4671_s30 + $0x3a4] ss:$8 sps:$4 sm:$0xff]  }
  0xaf   : > { %1398 = vmatprep.mubr.bf16.mxu0 %v4249_v25  ;;  %2679 = vmatprep.mubr.bf16.mxu1 %v4251_v26 }
  0xb6   : > { %1399 = vmatmul.mubr.bf16.gmra.mrb[56].mxu0 %v4253_v27  ;;  %2680 = vmatmul.mubr.bf16.gmra.mrb[56].mxu1 %v4254_v28  ;;  %v4335_v27 = vld [vmem:[%s4671_s30 + $0x384] ss:$8 sps:$4 sm:$0xff]  }
  0xb7   : > { %1406 = vmatprep.mubr.bf16.mxu0 %v4255_v29  ;;  %2687 = vmatprep.mubr.bf16.mxu1 %v4257_v30 }
  0xbe   : > { %1407 = vmatmul.mubr.bf16.gmra.mrb[60].mxu0 %v4259_v31  ;;  %2688 = vmatmul.mubr.bf16.gmra.mrb[60].mxu1 %v4260_v32 }
  0xbf   : > { %1414 = vmatprep.mubr.bf16.mxu0 %v4261_v33  ;;  %2695 = vmatprep.mubr.bf16.mxu1 %v4263_v34  ;;  %v3343_v33 = vld [vmem:[%s5528_s3] sm:$0xff]  ;;  %v3344_v34 = vld [vmem:[%s5528_s3 + $0x8] sm:$0xff] }
  0xc6   : > { %1415 = vmatmul.mubr.bf16.gmra.mrb[64].mxu0 %v4265_v35  ;;  %2696 = vmatmul.mubr.bf16.gmra.mrb[64].mxu1 %v4266_v36 }
  0xc7   : > { %1422 = vmatprep.mubr.bf16.mxu0 %v4267_v37  ;;  %2703 = vmatprep.mubr.bf16.mxu1 %v4269_v38 }
  0xce   : > { %1423 = vmatmul.mubr.bf16.gmra.mrb[68].mxu0 %v4271_v39  ;;  %2704 = vmatmul.mubr.bf16.gmra.mrb[68].mxu1 %v4272_v40  ;;  %v4337_v39 = vld [vmem:[%s4671_s30 + $0x3a0] ss:$8 sps:$4 sm:$0xff]  }
  0xcf   : > { %1430 = vmatprep.mubr.bf16.mxu0 %v4273_v41  ;;  %2711 = vmatprep.mubr.bf16.mxu1 %v4275_v42 }
  0xd6   : > { %1431 = vmatmul.mubr.bf16.gmra.mrb[72].mxu0 %v4277_v43  ;;  %2712 = vmatmul.mubr.bf16.gmra.mrb[72].mxu1 %v4278_v44 }
  0xd7   : > { %1438 = vmatprep.mubr.bf16.mxu0 %v4279_v45  ;;  %2719 = vmatprep.mubr.bf16.mxu1 %v4281_v46  ;;  %v4338_v45 = vld [vmem:[%s4671_s30 + $0x380] ss:$8 sps:$4 sm:$0xff]   ;;  %v4339_v46 = vld [vmem:[%s4671_s30 + $0x3b4] ss:$8 sps:$4 sm:$0xff]  }
  0xde   : > { %1439 = vmatmul.mubr.bf16.gmra.mrb[76].mxu0 %v4283_v47  ;;  %2720 = vmatmul.mubr.bf16.gmra.mrb[76].mxu1 %v4284_v48 }
  0xdf   : > { %1446 = vmatprep.mubr.bf16.mxu0 %v4285_v49  ;;  %2727 = vmatprep.mubr.bf16.mxu1 %v4287_v50  ;;  %v4341_v49 = vld [vmem:[%s4671_s30 + $0x394] ss:$8 sps:$4 sm:$0xff]  }
  0xe6   : > { %1447 = vmatmul.mubr.bf16.gmra.mrb[80].mxu0 %v4289_v51  ;;  %2728 = vmatmul.mubr.bf16.gmra.mrb[80].mxu1 %v4290_v52 }
  0xe7   : > { %1454 = vmatprep.mubr.bf16.mxu0 %v4291_v53  ;;  %2735 = vmatprep.mubr.bf16.mxu1 %v4293_v54  ;;  %v3345_v54 = vld [vmem:[%s5528_s3 + $0x10] sm:$0xff] }
  0xee   : > { %1455 = vmatmul.mubr.bf16.gmra.mrb[84].mxu0 %v4295_v55  ;;  %2736 = vmatmul.mubr.bf16.gmra.mrb[84].mxu1 %v4296_v56 }
  0xef   : > { %1462 = vmatprep.mubr.bf16.mxu0 %v4297_v57  ;;  %2743 = vmatprep.mubr.bf16.mxu1 %v4299_v58  ;;  %v3346_v57 = vld [vmem:[%s5528_s3 + $0x18] sm:$0xff] }
  0xf6   : > { %1463 = vmatmul.mubr.bf16.gmra.mrb[88].mxu0 %v4301_v59  ;;  %2744 = vmatmul.mubr.bf16.gmra.mrb[88].mxu1 %v4302_v60 }
  0xf7   : > { %1470 = vmatprep.mubr.bf16.mxu0 %v4303_v61  ;;  %2751 = vmatprep.mubr.bf16.mxu1 %v4305_v62 }
  0xfe   : > { %1471 = vmatmul.mubr.bf16.gmra.mrb[92].mxu0 %v4307_v63  ;;  %2752 = vmatmul.mubr.bf16.gmra.mrb[92].mxu1 %v4308_v0  ;;  %v4343_v63 = vld [vmem:[%s4671_s30 + $0x3b0] ss:$8 sps:$4 sm:$0xff]  }
  0xff   : > { %1478 = vmatprep.mubr.bf16.mxu0 %v4309_v1  ;;  %2759 = vmatprep.mubr.bf16.mxu1 %v4311_v2 }
 0x106   : > { %1479 = vmatmul.mubr.bf16.gmra.mrb[96].mxu0 %v4313_v3  ;;  %2760 = vmatmul.mubr.bf16.gmra.mrb[96].mxu1 %v4314_v4 }
 0x107   : > { %1486 = vmatprep.mubr.bf16.mxu0 %v4315_v5  ;;  %2767 = vmatprep.mubr.bf16.mxu1 %v4317_v6  ;;  %v4344_v5 = vld [vmem:[%s4671_s30 + $0x390] ss:$8 sps:$4 sm:$0xff]   ;;  %v4345_v6 = vld [vmem:[%s4671_s30 + $0x3e4] ss:$8 sps:$4 sm:$0xff]  }
 0x10e   : > { %1487 = vmatmul.mubr.bf16.gmra.mrb[100].mxu0 %v4319_v7  ;;  %2768 = vmatmul.mubr.bf16.gmra.mrb[100].mxu1 %v4320_v8 }
 0x10f   : > { %1494 = vmatprep.mubr.bf16.mxu0 %v4321_v9  ;;  %2775 = vmatprep.mubr.bf16.mxu1 %v4323_v10  ;;  %v4347_v9 = vld [vmem:[%s4671_s30 + $0x3c4] ss:$8 sps:$4 sm:$0xff]  }
 0x116   : > { %1495 = vmatmul.mubr.bf16.gmra.mrb[104].mxu0 %v4325_v11  ;;  %2776 = vmatmul.mubr.bf16.gmra.mrb[104].mxu1 %v4326_v12 }
 0x117   : > { %1502 = vmatprep.mubr.bf16.mxu0 %v4327_v13  ;;  %2783 = vmatprep.mubr.bf16.mxu1 %v4329_v14  ;;  %v3347_v14 = vld [vmem:[%s5528_s3 + $0x20] sm:$0xff] }
 0x119   : > { %v1288_v15 = vpop.f32.mrb[0].mxu0  ;;  %v2569_v16 = vpop.f32.mrb[0].mxu1 }
 0x11a   : > { %v1290_v18 = vpop.f32.mrb[1].mxu0  ;;  %v2570_v20 = vadd.f32 %v2569_v16, %v1288_v15  ;;  %v2571_v21 = vpop.f32.mrb[1].mxu1 }
 0x11b   : > { %v1291_v22 = vpop.f32.mrb[2].mxu0  ;;  %v2572_v25 = vpop.f32.mrb[2].mxu1  ;;  %v3348_v18 = vld [vmem:[%s5528_s3 + $0x28] sm:$0xff] }
 0x11c   : > { %v1293_v26 = vpop.f32.mrb[3].mxu0  ;;  %v3087_v28 = vadd.f32 %v4847_v17, %v2570_v20  ;;  %v2573_v29 = vadd.f32 %v2572_v25, %v1291_v22  ;;  %v2574_v30 = vpop.f32.mrb[3].mxu1 }
 0x11d   : > { %v4350_v30 = vld [vmem:[%s4671_s30 + $0x3c0] ss:$8 sps:$4 sm:$0xff]  }
 0x11e   : > { %1503 = vmatmul.mubr.bf16.gmra.mrb[108].mxu0 %v4331_v19  ;;  %v3215_v31 = vmax.f32 %v3087_v28, 0.0  ;;  %v3088_v32 = vadd.f32 %v4847_v17, %v2573_v29  ;;  %2784 = vmatmul.mubr.bf16.gmra.mrb[108].mxu1 %v4332_v23 }
 0x11f   : > { %1510 = vmatprep.mubr.bf16.mxu0 %v4333_v24  ;;  %2791 = vmatprep.mubr.bf16.mxu1 %v4335_v27  ;;  %v4349_v24 = vld [vmem:[%s4671_s30 + $0x3e0] ss:$8 sps:$4 sm:$0xff]  }
 0x120   : > { %v3216_v35 = vmax.f32 %v3088_v32, 0.0  ;;  %v3471_v40 = vmul.f32 %v3343_v33, %v3215_v31  ;;  %v4351_v31 = vld [vmem:[%s4671_s30 + $0x3f4] ss:$8 sps:$4 sm:$0xff]  }
 0x121   : > { %v1296_v36 = vpop.f32.mrb[4].mxu0  ;;  %v2577_v37 = vpop.f32.mrb[4].mxu1 }
 0x122   : > { %v1298_v38 = vpop.f32.mrb[5].mxu0  ;;  %v3472_v41 = vmul.f32 %v3344_v34, %v3216_v35  ;;  %v2578_v42 = vadd.f32 %v2577_v37, %v1296_v36  ;;  %v2579_v43 = vpop.f32.mrb[5].mxu1  ;;  %v4353_v34 = vld [vmem:[%s4671_s30 + $0x3d4] ss:$8 sps:$4 sm:$0xff]  }
 0x123   : > { %v1299_v44 = vpop.f32.mrb[6].mxu0  ;;  %v2580_v47 = vpop.f32.mrb[6].mxu1 }
 0x124   : > { %v1301_v48 = vpop.f32.mrb[7].mxu0  ;;  %v3599_v50 = vadd.f32 %v3472_v41, %v3471_v40  ;;  %v3089_v51 = vadd.f32 %v4847_v17, %v2578_v42  ;;  %v2581_v52 = vadd.f32 %v2580_v47, %v1299_v44  ;;  %v2582_v53 = vpop.f32.mrb[7].mxu1  ;;  %v3350_v42 = vld [vmem:[%s5528_s3 + $0x38] sm:$0xff] }
 0x125   : > { %v4355_v48 = vld [vmem:[%s4671_s30 + $0x3f0] ss:$8 sps:$4 sm:$0xff]  }
 0x126   : > { %1511 = vmatmul.mubr.bf16.gmra.mrb[112].mxu0 %v4337_v39  ;;  %v3217_v55 = vmax.f32 %v3089_v51, 0.0  ;;  %v3090_v56 = vadd.f32 %v4847_v17, %v2581_v52  ;;  %2792 = vmatmul.mubr.bf16.gmra.mrb[112].mxu1 %v4338_v45  ;;  %v3349_v39 = vld [vmem:[%s5528_s3 + $0x30] sm:$0xff] }
 0x127   : > { %1518 = vmatprep.mubr.bf16.mxu0 %v4339_v46  ;;  %2799 = vmatprep.mubr.bf16.mxu1 %v4341_v49 }
 0x128   : > { %v3473_v58 = vmul.f32 %v3345_v54, %v3217_v55  ;;  %v3218_v59 = vmax.f32 %v3090_v56, 0.0  ;;  %v4356_v54 = vld [vmem:[%s4671_s30 + $0x3d0] ss:$8 sps:$4 sm:$0xff]   ;;  %v4357_v55 = vld [vmem:[%s4671_s30 + $0x424] ss:$8 sps:$4 sm:$0xff]  }
 0x129   : > { %v1304_v60 = vpop.f32.mrb[8].mxu0  ;;  %v2585_v61 = vpop.f32.mrb[8].mxu1 }
 0x12a   : > { %v1306_v62 = vpop.f32.mrb[9].mxu0  ;;  %v3600_v0 = vadd.f32 %v3599_v50, %v3473_v58  ;;  %v3474_v1 = vmul.f32 %v3346_v57, %v3218_v59  ;;  %v2586_v2 = vadd.f32 %v2585_v61, %v1304_v60  ;;  %v2587_v3 = vpop.f32.mrb[9].mxu1  ;;  %v4359_v58 = vld [vmem:[%s4671_s30 + $0x404] ss:$8 sps:$4 sm:$0xff]  }
 0x12b   : > { %v1307_v4 = vpop.f32.mrb[10].mxu0  ;;  %v2588_v7 = vpop.f32.mrb[10].mxu1 }
 0x12c   : > { %v1309_v8 = vpop.f32.mrb[11].mxu0  ;;  %v3601_v10 = vadd.f32 %v3600_v0, %v3474_v1  ;;  %v3091_v11 = vadd.f32 %v4847_v17, %v2586_v2  ;;  %v2589_v12 = vadd.f32 %v2588_v7, %v1307_v4  ;;  %v2590_v13 = vpop.f32.mrb[11].mxu1  ;;  %v3352_v2 = vld [vmem:[%s5528_s3 + $0x48] sm:$0xff] }
 0x12d   : > { %v4361_v8 = vld [vmem:[%s4671_s30 + $0x420] ss:$8 sps:$4 sm:$0xff]  }
 0x12e   : > { %1519 = vmatmul.mubr.bf16.gmra.mrb[116].mxu0 %v4343_v63  ;;  %v3219_v15 = vmax.f32 %v3091_v11, 0.0  ;;  %v3092_v16 = vadd.f32 %v4847_v17, %v2589_v12  ;;  %2800 = vmatmul.mubr.bf16.gmra.mrb[116].mxu1 %v4344_v5  ;;  %v3351_v63 = vld [vmem:[%s5528_s3 + $0x40] sm:$0xff] }
 0x12f   : > { %1526 = vmatprep.mubr.bf16.mxu0 %v4345_v6  ;;  %2807 = vmatprep.mubr.bf16.mxu1 %v4347_v9 }
 0x130   : > { %v3475_v19 = vmul.f32 %v3347_v14, %v3219_v15  ;;  %v3220_v20 = vmax.f32 %v3092_v16, 0.0  ;;  %v4362_v14 = vld [vmem:[%s4671_s30 + $0x400] ss:$8 sps:$4 sm:$0xff]   ;;  %v4363_v15 = vld [vmem:[%s4671_s30 + $0x434] ss:$8 sps:$4 sm:$0xff]  }
 0x131   : > { %v1312_v21 = vpop.f32.mrb[12].mxu0  ;;  %v2593_v22 = vpop.f32.mrb[12].mxu1 }
 0x132   : > { %v1314_v23 = vpop.f32.mrb[13].mxu0  ;;  %v3602_v25 = vadd.f32 %v3601_v10, %v3475_v19  ;;  %v3476_v26 = vmul.f32 %v3348_v18, %v3220_v20  ;;  %v2594_v27 = vadd.f32 %v2593_v22, %v1312_v21  ;;  %v2595_v28 = vpop.f32.mrb[13].mxu1  ;;  %v4365_v19 = vld [vmem:[%s4671_s30 + $0x414] ss:$8 sps:$4 sm:$0xff]  }
 0x133   : > { %v1315_v29 = vpop.f32.mrb[14].mxu0  ;;  %v2596_v32 = vpop.f32.mrb[14].mxu1 }
 0x134   : > { %v1317_v33 = vpop.f32.mrb[15].mxu0  ;;  %v3603_v35 = vadd.f32 %v3602_v25, %v3476_v26  ;;  %v3093_v36 = vadd.f32 %v4847_v17, %v2594_v27  ;;  %v2597_v37 = vadd.f32 %v2596_v32, %v1315_v29  ;;  %v2598_v38 = vpop.f32.mrb[15].mxu1  ;;  %v3354_v27 = vld [vmem:[%s5528_s3 + $0x58] sm:$0xff] }
 0x135   : > { %v4367_v33 = vld [vmem:[%s4671_s30 + $0x430] ss:$8 sps:$4 sm:$0xff]  }
 0x136   : > { %1527 = vmatmul.mubr.bf16.gmra.mrb[120].mxu0 %v4349_v24  ;;  %v3221_v40 = vmax.f32 %v3093_v36, 0.0  ;;  %v3094_v41 = vadd.f32 %v4847_v17, %v2597_v37  ;;  %2808 = vmatmul.mubr.bf16.gmra.mrb[120].mxu1 %v4350_v30  ;;  %v3353_v24 = vld [vmem:[%s5528_s3 + $0x50] sm:$0xff] }
 0x137   : > { %1534 = vmatprep.mubr.bf16.mxu0 %v4351_v31  ;;  %2815 = vmatprep.mubr.bf16.mxu1 %v4353_v34 }
 0x138   : > { %v3477_v43 = vmul.f32 %v3349_v39, %v3221_v40  ;;  %v3222_v44 = vmax.f32 %v3094_v41, 0.0  ;;  %v4368_v39 = vld [vmem:[%s4671_s30 + $0x410] ss:$8 sps:$4 sm:$0xff]   ;;  %v4369_v40 = vld [vmem:[%s4671_s30 + $0x464] ss:$8 sps:$4 sm:$0xff]  }
 0x139   : > { %v1320_v45 = vpop.f32.mrb[16].mxu0  ;;  %v2601_v46 = vpop.f32.mrb[16].mxu1 }
 0x13a   : > { %v1322_v47 = vpop.f32.mrb[17].mxu0  ;;  %v3604_v49 = vadd.f32 %v3603_v35, %v3477_v43  ;;  %v3478_v50 = vmul.f32 %v3350_v42, %v3222_v44  ;;  %v2602_v51 = vadd.f32 %v2601_v46, %v1320_v45  ;;  %v2603_v52 = vpop.f32.mrb[17].mxu1  ;;  %v4371_v43 = vld [vmem:[%s4671_s30 + $0x444] ss:$8 sps:$4 sm:$0xff]  }
 0x13b   : > { %v1323_v53 = vpop.f32.mrb[18].mxu0  ;;  %v2604_v56 = vpop.f32.mrb[18].mxu1 }
 0x13c   : > { %v1325_v57 = vpop.f32.mrb[19].mxu0  ;;  %v3605_v59 = vadd.f32 %v3604_v49, %v3478_v50  ;;  %v3095_v60 = vadd.f32 %v4847_v17, %v2602_v51  ;;  %v2605_v61 = vadd.f32 %v2604_v56, %v1323_v53  ;;  %v2606_v62 = vpop.f32.mrb[19].mxu1  ;;  %v3356_v51 = vld [vmem:[%s5528_s3 + $0x68] sm:$0xff] }
 0x13d   : > { %v4373_v57 = vld [vmem:[%s4671_s30 + $0x460] ss:$8 sps:$4 sm:$0xff]  }
 0x13e   : > { %1535 = vmatmul.mubr.bf16.gmra.mrb[124].mxu0 %v4355_v48  ;;  %v3223_v0 = vmax.f32 %v3095_v60, 0.0  ;;  %v3096_v1 = vadd.f32 %v4847_v17, %v2605_v61  ;;  %2816 = vmatmul.mubr.bf16.gmra.mrb[124].mxu1 %v4356_v54  ;;  %v3355_v48 = vld [vmem:[%s5528_s3 + $0x60] sm:$0xff] }
 0x13f   : > { %1542 = vmatprep.mubr.bf16.mxu0 %v4357_v55  ;;  %2823 = vmatprep.mubr.bf16.mxu1 %v4359_v58 }
 0x140   : > { %v3479_v3 = vmul.f32 %v3351_v63, %v3223_v0  ;;  %v3224_v4 = vmax.f32 %v3096_v1, 0.0  ;;  %v4374_v63 = vld [vmem:[%s4671_s30 + $0x440] ss:$8 sps:$4 sm:$0xff]   ;;  %v4375_v0 = vld [vmem:[%s4671_s30 + $0x474] ss:$8 sps:$4 sm:$0xff]  }
 0x141   : > { %v1328_v5 = vpop.f32.mrb[20].mxu0  ;;  %v2609_v6 = vpop.f32.mrb[20].mxu1 }
 0x142   : > { %v1330_v7 = vpop.f32.mrb[21].mxu0  ;;  %v3606_v9 = vadd.f32 %v3605_v59, %v3479_v3  ;;  %v3480_v10 = vmul.f32 %v3352_v2, %v3224_v4  ;;  %v2610_v11 = vadd.f32 %v2609_v6, %v1328_v5  ;;  %v2611_v12 = vpop.f32.mrb[21].mxu1  ;;  %v4377_v3 = vld [vmem:[%s4671_s30 + $0x454] ss:$8 sps:$4 sm:$0xff]  }
 0x143   : > { %v1331_v13 = vpop.f32.mrb[22].mxu0  ;;  %v2612_v16 = vpop.f32.mrb[22].mxu1 }
 0x144   : > { %v1333_v18 = vpop.f32.mrb[23].mxu0  ;;  %v3607_v20 = vadd.f32 %v3606_v9, %v3480_v10  ;;  %v3097_v21 = vadd.f32 %v4847_v17, %v2610_v11  ;;  %v2613_v22 = vadd.f32 %v2612_v16, %v1331_v13  ;;  %v2614_v23 = vpop.f32.mrb[23].mxu1  ;;  %v3358_v11 = vld [vmem:[%s5528_s3 + $0x78] sm:$0xff] }
 0x145   : > { %v4379_v18 = vld [vmem:[%s4671_s30 + $0x470] ss:$8 sps:$4 sm:$0xff]  }
 0x146   : > { %1543 = vmatmul.mubr.bf16.gmra.mrb[128].mxu0 %v4361_v8  ;;  %v3225_v25 = vmax.f32 %v3097_v21, 0.0  ;;  %v3098_v26 = vadd.f32 %v4847_v17, %v2613_v22  ;;  %2824 = vmatmul.mubr.bf16.gmra.mrb[128].mxu1 %v4362_v14  ;;  %v3357_v8 = vld [vmem:[%s5528_s3 + $0x70] sm:$0xff] }
 0x147   : > { %1550 = vmatprep.mubr.bf16.mxu0 %v4363_v15  ;;  %2831 = vmatprep.mubr.bf16.mxu1 %v4365_v19 }
 0x148   : > { %v3481_v28 = vmul.f32 %v3353_v24, %v3225_v25  ;;  %v3226_v29 = vmax.f32 %v3098_v26, 0.0  ;;  %v4380_v24 = vld [vmem:[%s4671_s30 + $0x450] ss:$8 sps:$4 sm:$0xff]   ;;  %v4381_v25 = vld [vmem:[%s4671_s30 + $0x4a4] ss:$8 sps:$4 sm:$0xff]  }
 0x149   : > { %v1336_v30 = vpop.f32.mrb[24].mxu0  ;;  %v2617_v31 = vpop.f32.mrb[24].mxu1 }
 0x14a   : > { %v1338_v32 = vpop.f32.mrb[25].mxu0  ;;  %v3608_v34 = vadd.f32 %v3607_v20, %v3481_v28  ;;  %v3482_v35 = vmul.f32 %v3354_v27, %v3226_v29  ;;  %v2618_v36 = vadd.f32 %v2617_v31, %v1336_v30  ;;  %v2619_v37 = vpop.f32.mrb[25].mxu1  ;;  %v4383_v28 = vld [vmem:[%s4671_s30 + $0x484] ss:$8 sps:$4 sm:$0xff]  }
 0x14b   : > { %v1339_v38 = vpop.f32.mrb[26].mxu0  ;;  %v2620_v41 = vpop.f32.mrb[26].mxu1 }
 0x14c   : > { %v1341_v42 = vpop.f32.mrb[27].mxu0  ;;  %v3609_v44 = vadd.f32 %v3608_v34, %v3482_v35  ;;  %v3099_v45 = vadd.f32 %v4847_v17, %v2618_v36  ;;  %v2621_v46 = vadd.f32 %v2620_v41, %v1339_v38  ;;  %v2622_v47 = vpop.f32.mrb[27].mxu1  ;;  %v3360_v36 = vld [vmem:[%s5528_s3 + $0x88] sm:$0xff] }
 0x14d   : > { %v4385_v42 = vld [vmem:[%s4671_s30 + $0x4a0] ss:$8 sps:$4 sm:$0xff]  }
 0x14e   : > { %1551 = vmatmul.mubr.bf16.gmra.mrb[132].mxu0 %v4367_v33  ;;  %v3227_v49 = vmax.f32 %v3099_v45, 0.0  ;;  %v3100_v50 = vadd.f32 %v4847_v17, %v2621_v46  ;;  %2832 = vmatmul.mubr.bf16.gmra.mrb[132].mxu1 %v4368_v39  ;;  %v3359_v33 = vld [vmem:[%s5528_s3 + $0x80] sm:$0xff] }
 0x14f   : > { %1558 = vmatprep.mubr.bf16.mxu0 %v4369_v40  ;;  %2839 = vmatprep.mubr.bf16.mxu1 %v4371_v43 }
 0x150   : > { %v3483_v52 = vmul.f32 %v3355_v48, %v3227_v49  ;;  %v3228_v53 = vmax.f32 %v3100_v50, 0.0  ;;  %v4386_v48 = vld [vmem:[%s4671_s30 + $0x480] ss:$8 sps:$4 sm:$0xff]   ;;  %v4387_v49 = vld [vmem:[%s4671_s30 + $0x4b4] ss:$8 sps:$4 sm:$0xff]  }
 0x151   : > { %v1344_v54 = vpop.f32.mrb[28].mxu0  ;;  %v2625_v55 = vpop.f32.mrb[28].mxu1 }
 0x152   : > { %v1346_v56 = vpop.f32.mrb[29].mxu0  ;;  %v3610_v58 = vadd.f32 %v3609_v44, %v3483_v52  ;;  %v3484_v59 = vmul.f32 %v3356_v51, %v3228_v53  ;;  %v2626_v60 = vadd.f32 %v2625_v55, %v1344_v54  ;;  %v2627_v61 = vpop.f32.mrb[29].mxu1  ;;  %v4389_v52 = vld [vmem:[%s4671_s30 + $0x494] ss:$8 sps:$4 sm:$0xff]  }
 0x153   : > { %v1347_v62 = vpop.f32.mrb[30].mxu0  ;;  %v2628_v1 = vpop.f32.mrb[30].mxu1 }
 0x154   : > { %v1349_v2 = vpop.f32.mrb[31].mxu0  ;;  %v3611_v4 = vadd.f32 %v3610_v58, %v3484_v59  ;;  %v3101_v5 = vadd.f32 %v4847_v17, %v2626_v60  ;;  %v2629_v6 = vadd.f32 %v2628_v1, %v1347_v62  ;;  %v2630_v7 = vpop.f32.mrb[31].mxu1  ;;  %v3362_v60 = vld [vmem:[%s5528_s3 + $0x98] sm:$0xff] }
 0x155   : > { %v4391_v2 = vld [vmem:[%s4671_s30 + $0x4b0] ss:$8 sps:$4 sm:$0xff]  }
 0x156   : > { %1559 = vmatmul.mubr.bf16.gmra.mrb[136].mxu0 %v4373_v57  ;;  %v3229_v9 = vmax.f32 %v3101_v5, 0.0  ;;  %v3102_v10 = vadd.f32 %v4847_v17, %v2629_v6  ;;  %2840 = vmatmul.mubr.bf16.gmra.mrb[136].mxu1 %v4374_v63  ;;  %v3361_v57 = vld [vmem:[%s5528_s3 + $0x90] sm:$0xff] }
 0x157   : > { %1566 = vmatprep.mubr.bf16.mxu0 %v4375_v0  ;;  %2847 = vmatprep.mubr.bf16.mxu1 %v4377_v3 }
 0x158   : > { %v3485_v12 = vmul.f32 %v3357_v8, %v3229_v9  ;;  %v3230_v13 = vmax.f32 %v3102_v10, 0.0  ;;  %v4392_v8 = vld [vmem:[%s4671_s30 + $0x490] ss:$8 sps:$4 sm:$0xff]   ;;  %v4393_v9 = vld [vmem:[%s4671_s30 + $0x4e4] ss:$8 sps:$4 sm:$0xff]  }
 0x159   : > { %v1352_v14 = vpop.f32.mrb[32].mxu0  ;;  %v2633_v15 = vpop.f32.mrb[32].mxu1 }
 0x15a   : > { %v1354_v16 = vpop.f32.mrb[33].mxu0  ;;  %v3612_v19 = vadd.f32 %v3611_v4, %v3485_v12  ;;  %v3486_v20 = vmul.f32 %v3358_v11, %v3230_v13  ;;  %v2634_v21 = vadd.f32 %v2633_v15, %v1352_v14  ;;  %v2635_v22 = vpop.f32.mrb[33].mxu1  ;;  %v4395_v12 = vld [vmem:[%s4671_s30 + $0x4c4] ss:$8 sps:$4 sm:$0xff]  }
 0x15b   : > { %v1355_v23 = vpop.f32.mrb[34].mxu0  ;;  %v2636_v26 = vpop.f32.mrb[34].mxu1 }
 0x15c   : > { %v1357_v27 = vpop.f32.mrb[35].mxu0  ;;  %v3613_v29 = vadd.f32 %v3612_v19, %v3486_v20  ;;  %v3103_v30 = vadd.f32 %v4847_v17, %v2634_v21  ;;  %v2637_v31 = vadd.f32 %v2636_v26, %v1355_v23  ;;  %v2638_v32 = vpop.f32.mrb[35].mxu1  ;;  %v3364_v21 = vld [vmem:[%s5528_s3 + $0xa8] sm:$0xff] }
 0x15d   : > { %v4397_v27 = vld [vmem:[%s4671_s30 + $0x4e0] ss:$8 sps:$4 sm:$0xff]  }
 0x15e   : > { %1567 = vmatmul.mubr.bf16.gmra.mrb[140].mxu0 %v4379_v18  ;;  %v3231_v34 = vmax.f32 %v3103_v30, 0.0  ;;  %v3104_v35 = vadd.f32 %v4847_v17, %v2637_v31  ;;  %2848 = vmatmul.mubr.bf16.gmra.mrb[140].mxu1 %v4380_v24  ;;  %v3363_v18 = vld [vmem:[%s5528_s3 + $0xa0] sm:$0xff] }
 0x15f   : > { %1574 = vmatprep.mubr.bf16.mxu0 %v4381_v25  ;;  %2855 = vmatprep.mubr.bf16.mxu1 %v4383_v28 }
 0x160   : > { %v3487_v37 = vmul.f32 %v3359_v33, %v3231_v34  ;;  %v3232_v38 = vmax.f32 %v3104_v35, 0.0  ;;  %v4398_v33 = vld [vmem:[%s4671_s30 + $0x4c0] ss:$8 sps:$4 sm:$0xff]   ;;  %v4399_v34 = vld [vmem:[%s4671_s30 + $0x4f4] ss:$8 sps:$4 sm:$0xff]  }
 0x161   : > { %v1360_v39 = vpop.f32.mrb[36].mxu0  ;;  %v2641_v40 = vpop.f32.mrb[36].mxu1 }
 0x162   : > { %v1362_v41 = vpop.f32.mrb[37].mxu0  ;;  %v3614_v43 = vadd.f32 %v3613_v29, %v3487_v37  ;;  %v3488_v44 = vmul.f32 %v3360_v36, %v3232_v38  ;;  %v2642_v45 = vadd.f32 %v2641_v40, %v1360_v39  ;;  %v2643_v46 = vpop.f32.mrb[37].mxu1  ;;  %v4401_v37 = vld [vmem:[%s4671_s30 + $0x4d4] ss:$8 sps:$4 sm:$0xff]  }
 0x163   : > { %v1363_v47 = vpop.f32.mrb[38].mxu0  ;;  %v2644_v50 = vpop.f32.mrb[38].mxu1 }
 0x164   : > { %v1365_v51 = vpop.f32.mrb[39].mxu0  ;;  %v3615_v53 = vadd.f32 %v3614_v43, %v3488_v44  ;;  %v3105_v54 = vadd.f32 %v4847_v17, %v2642_v45  ;;  %v2645_v55 = vadd.f32 %v2644_v50, %v1363_v47  ;;  %v2646_v56 = vpop.f32.mrb[39].mxu1  ;;  %v3366_v45 = vld [vmem:[%s5528_s3 + $0xb8] sm:$0xff] }
 0x165   : > { %v4403_v51 = vld [vmem:[%s4671_s30 + $0x4f0] ss:$8 sps:$4 sm:$0xff]  }
 0x166   : > { %1575 = vmatmul.mubr.bf16.gmra.mrb[144].mxu0 %v4385_v42  ;;  %v3233_v58 = vmax.f32 %v3105_v54, 0.0  ;;  %v3106_v59 = vadd.f32 %v4847_v17, %v2645_v55  ;;  %2856 = vmatmul.mubr.bf16.gmra.mrb[144].mxu1 %v4386_v48  ;;  %v3365_v42 = vld [vmem:[%s5528_s3 + $0xb0] sm:$0xff] }
 0x167   : > { %1582 = vmatprep.mubr.bf16.mxu0 %v4387_v49  ;;  %2863 = vmatprep.mubr.bf16.mxu1 %v4389_v52 }
 0x168   : > { %v3489_v61 = vmul.f32 %v3361_v57, %v3233_v58  ;;  %v3234_v62 = vmax.f32 %v3106_v59, 0.0  ;;  %v4404_v57 = vld [vmem:[%s4671_s30 + $0x4d0] ss:$8 sps:$4 sm:$0xff]   ;;  %v4405_v58 = vld [vmem:[%s4671_s30 + $0x524] ss:$8 sps:$4 sm:$0xff]  }
 0x169   : > { %v1368_v63 = vpop.f32.mrb[40].mxu0  ;;  %v2649_v0 = vpop.f32.mrb[40].mxu1 }
 0x16a   : > { %v1370_v1 = vpop.f32.mrb[41].mxu0  ;;  %v3616_v3 = vadd.f32 %v3615_v53, %v3489_v61  ;;  %v3490_v4 = vmul.f32 %v3362_v60, %v3234_v62  ;;  %v2650_v5 = vadd.f32 %v2649_v0, %v1368_v63  ;;  %v2651_v6 = vpop.f32.mrb[41].mxu1  ;;  %v4407_v61 = vld [vmem:[%s4671_s30 + $0x504] ss:$8 sps:$4 sm:$0xff]  }
 0x16b   : > { %v1371_v7 = vpop.f32.mrb[42].mxu0  ;;  %v2652_v10 = vpop.f32.mrb[42].mxu1 }
 0x16c   : > { %v1373_v11 = vpop.f32.mrb[43].mxu0  ;;  %v3617_v13 = vadd.f32 %v3616_v3, %v3490_v4  ;;  %v3107_v14 = vadd.f32 %v4847_v17, %v2650_v5  ;;  %v2653_v15 = vadd.f32 %v2652_v10, %v1371_v7  ;;  %v2654_v16 = vpop.f32.mrb[43].mxu1  ;;  %v3368_v5 = vld [vmem:[%s5528_s3 + $0xc8] sm:$0xff] }
 0x16d   : > { %v4409_v11 = vld [vmem:[%s4671_s30 + $0x520] ss:$8 sps:$4 sm:$0xff]  }
 0x16e   : > { %1583 = vmatmul.mubr.bf16.gmra.mrb[148].mxu0 %v4391_v2  ;;  %v3235_v19 = vmax.f32 %v3107_v14, 0.0  ;;  %v3108_v20 = vadd.f32 %v4847_v17, %v2653_v15  ;;  %2864 = vmatmul.mubr.bf16.gmra.mrb[148].mxu1 %v4392_v8  ;;  %v3367_v2 = vld [vmem:[%s5528_s3 + $0xc0] sm:$0xff] }
 0x16f   : > { %1590 = vmatprep.mubr.bf16.mxu0 %v4393_v9  ;;  %2871 = vmatprep.mubr.bf16.mxu1 %v4395_v12 }
 0x170   : > { %v3491_v22 = vmul.f32 %v3363_v18, %v3235_v19  ;;  %v3236_v23 = vmax.f32 %v3108_v20, 0.0  ;;  %v4410_v18 = vld [vmem:[%s4671_s30 + $0x500] ss:$8 sps:$4 sm:$0xff]   ;;  %v4411_v19 = vld [vmem:[%s4671_s30 + $0x534] ss:$8 sps:$4 sm:$0xff]  }
 0x171   : > { %v1376_v24 = vpop.f32.mrb[44].mxu0  ;;  %v2657_v25 = vpop.f32.mrb[44].mxu1 }
 0x172   : > { %v1378_v26 = vpop.f32.mrb[45].mxu0  ;;  %v3618_v28 = vadd.f32 %v3617_v13, %v3491_v22  ;;  %v3492_v29 = vmul.f32 %v3364_v21, %v3236_v23  ;;  %v2658_v30 = vadd.f32 %v2657_v25, %v1376_v24  ;;  %v2659_v31 = vpop.f32.mrb[45].mxu1  ;;  %v4413_v22 = vld [vmem:[%s4671_s30 + $0x514] ss:$8 sps:$4 sm:$0xff]  }
 0x173   : > { %v1379_v32 = vpop.f32.mrb[46].mxu0  ;;  %v2660_v35 = vpop.f32.mrb[46].mxu1 }
 0x174   : > { %v1381_v36 = vpop.f32.mrb[47].mxu0  ;;  %v3619_v38 = vadd.f32 %v3618_v28, %v3492_v29  ;;  %v3109_v39 = vadd.f32 %v4847_v17, %v2658_v30  ;;  %v2661_v40 = vadd.f32 %v2660_v35, %v1379_v32  ;;  %v2662_v41 = vpop.f32.mrb[47].mxu1  ;;  %v3370_v30 = vld [vmem:[%s5528_s3 + $0xd8] sm:$0xff] }
 0x175   : > { %v4415_v36 = vld [vmem:[%s4671_s30 + $0x530] ss:$8 sps:$4 sm:$0xff]  }
 0x176   : > { %1591 = vmatmul.mubr.bf16.gmra.mrb[152].mxu0 %v4397_v27  ;;  %v3237_v43 = vmax.f32 %v3109_v39, 0.0  ;;  %v3110_v44 = vadd.f32 %v4847_v17, %v2661_v40  ;;  %2872 = vmatmul.mubr.bf16.gmra.mrb[152].mxu1 %v4398_v33  ;;  %v3369_v27 = vld [vmem:[%s5528_s3 + $0xd0] sm:$0xff] }
 0x177   : > { %1598 = vmatprep.mubr.bf16.mxu0 %v4399_v34  ;;  %2879 = vmatprep.mubr.bf16.mxu1 %v4401_v37 }
 0x178   : > { %v3493_v46 = vmul.f32 %v3365_v42, %v3237_v43  ;;  %v3238_v47 = vmax.f32 %v3110_v44, 0.0  ;;  %v4416_v42 = vld [vmem:[%s4671_s30 + $0x510] ss:$8 sps:$4 sm:$0xff]   ;;  %v4417_v43 = vld [vmem:[%s4671_s30 + $0x564] ss:$8 sps:$4 sm:$0xff]  }
 0x179   : > { %v1384_v48 = vpop.f32.mrb[48].mxu0  ;;  %v2665_v49 = vpop.f32.mrb[48].mxu1 }
 0x17a   : > { %v1386_v50 = vpop.f32.mrb[49].mxu0  ;;  %v3620_v52 = vadd.f32 %v3619_v38, %v3493_v46  ;;  %v3494_v53 = vmul.f32 %v3366_v45, %v3238_v47  ;;  %v2666_v54 = vadd.f32 %v2665_v49, %v1384_v48  ;;  %v2667_v55 = vpop.f32.mrb[49].mxu1  ;;  %v4419_v46 = vld [vmem:[%s4671_s30 + $0x544] ss:$8 sps:$4 sm:$0xff]  }
 0x17b   : > { %v1387_v56 = vpop.f32.mrb[50].mxu0  ;;  %v2668_v59 = vpop.f32.mrb[50].mxu1 }
 0x17c   : > { %v1389_v60 = vpop.f32.mrb[51].mxu0  ;;  %v3621_v62 = vadd.f32 %v3620_v52, %v3494_v53  ;;  %v3111_v63 = vadd.f32 %v4847_v17, %v2666_v54  ;;  %v2669_v0 = vadd.f32 %v2668_v59, %v1387_v56  ;;  %v2670_v1 = vpop.f32.mrb[51].mxu1  ;;  %v3372_v54 = vld [vmem:[%s5528_s3 + $0xe8] sm:$0xff] }
 0x17d   : > { %v4421_v60 = vld [vmem:[%s4671_s30 + $0x560] ss:$8 sps:$4 sm:$0xff]  }
 0x17e   : > { %1599 = vmatmul.mubr.bf16.gmra.mrb[156].mxu0 %v4403_v51  ;;  %v3239_v3 = vmax.f32 %v3111_v63, 0.0  ;;  %v3112_v4 = vadd.f32 %v4847_v17, %v2669_v0  ;;  %2880 = vmatmul.mubr.bf16.gmra.mrb[156].mxu1 %v4404_v57  ;;  %v3371_v51 = vld [vmem:[%s5528_s3 + $0xe0] sm:$0xff] }
 0x17f   : > { %1606 = vmatprep.mubr.bf16.mxu0 %v4405_v58  ;;  %2887 = vmatprep.mubr.bf16.mxu1 %v4407_v61 }
 0x180   : > { %v3495_v6 = vmul.f32 %v3367_v2, %v3239_v3  ;;  %v3240_v7 = vmax.f32 %v3112_v4, 0.0  ;;  %v4422_v2 = vld [vmem:[%s4671_s30 + $0x540] ss:$8 sps:$4 sm:$0xff]   ;;  %v4423_v3 = vld [vmem:[%s4671_s30 + $0x574] ss:$8 sps:$4 sm:$0xff]  }
 0x181   : > { %v1392_v8 = vpop.f32.mrb[52].mxu0  ;;  %v2673_v9 = vpop.f32.mrb[52].mxu1 }
 0x182   : > { %v1394_v10 = vpop.f32.mrb[53].mxu0  ;;  %v3622_v12 = vadd.f32 %v3621_v62, %v3495_v6  ;;  %v3496_v13 = vmul.f32 %v3368_v5, %v3240_v7  ;;  %v2674_v14 = vadd.f32 %v2673_v9, %v1392_v8  ;;  %v2675_v15 = vpop.f32.mrb[53].mxu1  ;;  %v4425_v6 = vld [vmem:[%s4671_s30 + $0x554] ss:$8 sps:$4 sm:$0xff]  }
 0x183   : > { %v1395_v16 = vpop.f32.mrb[54].mxu0  ;;  %v2676_v20 = vpop.f32.mrb[54].mxu1 }
 0x184   : > { %v1397_v21 = vpop.f32.mrb[55].mxu0  ;;  %v3623_v23 = vadd.f32 %v3622_v12, %v3496_v13  ;;  %v3113_v24 = vadd.f32 %v4847_v17, %v2674_v14  ;;  %v2677_v25 = vadd.f32 %v2676_v20, %v1395_v16  ;;  %v2678_v26 = vpop.f32.mrb[55].mxu1  ;;  %v3374_v14 = vld [vmem:[%s5528_s3 + $0xf8] sm:$0xff] }
 0x185   : > { %v4427_v21 = vld [vmem:[%s4671_s30 + $0x570] ss:$8 sps:$4 sm:$0xff]  }
 0x186   : > { %1607 = vmatmul.mubr.bf16.gmra.mrb[160].mxu0 %v4409_v11  ;;  %v3241_v28 = vmax.f32 %v3113_v24, 0.0  ;;  %v3114_v29 = vadd.f32 %v4847_v17, %v2677_v25  ;;  %2888 = vmatmul.mubr.bf16.gmra.mrb[160].mxu1 %v4410_v18  ;;  %v3373_v11 = vld [vmem:[%s5528_s3 + $0xf0] sm:$0xff] }
 0x187   : > { %1614 = vmatprep.mubr.bf16.mxu0 %v4411_v19  ;;  %2895 = vmatprep.mubr.bf16.mxu1 %v4413_v22 }
 0x188   : > { %v3497_v31 = vmul.f32 %v3369_v27, %v3241_v28  ;;  %v3242_v32 = vmax.f32 %v3114_v29, 0.0  ;;  %v4428_v27 = vld [vmem:[%s4671_s30 + $0x550] ss:$8 sps:$4 sm:$0xff]   ;;  %v4429_v28 = vld [vmem:[%s4671_s30 + $0x5a4] ss:$8 sps:$4 sm:$0xff]  }
 0x189   : > { %v1400_v33 = vpop.f32.mrb[56].mxu0  ;;  %v2681_v34 = vpop.f32.mrb[56].mxu1 }
 0x18a   : > { %v1402_v35 = vpop.f32.mrb[57].mxu0  ;;  %v3624_v37 = vadd.f32 %v3623_v23, %v3497_v31  ;;  %v3498_v38 = vmul.f32 %v3370_v30, %v3242_v32  ;;  %v2682_v39 = vadd.f32 %v2681_v34, %v1400_v33  ;;  %v2683_v40 = vpop.f32.mrb[57].mxu1  ;;  %v4431_v31 = vld [vmem:[%s4671_s30 + $0x584] ss:$8 sps:$4 sm:$0xff]  }
 0x18b   : > { %v1403_v41 = vpop.f32.mrb[58].mxu0  ;;  %v2684_v44 = vpop.f32.mrb[58].mxu1 }
 0x18c   : > { %v1405_v45 = vpop.f32.mrb[59].mxu0  ;;  %v3625_v47 = vadd.f32 %v3624_v37, %v3498_v38  ;;  %v3115_v48 = vadd.f32 %v4847_v17, %v2682_v39  ;;  %v2685_v49 = vadd.f32 %v2684_v44, %v1403_v41  ;;  %v2686_v50 = vpop.f32.mrb[59].mxu1  ;;  %v3376_v39 = vld [vmem:[%s5528_s3 + $0x108] sm:$0xff] }
 0x18d   : > { %v4433_v45 = vld [vmem:[%s4671_s30 + $0x5a0] ss:$8 sps:$4 sm:$0xff]  }
 0x18e   : > { %1615 = vmatmul.mubr.bf16.gmra.mrb[164].mxu0 %v4415_v36  ;;  %v3243_v52 = vmax.f32 %v3115_v48, 0.0  ;;  %v3116_v53 = vadd.f32 %v4847_v17, %v2685_v49  ;;  %2896 = vmatmul.mubr.bf16.gmra.mrb[164].mxu1 %v4416_v42  ;;  %v3375_v36 = vld [vmem:[%s5528_s3 + $0x100] sm:$0xff] }
 0x18f   : > { %1622 = vmatprep.mubr.bf16.mxu0 %v4417_v43  ;;  %2903 = vmatprep.mubr.bf16.mxu1 %v4419_v46 }
 0x190   : > { %v3499_v55 = vmul.f32 %v3371_v51, %v3243_v52  ;;  %v3244_v56 = vmax.f32 %v3116_v53, 0.0  ;;  %v4434_v51 = vld [vmem:[%s4671_s30 + $0x580] ss:$8 sps:$4 sm:$0xff]   ;;  %v4435_v52 = vld [vmem:[%s4671_s30 + $0x5b4] ss:$8 sps:$4 sm:$0xff]  }
 0x191   : > { %v1408_v57 = vpop.f32.mrb[60].mxu0  ;;  %v2689_v58 = vpop.f32.mrb[60].mxu1 }
 0x192   : > { %v1410_v59 = vpop.f32.mrb[61].mxu0  ;;  %v3626_v61 = vadd.f32 %v3625_v47, %v3499_v55  ;;  %v3500_v62 = vmul.f32 %v3372_v54, %v3244_v56  ;;  %v2690_v63 = vadd.f32 %v2689_v58, %v1408_v57  ;;  %v2691_v0 = vpop.f32.mrb[61].mxu1  ;;  %v4437_v55 = vld [vmem:[%s4671_s30 + $0x594] ss:$8 sps:$4 sm:$0xff]  }
 0x193   : > { %v1411_v1 = vpop.f32.mrb[62].mxu0  ;;  %v2692_v4 = vpop.f32.mrb[62].mxu1 }
 0x194   : > { %v1413_v5 = vpop.f32.mrb[63].mxu0  ;;  %v3627_v7 = vadd.f32 %v3626_v61, %v3500_v62  ;;  %v3117_v8 = vadd.f32 %v4847_v17, %v2690_v63  ;;  %v2693_v9 = vadd.f32 %v2692_v4, %v1411_v1  ;;  %v2694_v10 = vpop.f32.mrb[63].mxu1  ;;  %v3378_v63 = vld [vmem:[%s5528_s3 + $0x118] sm:$0xff] }
 0x195   : > { %v4439_v5 = vld [vmem:[%s4671_s30 + $0x5b0] ss:$8 sps:$4 sm:$0xff]  }
 0x196   : > { %1623 = vmatmul.mubr.bf16.gmra.mrb[168].mxu0 %v4421_v60  ;;  %v3245_v12 = vmax.f32 %v3117_v8, 0.0  ;;  %v3118_v13 = vadd.f32 %v4847_v17, %v2693_v9  ;;  %2904 = vmatmul.mubr.bf16.gmra.mrb[168].mxu1 %v4422_v2  ;;  %v3377_v60 = vld [vmem:[%s5528_s3 + $0x110] sm:$0xff] }
 0x197   : > { %1630 = vmatprep.mubr.bf16.mxu0 %v4423_v3  ;;  %2911 = vmatprep.mubr.bf16.mxu1 %v4425_v6  ;;  %v4440_v10 = vld [vmem:[%s4671_s30 + $0x590] ss:$8 sps:$4 sm:$0xff]  }
 0x198   : > { %v3501_v15 = vmul.f32 %v3373_v11, %v3245_v12  ;;  %v3246_v16 = vmax.f32 %v3118_v13, 0.0  ;;  %v4441_v11 = vld [vmem:[%s4671_s30 + $0x5e4] ss:$8 sps:$4 sm:$0xff]  }
 0x199   : > { %v1416_v18 = vpop.f32.mrb[64].mxu0  ;;  %v2697_v19 = vpop.f32.mrb[64].mxu1 }
 0x19a   : > { %v1418_v20 = vpop.f32.mrb[65].mxu0  ;;  %v3628_v22 = vadd.f32 %v3627_v7, %v3501_v15  ;;  %v3502_v23 = vmul.f32 %v3374_v14, %v3246_v16  ;;  %v2698_v24 = vadd.f32 %v2697_v19, %v1416_v18  ;;  %v2699_v25 = vpop.f32.mrb[65].mxu1  ;;  %v4443_v14 = vld [vmem:[%s4671_s30 + $0x5c4] ss:$8 sps:$4 sm:$0xff]   ;;  %v5072_v16 = vld [vmem:[%s5527_s2] ss:$0 sm:$0xff] }
 0x19b   : > { %v1419_v26 = vpop.f32.mrb[66].mxu0  ;;  %v2700_v29 = vpop.f32.mrb[66].mxu1 }
 0x19c   : > { %v1421_v30 = vpop.f32.mrb[67].mxu0  ;;  %v3629_v32 = vadd.f32 %v3628_v22, %v3502_v23  ;;  %v3119_v33 = vadd.f32 %v4847_v17, %v2698_v24  ;;  %v2701_v34 = vadd.f32 %v2700_v29, %v1419_v26  ;;  %v2702_v35 = vpop.f32.mrb[67].mxu1  ;;  %v3380_v24 = vld [vmem:[%s5528_s3 + $0x128] sm:$0xff] }
 0x19d   : > { %v4445_v30 = vld [vmem:[%s4671_s30 + $0x5e0] ss:$8 sps:$4 sm:$0xff]  }
 0x19e   : > { %1631 = vmatmul.mubr.bf16.gmra.mrb[172].mxu0 %v4427_v21  ;;  %v3247_v37 = vmax.f32 %v3119_v33, 0.0  ;;  %v3120_v38 = vadd.f32 %v4847_v17, %v2701_v34  ;;  %2912 = vmatmul.mubr.bf16.gmra.mrb[172].mxu1 %v4428_v27  ;;  %v3379_v21 = vld [vmem:[%s5528_s3 + $0x120] sm:$0xff] }
 0x19f   : > { %1638 = vmatprep.mubr.bf16.mxu0 %v4429_v28  ;;  %2919 = vmatprep.mubr.bf16.mxu1 %v4431_v31 }
 0x1a0   : > { %v3503_v40 = vmul.f32 %v3375_v36, %v3247_v37  ;;  %v3248_v41 = vmax.f32 %v3120_v38, 0.0  ;;  %v4446_v36 = vld [vmem:[%s4671_s30 + $0x5c0] ss:$8 sps:$4 sm:$0xff]   ;;  %v4447_v37 = vld [vmem:[%s4671_s30 + $0x5f4] ss:$8 sps:$4 sm:$0xff]  }
 0x1a1   : > { %v1424_v42 = vpop.f32.mrb[68].mxu0  ;;  %v2705_v43 = vpop.f32.mrb[68].mxu1 }
 0x1a2   : > { %v1426_v44 = vpop.f32.mrb[69].mxu0  ;;  %v3630_v46 = vadd.f32 %v3629_v32, %v3503_v40  ;;  %v3504_v47 = vmul.f32 %v3376_v39, %v3248_v41  ;;  %v2706_v48 = vadd.f32 %v2705_v43, %v1424_v42  ;;  %v2707_v49 = vpop.f32.mrb[69].mxu1  ;;  %v4449_v40 = vld [vmem:[%s4671_s30 + $0x5d4] ss:$8 sps:$4 sm:$0xff]  }
 0x1a3   : > { %v1427_v50 = vpop.f32.mrb[70].mxu0  ;;  %v2708_v53 = vpop.f32.mrb[70].mxu1 }
 0x1a4   : > { %v1429_v54 = vpop.f32.mrb[71].mxu0  ;;  %v3631_v56 = vadd.f32 %v3630_v46, %v3504_v47  ;;  %v3121_v57 = vadd.f32 %v4847_v17, %v2706_v48  ;;  %v2709_v58 = vadd.f32 %v2708_v53, %v1427_v50  ;;  %v2710_v59 = vpop.f32.mrb[71].mxu1  ;;  %v3382_v48 = vld [vmem:[%s5528_s3 + $0x138] sm:$0xff] }
 0x1a5   : > { %v4451_v54 = vld [vmem:[%s4671_s30 + $0x5f0] ss:$8 sps:$4 sm:$0xff]  }
 0x1a6   : > { %1639 = vmatmul.mubr.bf16.gmra.mrb[176].mxu0 %v4433_v45  ;;  %v3249_v61 = vmax.f32 %v3121_v57, 0.0  ;;  %v3122_v62 = vadd.f32 %v4847_v17, %v2709_v58  ;;  %2920 = vmatmul.mubr.bf16.gmra.mrb[176].mxu1 %v4434_v51  ;;  %v3381_v45 = vld [vmem:[%s5528_s3 + $0x130] sm:$0xff] }
 0x1a7   : > { %1646 = vmatprep.mubr.bf16.mxu0 %v4435_v52  ;;  %2927 = vmatprep.mubr.bf16.mxu1 %v4437_v55 }
 0x1a8   : > { %v3505_v0 = vmul.f32 %v3377_v60, %v3249_v61  ;;  %v3250_v1 = vmax.f32 %v3122_v62, 0.0  ;;  %v4452_v60 = vld [vmem:[%s4671_s30 + $0x5d0] ss:$8 sps:$4 sm:$0xff]   ;;  %v4453_v61 = vld [vmem:[%s4671_s30 + $0x624] ss:$8 sps:$4 sm:$0xff]  }
 0x1a9   : > { %v1432_v2 = vpop.f32.mrb[72].mxu0  ;;  %v2713_v3 = vpop.f32.mrb[72].mxu1 }
 0x1aa   : > { %v1434_v4 = vpop.f32.mrb[73].mxu0  ;;  %v3632_v6 = vadd.f32 %v3631_v56, %v3505_v0  ;;  %v3506_v7 = vmul.f32 %v3378_v63, %v3250_v1  ;;  %v2714_v8 = vadd.f32 %v2713_v3, %v1432_v2  ;;  %v2715_v17 = vpop.f32.mrb[73].mxu1  ;;  %v4455_v0 = vld [vmem:[%s4671_s30 + $0x604] ss:$8 sps:$4 sm:$0xff]  }
 0x1ab   : > { %v1435_v9 = vpop.f32.mrb[74].mxu0  ;;  %v2716_v12 = vpop.f32.mrb[74].mxu1 }
 0x1ac   : > { %v1437_v13 = vpop.f32.mrb[75].mxu0  ;;  %v3633_v15 = vadd.f32 %v3632_v6, %v3506_v7  ;;  %v3123_v18 = vadd.f32 %v5072_v16, %v2714_v8  ;;  %v2717_v19 = vadd.f32 %v2716_v12, %v1435_v9  ;;  %v2718_v20 = vpop.f32.mrb[75].mxu1  ;;  %v3384_v8 = vld [vmem:[%s5528_s3 + $0x148] sm:$0xff] }
 0x1ad   : > { %v4457_v13 = vld [vmem:[%s4671_s30 + $0x620] ss:$8 sps:$4 sm:$0xff]  }
 0x1ae   : > { %1647 = vmatmul.mubr.bf16.gmra.mrb[180].mxu0 %v4439_v5  ;;  %v3251_v22 = vmax.f32 %v3123_v18, 0.0  ;;  %v3124_v23 = vadd.f32 %v5072_v16, %v2717_v19  ;;  %2928 = vmatmul.mubr.bf16.gmra.mrb[180].mxu1 %v4440_v10  ;;  %v3383_v5 = vld [vmem:[%s5528_s3 + $0x140] sm:$0xff] }
 0x1af   : > { %1654 = vmatprep.mubr.bf16.mxu0 %v4441_v11  ;;  %2935 = vmatprep.mubr.bf16.mxu1 %v4443_v14 }
 0x1b0   : > { %v3507_v25 = vmul.f32 %v3379_v21, %v3251_v22  ;;  %v3252_v26 = vmax.f32 %v3124_v23, 0.0  ;;  %v4458_v21 = vld [vmem:[%s4671_s30 + $0x600] ss:$8 sps:$4 sm:$0xff]   ;;  %v4459_v22 = vld [vmem:[%s4671_s30 + $0x634] ss:$8 sps:$4 sm:$0xff]  }
 0x1b1   : > { %v1440_v27 = vpop.f32.mrb[76].mxu0  ;;  %v2721_v28 = vpop.f32.mrb[76].mxu1 }
 0x1b2   : > { %v1442_v29 = vpop.f32.mrb[77].mxu0  ;;  %v3634_v31 = vadd.f32 %v3633_v15, %v3507_v25  ;;  %v3508_v32 = vmul.f32 %v3380_v24, %v3252_v26  ;;  %v2722_v33 = vadd.f32 %v2721_v28, %v1440_v27  ;;  %v2723_v34 = vpop.f32.mrb[77].mxu1  ;;  %v4461_v25 = vld [vmem:[%s4671_s30 + $0x614] ss:$8 sps:$4 sm:$0xff]  }
 0x1b3   : > { %v1443_v35 = vpop.f32.mrb[78].mxu0  ;;  %v2724_v38 = vpop.f32.mrb[78].mxu1 }
 0x1b4   : > { %v1445_v39 = vpop.f32.mrb[79].mxu0  ;;  %v3635_v41 = vadd.f32 %v3634_v31, %v3508_v32  ;;  %v3125_v42 = vadd.f32 %v5072_v16, %v2722_v33  ;;  %v2725_v43 = vadd.f32 %v2724_v38, %v1443_v35  ;;  %v2726_v44 = vpop.f32.mrb[79].mxu1  ;;  %v3386_v33 = vld [vmem:[%s5528_s3 + $0x158] sm:$0xff] }
 0x1b5   : > { %v4463_v39 = vld [vmem:[%s4671_s30 + $0x630] ss:$8 sps:$4 sm:$0xff]  }
 0x1b6   : > { %1655 = vmatmul.mubr.bf16.gmra.mrb[184].mxu0 %v4445_v30  ;;  %v3253_v46 = vmax.f32 %v3125_v42, 0.0  ;;  %v3126_v47 = vadd.f32 %v5072_v16, %v2725_v43  ;;  %2936 = vmatmul.mubr.bf16.gmra.mrb[184].mxu1 %v4446_v36  ;;  %v3385_v30 = vld [vmem:[%s5528_s3 + $0x150] sm:$0xff] }
 0x1b7   : > { %1662 = vmatprep.mubr.bf16.mxu0 %v4447_v37  ;;  %2943 = vmatprep.mubr.bf16.mxu1 %v4449_v40 }
 0x1b8   : > { %v3509_v49 = vmul.f32 %v3381_v45, %v3253_v46  ;;  %v3254_v50 = vmax.f32 %v3126_v47, 0.0  ;;  %v4464_v45 = vld [vmem:[%s4671_s30 + $0x610] ss:$8 sps:$4 sm:$0xff]   ;;  %v4465_v46 = vld [vmem:[%s4671_s30 + $0x664] ss:$8 sps:$4 sm:$0xff]  }
 0x1b9   : > { %v1448_v51 = vpop.f32.mrb[80].mxu0  ;;  %v2729_v52 = vpop.f32.mrb[80].mxu1 }
 0x1ba   : > { %v1450_v53 = vpop.f32.mrb[81].mxu0  ;;  %v3636_v55 = vadd.f32 %v3635_v41, %v3509_v49  ;;  %v3510_v56 = vmul.f32 %v3382_v48, %v3254_v50  ;;  %v2730_v57 = vadd.f32 %v2729_v52, %v1448_v51  ;;  %v2731_v58 = vpop.f32.mrb[81].mxu1  ;;  %v4467_v49 = vld [vmem:[%s4671_s30 + $0x644] ss:$8 sps:$4 sm:$0xff]  }
 0x1bb   : > { %v1451_v59 = vpop.f32.mrb[82].mxu0  ;;  %v2732_v62 = vpop.f32.mrb[82].mxu1 }
 0x1bc   : > { %v1453_v63 = vpop.f32.mrb[83].mxu0  ;;  %v3637_v1 = vadd.f32 %v3636_v55, %v3510_v56  ;;  %v3127_v2 = vadd.f32 %v5072_v16, %v2730_v57  ;;  %v2733_v3 = vadd.f32 %v2732_v62, %v1451_v59  ;;  %v2734_v4 = vpop.f32.mrb[83].mxu1  ;;  %v3388_v57 = vld [vmem:[%s5528_s3 + $0x168] sm:$0xff] }
 0x1bd   : > { %v4469_v63 = vld [vmem:[%s4671_s30 + $0x660] ss:$8 sps:$4 sm:$0xff]  }
 0x1be   : > { %1663 = vmatmul.mubr.bf16.gmra.mrb[188].mxu0 %v4451_v54  ;;  %v3255_v6 = vmax.f32 %v3127_v2, 0.0  ;;  %v3128_v7 = vadd.f32 %v5072_v16, %v2733_v3  ;;  %2944 = vmatmul.mubr.bf16.gmra.mrb[188].mxu1 %v4452_v60  ;;  %v3387_v54 = vld [vmem:[%s5528_s3 + $0x160] sm:$0xff] }
 0x1bf   : > { %1670 = vmatprep.mubr.bf16.mxu0 %v4453_v61  ;;  %2951 = vmatprep.mubr.bf16.mxu1 %v4455_v0 }
 0x1c0   : > { %v3511_v17 = vmul.f32 %v3383_v5, %v3255_v6  ;;  %v3256_v9 = vmax.f32 %v3128_v7, 0.0  ;;  %v4470_v5 = vld [vmem:[%s4671_s30 + $0x640] ss:$8 sps:$4 sm:$0xff]   ;;  %v4471_v6 = vld [vmem:[%s4671_s30 + $0x674] ss:$8 sps:$4 sm:$0xff]  }
 0x1c1   : > { %v1456_v10 = vpop.f32.mrb[84].mxu0  ;;  %v2737_v11 = vpop.f32.mrb[84].mxu1 }
 0x1c2   : > { %v1458_v12 = vpop.f32.mrb[85].mxu0  ;;  %v3638_v14 = vadd.f32 %v3637_v1, %v3511_v17  ;;  %v3512_v15 = vmul.f32 %v3384_v8, %v3256_v9  ;;  %v2738_v18 = vadd.f32 %v2737_v11, %v1456_v10  ;;  %v2739_v19 = vpop.f32.mrb[85].mxu1  ;;  %v4473_v17 = vld [vmem:[%s4671_s30 + $0x654] ss:$8 sps:$4 sm:$0xff]  }
 0x1c3   : > { %v1459_v20 = vpop.f32.mrb[86].mxu0  ;;  %v2740_v23 = vpop.f32.mrb[86].mxu1 }
 0x1c4   : > { %v1461_v24 = vpop.f32.mrb[87].mxu0  ;;  %v3639_v26 = vadd.f32 %v3638_v14, %v3512_v15  ;;  %v3129_v27 = vadd.f32 %v5072_v16, %v2738_v18  ;;  %v2741_v28 = vadd.f32 %v2740_v23, %v1459_v20  ;;  %v2742_v29 = vpop.f32.mrb[87].mxu1  ;;  %v3390_v18 = vld [vmem:[%s5528_s3 + $0x178] sm:$0xff] }
 0x1c5   : > { %v4475_v24 = vld [vmem:[%s4671_s30 + $0x670] ss:$8 sps:$4 sm:$0xff]  }
 0x1c6   : > { %1671 = vmatmul.mubr.bf16.gmra.mrb[192].mxu0 %v4457_v13  ;;  %v3257_v31 = vmax.f32 %v3129_v27, 0.0  ;;  %v3130_v32 = vadd.f32 %v5072_v16, %v2741_v28  ;;  %2952 = vmatmul.mubr.bf16.gmra.mrb[192].mxu1 %v4458_v21  ;;  %v3389_v13 = vld [vmem:[%s5528_s3 + $0x170] sm:$0xff] }
 0x1c7   : > { %1678 = vmatprep.mubr.bf16.mxu0 %v4459_v22  ;;  %2959 = vmatprep.mubr.bf16.mxu1 %v4461_v25 }
 0x1c8   : > { %v3513_v34 = vmul.f32 %v3385_v30, %v3257_v31  ;;  %v3258_v35 = vmax.f32 %v3130_v32, 0.0  ;;  %v4476_v30 = vld [vmem:[%s4671_s30 + $0x650] ss:$8 sps:$4 sm:$0xff]   ;;  %v4477_v31 = vld [vmem:[%s4671_s30 + $0x6a4] ss:$8 sps:$4 sm:$0xff]  }
 0x1c9   : > { %v1464_v36 = vpop.f32.mrb[88].mxu0  ;;  %v2745_v37 = vpop.f32.mrb[88].mxu1 }
 0x1ca   : > { %v1466_v38 = vpop.f32.mrb[89].mxu0  ;;  %v3640_v40 = vadd.f32 %v3639_v26, %v3513_v34  ;;  %v3514_v41 = vmul.f32 %v3386_v33, %v3258_v35  ;;  %v2746_v42 = vadd.f32 %v2745_v37, %v1464_v36  ;;  %v2747_v43 = vpop.f32.mrb[89].mxu1  ;;  %v4479_v34 = vld [vmem:[%s4671_s30 + $0x684] ss:$8 sps:$4 sm:$0xff]  }
 0x1cb   : > { %v1467_v44 = vpop.f32.mrb[90].mxu0  ;;  %v2748_v47 = vpop.f32.mrb[90].mxu1 }
 0x1cc   : > { %v1469_v48 = vpop.f32.mrb[91].mxu0  ;;  %v3641_v50 = vadd.f32 %v3640_v40, %v3514_v41  ;;  %v3131_v51 = vadd.f32 %v5072_v16, %v2746_v42  ;;  %v2749_v52 = vadd.f32 %v2748_v47, %v1467_v44  ;;  %v2750_v53 = vpop.f32.mrb[91].mxu1  ;;  %v3392_v42 = vld [vmem:[%s5528_s3 + $0x188] sm:$0xff] }
 0x1cd   : > { %v4481_v48 = vld [vmem:[%s4671_s30 + $0x6a0] ss:$8 sps:$4 sm:$0xff]  }
 0x1ce   : > { %1679 = vmatmul.mubr.bf16.gmra.mrb[196].mxu0 %v4463_v39  ;;  %v3259_v55 = vmax.f32 %v3131_v51, 0.0  ;;  %v3132_v56 = vadd.f32 %v5072_v16, %v2749_v52  ;;  %2960 = vmatmul.mubr.bf16.gmra.mrb[196].mxu1 %v4464_v45  ;;  %v3391_v39 = vld [vmem:[%s5528_s3 + $0x180] sm:$0xff] }
 0x1cf   : > { %1686 = vmatprep.mubr.bf16.mxu0 %v4465_v46  ;;  %2967 = vmatprep.mubr.bf16.mxu1 %v4467_v49 }
 0x1d0   : > { %v3515_v58 = vmul.f32 %v3387_v54, %v3259_v55  ;;  %v3260_v59 = vmax.f32 %v3132_v56, 0.0  ;;  %v4482_v54 = vld [vmem:[%s4671_s30 + $0x680] ss:$8 sps:$4 sm:$0xff]   ;;  %v4483_v55 = vld [vmem:[%s4671_s30 + $0x6b4] ss:$8 sps:$4 sm:$0xff]  }
 0x1d1   : > { %v1472_v60 = vpop.f32.mrb[92].mxu0  ;;  %v2753_v61 = vpop.f32.mrb[92].mxu1 }
 0x1d2   : > { %v1474_v62 = vpop.f32.mrb[93].mxu0  ;;  %v3642_v0 = vadd.f32 %v3641_v50, %v3515_v58  ;;  %v3516_v1 = vmul.f32 %v3388_v57, %v3260_v59  ;;  %v2754_v2 = vadd.f32 %v2753_v61, %v1472_v60  ;;  %v2755_v3 = vpop.f32.mrb[93].mxu1  ;;  %v4485_v58 = vld [vmem:[%s4671_s30 + $0x694] ss:$8 sps:$4 sm:$0xff]  }
 0x1d3   : > { %v1475_v4 = vpop.f32.mrb[94].mxu0  ;;  %v2756_v7 = vpop.f32.mrb[94].mxu1 }
 0x1d4   : > { %v1477_v8 = vpop.f32.mrb[95].mxu0  ;;  %v3643_v9 = vadd.f32 %v3642_v0, %v3516_v1  ;;  %v3133_v10 = vadd.f32 %v5072_v16, %v2754_v2  ;;  %v2757_v11 = vadd.f32 %v2756_v7, %v1475_v4  ;;  %v2758_v12 = vpop.f32.mrb[95].mxu1  ;;  %v3394_v2 = vld [vmem:[%s5528_s3 + $0x198] sm:$0xff] }
 0x1d5   : > { %v4487_v8 = vld [vmem:[%s4671_s30 + $0x6b0] ss:$8 sps:$4 sm:$0xff]  }
 0x1d6   : > { %1687 = vmatmul.mubr.bf16.gmra.mrb[200].mxu0 %v4469_v63  ;;  %v3261_v14 = vmax.f32 %v3133_v10, 0.0  ;;  %v3134_v15 = vadd.f32 %v5072_v16, %v2757_v11  ;;  %2968 = vmatmul.mubr.bf16.gmra.mrb[200].mxu1 %v4470_v5  ;;  %v3393_v63 = vld [vmem:[%s5528_s3 + $0x190] sm:$0xff] }
 0x1d7   : > { %1694 = vmatprep.mubr.bf16.mxu0 %v4471_v6  ;;  %2975 = vmatprep.mubr.bf16.mxu1 %v4473_v17 }
 0x1d8   : > { %v3517_v19 = vmul.f32 %v3389_v13, %v3261_v14  ;;  %v3262_v20 = vmax.f32 %v3134_v15, 0.0  ;;  %v4488_v13 = vld [vmem:[%s4671_s30 + $0x690] ss:$8 sps:$4 sm:$0xff]   ;;  %v4489_v14 = vld [vmem:[%s4671_s30 + $0x6e4] ss:$8 sps:$4 sm:$0xff]  }
 0x1d9   : > { %v1480_v21 = vpop.f32.mrb[96].mxu0  ;;  %v2761_v22 = vpop.f32.mrb[96].mxu1 }
 0x1da   : > { %v1482_v23 = vpop.f32.mrb[97].mxu0  ;;  %v3644_v25 = vadd.f32 %v3643_v9, %v3517_v19  ;;  %v3518_v26 = vmul.f32 %v3390_v18, %v3262_v20  ;;  %v2762_v27 = vadd.f32 %v2761_v22, %v1480_v21  ;;  %v2763_v28 = vpop.f32.mrb[97].mxu1  ;;  %v4491_v19 = vld [vmem:[%s4671_s30 + $0x6c4] ss:$8 sps:$4 sm:$0xff]  }
 0x1db   : > { %v1483_v29 = vpop.f32.mrb[98].mxu0  ;;  %v2764_v32 = vpop.f32.mrb[98].mxu1 }
 0x1dc   : > { %v1485_v33 = vpop.f32.mrb[99].mxu0  ;;  %v3645_v35 = vadd.f32 %v3644_v25, %v3518_v26  ;;  %v3135_v36 = vadd.f32 %v5072_v16, %v2762_v27  ;;  %v2765_v37 = vadd.f32 %v2764_v32, %v1483_v29  ;;  %v2766_v38 = vpop.f32.mrb[99].mxu1  ;;  %v3396_v27 = vld [vmem:[%s5528_s3 + $0x1a8] sm:$0xff] }
 0x1dd   : > { %v4493_v33 = vld [vmem:[%s4671_s30 + $0x6e0] ss:$8 sps:$4 sm:$0xff]  }
 0x1de   : > { %1695 = vmatmul.mubr.bf16.gmra.mrb[204].mxu0 %v4475_v24  ;;  %v3263_v40 = vmax.f32 %v3135_v36, 0.0  ;;  %v3136_v41 = vadd.f32 %v5072_v16, %v2765_v37  ;;  %2976 = vmatmul.mubr.bf16.gmra.mrb[204].mxu1 %v4476_v30  ;;  %v3395_v24 = vld [vmem:[%s5528_s3 + $0x1a0] sm:$0xff] }
 0x1df   : > { %1702 = vmatprep.mubr.bf16.mxu0 %v4477_v31  ;;  %2983 = vmatprep.mubr.bf16.mxu1 %v4479_v34 }
 0x1e0   : > { %v3519_v43 = vmul.f32 %v3391_v39, %v3263_v40  ;;  %v3264_v44 = vmax.f32 %v3136_v41, 0.0  ;;  %v4494_v39 = vld [vmem:[%s4671_s30 + $0x6c0] ss:$8 sps:$4 sm:$0xff]   ;;  %v4495_v40 = vld [vmem:[%s4671_s30 + $0x6f4] ss:$8 sps:$4 sm:$0xff]  }
 0x1e1   : > { %v1488_v45 = vpop.f32.mrb[100].mxu0  ;;  %v2769_v46 = vpop.f32.mrb[100].mxu1 }
 0x1e2   : > { %v1490_v47 = vpop.f32.mrb[101].mxu0  ;;  %v3646_v49 = vadd.f32 %v3645_v35, %v3519_v43  ;;  %v3520_v50 = vmul.f32 %v3392_v42, %v3264_v44  ;;  %v2770_v51 = vadd.f32 %v2769_v46, %v1488_v45  ;;  %v2771_v52 = vpop.f32.mrb[101].mxu1  ;;  %v4497_v43 = vld [vmem:[%s4671_s30 + $0x6d4] ss:$8 sps:$4 sm:$0xff]  }
 0x1e3   : > { %v1491_v53 = vpop.f32.mrb[102].mxu0  ;;  %v2772_v56 = vpop.f32.mrb[102].mxu1 }
 0x1e4   : > { %v1493_v57 = vpop.f32.mrb[103].mxu0  ;;  %v3647_v59 = vadd.f32 %v3646_v49, %v3520_v50  ;;  %v3137_v60 = vadd.f32 %v5072_v16, %v2770_v51  ;;  %v2773_v61 = vadd.f32 %v2772_v56, %v1491_v53  ;;  %v2774_v62 = vpop.f32.mrb[103].mxu1  ;;  %v3398_v51 = vld [vmem:[%s5528_s3 + $0x1b8] sm:$0xff] }
 0x1e5   : > { %v4499_v57 = vld [vmem:[%s4671_s30 + $0x6f0] ss:$8 sps:$4 sm:$0xff]  }
 0x1e6   : > { %1703 = vmatmul.mubr.bf16.gmra.mrb[208].mxu0 %v4481_v48  ;;  %v3265_v0 = vmax.f32 %v3137_v60, 0.0  ;;  %v3138_v1 = vadd.f32 %v5072_v16, %v2773_v61  ;;  %2984 = vmatmul.mubr.bf16.gmra.mrb[208].mxu1 %v4482_v54  ;;  %v3397_v48 = vld [vmem:[%s5528_s3 + $0x1b0] sm:$0xff] }
 0x1e7   : > { %1710 = vmatprep.mubr.bf16.mxu0 %v4483_v55  ;;  %2991 = vmatprep.mubr.bf16.mxu1 %v4485_v58 }
 0x1e8   : > { %v3521_v3 = vmul.f32 %v3393_v63, %v3265_v0  ;;  %v3266_v4 = vmax.f32 %v3138_v1, 0.0  ;;  %v4500_v63 = vld [vmem:[%s4671_s30 + $0x6d0] ss:$8 sps:$4 sm:$0xff]   ;;  %v4501_v0 = vld [vmem:[%s4671_s30 + $0x724] ss:$8 sps:$4 sm:$0xff]  }
 0x1e9   : > { %v1496_v5 = vpop.f32.mrb[104].mxu0  ;;  %v2777_v6 = vpop.f32.mrb[104].mxu1 }
 0x1ea   : > { %v1498_v7 = vpop.f32.mrb[105].mxu0  ;;  %v3648_v17 = vadd.f32 %v3647_v59, %v3521_v3  ;;  %v3522_v9 = vmul.f32 %v3394_v2, %v3266_v4  ;;  %v2778_v10 = vadd.f32 %v2777_v6, %v1496_v5  ;;  %v2779_v11 = vpop.f32.mrb[105].mxu1  ;;  %v4503_v3 = vld [vmem:[%s4671_s30 + $0x704] ss:$8 sps:$4 sm:$0xff]  }
 0x1eb   : > { %v1499_v12 = vpop.f32.mrb[106].mxu0  ;;  %v2780_v15 = vpop.f32.mrb[106].mxu1 }
 0x1ec   : > { %v1501_v18 = vpop.f32.mrb[107].mxu0  ;;  %v3649_v20 = vadd.f32 %v3648_v17, %v3522_v9  ;;  %v3139_v21 = vadd.f32 %v5072_v16, %v2778_v10  ;;  %v2781_v22 = vadd.f32 %v2780_v15, %v1499_v12  ;;  %v2782_v23 = vpop.f32.mrb[107].mxu1  ;;  %v3400_v10 = vld [vmem:[%s5528_s3 + $0x1c8] sm:$0xff] }
 0x1ed   : > { %v4505_v18 = vld [vmem:[%s4671_s30 + $0x720] ss:$8 sps:$4 sm:$0xff]  }
 0x1ee   : > { %1711 = vmatmul.mubr.bf16.gmra.mrb[212].mxu0 %v4487_v8  ;;  %v3267_v25 = vmax.f32 %v3139_v21, 0.0  ;;  %v3140_v26 = vadd.f32 %v5072_v16, %v2781_v22  ;;  %2992 = vmatmul.mubr.bf16.gmra.mrb[212].mxu1 %v4488_v13  ;;  %v3399_v8 = vld [vmem:[%s5528_s3 + $0x1c0] sm:$0xff] }
 0x1ef   : > { %1718 = vmatprep.mubr.bf16.mxu0 %v4489_v14  ;;  %2999 = vmatprep.mubr.bf16.mxu1 %v4491_v19 }
 0x1f0   : > { %v3523_v28 = vmul.f32 %v3395_v24, %v3267_v25  ;;  %v3268_v29 = vmax.f32 %v3140_v26, 0.0  ;;  %v4506_v24 = vld [vmem:[%s4671_s30 + $0x700] ss:$8 sps:$4 sm:$0xff]   ;;  %v4507_v25 = vld [vmem:[%s4671_s30 + $0x734] ss:$8 sps:$4 sm:$0xff]  }
 0x1f1   : > { %v1504_v30 = vpop.f32.mrb[108].mxu0  ;;  %v2785_v31 = vpop.f32.mrb[108].mxu1 }
 0x1f2   : > { %v1506_v32 = vpop.f32.mrb[109].mxu0  ;;  %v3650_v34 = vadd.f32 %v3649_v20, %v3523_v28  ;;  %v3524_v35 = vmul.f32 %v3396_v27, %v3268_v29  ;;  %v2786_v36 = vadd.f32 %v2785_v31, %v1504_v30  ;;  %v2787_v37 = vpop.f32.mrb[109].mxu1  ;;  %v4509_v28 = vld [vmem:[%s4671_s30 + $0x714] ss:$8 sps:$4 sm:$0xff]  }
 0x1f3   : > { %v1507_v38 = vpop.f32.mrb[110].mxu0  ;;  %v2788_v41 = vpop.f32.mrb[110].mxu1 }
 0x1f4   : > { %v1509_v42 = vpop.f32.mrb[111].mxu0  ;;  %v3651_v44 = vadd.f32 %v3650_v34, %v3524_v35  ;;  %v3141_v45 = vadd.f32 %v5072_v16, %v2786_v36  ;;  %v2789_v46 = vadd.f32 %v2788_v41, %v1507_v38  ;;  %v2790_v47 = vpop.f32.mrb[111].mxu1  ;;  %v3402_v36 = vld [vmem:[%s5528_s3 + $0x1d8] sm:$0xff] }
 0x1f5   : > { %v4511_v42 = vld [vmem:[%s4671_s30 + $0x730] ss:$8 sps:$4 sm:$0xff]  }
 0x1f6   : > { %1719 = vmatmul.mubr.bf16.gmra.mrb[216].mxu0 %v4493_v33  ;;  %v3269_v49 = vmax.f32 %v3141_v45, 0.0  ;;  %v3142_v50 = vadd.f32 %v5072_v16, %v2789_v46  ;;  %3000 = vmatmul.mubr.bf16.gmra.mrb[216].mxu1 %v4494_v39  ;;  %v3401_v33 = vld [vmem:[%s5528_s3 + $0x1d0] sm:$0xff] }
 0x1f7   : > { %1726 = vmatprep.mubr.bf16.mxu0 %v4495_v40  ;;  %3007 = vmatprep.mubr.bf16.mxu1 %v4497_v43 }
 0x1f8   : > { %v3525_v52 = vmul.f32 %v3397_v48, %v3269_v49  ;;  %v3270_v53 = vmax.f32 %v3142_v50, 0.0  ;;  %v4512_v48 = vld [vmem:[%s4671_s30 + $0x710] ss:$8 sps:$4 sm:$0xff]   ;;  %v4513_v49 = vld [vmem:[%s4671_s30 + $0x764] ss:$8 sps:$4 sm:$0xff]  }
 0x1f9   : > { %v1512_v54 = vpop.f32.mrb[112].mxu0  ;;  %v2793_v55 = vpop.f32.mrb[112].mxu1 }
 0x1fa   : > { %v1514_v56 = vpop.f32.mrb[113].mxu0  ;;  %v3652_v58 = vadd.f32 %v3651_v44, %v3525_v52  ;;  %v3526_v59 = vmul.f32 %v3398_v51, %v3270_v53  ;;  %v2794_v60 = vadd.f32 %v2793_v55, %v1512_v54  ;;  %v2795_v61 = vpop.f32.mrb[113].mxu1  ;;  %v4515_v52 = vld [vmem:[%s4671_s30 + $0x744] ss:$8 sps:$4 sm:$0xff]  }
 0x1fb   : > { %v1515_v62 = vpop.f32.mrb[114].mxu0  ;;  %v2796_v1 = vpop.f32.mrb[114].mxu1 }
 0x1fc   : > { %v1517_v2 = vpop.f32.mrb[115].mxu0  ;;  %v3653_v4 = vadd.f32 %v3652_v58, %v3526_v59  ;;  %v3143_v5 = vadd.f32 %v5072_v16, %v2794_v60  ;;  %v2797_v6 = vadd.f32 %v2796_v1, %v1515_v62  ;;  %v2798_v7 = vpop.f32.mrb[115].mxu1  ;;  %v3404_v60 = vld [vmem:[%s5528_s3 + $0x1e8] sm:$0xff] }
 0x1fd   : > { %v4517_v2 = vld [vmem:[%s4671_s30 + $0x760] ss:$8 sps:$4 sm:$0xff]  }
 0x1fe   : > { %1727 = vmatmul.mubr.bf16.gmra.mrb[220].mxu0 %v4499_v57  ;;  %v3271_v17 = vmax.f32 %v3143_v5, 0.0  ;;  %v3144_v9 = vadd.f32 %v5072_v16, %v2797_v6  ;;  %3008 = vmatmul.mubr.bf16.gmra.mrb[220].mxu1 %v4500_v63  ;;  %v3403_v57 = vld [vmem:[%s5528_s3 + $0x1e0] sm:$0xff] }
 0x1ff   : > { %1734 = vmatprep.mubr.bf16.mxu0 %v4501_v0  ;;  %3015 = vmatprep.mubr.bf16.mxu1 %v4503_v3 }
 0x200   : > { %v3527_v11 = vmul.f32 %v3399_v8, %v3271_v17  ;;  %v3272_v12 = vmax.f32 %v3144_v9, 0.0  ;;  %v4518_v8 = vld [vmem:[%s4671_s30 + $0x740] ss:$8 sps:$4 sm:$0xff]   ;;  %v4519_v17 = vld [vmem:[%s4671_s30 + $0x774] ss:$8 sps:$4 sm:$0xff]  }
 0x201   : > { %v1520_v13 = vpop.f32.mrb[116].mxu0  ;;  %v2801_v14 = vpop.f32.mrb[116].mxu1 }
 0x202   : > { %v1522_v15 = vpop.f32.mrb[117].mxu0  ;;  %v3654_v19 = vadd.f32 %v3653_v4, %v3527_v11  ;;  %v3528_v20 = vmul.f32 %v3400_v10, %v3272_v12  ;;  %v2802_v21 = vadd.f32 %v2801_v14, %v1520_v13  ;;  %v2803_v22 = vpop.f32.mrb[117].mxu1  ;;  %v4521_v11 = vld [vmem:[%s4671_s30 + $0x754] ss:$8 sps:$4 sm:$0xff]  }
 0x203   : > { %v1523_v23 = vpop.f32.mrb[118].mxu0  ;;  %v2804_v26 = vpop.f32.mrb[118].mxu1 }
 0x204   : > { %v1525_v27 = vpop.f32.mrb[119].mxu0  ;;  %v3655_v29 = vadd.f32 %v3654_v19, %v3528_v20  ;;  %v3145_v30 = vadd.f32 %v5072_v16, %v2802_v21  ;;  %v2805_v31 = vadd.f32 %v2804_v26, %v1523_v23  ;;  %v2806_v32 = vpop.f32.mrb[119].mxu1  ;;  %v3406_v21 = vld [vmem:[%s5528_s3 + $0x1f8] sm:$0xff] }
 0x205   : > { %v4523_v27 = vld [vmem:[%s4671_s30 + $0x770] ss:$8 sps:$4 sm:$0xff]  }
 0x206   : > { %1735 = vmatmul.mubr.bf16.gmra.mrb[224].mxu0 %v4505_v18  ;;  %v3273_v34 = vmax.f32 %v3145_v30, 0.0  ;;  %v3146_v35 = vadd.f32 %v5072_v16, %v2805_v31  ;;  %3016 = vmatmul.mubr.bf16.gmra.mrb[224].mxu1 %v4506_v24  ;;  %v3405_v18 = vld [vmem:[%s5528_s3 + $0x1f0] sm:$0xff] }
 0x207   : > { %1742 = vmatprep.mubr.bf16.mxu0 %v4507_v25  ;;  %3023 = vmatprep.mubr.bf16.mxu1 %v4509_v28 }
 0x208   : > { %v3529_v37 = vmul.f32 %v3401_v33, %v3273_v34  ;;  %v3274_v38 = vmax.f32 %v3146_v35, 0.0  ;;  %v4524_v33 = vld [vmem:[%s4671_s30 + $0x750] ss:$8 sps:$4 sm:$0xff]   ;;  %v4525_v34 = vld [vmem:[%s4671_s30 + $0x7a4] ss:$8 sps:$4 sm:$0xff]  }
 0x209   : > { %v1528_v39 = vpop.f32.mrb[120].mxu0  ;;  %v2809_v40 = vpop.f32.mrb[120].mxu1 }
 0x20a   : > { %v1530_v41 = vpop.f32.mrb[121].mxu0  ;;  %v3656_v43 = vadd.f32 %v3655_v29, %v3529_v37  ;;  %v3530_v44 = vmul.f32 %v3402_v36, %v3274_v38  ;;  %v2810_v45 = vadd.f32 %v2809_v40, %v1528_v39  ;;  %v2811_v46 = vpop.f32.mrb[121].mxu1  ;;  %v4527_v37 = vld [vmem:[%s4671_s30 + $0x784] ss:$8 sps:$4 sm:$0xff]  }
 0x20b   : > { %v1531_v47 = vpop.f32.mrb[122].mxu0  ;;  %v2812_v50 = vpop.f32.mrb[122].mxu1 }
 0x20c   : > { %v1533_v51 = vpop.f32.mrb[123].mxu0  ;;  %v3657_v53 = vadd.f32 %v3656_v43, %v3530_v44  ;;  %v3147_v54 = vadd.f32 %v5072_v16, %v2810_v45  ;;  %v2813_v55 = vadd.f32 %v2812_v50, %v1531_v47  ;;  %v2814_v56 = vpop.f32.mrb[123].mxu1  ;;  %v3408_v45 = vld [vmem:[%s5528_s3 + $0x208] sm:$0xff] }
 0x20d   : > { %v4529_v51 = vld [vmem:[%s4671_s30 + $0x7a0] ss:$8 sps:$4 sm:$0xff]  }
 0x20e   : > { %1743 = vmatmul.mubr.bf16.gmra.mrb[228].mxu0 %v4511_v42  ;;  %v3275_v58 = vmax.f32 %v3147_v54, 0.0  ;;  %v3148_v59 = vadd.f32 %v5072_v16, %v2813_v55  ;;  %3024 = vmatmul.mubr.bf16.gmra.mrb[228].mxu1 %v4512_v48  ;;  %v3407_v42 = vld [vmem:[%s5528_s3 + $0x200] sm:$0xff] }
 0x20f   : > { %1750 = vmatprep.mubr.bf16.mxu0 %v4513_v49  ;;  %3031 = vmatprep.mubr.bf16.mxu1 %v4515_v52 }
 0x210   : > { %v3531_v61 = vmul.f32 %v3403_v57, %v3275_v58  ;;  %v3276_v62 = vmax.f32 %v3148_v59, 0.0  ;;  %v4530_v57 = vld [vmem:[%s4671_s30 + $0x780] ss:$8 sps:$4 sm:$0xff]   ;;  %v4531_v58 = vld [vmem:[%s4671_s30 + $0x7b4] ss:$8 sps:$4 sm:$0xff]  }
 0x211   : > { %v1536_v63 = vpop.f32.mrb[124].mxu0  ;;  %v2817_v0 = vpop.f32.mrb[124].mxu1 }
 0x212   : > { %v1538_v1 = vpop.f32.mrb[125].mxu0  ;;  %v3658_v3 = vadd.f32 %v3657_v53, %v3531_v61  ;;  %v3532_v4 = vmul.f32 %v3404_v60, %v3276_v62  ;;  %v2818_v5 = vadd.f32 %v2817_v0, %v1536_v63  ;;  %v2819_v6 = vpop.f32.mrb[125].mxu1  ;;  %v4533_v61 = vld [vmem:[%s4671_s30 + $0x794] ss:$8 sps:$4 sm:$0xff]  }
 0x213   : > { %v1539_v7 = vpop.f32.mrb[126].mxu0  ;;  %v2820_v9 = vpop.f32.mrb[126].mxu1 }
 0x214   : > { %v1541_v10 = vpop.f32.mrb[127].mxu0  ;;  %v3659_v12 = vadd.f32 %v3658_v3, %v3532_v4  ;;  %v3149_v13 = vadd.f32 %v5072_v16, %v2818_v5  ;;  %v2821_v14 = vadd.f32 %v2820_v9, %v1539_v7  ;;  %v2822_v15 = vpop.f32.mrb[127].mxu1  ;;  %v3410_v5 = vld [vmem:[%s5528_s3 + $0x218] sm:$0xff] }
 0x215   : > { %v4535_v10 = vld [vmem:[%s4671_s30 + $0x7b0] ss:$8 sps:$4 sm:$0xff]  }
 0x216   : > { %1751 = vmatmul.mubr.bf16.gmra.mrb[232].mxu0 %v4517_v2  ;;  %v3277_v19 = vmax.f32 %v3149_v13, 0.0  ;;  %v3150_v20 = vadd.f32 %v5072_v16, %v2821_v14  ;;  %3032 = vmatmul.mubr.bf16.gmra.mrb[232].mxu1 %v4518_v8  ;;  %v3409_v2 = vld [vmem:[%s5528_s3 + $0x210] sm:$0xff] }
 0x217   : > { %1758 = vmatprep.mubr.bf16.mxu0 %v4519_v17  ;;  %3039 = vmatprep.mubr.bf16.mxu1 %v4521_v11 }
 0x218   : > { %v3533_v22 = vmul.f32 %v3405_v18, %v3277_v19  ;;  %v3278_v23 = vmax.f32 %v3150_v20, 0.0  ;;  %v4536_v18 = vld [vmem:[%s4671_s30 + $0x790] ss:$8 sps:$4 sm:$0xff]   ;;  %v4537_v19 = vld [vmem:[%s4671_s30 + $0x7e4] ss:$8 sps:$4 sm:$0xff]  }
 0x219   : > { %v1544_v24 = vpop.f32.mrb[128].mxu0  ;;  %v2825_v25 = vpop.f32.mrb[128].mxu1 }
 0x21a   : > { %v1546_v26 = vpop.f32.mrb[129].mxu0  ;;  %v3660_v28 = vadd.f32 %v3659_v12, %v3533_v22  ;;  %v3534_v29 = vmul.f32 %v3406_v21, %v3278_v23  ;;  %v2826_v30 = vadd.f32 %v2825_v25, %v1544_v24  ;;  %v2827_v31 = vpop.f32.mrb[129].mxu1  ;;  %v4539_v22 = vld [vmem:[%s4671_s30 + $0x7c4] ss:$8 sps:$4 sm:$0xff]  }
 0x21b   : > { %v1547_v32 = vpop.f32.mrb[130].mxu0  ;;  %v2828_v35 = vpop.f32.mrb[130].mxu1 }
 0x21c   : > { %v1549_v36 = vpop.f32.mrb[131].mxu0  ;;  %v3661_v38 = vadd.f32 %v3660_v28, %v3534_v29  ;;  %v3151_v39 = vadd.f32 %v5072_v16, %v2826_v30  ;;  %v2829_v40 = vadd.f32 %v2828_v35, %v1547_v32  ;;  %v2830_v41 = vpop.f32.mrb[131].mxu1  ;;  %v3412_v30 = vld [vmem:[%s5528_s3 + $0x228] sm:$0xff] }
 0x21d   : > { %v4541_v36 = vld [vmem:[%s4671_s30 + $0x7e0] ss:$8 sps:$4 sm:$0xff]  }
 0x21e   : > { %1759 = vmatmul.mubr.bf16.gmra.mrb[236].mxu0 %v4523_v27  ;;  %v3279_v43 = vmax.f32 %v3151_v39, 0.0  ;;  %v3152_v44 = vadd.f32 %v5072_v16, %v2829_v40  ;;  %3040 = vmatmul.mubr.bf16.gmra.mrb[236].mxu1 %v4524_v33  ;;  %v3411_v27 = vld [vmem:[%s5528_s3 + $0x220] sm:$0xff] }
 0x21f   : > { %1766 = vmatprep.mubr.bf16.mxu0 %v4525_v34  ;;  %3047 = vmatprep.mubr.bf16.mxu1 %v4527_v37 }
 0x220   : > { %v3535_v46 = vmul.f32 %v3407_v42, %v3279_v43  ;;  %v3280_v47 = vmax.f32 %v3152_v44, 0.0  ;;  %v4542_v42 = vld [vmem:[%s4671_s30 + $0x7c0] ss:$8 sps:$4 sm:$0xff]   ;;  %v4543_v43 = vld [vmem:[%s4671_s30 + $0x7f4] ss:$8 sps:$4 sm:$0xff]  }
 0x221   : > { %v1552_v48 = vpop.f32.mrb[132].mxu0  ;;  %v2833_v49 = vpop.f32.mrb[132].mxu1 }
 0x222   : > { %v1554_v50 = vpop.f32.mrb[133].mxu0  ;;  %v3662_v52 = vadd.f32 %v3661_v38, %v3535_v46  ;;  %v3536_v53 = vmul.f32 %v3408_v45, %v3280_v47  ;;  %v2834_v54 = vadd.f32 %v2833_v49, %v1552_v48  ;;  %v2835_v55 = vpop.f32.mrb[133].mxu1  ;;  %v4545_v46 = vld [vmem:[%s4671_s30 + $0x7d4] ss:$8 sps:$4 sm:$0xff]  }
 0x223   : > { %v1555_v56 = vpop.f32.mrb[134].mxu0  ;;  %v2836_v59 = vpop.f32.mrb[134].mxu1 }
 0x224   : > { %v1557_v60 = vpop.f32.mrb[135].mxu0  ;;  %v3663_v62 = vadd.f32 %v3662_v52, %v3536_v53  ;;  %v3153_v63 = vadd.f32 %v5072_v16, %v2834_v54  ;;  %v2837_v0 = vadd.f32 %v2836_v59, %v1555_v56  ;;  %v2838_v1 = vpop.f32.mrb[135].mxu1  ;;  %v3414_v54 = vld [vmem:[%s5528_s3 + $0x238] sm:$0xff] }
 0x225   : > { %v4547_v60 = vld [vmem:[%s4671_s30 + $0x7f0] ss:$8 sps:$4 sm:$0xff]  }
 0x226   : > { %1767 = vmatmul.mubr.bf16.gmra.mrb[240].mxu0 %v4529_v51  ;;  %v3281_v3 = vmax.f32 %v3153_v63, 0.0  ;;  %v3154_v4 = vadd.f32 %v5072_v16, %v2837_v0  ;;  %3048 = vmatmul.mubr.bf16.gmra.mrb[240].mxu1 %v4530_v57  ;;  %v3413_v51 = vld [vmem:[%s5528_s3 + $0x230] sm:$0xff] }
 0x227   : > { %1774 = vmatprep.mubr.bf16.mxu0 %v4531_v58  ;;  %3055 = vmatprep.mubr.bf16.mxu1 %v4533_v61 }
 0x228   : > { %v3537_v6 = vmul.f32 %v3409_v2, %v3281_v3  ;;  %v3282_v7 = vmax.f32 %v3154_v4, 0.0  ;;  %v4548_v2 = vld [vmem:[%s4671_s30 + $0x7d0] ss:$8 sps:$4 sm:$0xff]  }
 0x229   : > { %v1560_v8 = vpop.f32.mrb[136].mxu0  ;;  %v2841_v17 = vpop.f32.mrb[136].mxu1 }
 0x22a   : > { %v1562_v9 = vpop.f32.mrb[137].mxu0  ;;  %v3664_v11 = vadd.f32 %v3663_v62, %v3537_v6  ;;  %v3538_v12 = vmul.f32 %v3410_v5, %v3282_v7  ;;  %v2842_v13 = vadd.f32 %v2841_v17, %v1560_v8  ;;  %v2843_v14 = vpop.f32.mrb[137].mxu1  ;;  %v3415_v17 = vld [vmem:[%s5528_s3 + $0x240] sm:$0xff] }
 0x22b   : > { %v1563_v15 = vpop.f32.mrb[138].mxu0  ;;  %v2844_v20 = vpop.f32.mrb[138].mxu1 }
 0x22c   : > { %v1565_v21 = vpop.f32.mrb[139].mxu0  ;;  %v3665_v23 = vadd.f32 %v3664_v11, %v3538_v12  ;;  %v3155_v24 = vadd.f32 %v5072_v16, %v2842_v13  ;;  %v2845_v25 = vadd.f32 %v2844_v20, %v1563_v15  ;;  %v2846_v26 = vpop.f32.mrb[139].mxu1  ;;  %v3416_v11 = vld [vmem:[%s5528_s3 + $0x248] sm:$0xff] }
 0x22e   : > { %1775 = vmatmul.mubr.bf16.gmra.mrb[244].mxu0 %v4535_v10  ;;  %v3283_v28 = vmax.f32 %v3155_v24, 0.0  ;;  %v3156_v29 = vadd.f32 %v5072_v16, %v2845_v25  ;;  %3056 = vmatmul.mubr.bf16.gmra.mrb[244].mxu1 %v4536_v18 }
 0x22f   : > { %1782 = vmatprep.mubr.bf16.mxu0 %v4537_v19  ;;  %3063 = vmatprep.mubr.bf16.mxu1 %v4539_v22 }
 0x230   : > { %v3539_v31 = vmul.f32 %v3411_v27, %v3283_v28  ;;  %v3284_v32 = vmax.f32 %v3156_v29, 0.0 }
 0x231   : > { %v1568_v33 = vpop.f32.mrb[140].mxu0  ;;  %v2849_v34 = vpop.f32.mrb[140].mxu1 }
 0x232   : > { %v1570_v35 = vpop.f32.mrb[141].mxu0  ;;  %v3666_v37 = vadd.f32 %v3665_v23, %v3539_v31  ;;  %v3540_v38 = vmul.f32 %v3412_v30, %v3284_v32  ;;  %v2850_v39 = vadd.f32 %v2849_v34, %v1568_v33  ;;  %v2851_v40 = vpop.f32.mrb[141].mxu1  ;;  %v3417_v30 = vld [vmem:[%s5528_s3 + $0x250] sm:$0xff]  ;;  %v3418_v33 = vld [vmem:[%s5528_s3 + $0x258] sm:$0xff] }
 0x233   : > { %v1571_v41 = vpop.f32.mrb[142].mxu0  ;;  %v2852_v44 = vpop.f32.mrb[142].mxu1 }
 0x234   : > { %v1573_v45 = vpop.f32.mrb[143].mxu0  ;;  %v3667_v47 = vadd.f32 %v3666_v37, %v3540_v38  ;;  %v3157_v48 = vadd.f32 %v5072_v16, %v2850_v39  ;;  %v2853_v49 = vadd.f32 %v2852_v44, %v1571_v41  ;;  %v2854_v50 = vpop.f32.mrb[143].mxu1 }
 0x235   : > { %v3419_v50 = vld [vmem:[%s5528_s3 + $0x260] sm:$0xff] }
 0x236   : > { %1783 = vmatmul.mubr.bf16.gmra.mrb[248].mxu0 %v4541_v36  ;;  %v3285_v52 = vmax.f32 %v3157_v48, 0.0  ;;  %v3158_v53 = vadd.f32 %v5072_v16, %v2853_v49  ;;  %3064 = vmatmul.mubr.bf16.gmra.mrb[248].mxu1 %v4542_v42 }
 0x237   : > { %1790 = vmatprep.mubr.bf16.mxu0 %v4543_v43  ;;  %3071 = vmatprep.mubr.bf16.mxu1 %v4545_v46 }
 0x238   : > { %v3541_v55 = vmul.f32 %v3413_v51, %v3285_v52  ;;  %v3286_v56 = vmax.f32 %v3158_v53, 0.0  ;;  %v3420_v53 = vld [vmem:[%s5528_s3 + $0x268] sm:$0xff] }
 0x239   : > { %v1576_v57 = vpop.f32.mrb[144].mxu0  ;;  %v2857_v58 = vpop.f32.mrb[144].mxu1 }
 0x23a   : > { %v1578_v59 = vpop.f32.mrb[145].mxu0  ;;  %v3668_v61 = vadd.f32 %v3667_v47, %v3541_v55  ;;  %v3542_v62 = vmul.f32 %v3414_v54, %v3286_v56  ;;  %v2858_v63 = vadd.f32 %v2857_v58, %v1576_v57  ;;  %v2859_v0 = vpop.f32.mrb[145].mxu1 }
 0x23b   : > { %v1579_v1 = vpop.f32.mrb[146].mxu0  ;;  %v2860_v3 = vpop.f32.mrb[146].mxu1 }
 0x23c   : > { %v1581_v4 = vpop.f32.mrb[147].mxu0  ;;  %v3669_v5 = vadd.f32 %v3668_v61, %v3542_v62  ;;  %v3159_v6 = vadd.f32 %v5072_v16, %v2858_v63  ;;  %v2861_v7 = vadd.f32 %v2860_v3, %v1579_v1  ;;  %v2862_v8 = vpop.f32.mrb[147].mxu1 }
 0x23e   : > { %1791 = vmatmul.mubr.bf16.gmra.mrb[252].mxu0 %v4547_v60  ;;  %v3287_v9 = vmax.f32 %v3159_v6, 0.0  ;;  %v3160_v10 = vadd.f32 %v5072_v16, %v2861_v7  ;;  %3072 = vmatmul.mubr.bf16.gmra.mrb[252].mxu1 %v4548_v2  ;;  %v5299_v16 = vld [vmem:[%s5527_s2] ss:$0 sm:$0xff]  ;;  %v3421_v6 = vld [vmem:[%s5528_s3 + $0x270] sm:$0xff] }
 0x240   : > { %v3543_v12 = vmul.f32 %v3415_v17, %v3287_v9  ;;  %v3288_v13 = vmax.f32 %v3160_v10, 0.0  ;;  %v3422_v17 = vld [vmem:[%s5528_s3 + $0x278] sm:$0xff] }
 0x241   : > { %v1584_v14 = vpop.f32.mrb[148].mxu0  ;;  %v2865_v15 = vpop.f32.mrb[148].mxu1 }
 0x242   : > { %v1586_v18 = vpop.f32.mrb[149].mxu0  ;;  %v3670_v19 = vadd.f32 %v3669_v5, %v3543_v12  ;;  %v3544_v20 = vmul.f32 %v3416_v11, %v3288_v13  ;;  %v2866_v21 = vadd.f32 %v2865_v15, %v1584_v14  ;;  %v2867_v22 = vpop.f32.mrb[149].mxu1 }
 0x243   : > { %v1587_v23 = vpop.f32.mrb[150].mxu0  ;;  %v2868_v24 = vpop.f32.mrb[150].mxu1 }
 0x244   : > { %v1589_v25 = vpop.f32.mrb[151].mxu0  ;;  %v3671_v26 = vadd.f32 %v3670_v19, %v3544_v20  ;;  %v3161_v27 = vadd.f32 %v5299_v16, %v2866_v21  ;;  %v2869_v28 = vadd.f32 %v2868_v24, %v1587_v23  ;;  %v2870_v29 = vpop.f32.mrb[151].mxu1 }
 0x246   : > { %v3289_v31 = vmax.f32 %v3161_v27, 0.0  ;;  %v3162_v32 = vadd.f32 %v5299_v16, %v2869_v28  ;;  %v3423_v27 = vld [vmem:[%s5528_s3 + $0x280] sm:$0xff] }
 0x248   : > { %v3545_v34 = vmul.f32 %v3417_v30, %v3289_v31  ;;  %v3290_v35 = vmax.f32 %v3162_v32, 0.0  ;;  %v3424_v30 = vld [vmem:[%s5528_s3 + $0x288] sm:$0xff] }
 0x249   : > { %v1592_v36 = vpop.f32.mrb[152].mxu0  ;;  %v2873_v37 = vpop.f32.mrb[152].mxu1 }
 0x24a   : > { %v1594_v38 = vpop.f32.mrb[153].mxu0  ;;  %v3672_v39 = vadd.f32 %v3671_v26, %v3545_v34  ;;  %v3546_v40 = vmul.f32 %v3418_v33, %v3290_v35  ;;  %v2874_v41 = vadd.f32 %v2873_v37, %v1592_v36  ;;  %v2875_v42 = vpop.f32.mrb[153].mxu1 }
 0x24b   : > { %v1595_v43 = vpop.f32.mrb[154].mxu0  ;;  %v2876_v44 = vpop.f32.mrb[154].mxu1 }
 0x24c   : > { %v1597_v45 = vpop.f32.mrb[155].mxu0  ;;  %v3673_v46 = vadd.f32 %v3672_v39, %v3546_v40  ;;  %v3163_v47 = vadd.f32 %v5299_v16, %v2874_v41  ;;  %v2877_v48 = vadd.f32 %v2876_v44, %v1595_v43  ;;  %v2878_v49 = vpop.f32.mrb[155].mxu1 }
 0x24e   : > { %v3291_v51 = vmax.f32 %v3163_v47, 0.0  ;;  %v3164_v52 = vadd.f32 %v5299_v16, %v2877_v48  ;;  %v3425_v47 = vld [vmem:[%s5528_s3 + $0x290] sm:$0xff] }
 0x250   : > { %v3547_v54 = vmul.f32 %v3419_v50, %v3291_v51  ;;  %v3292_v55 = vmax.f32 %v3164_v52, 0.0  ;;  %v3426_v50 = vld [vmem:[%s5528_s3 + $0x298] sm:$0xff] }
 0x251   : > { %v1600_v56 = vpop.f32.mrb[156].mxu0  ;;  %v2881_v57 = vpop.f32.mrb[156].mxu1 }
 0x252   : > { %v1602_v58 = vpop.f32.mrb[157].mxu0  ;;  %v3674_v59 = vadd.f32 %v3673_v46, %v3547_v54  ;;  %v3548_v60 = vmul.f32 %v3420_v53, %v3292_v55  ;;  %v2882_v61 = vadd.f32 %v2881_v57, %v1600_v56  ;;  %v2883_v62 = vpop.f32.mrb[157].mxu1 }
 0x253   : > { %v1603_v63 = vpop.f32.mrb[158].mxu0  ;;  %v2884_v0 = vpop.f32.mrb[158].mxu1 }
 0x254   : > { %v1605_v1 = vpop.f32.mrb[159].mxu0  ;;  %v3675_v2 = vadd.f32 %v3674_v59, %v3548_v60  ;;  %v3165_v3 = vadd.f32 %v5299_v16, %v2882_v61  ;;  %v2885_v4 = vadd.f32 %v2884_v0, %v1603_v63  ;;  %v2886_v5 = vpop.f32.mrb[159].mxu1 }
 0x256   : > { %v3293_v7 = vmax.f32 %v3165_v3, 0.0  ;;  %v3166_v8 = vadd.f32 %v5299_v16, %v2885_v4  ;;  %v3427_v3 = vld [vmem:[%s5528_s3 + $0x2a0] sm:$0xff] }
 0x258   : > { %v3549_v9 = vmul.f32 %v3421_v6, %v3293_v7  ;;  %v3294_v10 = vmax.f32 %v3166_v8, 0.0  ;;  %v3428_v6 = vld [vmem:[%s5528_s3 + $0x2a8] sm:$0xff] }
 0x259   : > { %v1608_v11 = vpop.f32.mrb[160].mxu0  ;;  %v2889_v12 = vpop.f32.mrb[160].mxu1 }
 0x25a   : > { %v1610_v13 = vpop.f32.mrb[161].mxu0  ;;  %v3676_v14 = vadd.f32 %v3675_v2, %v3549_v9  ;;  %v3550_v15 = vmul.f32 %v3422_v17, %v3294_v10  ;;  %v2890_v18 = vadd.f32 %v2889_v12, %v1608_v11  ;;  %v2891_v19 = vpop.f32.mrb[161].mxu1 }
 0x25b   : > { %v1611_v20 = vpop.f32.mrb[162].mxu0  ;;  %v2892_v21 = vpop.f32.mrb[162].mxu1 }
 0x25c   : > { %v1613_v22 = vpop.f32.mrb[163].mxu0  ;;  %v3677_v23 = vadd.f32 %v3676_v14, %v3550_v15  ;;  %v3167_v24 = vadd.f32 %v5299_v16, %v2890_v18  ;;  %v2893_v25 = vadd.f32 %v2892_v21, %v1611_v20  ;;  %v2894_v26 = vpop.f32.mrb[163].mxu1 }
 0x25e   : > { %v3295_v28 = vmax.f32 %v3167_v24, 0.0  ;;  %v3168_v29 = vadd.f32 %v5299_v16, %v2893_v25  ;;  %v3429_v24 = vld [vmem:[%s5528_s3 + $0x2b0] sm:$0xff] }
 0x260   : > { %v3551_v31 = vmul.f32 %v3423_v27, %v3295_v28  ;;  %v3296_v32 = vmax.f32 %v3168_v29, 0.0  ;;  %v3430_v27 = vld [vmem:[%s5528_s3 + $0x2b8] sm:$0xff] }
 0x261   : > { %v1616_v33 = vpop.f32.mrb[164].mxu0  ;;  %v2897_v34 = vpop.f32.mrb[164].mxu1 }
 0x262   : > { %v1618_v35 = vpop.f32.mrb[165].mxu0  ;;  %v3678_v36 = vadd.f32 %v3677_v23, %v3551_v31  ;;  %v3552_v37 = vmul.f32 %v3424_v30, %v3296_v32  ;;  %v2898_v38 = vadd.f32 %v2897_v34, %v1616_v33  ;;  %v2899_v39 = vpop.f32.mrb[165].mxu1 }
 0x263   : > { %v1619_v40 = vpop.f32.mrb[166].mxu0  ;;  %v2900_v41 = vpop.f32.mrb[166].mxu1 }
 0x264   : > { %v1621_v42 = vpop.f32.mrb[167].mxu0  ;;  %v3679_v43 = vadd.f32 %v3678_v36, %v3552_v37  ;;  %v3169_v44 = vadd.f32 %v5299_v16, %v2898_v38  ;;  %v2901_v45 = vadd.f32 %v2900_v41, %v1619_v40  ;;  %v2902_v46 = vpop.f32.mrb[167].mxu1 }
 0x266   : > { %v3297_v48 = vmax.f32 %v3169_v44, 0.0  ;;  %v3170_v49 = vadd.f32 %v5299_v16, %v2901_v45  ;;  %v3431_v44 = vld [vmem:[%s5528_s3 + $0x2c0] sm:$0xff] }
 0x268   : > { %v3553_v51 = vmul.f32 %v3425_v47, %v3297_v48  ;;  %v3298_v52 = vmax.f32 %v3170_v49, 0.0  ;;  %v3432_v47 = vld [vmem:[%s5528_s3 + $0x2c8] sm:$0xff] }
 0x269   : > { %v1624_v53 = vpop.f32.mrb[168].mxu0  ;;  %v2905_v54 = vpop.f32.mrb[168].mxu1 }
 0x26a   : > { %v1626_v55 = vpop.f32.mrb[169].mxu0  ;;  %v3680_v56 = vadd.f32 %v3679_v43, %v3553_v51  ;;  %v3554_v57 = vmul.f32 %v3426_v50, %v3298_v52  ;;  %v2906_v58 = vadd.f32 %v2905_v54, %v1624_v53  ;;  %v2907_v59 = vpop.f32.mrb[169].mxu1 }
 0x26b   : > { %v1627_v60 = vpop.f32.mrb[170].mxu0  ;;  %v2908_v61 = vpop.f32.mrb[170].mxu1 }
 0x26c   : > { %v1629_v62 = vpop.f32.mrb[171].mxu0  ;;  %v3681_v63 = vadd.f32 %v3680_v56, %v3554_v57  ;;  %v3171_v0 = vadd.f32 %v5299_v16, %v2906_v58  ;;  %v2909_v1 = vadd.f32 %v2908_v61, %v1627_v60  ;;  %v2910_v2 = vpop.f32.mrb[171].mxu1 }
 0x26e   : > { %v3299_v4 = vmax.f32 %v3171_v0, 0.0  ;;  %v3172_v5 = vadd.f32 %v5299_v16, %v2909_v1  ;;  %v3433_v0 = vld [vmem:[%s5528_s3 + $0x2d0] sm:$0xff] }
 0x270   : > { %v3555_v7 = vmul.f32 %v3427_v3, %v3299_v4  ;;  %v3300_v8 = vmax.f32 %v3172_v5, 0.0  ;;  %v3434_v3 = vld [vmem:[%s5528_s3 + $0x2d8] sm:$0xff] }
 0x271   : > { %v1632_v17 = vpop.f32.mrb[172].mxu0  ;;  %v2913_v9 = vpop.f32.mrb[172].mxu1 }
 0x272   : > { %v1634_v10 = vpop.f32.mrb[173].mxu0  ;;  %v3682_v11 = vadd.f32 %v3681_v63, %v3555_v7  ;;  %v3556_v12 = vmul.f32 %v3428_v6, %v3300_v8  ;;  %v2914_v13 = vadd.f32 %v2913_v9, %v1632_v17  ;;  %v2915_v14 = vpop.f32.mrb[173].mxu1 }
 0x273   : > { %v1635_v15 = vpop.f32.mrb[174].mxu0  ;;  %v2916_v18 = vpop.f32.mrb[174].mxu1 }
 0x274   : > { %v1637_v19 = vpop.f32.mrb[175].mxu0  ;;  %v3683_v20 = vadd.f32 %v3682_v11, %v3556_v12  ;;  %v3173_v21 = vadd.f32 %v5299_v16, %v2914_v13  ;;  %v2917_v22 = vadd.f32 %v2916_v18, %v1635_v15  ;;  %v2918_v23 = vpop.f32.mrb[175].mxu1 }
 0x276   : > { %v3301_v25 = vmax.f32 %v3173_v21, 0.0  ;;  %v3174_v26 = vadd.f32 %v5299_v16, %v2917_v22  ;;  %v3435_v21 = vld [vmem:[%s5528_s3 + $0x2e0] sm:$0xff] }
 0x278   : > { %v3557_v28 = vmul.f32 %v3429_v24, %v3301_v25  ;;  %v3302_v29 = vmax.f32 %v3174_v26, 0.0  ;;  %v3436_v24 = vld [vmem:[%s5528_s3 + $0x2e8] sm:$0xff] }
 0x279   : > { %v1640_v30 = vpop.f32.mrb[176].mxu0  ;;  %v2921_v31 = vpop.f32.mrb[176].mxu1 }
 0x27a   : > { %v1642_v32 = vpop.f32.mrb[177].mxu0  ;;  %v3684_v33 = vadd.f32 %v3683_v20, %v3557_v28  ;;  %v3558_v34 = vmul.f32 %v3430_v27, %v3302_v29  ;;  %v2922_v35 = vadd.f32 %v2921_v31, %v1640_v30  ;;  %v2923_v36 = vpop.f32.mrb[177].mxu1 }
 0x27b   : > { %v1643_v37 = vpop.f32.mrb[178].mxu0  ;;  %v2924_v38 = vpop.f32.mrb[178].mxu1 }
 0x27c   : > { %v1645_v39 = vpop.f32.mrb[179].mxu0  ;;  %v3685_v40 = vadd.f32 %v3684_v33, %v3558_v34  ;;  %v3175_v41 = vadd.f32 %v5299_v16, %v2922_v35  ;;  %v2925_v42 = vadd.f32 %v2924_v38, %v1643_v37  ;;  %v2926_v43 = vpop.f32.mrb[179].mxu1 }
 0x27e   : > { %v3303_v45 = vmax.f32 %v3175_v41, 0.0  ;;  %v3176_v46 = vadd.f32 %v5299_v16, %v2925_v42  ;;  %v3437_v41 = vld [vmem:[%s5528_s3 + $0x2f0] sm:$0xff] }
 0x280   : > { %v3559_v48 = vmul.f32 %v3431_v44, %v3303_v45  ;;  %v3304_v49 = vmax.f32 %v3176_v46, 0.0  ;;  %v3438_v44 = vld [vmem:[%s5528_s3 + $0x2f8] sm:$0xff] }
 0x281   : > { %v1648_v50 = vpop.f32.mrb[180].mxu0  ;;  %v2929_v51 = vpop.f32.mrb[180].mxu1 }
 0x282   : > { %v1650_v52 = vpop.f32.mrb[181].mxu0  ;;  %v3686_v53 = vadd.f32 %v3685_v40, %v3559_v48  ;;  %v3560_v54 = vmul.f32 %v3432_v47, %v3304_v49  ;;  %v2930_v55 = vadd.f32 %v2929_v51, %v1648_v50  ;;  %v2931_v56 = vpop.f32.mrb[181].mxu1 }
 0x283   : > { %v1651_v57 = vpop.f32.mrb[182].mxu0  ;;  %v2932_v58 = vpop.f32.mrb[182].mxu1 }
 0x284   : > { %v1653_v59 = vpop.f32.mrb[183].mxu0  ;;  %v3687_v60 = vadd.f32 %v3686_v53, %v3560_v54  ;;  %v3177_v61 = vadd.f32 %v5299_v16, %v2930_v55  ;;  %v2933_v62 = vadd.f32 %v2932_v58, %v1651_v57  ;;  %v2934_v63 = vpop.f32.mrb[183].mxu1 }
 0x286   : > { %v3305_v1 = vmax.f32 %v3177_v61, 0.0  ;;  %v3178_v2 = vadd.f32 %v5299_v16, %v2933_v62  ;;  %v3439_v61 = vld [vmem:[%s5528_s3 + $0x300] sm:$0xff] }
 0x288   : > { %v3561_v4 = vmul.f32 %v3433_v0, %v3305_v1  ;;  %v3306_v5 = vmax.f32 %v3178_v2, 0.0  ;;  %v3440_v0 = vld [vmem:[%s5528_s3 + $0x308] sm:$0xff] }
 0x289   : > { %v1656_v6 = vpop.f32.mrb[184].mxu0  ;;  %v2937_v7 = vpop.f32.mrb[184].mxu1 }
 0x28a   : > { %v1658_v8 = vpop.f32.mrb[185].mxu0  ;;  %v3688_v17 = vadd.f32 %v3687_v60, %v3561_v4  ;;  %v3562_v9 = vmul.f32 %v3434_v3, %v3306_v5  ;;  %v2938_v10 = vadd.f32 %v2937_v7, %v1656_v6  ;;  %v2939_v11 = vpop.f32.mrb[185].mxu1 }
 0x28b   : > { %v1659_v12 = vpop.f32.mrb[186].mxu0  ;;  %v2940_v13 = vpop.f32.mrb[186].mxu1 }
 0x28c   : > { %v1661_v14 = vpop.f32.mrb[187].mxu0  ;;  %v3689_v15 = vadd.f32 %v3688_v17, %v3562_v9  ;;  %v3179_v18 = vadd.f32 %v5299_v16, %v2938_v10  ;;  %v2941_v19 = vadd.f32 %v2940_v13, %v1659_v12  ;;  %v2942_v20 = vpop.f32.mrb[187].mxu1 }
 0x28e   : > { %v3307_v22 = vmax.f32 %v3179_v18, 0.0  ;;  %v3180_v23 = vadd.f32 %v5299_v16, %v2941_v19  ;;  %v3441_v18 = vld [vmem:[%s5528_s3 + $0x310] sm:$0xff] }
 0x290   : > { %v3563_v25 = vmul.f32 %v3435_v21, %v3307_v22  ;;  %v3308_v26 = vmax.f32 %v3180_v23, 0.0  ;;  %v3442_v21 = vld [vmem:[%s5528_s3 + $0x318] sm:$0xff] }
 0x291   : > { %v1664_v27 = vpop.f32.mrb[188].mxu0  ;;  %v2945_v28 = vpop.f32.mrb[188].mxu1 }
 0x292   : > { %v1666_v29 = vpop.f32.mrb[189].mxu0  ;;  %v3690_v30 = vadd.f32 %v3689_v15, %v3563_v25  ;;  %v3564_v31 = vmul.f32 %v3436_v24, %v3308_v26  ;;  %v2946_v32 = vadd.f32 %v2945_v28, %v1664_v27  ;;  %v2947_v33 = vpop.f32.mrb[189].mxu1 }
 0x293   : > { %v1667_v34 = vpop.f32.mrb[190].mxu0  ;;  %v2948_v35 = vpop.f32.mrb[190].mxu1 }
 0x294   : > { %v1669_v36 = vpop.f32.mrb[191].mxu0  ;;  %v3691_v37 = vadd.f32 %v3690_v30, %v3564_v31  ;;  %v3181_v38 = vadd.f32 %v5299_v16, %v2946_v32  ;;  %v2949_v39 = vadd.f32 %v2948_v35, %v1667_v34  ;;  %v2950_v40 = vpop.f32.mrb[191].mxu1 }
 0x296   : > { %v3309_v42 = vmax.f32 %v3181_v38, 0.0  ;;  %v3182_v43 = vadd.f32 %v5299_v16, %v2949_v39  ;;  %v3443_v38 = vld [vmem:[%s5528_s3 + $0x320] sm:$0xff] }
 0x298   : > { %v3565_v45 = vmul.f32 %v3437_v41, %v3309_v42  ;;  %v3310_v46 = vmax.f32 %v3182_v43, 0.0  ;;  %v3444_v41 = vld [vmem:[%s5528_s3 + $0x328] sm:$0xff] }
 0x299   : > { %v1672_v47 = vpop.f32.mrb[192].mxu0  ;;  %v2953_v48 = vpop.f32.mrb[192].mxu1 }
 0x29a   : > { %v1674_v49 = vpop.f32.mrb[193].mxu0  ;;  %v3692_v50 = vadd.f32 %v3691_v37, %v3565_v45  ;;  %v3566_v51 = vmul.f32 %v3438_v44, %v3310_v46  ;;  %v2954_v52 = vadd.f32 %v2953_v48, %v1672_v47  ;;  %v2955_v53 = vpop.f32.mrb[193].mxu1 }
 0x29b   : > { %v1675_v54 = vpop.f32.mrb[194].mxu0  ;;  %v2956_v55 = vpop.f32.mrb[194].mxu1 }
 0x29c   : > { %v1677_v56 = vpop.f32.mrb[195].mxu0  ;;  %v3693_v57 = vadd.f32 %v3692_v50, %v3566_v51  ;;  %v3183_v58 = vadd.f32 %v5299_v16, %v2954_v52  ;;  %v2957_v59 = vadd.f32 %v2956_v55, %v1675_v54  ;;  %v2958_v60 = vpop.f32.mrb[195].mxu1 }
 0x29e   : > { %v3311_v62 = vmax.f32 %v3183_v58, 0.0  ;;  %v3184_v63 = vadd.f32 %v5299_v16, %v2957_v59  ;;  %v3445_v58 = vld [vmem:[%s5528_s3 + $0x330] sm:$0xff] }
 0x2a0   : > { %v3567_v1 = vmul.f32 %v3439_v61, %v3311_v62  ;;  %v3312_v2 = vmax.f32 %v3184_v63, 0.0  ;;  %v3446_v61 = vld [vmem:[%s5528_s3 + $0x338] sm:$0xff] }
 0x2a1   : > { %v1680_v3 = vpop.f32.mrb[196].mxu0  ;;  %v2961_v4 = vpop.f32.mrb[196].mxu1 }
 0x2a2   : > { %v1682_v5 = vpop.f32.mrb[197].mxu0  ;;  %v3694_v6 = vadd.f32 %v3693_v57, %v3567_v1  ;;  %v3568_v7 = vmul.f32 %v3440_v0, %v3312_v2  ;;  %v2962_v8 = vadd.f32 %v2961_v4, %v1680_v3  ;;  %v2963_v17 = vpop.f32.mrb[197].mxu1 }
 0x2a3   : > { %v1683_v9 = vpop.f32.mrb[198].mxu0  ;;  %v2964_v10 = vpop.f32.mrb[198].mxu1 }
 0x2a4   : > { %v1685_v11 = vpop.f32.mrb[199].mxu0  ;;  %v3695_v12 = vadd.f32 %v3694_v6, %v3568_v7  ;;  %v3185_v13 = vadd.f32 %v5299_v16, %v2962_v8  ;;  %v2965_v14 = vadd.f32 %v2964_v10, %v1683_v9  ;;  %v2966_v15 = vpop.f32.mrb[199].mxu1 }
 0x2a6   : > { %v3313_v19 = vmax.f32 %v3185_v13, 0.0  ;;  %v3186_v20 = vadd.f32 %v5299_v16, %v2965_v14  ;;  %v3447_v13 = vld [vmem:[%s5528_s3 + $0x340] sm:$0xff] }
 0x2a8   : > { %v3569_v22 = vmul.f32 %v3441_v18, %v3313_v19  ;;  %v3314_v23 = vmax.f32 %v3186_v20, 0.0  ;;  %v3448_v18 = vld [vmem:[%s5528_s3 + $0x348] sm:$0xff] }
 0x2a9   : > { %v1688_v24 = vpop.f32.mrb[200].mxu0  ;;  %v2969_v25 = vpop.f32.mrb[200].mxu1 }
 0x2aa   : > { %v1690_v26 = vpop.f32.mrb[201].mxu0  ;;  %v3696_v27 = vadd.f32 %v3695_v12, %v3569_v22  ;;  %v3570_v28 = vmul.f32 %v3442_v21, %v3314_v23  ;;  %v2970_v29 = vadd.f32 %v2969_v25, %v1688_v24  ;;  %v2971_v30 = vpop.f32.mrb[201].mxu1 }
 0x2ab   : > { %v1691_v31 = vpop.f32.mrb[202].mxu0  ;;  %v2972_v32 = vpop.f32.mrb[202].mxu1 }
 0x2ac   : > { %v1693_v33 = vpop.f32.mrb[203].mxu0  ;;  %v3697_v34 = vadd.f32 %v3696_v27, %v3570_v28  ;;  %v3187_v35 = vadd.f32 %v5299_v16, %v2970_v29  ;;  %v2973_v36 = vadd.f32 %v2972_v32, %v1691_v31  ;;  %v2974_v37 = vpop.f32.mrb[203].mxu1 }
 0x2ae   : > { %v3315_v39 = vmax.f32 %v3187_v35, 0.0  ;;  %v3188_v40 = vadd.f32 %v5299_v16, %v2973_v36  ;;  %v3449_v35 = vld [vmem:[%s5528_s3 + $0x350] sm:$0xff] }
 0x2b0   : > { %v3571_v42 = vmul.f32 %v3443_v38, %v3315_v39  ;;  %v3316_v43 = vmax.f32 %v3188_v40, 0.0  ;;  %v3450_v38 = vld [vmem:[%s5528_s3 + $0x358] sm:$0xff] }
 0x2b1   : > { %v1696_v44 = vpop.f32.mrb[204].mxu0  ;;  %v2977_v45 = vpop.f32.mrb[204].mxu1 }
 0x2b2   : > { %v1698_v46 = vpop.f32.mrb[205].mxu0  ;;  %v3698_v47 = vadd.f32 %v3697_v34, %v3571_v42  ;;  %v3572_v48 = vmul.f32 %v3444_v41, %v3316_v43  ;;  %v2978_v49 = vadd.f32 %v2977_v45, %v1696_v44  ;;  %v2979_v50 = vpop.f32.mrb[205].mxu1 }
 0x2b3   : > { %v1699_v51 = vpop.f32.mrb[206].mxu0  ;;  %v2980_v52 = vpop.f32.mrb[206].mxu1 }
 0x2b4   : > { %v1701_v53 = vpop.f32.mrb[207].mxu0  ;;  %v3699_v54 = vadd.f32 %v3698_v47, %v3572_v48  ;;  %v3189_v55 = vadd.f32 %v5299_v16, %v2978_v49  ;;  %v2981_v56 = vadd.f32 %v2980_v52, %v1699_v51  ;;  %v2982_v57 = vpop.f32.mrb[207].mxu1 }
 0x2b6   : > { %v3317_v59 = vmax.f32 %v3189_v55, 0.0  ;;  %v3190_v60 = vadd.f32 %v5299_v16, %v2981_v56  ;;  %v3451_v55 = vld [vmem:[%s5528_s3 + $0x360] sm:$0xff] }
 0x2b8   : > { %v3573_v62 = vmul.f32 %v3445_v58, %v3317_v59  ;;  %v3318_v63 = vmax.f32 %v3190_v60, 0.0  ;;  %v3452_v58 = vld [vmem:[%s5528_s3 + $0x368] sm:$0xff] }
 0x2b9   : > { %v1704_v0 = vpop.f32.mrb[208].mxu0  ;;  %v2985_v1 = vpop.f32.mrb[208].mxu1 }
 0x2ba   : > { %v1706_v2 = vpop.f32.mrb[209].mxu0  ;;  %v3700_v3 = vadd.f32 %v3699_v54, %v3573_v62  ;;  %v3574_v4 = vmul.f32 %v3446_v61, %v3318_v63  ;;  %v2986_v5 = vadd.f32 %v2985_v1, %v1704_v0  ;;  %v2987_v6 = vpop.f32.mrb[209].mxu1 }
 0x2bb   : > { %v1707_v7 = vpop.f32.mrb[210].mxu0  ;;  %v2988_v8 = vpop.f32.mrb[210].mxu1 }
 0x2bc   : > { %v1709_v17 = vpop.f32.mrb[211].mxu0  ;;  %v3701_v9 = vadd.f32 %v3700_v3, %v3574_v4  ;;  %v3191_v10 = vadd.f32 %v5299_v16, %v2986_v5  ;;  %v2989_v11 = vadd.f32 %v2988_v8, %v1707_v7  ;;  %v2990_v12 = vpop.f32.mrb[211].mxu1 }
 0x2be   : > { %v3319_v14 = vmax.f32 %v3191_v10, 0.0  ;;  %v3192_v15 = vadd.f32 %v5299_v16, %v2989_v11  ;;  %v3453_v10 = vld [vmem:[%s5528_s3 + $0x370] sm:$0xff] }
 0x2c0   : > { %v3575_v19 = vmul.f32 %v3447_v13, %v3319_v14  ;;  %v3320_v20 = vmax.f32 %v3192_v15, 0.0  ;;  %v3454_v13 = vld [vmem:[%s5528_s3 + $0x378] sm:$0xff] }
 0x2c1   : > { %v1712_v21 = vpop.f32.mrb[212].mxu0  ;;  %v2993_v22 = vpop.f32.mrb[212].mxu1 }
 0x2c2   : > { %v1714_v23 = vpop.f32.mrb[213].mxu0  ;;  %v3702_v24 = vadd.f32 %v3701_v9, %v3575_v19  ;;  %v3576_v25 = vmul.f32 %v3448_v18, %v3320_v20  ;;  %v2994_v26 = vadd.f32 %v2993_v22, %v1712_v21  ;;  %v2995_v27 = vpop.f32.mrb[213].mxu1 }
 0x2c3   : > { %v1715_v28 = vpop.f32.mrb[214].mxu0  ;;  %v2996_v29 = vpop.f32.mrb[214].mxu1 }
 0x2c4   : > { %v1717_v30 = vpop.f32.mrb[215].mxu0  ;;  %v3703_v31 = vadd.f32 %v3702_v24, %v3576_v25  ;;  %v3193_v32 = vadd.f32 %v5299_v16, %v2994_v26  ;;  %v2997_v33 = vadd.f32 %v2996_v29, %v1715_v28  ;;  %v2998_v34 = vpop.f32.mrb[215].mxu1 }
 0x2c6   : > { %v3321_v36 = vmax.f32 %v3193_v32, 0.0  ;;  %v3194_v37 = vadd.f32 %v5299_v16, %v2997_v33  ;;  %v3455_v32 = vld [vmem:[%s5528_s3 + $0x380] sm:$0xff] }
 0x2c8   : > { %v3577_v39 = vmul.f32 %v3449_v35, %v3321_v36  ;;  %v3322_v40 = vmax.f32 %v3194_v37, 0.0  ;;  %v3456_v35 = vld [vmem:[%s5528_s3 + $0x388] sm:$0xff] }
 0x2c9   : > { %v1720_v41 = vpop.f32.mrb[216].mxu0  ;;  %v3001_v42 = vpop.f32.mrb[216].mxu1 }
 0x2ca   : > { %v1722_v43 = vpop.f32.mrb[217].mxu0  ;;  %v3704_v44 = vadd.f32 %v3703_v31, %v3577_v39  ;;  %v3578_v45 = vmul.f32 %v3450_v38, %v3322_v40  ;;  %v3002_v46 = vadd.f32 %v3001_v42, %v1720_v41  ;;  %v3003_v47 = vpop.f32.mrb[217].mxu1 }
 0x2cb   : > { %v1723_v48 = vpop.f32.mrb[218].mxu0  ;;  %v3004_v49 = vpop.f32.mrb[218].mxu1 }
 0x2cc   : > { %v1725_v50 = vpop.f32.mrb[219].mxu0  ;;  %v3705_v51 = vadd.f32 %v3704_v44, %v3578_v45  ;;  %v3195_v52 = vadd.f32 %v5299_v16, %v3002_v46  ;;  %v3005_v53 = vadd.f32 %v3004_v49, %v1723_v48  ;;  %v3006_v54 = vpop.f32.mrb[219].mxu1 }
 0x2ce   : > { %v3323_v56 = vmax.f32 %v3195_v52, 0.0  ;;  %v3196_v57 = vadd.f32 %v5299_v16, %v3005_v53  ;;  %v3457_v52 = vld [vmem:[%s5528_s3 + $0x390] sm:$0xff] }
 0x2d0   : > { %v3579_v59 = vmul.f32 %v3451_v55, %v3323_v56  ;;  %v3324_v60 = vmax.f32 %v3196_v57, 0.0  ;;  %v3458_v55 = vld [vmem:[%s5528_s3 + $0x398] sm:$0xff] }
 0x2d1   : > { %v1728_v61 = vpop.f32.mrb[220].mxu0  ;;  %v3009_v62 = vpop.f32.mrb[220].mxu1 }
 0x2d2   : > { %v1730_v63 = vpop.f32.mrb[221].mxu0  ;;  %v3706_v0 = vadd.f32 %v3705_v51, %v3579_v59  ;;  %v3580_v1 = vmul.f32 %v3452_v58, %v3324_v60  ;;  %v3010_v2 = vadd.f32 %v3009_v62, %v1728_v61  ;;  %v3011_v3 = vpop.f32.mrb[221].mxu1 }
 0x2d3   : > { %v1731_v4 = vpop.f32.mrb[222].mxu0  ;;  %v3012_v5 = vpop.f32.mrb[222].mxu1 }
 0x2d4   : > { %v1733_v6 = vpop.f32.mrb[223].mxu0  ;;  %v3707_v7 = vadd.f32 %v3706_v0, %v3580_v1  ;;  %v3197_v8 = vadd.f32 %v5299_v16, %v3010_v2  ;;  %v3013_v17 = vadd.f32 %v3012_v5, %v1731_v4  ;;  %v3014_v9 = vpop.f32.mrb[223].mxu1 }
 0x2d6   : > { %v3325_v11 = vmax.f32 %v3197_v8, 0.0  ;;  %v3198_v12 = vadd.f32 %v5299_v16, %v3013_v17  ;;  %v3459_v8 = vld [vmem:[%s5528_s3 + $0x3a0] sm:$0xff] }
 0x2d8   : > { %v3581_v14 = vmul.f32 %v3453_v10, %v3325_v11  ;;  %v3326_v15 = vmax.f32 %v3198_v12, 0.0  ;;  %v3460_v10 = vld [vmem:[%s5528_s3 + $0x3a8] sm:$0xff] }
 0x2d9   : > { %v1736_v18 = vpop.f32.mrb[224].mxu0  ;;  %v3017_v19 = vpop.f32.mrb[224].mxu1 }
 0x2da   : > { %v1738_v20 = vpop.f32.mrb[225].mxu0  ;;  %v3708_v21 = vadd.f32 %v3707_v7, %v3581_v14  ;;  %v3582_v22 = vmul.f32 %v3454_v13, %v3326_v15  ;;  %v3018_v23 = vadd.f32 %v3017_v19, %v1736_v18  ;;  %v3019_v24 = vpop.f32.mrb[225].mxu1 }
 0x2db   : > { %v1739_v25 = vpop.f32.mrb[226].mxu0  ;;  %v3020_v26 = vpop.f32.mrb[226].mxu1 }
 0x2dc   : > { %v1741_v27 = vpop.f32.mrb[227].mxu0  ;;  %v3709_v28 = vadd.f32 %v3708_v21, %v3582_v22  ;;  %v3199_v29 = vadd.f32 %v5299_v16, %v3018_v23  ;;  %v3021_v30 = vadd.f32 %v3020_v26, %v1739_v25  ;;  %v3022_v31 = vpop.f32.mrb[227].mxu1 }
 0x2de   : > { %v3327_v33 = vmax.f32 %v3199_v29, 0.0  ;;  %v3200_v34 = vadd.f32 %v5299_v16, %v3021_v30  ;;  %v3461_v29 = vld [vmem:[%s5528_s3 + $0x3b0] sm:$0xff] }
 0x2e0   : > { %v3583_v36 = vmul.f32 %v3455_v32, %v3327_v33  ;;  %v3328_v37 = vmax.f32 %v3200_v34, 0.0  ;;  %v3462_v32 = vld [vmem:[%s5528_s3 + $0x3b8] sm:$0xff] }
 0x2e1   : > { %v1744_v38 = vpop.f32.mrb[228].mxu0  ;;  %v3025_v39 = vpop.f32.mrb[228].mxu1 }
 0x2e2   : > { %v1746_v40 = vpop.f32.mrb[229].mxu0  ;;  %v3710_v41 = vadd.f32 %v3709_v28, %v3583_v36  ;;  %v3584_v42 = vmul.f32 %v3456_v35, %v3328_v37  ;;  %v3026_v43 = vadd.f32 %v3025_v39, %v1744_v38  ;;  %v3027_v44 = vpop.f32.mrb[229].mxu1 }
 0x2e3   : > { %v1747_v45 = vpop.f32.mrb[230].mxu0  ;;  %v3028_v46 = vpop.f32.mrb[230].mxu1 }
 0x2e4   : > { %v1749_v47 = vpop.f32.mrb[231].mxu0  ;;  %v3711_v48 = vadd.f32 %v3710_v41, %v3584_v42  ;;  %v3201_v49 = vadd.f32 %v5299_v16, %v3026_v43  ;;  %v3029_v50 = vadd.f32 %v3028_v46, %v1747_v45  ;;  %v3030_v51 = vpop.f32.mrb[231].mxu1 }
 0x2e6   : > { %v3329_v53 = vmax.f32 %v3201_v49, 0.0  ;;  %v3202_v54 = vadd.f32 %v5299_v16, %v3029_v50  ;;  %v3463_v49 = vld [vmem:[%s5528_s3 + $0x3c0] sm:$0xff] }
 0x2e8   : > { %v3585_v56 = vmul.f32 %v3457_v52, %v3329_v53  ;;  %v3330_v57 = vmax.f32 %v3202_v54, 0.0  ;;  %v3464_v52 = vld [vmem:[%s5528_s3 + $0x3c8] sm:$0xff] }
 0x2e9   : > { %v1752_v58 = vpop.f32.mrb[232].mxu0  ;;  %v3033_v59 = vpop.f32.mrb[232].mxu1 }
 0x2ea   : > { %v1754_v60 = vpop.f32.mrb[233].mxu0  ;;  %v3712_v61 = vadd.f32 %v3711_v48, %v3585_v56  ;;  %v3586_v62 = vmul.f32 %v3458_v55, %v3330_v57  ;;  %v3034_v63 = vadd.f32 %v3033_v59, %v1752_v58  ;;  %v3035_v0 = vpop.f32.mrb[233].mxu1 }
 0x2eb   : > { %v1755_v1 = vpop.f32.mrb[234].mxu0  ;;  %v3036_v2 = vpop.f32.mrb[234].mxu1 }
 0x2ec   : > { %v1757_v3 = vpop.f32.mrb[235].mxu0  ;;  %v3713_v4 = vadd.f32 %v3712_v61, %v3586_v62  ;;  %v3203_v5 = vadd.f32 %v5299_v16, %v3034_v63  ;;  %v3037_v6 = vadd.f32 %v3036_v2, %v1755_v1  ;;  %v3038_v7 = vpop.f32.mrb[235].mxu1 }
 0x2ee   : > { %v3331_v17 = vmax.f32 %v3203_v5, 0.0  ;;  %v3204_v9 = vadd.f32 %v5299_v16, %v3037_v6  ;;  %v3465_v5 = vld [vmem:[%s5528_s3 + $0x3d0] sm:$0xff] }
 0x2f0   : > { %v3587_v11 = vmul.f32 %v3459_v8, %v3331_v17  ;;  %v3332_v12 = vmax.f32 %v3204_v9, 0.0  ;;  %v3466_v8 = vld [vmem:[%s5528_s3 + $0x3d8] sm:$0xff] }
 0x2f1   : > { %v1760_v13 = vpop.f32.mrb[236].mxu0  ;;  %v3041_v14 = vpop.f32.mrb[236].mxu1 }
 0x2f2   : > { %v1762_v15 = vpop.f32.mrb[237].mxu0  ;;  %v3714_v18 = vadd.f32 %v3713_v4, %v3587_v11  ;;  %v3588_v19 = vmul.f32 %v3460_v10, %v3332_v12  ;;  %v3042_v20 = vadd.f32 %v3041_v14, %v1760_v13  ;;  %v3043_v21 = vpop.f32.mrb[237].mxu1 }
 0x2f3   : > { %v1763_v22 = vpop.f32.mrb[238].mxu0  ;;  %v3044_v23 = vpop.f32.mrb[238].mxu1 }
 0x2f4   : > { %v1765_v24 = vpop.f32.mrb[239].mxu0  ;;  %v3715_v25 = vadd.f32 %v3714_v18, %v3588_v19  ;;  %v3205_v26 = vadd.f32 %v5299_v16, %v3042_v20  ;;  %v3045_v27 = vadd.f32 %v3044_v23, %v1763_v22  ;;  %v3046_v28 = vpop.f32.mrb[239].mxu1 }
 0x2f6   : > { %v3333_v30 = vmax.f32 %v3205_v26, 0.0  ;;  %v3206_v31 = vadd.f32 %v5299_v16, %v3045_v27  ;;  %v3467_v26 = vld [vmem:[%s5528_s3 + $0x3e0] sm:$0xff] }
 0x2f8   : > { %v3589_v33 = vmul.f32 %v3461_v29, %v3333_v30  ;;  %v3334_v34 = vmax.f32 %v3206_v31, 0.0  ;;  %v3468_v29 = vld [vmem:[%s5528_s3 + $0x3e8] sm:$0xff] }
 0x2f9   : > { %v1768_v35 = vpop.f32.mrb[240].mxu0  ;;  %v3049_v36 = vpop.f32.mrb[240].mxu1 }
 0x2fa   : > { %v1770_v37 = vpop.f32.mrb[241].mxu0  ;;  %v3716_v38 = vadd.f32 %v3715_v25, %v3589_v33  ;;  %v3590_v39 = vmul.f32 %v3462_v32, %v3334_v34  ;;  %v3050_v40 = vadd.f32 %v3049_v36, %v1768_v35  ;;  %v3051_v41 = vpop.f32.mrb[241].mxu1 }
 0x2fb   : > { %v1771_v42 = vpop.f32.mrb[242].mxu0  ;;  %v3052_v43 = vpop.f32.mrb[242].mxu1 }
 0x2fc   : > { %v1773_v44 = vpop.f32.mrb[243].mxu0  ;;  %v3717_v45 = vadd.f32 %v3716_v38, %v3590_v39  ;;  %v3207_v46 = vadd.f32 %v5299_v16, %v3050_v40  ;;  %v3053_v47 = vadd.f32 %v3052_v43, %v1771_v42  ;;  %v3054_v48 = vpop.f32.mrb[243].mxu1 }
 0x2fe   : > { %v3335_v50 = vmax.f32 %v3207_v46, 0.0  ;;  %v3208_v51 = vadd.f32 %v5299_v16, %v3053_v47  ;;  %v3469_v46 = vld [vmem:[%s5528_s3 + $0x3f0] sm:$0xff] }
 0x300   : > { %v3591_v53 = vmul.f32 %v3463_v49, %v3335_v50  ;;  %v3336_v54 = vmax.f32 %v3208_v51, 0.0  ;;  %v3470_v49 = vld [vmem:[%s5528_s3 + $0x3f8] sm:$0xff] }
 0x301   : > { %v1776_v55 = vpop.f32.mrb[244].mxu0  ;;  %v3057_v56 = vpop.f32.mrb[244].mxu1 }
 0x302   : > { %v1778_v57 = vpop.f32.mrb[245].mxu0  ;;  %v3718_v58 = vadd.f32 %v3717_v45, %v3591_v53  ;;  %v3592_v59 = vmul.f32 %v3464_v52, %v3336_v54  ;;  %v3058_v60 = vadd.f32 %v3057_v56, %v1776_v55  ;;  %v3059_v61 = vpop.f32.mrb[245].mxu1 }
 0x303   : > { %v1779_v62 = vpop.f32.mrb[246].mxu0  ;;  %v3060_v63 = vpop.f32.mrb[246].mxu1 }
 0x304   : > { %v1781_v0 = vpop.f32.mrb[247].mxu0  ;;  %v3719_v1 = vadd.f32 %v3718_v58, %v3592_v59  ;;  %v3209_v2 = vadd.f32 %v5299_v16, %v3058_v60  ;;  %v3061_v3 = vadd.f32 %v3060_v63, %v1779_v62  ;;  %v3062_v4 = vpop.f32.mrb[247].mxu1 }
 0x306   : > { %v3337_v6 = vmax.f32 %v3209_v2, 0.0  ;;  %v3210_v7 = vadd.f32 %v5299_v16, %v3061_v3 }
 0x308   : > { %v3593_v17 = vmul.f32 %v3465_v5, %v3337_v6  ;;  %v3338_v9 = vmax.f32 %v3210_v7, 0.0 }
 0x309   : > { %v1784_v10 = vpop.f32.mrb[248].mxu0  ;;  %v3065_v11 = vpop.f32.mrb[248].mxu1 }
 0x30a   : > { %v1786_v12 = vpop.f32.mrb[249].mxu0  ;;  %v3720_v13 = vadd.f32 %v3719_v1, %v3593_v17  ;;  %v3594_v14 = vmul.f32 %v3466_v8, %v3338_v9  ;;  %v3066_v15 = vadd.f32 %v3065_v11, %v1784_v10  ;;  %v3067_v18 = vpop.f32.mrb[249].mxu1 }
 0x30b   : > { %v1787_v19 = vpop.f32.mrb[250].mxu0  ;;  %v3068_v20 = vpop.f32.mrb[250].mxu1 }
 0x30c   : > { %v1789_v21 = vpop.f32.mrb[251].mxu0  ;;  %v3721_v22 = vadd.f32 %v3720_v13, %v3594_v14  ;;  %v3211_v23 = vadd.f32 %v5299_v16, %v3066_v15  ;;  %v3069_v24 = vadd.f32 %v3068_v20, %v1787_v19  ;;  %v3070_v25 = vpop.f32.mrb[251].mxu1 }
 0x30e   : > { %v3339_v27 = vmax.f32 %v3211_v23, 0.0  ;;  %v3212_v28 = vadd.f32 %v5299_v16, %v3069_v24  ;;  %v4551_v16 = vld [vmem:[%s5527_s2] ss:$0 sm:$0xff] }
 0x310   : > { %v3595_v30 = vmul.f32 %v3467_v26, %v3339_v27  ;;  %v3340_v31 = vmax.f32 %v3212_v28, 0.0 }
 0x311   : > { %v1792_v32 = vpop.f32.mrb[252].mxu0  ;;  %v3073_v33 = vpop.f32.mrb[252].mxu1 }
 0x312   : > { %v1794_v34 = vpop.f32.mrb[253].mxu0  ;;  %v3596_v35 = vmul.f32 %v3468_v29, %v3340_v31  ;;  %v3074_v36 = vadd.f32 %v3073_v33, %v1792_v32  ;;  %v3075_v37 = vpop.f32.mrb[253].mxu1  ;;  %v3722_v39 = vadd.f32 %v3721_v22, %v3595_v30 }
 0x313   : > { %v1795_v38 = vpop.f32.mrb[254].mxu0  ;;  %v3076_v40 = vpop.f32.mrb[254].mxu1 }
 0x314   : > { %v1797_v41 = vpop.f32.mrb[255].mxu0  ;;  %v3213_v42 = vadd.f32 %v4551_v16, %v3074_v36  ;;  %v3077_v43 = vadd.f32 %v3076_v40, %v1795_v38  ;;  %v3078_v44 = vpop.f32.mrb[255].mxu1  ;;  %v3723_v45 = vadd.f32 %v3722_v39, %v3596_v35 }
 0x316   : > { %v3341_v47 = vmax.f32 %v3213_v42, 0.0  ;;  %v3214_v48 = vadd.f32 %v4551_v16, %v3077_v43 }
 0x318   : > { %v3342_v50 = vmax.f32 %v3214_v48, 0.0  ;;  %v3597_v51 = vmul.f32 %v3469_v46, %v3341_v47 }
 0x31a   : > { %v3598_v52 = vmul.f32 %v3470_v49, %v3342_v50  ;;  %v3724_v53 = vadd.f32 %v3723_v45, %v3597_v51 }
 0x31c   : > { %v3725_v54 = vadd.f32 %v3724_v53, %v3598_v52 }
 0x31e   : > { %3726 = vadd.xlane.f32.xlu0 %v3725_v54 }
 0x3ab   : > { %v3727_v55 = vpop.xlane.xlu0 %3726 }
 0x3ac   : > { %v3728_v56 = vrot.slane %v3727_v55, 4 }
 0x3ae   : > { %v3729_v57 = vadd.f32 %v3728_v56, %v3727_v55 }
 0x3b0   : > { %v3730_v58 = vrot.slane %v3729_v57, 2 }
 0x3b2   : > { %v3731_v59 = vadd.f32 %v3730_v58, %v3729_v57 }
 0x3b4   : > { %v3732_v60 = vrot.slane %v3731_v59, 1 }
 0x3b6   : > { %v3733_v61 = vadd.f32 %v3732_v60, %v3731_v59 }
 0x3b8   : > { %4122 = vpush %v3733_v61 }
 0x3e9   : > { %s4123_s24 = spop %4122 }
 0x3ea   : > { %v3735_v62 = vstv %s4123_s24 }
 0x3eb   : > { %3736 = vst [vmem:[%s195_s23] sm:$0xff] %v3735_v62 }
 0x3ec PF: > { %s14_s15 = sadd.s32 1, %s4558_s15  }
 0x3ed   : > { %p11_p4 = scmp.ge.s32.totalorder %s14_s15, 4  }
 0x3ef   :  { %13 = sbr.rel (!%p11_p4) target bundleno = 1 (0x1), region = 67 }

</bundles_post_ra>
